<compile_context>
chip_gen: v5e
topology: v5e:2x2
jax: 0.10.0
libtpu: 0.0.40
codegen_flags: <defaults>
</compile_context>

<pallas_src>
import functools

import jax
import jax.numpy as jnp
from jax.experimental import pallas as pl
from jax.experimental.pallas import tpu as pltpu


# Architecture constants from the PyTorch module.
N_K1, N_K2 = 16, 32        # conv1 / conv2 output channels
K1, S1 = 8, 8              # conv1: 8x8 kernel, stride 8 (non-overlapping)
K2, S2 = 4, 2              # conv2: 4x4 kernel, stride 2 (overlapping)
HIDDEN = 256               # L1 width
POS_PER_ROW = 8            # conv1 positions packed per matmul row (sublane tile)


def conv_out(n, k, s):
    return (n - k) // s + 1


# ---------------------------------------------------------------------------
# Fused kernel: one grid step == one block of `block_b` samples.
# ---------------------------------------------------------------------------
def _net_kernel(p1_ref, w1_ref, b1_ref, w2_ref, b2_ref,
                l1w_ref, lb1_ref, l2w_ref, lb2_ref, o_ref, *, groups, block_b):
    f32 = jnp.float32

    # conv1: ONE matmul.  Rows are (position-group, sample); the block-diagonal
    # weight makes the 128 output lanes = 8 conv1 positions x 16 channels.
    x = p1_ref[...].reshape(groups * block_b, -1)      # free merge (block_b % 8 == 0)
    y1 = jnp.dot(x, w1_ref[...], preferred_element_type=f32)
    y1 = jnp.maximum(y1 + b1_ref[...], 0.0)            # (groups*B, 128) f32

    # Lane-concatenate the position groups -> per-sample conv1 feature row
    # (B, groups*128).  Every slice is sublane-tile aligned and a full lane
    # tile, so this is pure tile placement (no relayout).
    y1c = jnp.concatenate(
        [y1[g * block_b:(g + 1) * block_b, :] for g in range(groups)], axis=1)

    # conv2 (its im2col gather is folded into w2_ref at init): ONE matmul.
    z2 = jnp.dot(y1c.astype(jnp.bfloat16), w2_ref[...], preferred_element_type=f32)
    z2 = jnp.maximum(z2 + b2_ref[...], 0.0)            # (B, n_pos*32) f32

    # L1 (PyTorch's NCHW view(N,-1) permutation folded into l1w_ref): ONE matmul.
    h = jnp.dot(z2.astype(jnp.bfloat16), l1w_ref[...], preferred_element_type=f32)
    h = jnp.maximum(h + lb1_ref[...], 0.0)             # (B, 256) f32

    # L2 + softmax(dim=1), all f32.
    logits = jnp.dot(h, l2w_ref[...], preferred_element_type=f32) + lb2_ref[...]
    m = jnp.max(logits, axis=1, keepdims=True)
    e = jnp.exp(logits - m)
    o_ref[...] = e / jnp.sum(e, axis=1, keepdims=True)


def _pick_block(n):
    """Samples per grid step: multiple of 8, <= 64, >= 2 grid steps if possible."""
    npad8 = ((n + 7) // 8) * 8
    b = min(64, npad8)                       # B=64 keeps double-buffered p1 small
    if npad8 > 8 and npad8 // b < 2:         # keep both v7x TensorCores busy
        b = max(8, ((npad8 // 2 + 7) // 8) * 8)
    return b


@jax.jit
def net_forward(x, kp):
    N, C, H, W = x.shape
    OH1, OW1 = conv_out(H, K1, S1), conv_out(W, K1, S1)
    P1 = OH1 * OW1
    groups = (P1 + POS_PER_ROW - 1) // POS_PER_ROW
    P1pad = groups * POS_PER_ROW
    CF = C * K1 * K1
    D_out = kp["lw2"].shape[1]

    B = _pick_block(N)
    Npad = pl.cdiv(N, B) * B

    # conv1 im2col: stride == kernel, so it is a pure crop + reshape/transpose
    # (no gather).  Emitted in bf16, 8 positions per row, group-major layout.
    xc = x[:, :, :OH1 * S1, :OW1 * S1]
    if Npad != N:   # pad the batch tail with zero samples (sliced off below)
        xc = jnp.concatenate(
            [xc, jnp.zeros((Npad - N,) + xc.shape[1:], xc.dtype)], axis=0)
    p1 = (xc.reshape(Npad, C, OH1, K1, OW1, K1)
            .transpose(0, 2, 4, 1, 3, 5)
            .reshape(Npad, P1, CF)
            .astype(jnp.bfloat16))
    p1 = jnp.pad(p1, ((0, 0), (0, P1pad - P1), (0, 0)))
    p1 = p1.reshape(Npad, groups, POS_PER_ROW * CF).transpose(1, 0, 2)  # (G,Npad,8*CF)

    weights = (kp["w1bd"], kp["b1t"], kp["w2f"], kp["b2t"],
               kp["l1w"], kp["lb1"], kp["lw2"], kp["lb2"])

    def const_spec(a):
        zeros = (0,) * a.ndim                # constant index map: VMEM-resident,
        return pl.BlockSpec(a.shape, lambda n: zeros)   # never re-DMA'd per step

    out = pl.pallas_call(
        functools.partial(_net_kernel, groups=groups, block_b=B),
        out_shape=jax.ShapeDtypeStruct((Npad, D_out), jnp.float32),
        grid=(Npad // B,),
        in_specs=[pl.BlockSpec((groups, B, POS_PER_ROW * CF), lambda n: (0, n, 0))]
                 + [const_spec(a) for a in weights],
        out_specs=pl.BlockSpec((B, D_out), lambda n: (n, 0)),
        compiler_params=pltpu.CompilerParams(
            dimension_semantics=("parallel",),
            vmem_limit_bytes=48 * 1024 * 1024),
    )(p1, *weights)
    return out[:N]


# ---------------------------------------------------------------------------
# One-time parameter preparation (all layout work moved out of the forward pass)
# ---------------------------------------------------------------------------
def prepare_params(params, H, W):
    OH1, OW1 = conv_out(H, K1, S1), conv_out(W, K1, S1)
    OH2, OW2 = conv_out(OH1, K2, S2), conv_out(OW1, K2, S2)
    P1 = OH1 * OW1
    groups = (P1 + POS_PER_ROW - 1) // POS_PER_ROW
    P1pad = groups * POS_PER_ROW
    n_pos = OH2 * OW2
    bf16, f32 = jnp.bfloat16, jnp.float32

    cw1, cb1 = params["cw1"], params["cb1"]
    cw2, cb2 = params["cw2"], params["cb2"]
    lw1, lb1 = params["lw1"], params["lb1"]
    lw2, lb2 = params["lw2"], params["lb2"]
    n_k1, n_k2 = cw1.shape[0], cw2.shape[0]

    # conv1 weight OIHW -> (C*K1*K1, 16); block-diagonal over 8 positions so one
    # matmul yields lanes ordered (pos_in_group, out_chan).
    w1mat = cw1.reshape(n_k1, -1).T.astype(f32)                      # (CF, 16)
    w1bd = jnp.kron(jnp.eye(POS_PER_ROW, dtype=f32), w1mat)          # (8*CF, 128)
    b1t = jnp.tile(cb1, POS_PER_ROW).reshape(1, -1)                  # (1, 128)

    # conv2 + its im2col folded into one (P1pad*16, n_pos*32) matrix:
    # row p*16+c1 holds, for every (out_pos, out_chan), the conv2 weight that
    # multiplies conv1 activation (position p, channel c1).  Pad rows are zero.
    kh = jnp.arange(K2)[:, None, None, None]
    kw = jnp.arange(K2)[None, :, None, None]
    h2 = jnp.arange(OH2)[None, None, :, None]
    w2 = jnp.arange(OW2)[None, None, None, :]
    q = (S2 * h2 + kh) * OW1 + (S2 * w2 + kw)                        # (K2,K2,OH2,OW2)
    oh = jax.nn.one_hot(q, P1pad, dtype=f32)                         # (K2,K2,OH2,OW2,P1pad)
    w2f = jnp.einsum("ijhwp,ocij->pchwo", oh, cw2.astype(f32))       # (P1pad,16,OH2,OW2,32)
    w2f = w2f.reshape(P1pad * n_k1, n_pos * n_k2)
    b2t = jnp.tile(cb2, n_pos).reshape(1, -1)                        # (1, n_pos*32)

    # L1 weight: fold PyTorch's (chan, h2, w2) flatten order; kernel's conv2
    # columns are (pos, chan)-ordered.
    l1w = (lw1.T.reshape(n_k2, n_pos, lw1.shape[0])
              .transpose(1, 0, 2)
              .reshape(n_pos * n_k2, lw1.shape[0]))                  # (n_pos*32, 256)

    return {
        "w1bd": w1bd.astype(bf16), "b1t": b1t.astype(f32),
        "w2f": w2f.astype(bf16),   "b2t": b2t.astype(f32),
        "l1w": l1w.astype(bf16),   "lb1": lb1.reshape(1, -1).astype(f32),
        "lw2": lw2.T.astype(f32),  "lb2": lb2.reshape(1, -1).astype(f32),
    }


# ---------------------------------------------------------------------------
# Deterministic PyTorch-style init (kept in PyTorch layouts for the reference)
# ---------------------------------------------------------------------------
def init_params(key, H, W, C_in, D_out):
    OH1, OW1 = conv_out(H, K1, S1), conv_out(W, K1, S1)
    OH2, OW2 = conv_out(OH1, K2, S2), conv_out(OW1, K2, S2)
    feat = OH2 * OW2 * N_K2

    def uni(k, shape, fan_in):
        bound = 1.0 / jnp.sqrt(fan_in)
        return jax.random.uniform(k, shape, jnp.float32, -bound, bound)

    ks = jax.random.split(key, 8)
    return {
        "cw1": uni(ks[0], (N_K1, C_in, K1, K1), C_in * K1 * K1),
        "cb1": uni(ks[1], (N_K1,), C_in * K1 * K1),
        "cw2": uni(ks[2], (N_K2, N_K1, K2, K2), N_K1 * K2 * K2),
        "cb2": uni(ks[3], (N_K2,), N_K1 * K2 * K2),
        "lw1": uni(ks[4], (HIDDEN, feat), feat),
        "lb1": uni(ks[5], (HIDDEN,), feat),
        "lw2": uni(ks[6], (D_out, HIDDEN), HIDDEN),
        "lb2": uni(ks[7], (D_out,), HIDDEN),
    }


# ---------------------------------------------------------------------------
# Pure-JAX f32 reference (semantics check against the PyTorch forward)
# ---------------------------------------------------------------------------
def ref_forward(x, params):
    dn = ("NCHW", "OIHW", "NCHW")
    y = jax.lax.conv_general_dilated(x, params["cw1"], (S1, S1), "VALID",
                                     dimension_numbers=dn)
    y = jax.nn.relu(y + params["cb1"][None, :, None, None])
    y = jax.lax.conv_general_dilated(y, params["cw2"], (S2, S2), "VALID",
                                     dimension_numbers=dn)
    y = jax.nn.relu(y + params["cb2"][None, :, None, None])
    y = y.reshape(x.shape[0], -1)
    y = jax.nn.relu(y @ params["lw1"].T + params["lb1"])
    y = y @ params["lw2"].T + params["lb2"]
    return jax.nn.softmax(y, axis=1)


if __name__ == "__main__":
    H_in, W_in, C_in, D_out, batch = 84, 84, 4, 6, 20

    key = jax.random.PRNGKey(0)
    k_x, k_p = jax.random.split(key)
    x = jax.random.uniform(k_x, (batch, C_in, H_in, W_in), jnp.float32)
    params = init_params(k_p, H_in, W_in, C_in, D_out)
    kparams = prepare_params(params, H_in, W_in)   # one-time weight/layout prep

    out = jax.block_until_ready(net_forward(x, kparams))
    ref = jax.block_until_ready(ref_forward(x, params))

    assert out.shape == (batch, D_out)
    assert bool(jnp.all(jnp.isfinite(out)))
    assert jnp.allclose(jnp.sum(out, axis=1), 1.0, atol=1e-5)
    # bf16 inputs/weights with f32 accumulation -> relaxed parity vs exact-f32 ref.
    assert jnp.allclose(out, ref, atol=2e-2, rtol=2e-2)

    print("KERNEL_OK")
</pallas_src>

<mosaic_0001>
module attributes {stable_mosaic.version = 11 : i64} {
  func.func @_net_kernel(%arg0: i32, %arg1: memref<13x16x2048xbf16, #tpu.memory_space<vmem>>, %arg2: memref<2048x128xbf16, #tpu.memory_space<vmem>>, %arg3: memref<1x128xf32, #tpu.memory_space<vmem>>, %arg4: memref<1664x512xbf16, #tpu.memory_space<vmem>>, %arg5: memref<1x512xf32, #tpu.memory_space<vmem>>, %arg6: memref<512x256xbf16, #tpu.memory_space<vmem>>, %arg7: memref<1x256xf32, #tpu.memory_space<vmem>>, %arg8: memref<256x6xf32, #tpu.memory_space<vmem>>, %arg9: memref<1x6xf32, #tpu.memory_space<vmem>>, %arg10: memref<16x6xf32, #tpu.memory_space<vmem>>) attributes {dimension_semantics = [#tpu.dimension_semantics<parallel>], iteration_bounds = array<i64: 2>, scalar_prefetch = 0 : i64, scratch_operands = 0 : i64, tpu.core_type = #tpu.core_type<tc>, window_params = [{transform_indices = @transform_0, window_bounds = array<i64: 13, 16, 2048>}, {pipeline_mode = #tpu.pipeline_mode<synchronous>, transform_indices = @transform_1, window_bounds = array<i64: 2048, 128>}, {pipeline_mode = #tpu.pipeline_mode<synchronous>, transform_indices = @transform_2, window_bounds = array<i64: 1, 128>}, {pipeline_mode = #tpu.pipeline_mode<synchronous>, transform_indices = @transform_3, window_bounds = array<i64: 1664, 512>}, {pipeline_mode = #tpu.pipeline_mode<synchronous>, transform_indices = @transform_4, window_bounds = array<i64: 1, 512>}, {pipeline_mode = #tpu.pipeline_mode<synchronous>, transform_indices = @transform_5, window_bounds = array<i64: 512, 256>}, {pipeline_mode = #tpu.pipeline_mode<synchronous>, transform_indices = @transform_6, window_bounds = array<i64: 1, 256>}, {pipeline_mode = #tpu.pipeline_mode<synchronous>, transform_indices = @transform_7, window_bounds = array<i64: 256, 6>}, {pipeline_mode = #tpu.pipeline_mode<synchronous>, transform_indices = @transform_8, window_bounds = array<i64: 1, 6>}, {transform_indices = @transform_9, window_bounds = array<i64: 16, 6>}]} {
    %c0 = arith.constant 0 : index
    %c0_0 = arith.constant 0 : index
    %c0_1 = arith.constant 0 : index
    %0 = vector.load %arg1[%c0, %c0_0, %c0_1] : memref<13x16x2048xbf16, #tpu.memory_space<vmem>>, vector<13x16x2048xbf16>
    %1 = vector.shape_cast %0 : vector<13x16x2048xbf16> to vector<208x2048xbf16>
    %c0_2 = arith.constant 0 : index
    %c0_3 = arith.constant 0 : index
    %2 = vector.load %arg2[%c0_2, %c0_3] : memref<2048x128xbf16, #tpu.memory_space<vmem>>, vector<2048x128xbf16>
    %cst = arith.constant dense<0.000000e+00> : vector<208x128xf32>
    %3 = tpu.matmul %1, %2, %cst {dimension_numbers = #tpu.dot_dimension_numbers<[1], [0], [0], [1], [0, 0, 1, 1], [], []>} : vector<208x2048xbf16>, vector<2048x128xbf16>, vector<208x128xf32> -> vector<208x128xf32>
    %c0_4 = arith.constant 0 : index
    %c0_5 = arith.constant 0 : index
    %4 = vector.load %arg3[%c0_4, %c0_5] : memref<1x128xf32, #tpu.memory_space<vmem>>, vector<1x128xf32>
    %5 = vector.broadcast %4 : vector<1x128xf32> to vector<208x128xf32>
    %6 = arith.addf %3, %5 : vector<208x128xf32>
    %cst_6 = arith.constant 0.000000e+00 : f32
    %7 = vector.broadcast %cst_6 : f32 to vector<208x128xf32>
    %8 = arith.maximumf %6, %7 : vector<208x128xf32>
    %9 = vector.extract_strided_slice %8 {offsets = [0, 0], sizes = [16, 128], strides = [1, 1]} : vector<208x128xf32> to vector<16x128xf32>
    %10 = vector.extract_strided_slice %8 {offsets = [16, 0], sizes = [16, 128], strides = [1, 1]} : vector<208x128xf32> to vector<16x128xf32>
    %11 = vector.extract_strided_slice %8 {offsets = [32, 0], sizes = [16, 128], strides = [1, 1]} : vector<208x128xf32> to vector<16x128xf32>
    %12 = vector.extract_strided_slice %8 {offsets = [48, 0], sizes = [16, 128], strides = [1, 1]} : vector<208x128xf32> to vector<16x128xf32>
    %13 = vector.extract_strided_slice %8 {offsets = [64, 0], sizes = [16, 128], strides = [1, 1]} : vector<208x128xf32> to vector<16x128xf32>
    %14 = vector.extract_strided_slice %8 {offsets = [80, 0], sizes = [16, 128], strides = [1, 1]} : vector<208x128xf32> to vector<16x128xf32>
    %15 = vector.extract_strided_slice %8 {offsets = [96, 0], sizes = [16, 128], strides = [1, 1]} : vector<208x128xf32> to vector<16x128xf32>
    %16 = vector.extract_strided_slice %8 {offsets = [112, 0], sizes = [16, 128], strides = [1, 1]} : vector<208x128xf32> to vector<16x128xf32>
    %17 = vector.extract_strided_slice %8 {offsets = [128, 0], sizes = [16, 128], strides = [1, 1]} : vector<208x128xf32> to vector<16x128xf32>
    %18 = vector.extract_strided_slice %8 {offsets = [144, 0], sizes = [16, 128], strides = [1, 1]} : vector<208x128xf32> to vector<16x128xf32>
    %19 = vector.extract_strided_slice %8 {offsets = [160, 0], sizes = [16, 128], strides = [1, 1]} : vector<208x128xf32> to vector<16x128xf32>
    %20 = vector.extract_strided_slice %8 {offsets = [176, 0], sizes = [16, 128], strides = [1, 1]} : vector<208x128xf32> to vector<16x128xf32>
    %21 = vector.extract_strided_slice %8 {offsets = [192, 0], sizes = [16, 128], strides = [1, 1]} : vector<208x128xf32> to vector<16x128xf32>
    %22 = tpu.concatenate %9, %10, %11, %12, %13, %14, %15, %16, %17, %18, %19, %20, %21 in 1 : vector<16x128xf32>, vector<16x128xf32>, vector<16x128xf32>, vector<16x128xf32>, vector<16x128xf32>, vector<16x128xf32>, vector<16x128xf32>, vector<16x128xf32>, vector<16x128xf32>, vector<16x128xf32>, vector<16x128xf32>, vector<16x128xf32>, vector<16x128xf32> -> vector<16x1664xf32>
    %23 = arith.truncf %22 : vector<16x1664xf32> to vector<16x1664xbf16>
    %c0_7 = arith.constant 0 : index
    %c0_8 = arith.constant 0 : index
    %24 = vector.load %arg4[%c0_7, %c0_8] : memref<1664x512xbf16, #tpu.memory_space<vmem>>, vector<1664x512xbf16>
    %cst_9 = arith.constant dense<0.000000e+00> : vector<16x512xf32>
    %25 = tpu.matmul %23, %24, %cst_9 {dimension_numbers = #tpu.dot_dimension_numbers<[1], [0], [0], [1], [0, 0, 1, 1], [], []>} : vector<16x1664xbf16>, vector<1664x512xbf16>, vector<16x512xf32> -> vector<16x512xf32>
    %c0_10 = arith.constant 0 : index
    %c0_11 = arith.constant 0 : index
    %26 = vector.load %arg5[%c0_10, %c0_11] : memref<1x512xf32, #tpu.memory_space<vmem>>, vector<1x512xf32>
    %27 = vector.broadcast %26 : vector<1x512xf32> to vector<16x512xf32>
    %28 = arith.addf %25, %27 : vector<16x512xf32>
    %cst_12 = arith.constant 0.000000e+00 : f32
    %29 = vector.broadcast %cst_12 : f32 to vector<16x512xf32>
    %30 = arith.maximumf %28, %29 : vector<16x512xf32>
    %31 = arith.truncf %30 : vector<16x512xf32> to vector<16x512xbf16>
    %c0_13 = arith.constant 0 : index
    %c0_14 = arith.constant 0 : index
    %32 = vector.load %arg6[%c0_13, %c0_14] : memref<512x256xbf16, #tpu.memory_space<vmem>>, vector<512x256xbf16>
    %cst_15 = arith.constant dense<0.000000e+00> : vector<16x256xf32>
    %33 = tpu.matmul %31, %32, %cst_15 {dimension_numbers = #tpu.dot_dimension_numbers<[1], [0], [0], [1], [0, 0, 1, 1], [], []>} : vector<16x512xbf16>, vector<512x256xbf16>, vector<16x256xf32> -> vector<16x256xf32>
    %c0_16 = arith.constant 0 : index
    %c0_17 = arith.constant 0 : index
    %34 = vector.load %arg7[%c0_16, %c0_17] : memref<1x256xf32, #tpu.memory_space<vmem>>, vector<1x256xf32>
    %35 = vector.broadcast %34 : vector<1x256xf32> to vector<16x256xf32>
    %36 = arith.addf %33, %35 : vector<16x256xf32>
    %cst_18 = arith.constant 0.000000e+00 : f32
    %37 = vector.broadcast %cst_18 : f32 to vector<16x256xf32>
    %38 = arith.maximumf %36, %37 : vector<16x256xf32>
    %c0_19 = arith.constant 0 : index
    %c0_20 = arith.constant 0 : index
    %39 = vector.load %arg8[%c0_19, %c0_20] : memref<256x6xf32, #tpu.memory_space<vmem>>, vector<256x6xf32>
    %cst_21 = arith.constant dense<0.000000e+00> : vector<16x6xf32>
    %40 = tpu.matmul %38, %39, %cst_21 {dimension_numbers = #tpu.dot_dimension_numbers<[1], [0], [0], [1], [0, 0, 1, 1], [], []>} : vector<16x256xf32>, vector<256x6xf32>, vector<16x6xf32> -> vector<16x6xf32>
    %c0_22 = arith.constant 0 : index
    %c0_23 = arith.constant 0 : index
    %41 = vector.load %arg9[%c0_22, %c0_23] : memref<1x6xf32, #tpu.memory_space<vmem>>, vector<1x6xf32>
    %42 = vector.broadcast %41 : vector<1x6xf32> to vector<16x6xf32>
    %43 = arith.addf %40, %42 : vector<16x6xf32>
    %cst_24 = arith.constant dense<0xFF800000> : vector<16xf32>
    %44 = vector.multi_reduction <maximumf>, %43, %cst_24 [1] : vector<16x6xf32> to vector<16xf32>
    %45 = vector.shape_cast %44 : vector<16xf32> to vector<16x1xf32>
    %46 = vector.broadcast %45 : vector<16x1xf32> to vector<16x6xf32>
    %47 = arith.subf %43, %46 : vector<16x6xf32>
    %48 = math.exp %47 : vector<16x6xf32>
    %cst_25 = arith.constant dense<0.000000e+00> : vector<16xf32>
    %49 = vector.multi_reduction <add>, %48, %cst_25 [1] : vector<16x6xf32> to vector<16xf32>
    %50 = vector.shape_cast %49 : vector<16xf32> to vector<16x1xf32>
    %51 = vector.broadcast %50 : vector<16x1xf32> to vector<16x6xf32>
    %52 = arith.divf %48, %51 : vector<16x6xf32>
    %c0_26 = arith.constant 0 : index
    %c0_27 = arith.constant 0 : index
    %53 = vector.load %arg10[%c0_26, %c0_27] : memref<16x6xf32, #tpu.memory_space<vmem>>, vector<16x6xf32>
    tpu.vector_store %arg10[%c0_26, %c0_27], %52 {strides = array<i32>} : memref<16x6xf32, #tpu.memory_space<vmem>>, vector<16x6xf32>,
    return
  }
  func.func @transform_0(%arg0: i32) -> (i32, i32, i32) {
    %c0_i32 = arith.constant 0 : i32
    %c0_i32_0 = arith.constant 0 : i32
    %c0_i32_1 = arith.constant 0 : i32
    return %c0_i32, %arg0, %c0_i32_0 : i32, i32, i32
  }
  func.func @transform_1(%arg0: i32) -> (i32, i32) {
    %c0_i32 = arith.constant 0 : i32
    %c0_i32_0 = arith.constant 0 : i32
    %c0_i32_1 = arith.constant 0 : i32
    return %c0_i32, %c0_i32_0 : i32, i32
  }
  func.func @transform_2(%arg0: i32) -> (i32, i32) {
    %c0_i32 = arith.constant 0 : i32
    %c0_i32_0 = arith.constant 0 : i32
    %c0_i32_1 = arith.constant 0 : i32
    return %c0_i32, %c0_i32_0 : i32, i32
  }
  func.func @transform_3(%arg0: i32) -> (i32, i32) {
    %c0_i32 = arith.constant 0 : i32
    %c0_i32_0 = arith.constant 0 : i32
    %c0_i32_1 = arith.constant 0 : i32
    return %c0_i32, %c0_i32_0 : i32, i32
  }
  func.func @transform_4(%arg0: i32) -> (i32, i32) {
    %c0_i32 = arith.constant 0 : i32
    %c0_i32_0 = arith.constant 0 : i32
    %c0_i32_1 = arith.constant 0 : i32
    return %c0_i32, %c0_i32_0 : i32, i32
  }
  func.func @transform_5(%arg0: i32) -> (i32, i32) {
    %c0_i32 = arith.constant 0 : i32
    %c0_i32_0 = arith.constant 0 : i32
    %c0_i32_1 = arith.constant 0 : i32
    return %c0_i32, %c0_i32_0 : i32, i32
  }
  func.func @transform_6(%arg0: i32) -> (i32, i32) {
    %c0_i32 = arith.constant 0 : i32
    %c0_i32_0 = arith.constant 0 : i32
    %c0_i32_1 = arith.constant 0 : i32
    return %c0_i32, %c0_i32_0 : i32, i32
  }
  func.func @transform_7(%arg0: i32) -> (i32, i32) {
    %c0_i32 = arith.constant 0 : i32
    %c0_i32_0 = arith.constant 0 : i32
    %c0_i32_1 = arith.constant 0 : i32
    return %c0_i32, %c0_i32_0 : i32, i32
  }
  func.func @transform_8(%arg0: i32) -> (i32, i32) {
    %c0_i32 = arith.constant 0 : i32
    %c0_i32_0 = arith.constant 0 : i32
    %c0_i32_1 = arith.constant 0 : i32
    return %c0_i32, %c0_i32_0 : i32, i32
  }
  func.func @transform_9(%arg0: i32) -> (i32, i32) {
    %c0_i32 = arith.constant 0 : i32
    %c0_i32_0 = arith.constant 0 : i32
    return %arg0, %c0_i32 : i32, i32
  }
}

</mosaic_0001>

<bundles_post_ra>
// kernel: net_forward.1
= control target key start
LH: loop header
LB: loop body
LE: loop exit
PB: predicated region body
PF: predicated region fallthrough
CT: control target
= control target key end

     0   :  { %s12453_s30 = smov 0   ;;  %s12455_s10 = smov 0   ;;  %s17219_s0 = inlined_call_operand.vmem [shape: bf16[13,32,2048], index: 0, kind: input, shape index: {}]   ;;  %s17220_s1 = inlined_call_operand.vmem [shape: bf16[2048,128], index: 1, kind: input, shape index: {}]   ;;  %s17221_s2 = inlined_call_operand.vmem [shape: f32[1,128], index: 2, kind: input, shape index: {}]   ;;  %s17222_s3 = inlined_call_operand.vmem [shape: bf16[1664,512], index: 3, kind: input, shape index: {}]   ;;  %s17223_s4 = inlined_call_operand.vmem [shape: f32[1,512], index: 4, kind: input, shape index: {}]   ;;  %s17224_s5 = inlined_call_operand.vmem [shape: bf16[512,256], index: 5, kind: input, shape index: {}]   ;;  %s17225_s6 = inlined_call_operand.vmem [shape: f32[1,256], index: 6, kind: input, shape index: {}]   ;;  %s17226_s7 = inlined_call_operand.vmem [shape: f32[256,6], index: 7, kind: input, shape index: {}]   ;;  %s17227_s8 = inlined_call_operand.vmem [shape: f32[1,6], index: 8, kind: input, shape index: {}]   ;;  %s17228_s9 = inlined_call_operand.vmem [shape: f32[32,6], index: 9, kind: output, shape index: {}]  }
   0x1   :  { %s12457_s11 = smov 0  }
   0x2 LB: > { %s8216_s12 = sadd.s32 4294967295, %s12401_s11   ;;  %s12470_s13 = sadd.s32 1, %s12401_s11   ;;  %s12401_s11 = sphi %s12457_s11, %s17231_s11   ;;  %s12397_s10 = sphi %s12455_s10, %s17230_s10   ;;  %s12393_s30 = sphi %s12453_s30, %s17229_s30  }
   0x3   : > { %s23_s14 = ssub.s32 %s12401_s11, %s12470_s13  ;;  %s26_s15 = sadd.s32 1, %s12397_s10 }
   0x4   : > { %p24_p0 = scmp.eq.s32.totalorder %s23_s14, 0  ;;  %p33_p1 = scmp.ne.s32.totalorder %s12397_s10, %s12393_s30 }
   0x5   : > { %p34_p2 = scmp.eq.s32.totalorder %s12401_s11, 0  ;;  %p8219_p4 = scmp.ge.s32.totalorder %s12401_s11, 2 }
   0x6   : > { %s12479_s16 = scalar_select %p24_p0, %s12397_s10, %s26_s15  }
   0x7   : > { %p35_p3 = por %p34_p2, %p33_p1  ;;  %277 = sbr.rel (%p8219_p4) target bundleno = 224 (0xe0), region = 48 }
   0xc   : > { %280 = sbr.rel (!%p35_p3) target bundleno = 224 (0xe0), region = 52  ;;  %s282_s17 = sand.u32 (%p35_p3), 1, %s12397_s10  }
   0xd   : > { %s11493_s18 = sshll.u32 (%p35_p3), %s12401_s11, 7  ;;  %s12342_s19 = smul.u32 (%p35_p3), 1664, %s282_s17 }
   0xe   : > { %s12487_s22 = scalar_lea.vmem (%p35_p3), %s17219_s0, %s11493_s18 }
   0xf   : > { %v301_v0 = vld [vmem:[%s12487_s22] sm:$0xff] (%p35_p3)  ;;  %v303_v1 = vld [vmem:[%s12487_s22 + $0x8] sm:$0xff] (%p35_p3)  ;;  %v305_v2 = vld [vmem:[%s12487_s22 + $0x10] sm:$0xff] (%p35_p3)  ;;  %s12492_s23 = scalar_lea.vmem (%p35_p3), [#allocation2], %s12342_s19 }
  0x10   : > { %302 = vst [vmem:[%s12492_s23] sm:$0xff] (%p35_p3), %v301_v0  ;;  %v307_v3 = vld [vmem:[%s12487_s22 + $0x18] sm:$0xff] (%p35_p3)  ;;  %v309_v4 = vld [vmem:[%s12487_s22 + $0x20] sm:$0xff] (%p35_p3)  ;;  %v311_v5 = vld [vmem:[%s12487_s22 + $0x28] sm:$0xff] (%p35_p3) }
  0x11   : > { %304 = vst [vmem:[%s12492_s23 + $0x8] sm:$0xff] %v303_v1  ;;  %v313_v6 = vld [vmem:[%s12487_s22 + $0x30] sm:$0xff]  ;;  %v315_v7 = vld [vmem:[%s12487_s22 + $0x38] sm:$0xff]  ;;  %v317_v8 = vld [vmem:[%s12487_s22 + $0x40] sm:$0xff] }
  0x12   : > { %306 = vst [vmem:[%s12492_s23 + $0x10] sm:$0xff] %v305_v2  ;;  %v319_v9 = vld [vmem:[%s12487_s22 + $0x48] sm:$0xff]  ;;  %v321_v10 = vld [vmem:[%s12487_s22 + $0x50] sm:$0xff]  ;;  %v323_v11 = vld [vmem:[%s12487_s22 + $0x58] sm:$0xff] }
  0x13   : > { %308 = vst [vmem:[%s12492_s23 + $0x18] sm:$0xff] %v307_v3  ;;  %v325_v12 = vld [vmem:[%s12487_s22 + $0x60] sm:$0xff]  ;;  %v327_v13 = vld [vmem:[%s12487_s22 + $0x68] sm:$0xff]  ;;  %v329_v14 = vld [vmem:[%s12487_s22 + $0x70] sm:$0xff] }
  0x14   : > { %310 = vst [vmem:[%s12492_s23 + $0x20] sm:$0xff] %v309_v4  ;;  %v331_v15 = vld [vmem:[%s12487_s22 + $0x78] sm:$0xff]  ;;  %v333_v16 = vld [vmem:[%s12487_s22 + $0x100] sm:$0xff]  ;;  %v335_v17 = vld [vmem:[%s12487_s22 + $0x108] sm:$0xff] }
  0x15   : > { %312 = vst [vmem:[%s12492_s23 + $0x28] sm:$0xff] %v311_v5  ;;  %v337_v18 = vld [vmem:[%s12487_s22 + $0x110] sm:$0xff]  ;;  %v339_v19 = vld [vmem:[%s12487_s22 + $0x118] sm:$0xff]  ;;  %v341_v20 = vld [vmem:[%s12487_s22 + $0x120] sm:$0xff] }
  0x16   : > { %314 = vst [vmem:[%s12492_s23 + $0x30] sm:$0xff] %v313_v6  ;;  %v343_v21 = vld [vmem:[%s12487_s22 + $0x128] sm:$0xff]  ;;  %v345_v22 = vld [vmem:[%s12487_s22 + $0x130] sm:$0xff]  ;;  %v347_v23 = vld [vmem:[%s12487_s22 + $0x138] sm:$0xff] }
  0x17   : > { %316 = vst [vmem:[%s12492_s23 + $0x38] sm:$0xff] %v315_v7  ;;  %v349_v24 = vld [vmem:[%s12487_s22 + $0x140] sm:$0xff]  ;;  %v351_v25 = vld [vmem:[%s12487_s22 + $0x148] sm:$0xff]  ;;  %v353_v26 = vld [vmem:[%s12487_s22 + $0x150] sm:$0xff] }
  0x18   : > { %318 = vst [vmem:[%s12492_s23 + $0x40] sm:$0xff] %v317_v8  ;;  %v355_v27 = vld [vmem:[%s12487_s22 + $0x158] sm:$0xff]  ;;  %v357_v28 = vld [vmem:[%s12487_s22 + $0x160] sm:$0xff]  ;;  %v359_v29 = vld [vmem:[%s12487_s22 + $0x168] sm:$0xff] }
  0x19   : > { %320 = vst [vmem:[%s12492_s23 + $0x48] sm:$0xff] %v319_v9  ;;  %v361_v30 = vld [vmem:[%s12487_s22 + $0x170] sm:$0xff]  ;;  %v363_v31 = vld [vmem:[%s12487_s22 + $0x178] sm:$0xff]  ;;  %v365_v32 = vld [vmem:[%s12487_s22 + $0x200] sm:$0xff] }
  0x1a   : > { %322 = vst [vmem:[%s12492_s23 + $0x50] sm:$0xff] %v321_v10  ;;  %v367_v33 = vld [vmem:[%s12487_s22 + $0x208] sm:$0xff]  ;;  %v369_v34 = vld [vmem:[%s12487_s22 + $0x210] sm:$0xff]  ;;  %v371_v35 = vld [vmem:[%s12487_s22 + $0x218] sm:$0xff] }
  0x1b   : > { %324 = vst [vmem:[%s12492_s23 + $0x58] sm:$0xff] %v323_v11  ;;  %v373_v36 = vld [vmem:[%s12487_s22 + $0x220] sm:$0xff]  ;;  %v375_v37 = vld [vmem:[%s12487_s22 + $0x228] sm:$0xff]  ;;  %v377_v38 = vld [vmem:[%s12487_s22 + $0x230] sm:$0xff] }
  0x1c   : > { %326 = vst [vmem:[%s12492_s23 + $0x60] sm:$0xff] %v325_v12  ;;  %v379_v39 = vld [vmem:[%s12487_s22 + $0x238] sm:$0xff]  ;;  %v381_v40 = vld [vmem:[%s12487_s22 + $0x240] sm:$0xff]  ;;  %v383_v41 = vld [vmem:[%s12487_s22 + $0x248] sm:$0xff] }
  0x1d   : > { %328 = vst [vmem:[%s12492_s23 + $0x68] sm:$0xff] %v327_v13  ;;  %v385_v42 = vld [vmem:[%s12487_s22 + $0x250] sm:$0xff]  ;;  %v387_v43 = vld [vmem:[%s12487_s22 + $0x258] sm:$0xff]  ;;  %v389_v44 = vld [vmem:[%s12487_s22 + $0x260] sm:$0xff] }
  0x1e   : > { %330 = vst [vmem:[%s12492_s23 + $0x70] sm:$0xff] %v329_v14  ;;  %v391_v45 = vld [vmem:[%s12487_s22 + $0x268] sm:$0xff]  ;;  %v393_v46 = vld [vmem:[%s12487_s22 + $0x270] sm:$0xff]  ;;  %v395_v47 = vld [vmem:[%s12487_s22 + $0x278] sm:$0xff] }
  0x1f   : > { %332 = vst [vmem:[%s12492_s23 + $0x78] sm:$0xff] %v331_v15  ;;  %v397_v48 = vld [vmem:[%s12487_s22 + $0x300] sm:$0xff]  ;;  %v399_v49 = vld [vmem:[%s12487_s22 + $0x308] sm:$0xff]  ;;  %v401_v50 = vld [vmem:[%s12487_s22 + $0x310] sm:$0xff] }
  0x20   : > { %334 = vst [vmem:[%s12492_s23 + $0x80] sm:$0xff] %v333_v16  ;;  %v403_v51 = vld [vmem:[%s12487_s22 + $0x318] sm:$0xff]  ;;  %v405_v52 = vld [vmem:[%s12487_s22 + $0x320] sm:$0xff]  ;;  %v407_v53 = vld [vmem:[%s12487_s22 + $0x328] sm:$0xff] }
  0x21   : > { %336 = vst [vmem:[%s12492_s23 + $0x88] sm:$0xff] %v335_v17  ;;  %v409_v54 = vld [vmem:[%s12487_s22 + $0x330] sm:$0xff]  ;;  %v411_v55 = vld [vmem:[%s12487_s22 + $0x338] sm:$0xff]  ;;  %v413_v56 = vld [vmem:[%s12487_s22 + $0x340] sm:$0xff] }
  0x22   : > { %338 = vst [vmem:[%s12492_s23 + $0x90] sm:$0xff] %v337_v18  ;;  %v415_v57 = vld [vmem:[%s12487_s22 + $0x348] sm:$0xff]  ;;  %v417_v58 = vld [vmem:[%s12487_s22 + $0x350] sm:$0xff]  ;;  %v419_v59 = vld [vmem:[%s12487_s22 + $0x358] sm:$0xff] }
  0x23   : > { %340 = vst [vmem:[%s12492_s23 + $0x98] sm:$0xff] %v339_v19  ;;  %v421_v60 = vld [vmem:[%s12487_s22 + $0x360] sm:$0xff]  ;;  %v423_v61 = vld [vmem:[%s12487_s22 + $0x368] sm:$0xff]  ;;  %v425_v62 = vld [vmem:[%s12487_s22 + $0x370] sm:$0xff] }
  0x24   : > { %342 = vst [vmem:[%s12492_s23 + $0xa0] sm:$0xff] %v341_v20  ;;  %v427_v63 = vld [vmem:[%s12487_s22 + $0x378] sm:$0xff]  ;;  %v429_v0 = vld [vmem:[%s12487_s22 + $0x400] sm:$0xff]  ;;  %v431_v1 = vld [vmem:[%s12487_s22 + $0x408] sm:$0xff] }
  0x25   : > { %344 = vst [vmem:[%s12492_s23 + $0xa8] sm:$0xff] %v343_v21  ;;  %v433_v2 = vld [vmem:[%s12487_s22 + $0x410] sm:$0xff]  ;;  %v435_v3 = vld [vmem:[%s12487_s22 + $0x418] sm:$0xff]  ;;  %v437_v4 = vld [vmem:[%s12487_s22 + $0x420] sm:$0xff] }
  0x26   : > { %346 = vst [vmem:[%s12492_s23 + $0xb0] sm:$0xff] %v345_v22  ;;  %v439_v5 = vld [vmem:[%s12487_s22 + $0x428] sm:$0xff]  ;;  %v441_v6 = vld [vmem:[%s12487_s22 + $0x430] sm:$0xff]  ;;  %v443_v7 = vld [vmem:[%s12487_s22 + $0x438] sm:$0xff] }
  0x27   : > { %348 = vst [vmem:[%s12492_s23 + $0xb8] sm:$0xff] %v347_v23  ;;  %v445_v8 = vld [vmem:[%s12487_s22 + $0x440] sm:$0xff]  ;;  %v447_v9 = vld [vmem:[%s12487_s22 + $0x448] sm:$0xff]  ;;  %v449_v10 = vld [vmem:[%s12487_s22 + $0x450] sm:$0xff] }
  0x28   : > { %350 = vst [vmem:[%s12492_s23 + $0xc0] sm:$0xff] %v349_v24  ;;  %v451_v11 = vld [vmem:[%s12487_s22 + $0x458] sm:$0xff]  ;;  %v453_v12 = vld [vmem:[%s12487_s22 + $0x460] sm:$0xff]  ;;  %v455_v13 = vld [vmem:[%s12487_s22 + $0x468] sm:$0xff] }
  0x29   : > { %352 = vst [vmem:[%s12492_s23 + $0xc8] sm:$0xff] %v351_v25  ;;  %v457_v14 = vld [vmem:[%s12487_s22 + $0x470] sm:$0xff]  ;;  %v459_v15 = vld [vmem:[%s12487_s22 + $0x478] sm:$0xff]  ;;  %v461_v16 = vld [vmem:[%s12487_s22 + $0x500] sm:$0xff] }
  0x2a   : > { %354 = vst [vmem:[%s12492_s23 + $0xd0] sm:$0xff] %v353_v26  ;;  %v463_v17 = vld [vmem:[%s12487_s22 + $0x508] sm:$0xff]  ;;  %v465_v18 = vld [vmem:[%s12487_s22 + $0x510] sm:$0xff]  ;;  %v467_v19 = vld [vmem:[%s12487_s22 + $0x518] sm:$0xff] }
  0x2b   : > { %356 = vst [vmem:[%s12492_s23 + $0xd8] sm:$0xff] %v355_v27  ;;  %v469_v20 = vld [vmem:[%s12487_s22 + $0x520] sm:$0xff]  ;;  %v471_v21 = vld [vmem:[%s12487_s22 + $0x528] sm:$0xff]  ;;  %v473_v22 = vld [vmem:[%s12487_s22 + $0x530] sm:$0xff] }
  0x2c   : > { %358 = vst [vmem:[%s12492_s23 + $0xe0] sm:$0xff] %v357_v28  ;;  %v475_v23 = vld [vmem:[%s12487_s22 + $0x538] sm:$0xff]  ;;  %v477_v24 = vld [vmem:[%s12487_s22 + $0x540] sm:$0xff]  ;;  %v479_v25 = vld [vmem:[%s12487_s22 + $0x548] sm:$0xff] }
  0x2d   : > { %360 = vst [vmem:[%s12492_s23 + $0xe8] sm:$0xff] %v359_v29  ;;  %v481_v26 = vld [vmem:[%s12487_s22 + $0x550] sm:$0xff]  ;;  %v483_v27 = vld [vmem:[%s12487_s22 + $0x558] sm:$0xff]  ;;  %v485_v28 = vld [vmem:[%s12487_s22 + $0x560] sm:$0xff] }
  0x2e   : > { %362 = vst [vmem:[%s12492_s23 + $0xf0] sm:$0xff] %v361_v30  ;;  %v487_v29 = vld [vmem:[%s12487_s22 + $0x568] sm:$0xff]  ;;  %v489_v30 = vld [vmem:[%s12487_s22 + $0x570] sm:$0xff] }
  0x2f   : > { %364 = vst [vmem:[%s12492_s23 + $0xf8] sm:$0xff] %v363_v31  ;;  %v491_v31 = vld [vmem:[%s12487_s22 + $0x578] sm:$0xff] }
  0x30   : > { %366 = vst [vmem:[%s12492_s23 + $0x100] sm:$0xff] %v365_v32  ;;  %v493_v32 = vld [vmem:[%s12487_s22 + $0x600] sm:$0xff] }
  0x31   : > { %368 = vst [vmem:[%s12492_s23 + $0x108] sm:$0xff] %v367_v33  ;;  %v495_v33 = vld [vmem:[%s12487_s22 + $0x608] sm:$0xff] }
  0x32   : > { %370 = vst [vmem:[%s12492_s23 + $0x110] sm:$0xff] %v369_v34  ;;  %v497_v34 = vld [vmem:[%s12487_s22 + $0x610] sm:$0xff] }
  0x33   : > { %372 = vst [vmem:[%s12492_s23 + $0x118] sm:$0xff] %v371_v35  ;;  %v499_v35 = vld [vmem:[%s12487_s22 + $0x618] sm:$0xff] }
  0x34   : > { %374 = vst [vmem:[%s12492_s23 + $0x120] sm:$0xff] %v373_v36  ;;  %v501_v36 = vld [vmem:[%s12487_s22 + $0x620] sm:$0xff] }
  0x35   : > { %376 = vst [vmem:[%s12492_s23 + $0x128] sm:$0xff] %v375_v37  ;;  %v503_v37 = vld [vmem:[%s12487_s22 + $0x628] sm:$0xff] }
  0x36   : > { %378 = vst [vmem:[%s12492_s23 + $0x130] sm:$0xff] %v377_v38  ;;  %v505_v38 = vld [vmem:[%s12487_s22 + $0x630] sm:$0xff] }
  0x37   : > { %380 = vst [vmem:[%s12492_s23 + $0x138] sm:$0xff] %v379_v39  ;;  %v507_v39 = vld [vmem:[%s12487_s22 + $0x638] sm:$0xff] }
  0x38   : > { %382 = vst [vmem:[%s12492_s23 + $0x140] sm:$0xff] %v381_v40  ;;  %v509_v40 = vld [vmem:[%s12487_s22 + $0x640] sm:$0xff] }
  0x39   : > { %384 = vst [vmem:[%s12492_s23 + $0x148] sm:$0xff] %v383_v41  ;;  %v511_v41 = vld [vmem:[%s12487_s22 + $0x648] sm:$0xff] }
  0x3a   : > { %386 = vst [vmem:[%s12492_s23 + $0x150] sm:$0xff] %v385_v42  ;;  %v513_v42 = vld [vmem:[%s12487_s22 + $0x650] sm:$0xff] }
  0x3b   : > { %388 = vst [vmem:[%s12492_s23 + $0x158] sm:$0xff] %v387_v43  ;;  %v515_v43 = vld [vmem:[%s12487_s22 + $0x658] sm:$0xff] }
  0x3c   : > { %390 = vst [vmem:[%s12492_s23 + $0x160] sm:$0xff] %v389_v44  ;;  %v517_v44 = vld [vmem:[%s12487_s22 + $0x660] sm:$0xff] }
  0x3d   : > { %392 = vst [vmem:[%s12492_s23 + $0x168] sm:$0xff] %v391_v45  ;;  %v519_v45 = vld [vmem:[%s12487_s22 + $0x668] sm:$0xff] }
  0x3e   : > { %394 = vst [vmem:[%s12492_s23 + $0x170] sm:$0xff] %v393_v46  ;;  %v521_v46 = vld [vmem:[%s12487_s22 + $0x670] sm:$0xff] }
  0x3f   : > { %396 = vst [vmem:[%s12492_s23 + $0x178] sm:$0xff] %v395_v47  ;;  %v523_v47 = vld [vmem:[%s12487_s22 + $0x678] sm:$0xff] }
  0x40   : > { %398 = vst [vmem:[%s12492_s23 + $0x180] sm:$0xff] %v397_v48  ;;  %v525_v48 = vld [vmem:[%s12487_s22 + $0x700] sm:$0xff] }
  0x41   : > { %400 = vst [vmem:[%s12492_s23 + $0x188] sm:$0xff] %v399_v49  ;;  %v527_v49 = vld [vmem:[%s12487_s22 + $0x708] sm:$0xff] }
  0x42   : > { %402 = vst [vmem:[%s12492_s23 + $0x190] sm:$0xff] %v401_v50  ;;  %v529_v50 = vld [vmem:[%s12487_s22 + $0x710] sm:$0xff] }
  0x43   : > { %404 = vst [vmem:[%s12492_s23 + $0x198] sm:$0xff] %v403_v51  ;;  %v531_v51 = vld [vmem:[%s12487_s22 + $0x718] sm:$0xff] }
  0x44   : > { %406 = vst [vmem:[%s12492_s23 + $0x1a0] sm:$0xff] %v405_v52  ;;  %v533_v52 = vld [vmem:[%s12487_s22 + $0x720] sm:$0xff] }
  0x45   : > { %408 = vst [vmem:[%s12492_s23 + $0x1a8] sm:$0xff] %v407_v53  ;;  %v535_v53 = vld [vmem:[%s12487_s22 + $0x728] sm:$0xff] }
  0x46   : > { %410 = vst [vmem:[%s12492_s23 + $0x1b0] sm:$0xff] %v409_v54  ;;  %v537_v54 = vld [vmem:[%s12487_s22 + $0x730] sm:$0xff] }
  0x47   : > { %412 = vst [vmem:[%s12492_s23 + $0x1b8] sm:$0xff] %v411_v55  ;;  %v539_v55 = vld [vmem:[%s12487_s22 + $0x738] sm:$0xff] }
  0x48   : > { %414 = vst [vmem:[%s12492_s23 + $0x1c0] sm:$0xff] %v413_v56  ;;  %v541_v56 = vld [vmem:[%s12487_s22 + $0x740] sm:$0xff] }
  0x49   : > { %416 = vst [vmem:[%s12492_s23 + $0x1c8] sm:$0xff] %v415_v57  ;;  %v543_v57 = vld [vmem:[%s12487_s22 + $0x748] sm:$0xff] }
  0x4a   : > { %418 = vst [vmem:[%s12492_s23 + $0x1d0] sm:$0xff] %v417_v58  ;;  %v545_v58 = vld [vmem:[%s12487_s22 + $0x750] sm:$0xff] }
  0x4b   : > { %420 = vst [vmem:[%s12492_s23 + $0x1d8] sm:$0xff] %v419_v59  ;;  %v547_v59 = vld [vmem:[%s12487_s22 + $0x758] sm:$0xff] }
  0x4c   : > { %422 = vst [vmem:[%s12492_s23 + $0x1e0] sm:$0xff] %v421_v60  ;;  %v549_v60 = vld [vmem:[%s12487_s22 + $0x760] sm:$0xff] }
  0x4d   : > { %424 = vst [vmem:[%s12492_s23 + $0x1e8] sm:$0xff] %v423_v61  ;;  %v551_v61 = vld [vmem:[%s12487_s22 + $0x768] sm:$0xff] }
  0x4e   : > { %426 = vst [vmem:[%s12492_s23 + $0x1f0] sm:$0xff] %v425_v62  ;;  %v553_v62 = vld [vmem:[%s12487_s22 + $0x770] sm:$0xff] }
  0x4f   : > { %428 = vst [vmem:[%s12492_s23 + $0x1f8] sm:$0xff] %v427_v63  ;;  %v555_v63 = vld [vmem:[%s12487_s22 + $0x778] sm:$0xff] }
  0x50   : > { %430 = vst [vmem:[%s12492_s23 + $0x200] sm:$0xff] %v429_v0  ;;  %v557_v0 = vld [vmem:[%s12487_s22 + $0x800] sm:$0xff] }
  0x51   : > { %432 = vst [vmem:[%s12492_s23 + $0x208] sm:$0xff] %v431_v1  ;;  %v559_v1 = vld [vmem:[%s12487_s22 + $0x808] sm:$0xff] }
  0x52   : > { %434 = vst [vmem:[%s12492_s23 + $0x210] sm:$0xff] %v433_v2  ;;  %v561_v2 = vld [vmem:[%s12487_s22 + $0x810] sm:$0xff] }
  0x53   : > { %436 = vst [vmem:[%s12492_s23 + $0x218] sm:$0xff] %v435_v3  ;;  %v563_v3 = vld [vmem:[%s12487_s22 + $0x818] sm:$0xff] }
  0x54   : > { %438 = vst [vmem:[%s12492_s23 + $0x220] sm:$0xff] %v437_v4  ;;  %v565_v4 = vld [vmem:[%s12487_s22 + $0x820] sm:$0xff] }
  0x55   : > { %440 = vst [vmem:[%s12492_s23 + $0x228] sm:$0xff] %v439_v5  ;;  %v567_v5 = vld [vmem:[%s12487_s22 + $0x828] sm:$0xff] }
  0x56   : > { %442 = vst [vmem:[%s12492_s23 + $0x230] sm:$0xff] %v441_v6  ;;  %v569_v6 = vld [vmem:[%s12487_s22 + $0x830] sm:$0xff] }
  0x57   : > { %444 = vst [vmem:[%s12492_s23 + $0x238] sm:$0xff] %v443_v7  ;;  %v571_v7 = vld [vmem:[%s12487_s22 + $0x838] sm:$0xff] }
  0x58   : > { %446 = vst [vmem:[%s12492_s23 + $0x240] sm:$0xff] %v445_v8  ;;  %v573_v8 = vld [vmem:[%s12487_s22 + $0x840] sm:$0xff] }
  0x59   : > { %448 = vst [vmem:[%s12492_s23 + $0x248] sm:$0xff] %v447_v9  ;;  %v575_v9 = vld [vmem:[%s12487_s22 + $0x848] sm:$0xff] }
  0x5a   : > { %450 = vst [vmem:[%s12492_s23 + $0x250] sm:$0xff] %v449_v10  ;;  %v577_v10 = vld [vmem:[%s12487_s22 + $0x850] sm:$0xff] }
  0x5b   : > { %452 = vst [vmem:[%s12492_s23 + $0x258] sm:$0xff] %v451_v11  ;;  %v579_v11 = vld [vmem:[%s12487_s22 + $0x858] sm:$0xff] }
  0x5c   : > { %454 = vst [vmem:[%s12492_s23 + $0x260] sm:$0xff] %v453_v12  ;;  %v581_v12 = vld [vmem:[%s12487_s22 + $0x860] sm:$0xff] }
  0x5d   : > { %456 = vst [vmem:[%s12492_s23 + $0x268] sm:$0xff] %v455_v13  ;;  %v583_v13 = vld [vmem:[%s12487_s22 + $0x868] sm:$0xff] }
  0x5e   : > { %458 = vst [vmem:[%s12492_s23 + $0x270] sm:$0xff] %v457_v14  ;;  %v585_v14 = vld [vmem:[%s12487_s22 + $0x870] sm:$0xff] }
  0x5f   : > { %460 = vst [vmem:[%s12492_s23 + $0x278] sm:$0xff] %v459_v15  ;;  %v587_v15 = vld [vmem:[%s12487_s22 + $0x878] sm:$0xff] }
  0x60   : > { %462 = vst [vmem:[%s12492_s23 + $0x280] sm:$0xff] %v461_v16  ;;  %v589_v16 = vld [vmem:[%s12487_s22 + $0x900] sm:$0xff] }
  0x61   : > { %464 = vst [vmem:[%s12492_s23 + $0x288] sm:$0xff] %v463_v17  ;;  %v591_v17 = vld [vmem:[%s12487_s22 + $0x908] sm:$0xff] }
  0x62   : > { %466 = vst [vmem:[%s12492_s23 + $0x290] sm:$0xff] %v465_v18  ;;  %v593_v18 = vld [vmem:[%s12487_s22 + $0x910] sm:$0xff] }
  0x63   : > { %468 = vst [vmem:[%s12492_s23 + $0x298] sm:$0xff] %v467_v19  ;;  %v595_v19 = vld [vmem:[%s12487_s22 + $0x918] sm:$0xff] }
  0x64   : > { %470 = vst [vmem:[%s12492_s23 + $0x2a0] sm:$0xff] %v469_v20  ;;  %v597_v20 = vld [vmem:[%s12487_s22 + $0x920] sm:$0xff] }
  0x65   : > { %472 = vst [vmem:[%s12492_s23 + $0x2a8] sm:$0xff] %v471_v21  ;;  %v599_v21 = vld [vmem:[%s12487_s22 + $0x928] sm:$0xff] }
  0x66   : > { %474 = vst [vmem:[%s12492_s23 + $0x2b0] sm:$0xff] %v473_v22  ;;  %v601_v22 = vld [vmem:[%s12487_s22 + $0x930] sm:$0xff] }
  0x67   : > { %476 = vst [vmem:[%s12492_s23 + $0x2b8] sm:$0xff] %v475_v23  ;;  %v603_v23 = vld [vmem:[%s12487_s22 + $0x938] sm:$0xff] }
  0x68   : > { %478 = vst [vmem:[%s12492_s23 + $0x2c0] sm:$0xff] %v477_v24  ;;  %v605_v24 = vld [vmem:[%s12487_s22 + $0x940] sm:$0xff] }
  0x69   : > { %480 = vst [vmem:[%s12492_s23 + $0x2c8] sm:$0xff] %v479_v25  ;;  %v607_v25 = vld [vmem:[%s12487_s22 + $0x948] sm:$0xff] }
  0x6a   : > { %482 = vst [vmem:[%s12492_s23 + $0x2d0] sm:$0xff] %v481_v26  ;;  %v609_v26 = vld [vmem:[%s12487_s22 + $0x950] sm:$0xff] }
  0x6b   : > { %484 = vst [vmem:[%s12492_s23 + $0x2d8] sm:$0xff] %v483_v27  ;;  %v611_v27 = vld [vmem:[%s12487_s22 + $0x958] sm:$0xff] }
  0x6c   : > { %486 = vst [vmem:[%s12492_s23 + $0x2e0] sm:$0xff] %v485_v28  ;;  %v613_v28 = vld [vmem:[%s12487_s22 + $0x960] sm:$0xff] }
  0x6d   : > { %488 = vst [vmem:[%s12492_s23 + $0x2e8] sm:$0xff] %v487_v29  ;;  %v615_v29 = vld [vmem:[%s12487_s22 + $0x968] sm:$0xff] }
  0x6e   : > { %490 = vst [vmem:[%s12492_s23 + $0x2f0] sm:$0xff] %v489_v30  ;;  %v617_v30 = vld [vmem:[%s12487_s22 + $0x970] sm:$0xff] }
  0x6f   : > { %492 = vst [vmem:[%s12492_s23 + $0x2f8] sm:$0xff] %v491_v31  ;;  %v619_v31 = vld [vmem:[%s12487_s22 + $0x978] sm:$0xff] }
  0x70   : > { %494 = vst [vmem:[%s12492_s23 + $0x300] sm:$0xff] %v493_v32  ;;  %v621_v32 = vld [vmem:[%s12487_s22 + $0xa00] sm:$0xff] }
  0x71   : > { %496 = vst [vmem:[%s12492_s23 + $0x308] sm:$0xff] %v495_v33  ;;  %v623_v33 = vld [vmem:[%s12487_s22 + $0xa08] sm:$0xff] }
  0x72   : > { %498 = vst [vmem:[%s12492_s23 + $0x310] sm:$0xff] %v497_v34  ;;  %v625_v34 = vld [vmem:[%s12487_s22 + $0xa10] sm:$0xff] }
  0x73   : > { %500 = vst [vmem:[%s12492_s23 + $0x318] sm:$0xff] %v499_v35  ;;  %v627_v35 = vld [vmem:[%s12487_s22 + $0xa18] sm:$0xff] }
  0x74   : > { %502 = vst [vmem:[%s12492_s23 + $0x320] sm:$0xff] %v501_v36  ;;  %v629_v36 = vld [vmem:[%s12487_s22 + $0xa20] sm:$0xff] }
  0x75   : > { %504 = vst [vmem:[%s12492_s23 + $0x328] sm:$0xff] %v503_v37  ;;  %v631_v37 = vld [vmem:[%s12487_s22 + $0xa28] sm:$0xff] }
  0x76   : > { %506 = vst [vmem:[%s12492_s23 + $0x330] sm:$0xff] %v505_v38  ;;  %v633_v38 = vld [vmem:[%s12487_s22 + $0xa30] sm:$0xff] }
  0x77   : > { %508 = vst [vmem:[%s12492_s23 + $0x338] sm:$0xff] %v507_v39  ;;  %v635_v39 = vld [vmem:[%s12487_s22 + $0xa38] sm:$0xff] }
  0x78   : > { %510 = vst [vmem:[%s12492_s23 + $0x340] sm:$0xff] %v509_v40  ;;  %v637_v40 = vld [vmem:[%s12487_s22 + $0xa40] sm:$0xff] }
  0x79   : > { %512 = vst [vmem:[%s12492_s23 + $0x348] sm:$0xff] %v511_v41  ;;  %v639_v41 = vld [vmem:[%s12487_s22 + $0xa48] sm:$0xff] }
  0x7a   : > { %514 = vst [vmem:[%s12492_s23 + $0x350] sm:$0xff] %v513_v42  ;;  %v641_v42 = vld [vmem:[%s12487_s22 + $0xa50] sm:$0xff] }
  0x7b   : > { %516 = vst [vmem:[%s12492_s23 + $0x358] sm:$0xff] %v515_v43  ;;  %v643_v43 = vld [vmem:[%s12487_s22 + $0xa58] sm:$0xff] }
  0x7c   : > { %518 = vst [vmem:[%s12492_s23 + $0x360] sm:$0xff] %v517_v44  ;;  %v645_v44 = vld [vmem:[%s12487_s22 + $0xa60] sm:$0xff] }
  0x7d   : > { %520 = vst [vmem:[%s12492_s23 + $0x368] sm:$0xff] %v519_v45  ;;  %v647_v45 = vld [vmem:[%s12487_s22 + $0xa68] sm:$0xff] }
  0x7e   : > { %522 = vst [vmem:[%s12492_s23 + $0x370] sm:$0xff] %v521_v46  ;;  %v649_v46 = vld [vmem:[%s12487_s22 + $0xa70] sm:$0xff] }
  0x7f   : > { %524 = vst [vmem:[%s12492_s23 + $0x378] sm:$0xff] %v523_v47  ;;  %v651_v47 = vld [vmem:[%s12487_s22 + $0xa78] sm:$0xff] }
  0x80   : > { %526 = vst [vmem:[%s12492_s23 + $0x380] sm:$0xff] %v525_v48  ;;  %v653_v48 = vld [vmem:[%s12487_s22 + $0xb00] sm:$0xff] }
  0x81   : > { %528 = vst [vmem:[%s12492_s23 + $0x388] sm:$0xff] %v527_v49  ;;  %v655_v49 = vld [vmem:[%s12487_s22 + $0xb08] sm:$0xff] }
  0x82   : > { %530 = vst [vmem:[%s12492_s23 + $0x390] sm:$0xff] %v529_v50  ;;  %v657_v50 = vld [vmem:[%s12487_s22 + $0xb10] sm:$0xff] }
  0x83   : > { %532 = vst [vmem:[%s12492_s23 + $0x398] sm:$0xff] %v531_v51  ;;  %v659_v51 = vld [vmem:[%s12487_s22 + $0xb18] sm:$0xff] }
  0x84   : > { %534 = vst [vmem:[%s12492_s23 + $0x3a0] sm:$0xff] %v533_v52  ;;  %v661_v52 = vld [vmem:[%s12487_s22 + $0xb20] sm:$0xff] }
  0x85   : > { %536 = vst [vmem:[%s12492_s23 + $0x3a8] sm:$0xff] %v535_v53  ;;  %v663_v53 = vld [vmem:[%s12487_s22 + $0xb28] sm:$0xff] }
  0x86   : > { %538 = vst [vmem:[%s12492_s23 + $0x3b0] sm:$0xff] %v537_v54  ;;  %v665_v54 = vld [vmem:[%s12487_s22 + $0xb30] sm:$0xff] }
  0x87   : > { %540 = vst [vmem:[%s12492_s23 + $0x3b8] sm:$0xff] %v539_v55  ;;  %v667_v55 = vld [vmem:[%s12487_s22 + $0xb38] sm:$0xff] }
  0x88   : > { %542 = vst [vmem:[%s12492_s23 + $0x3c0] sm:$0xff] %v541_v56  ;;  %v669_v56 = vld [vmem:[%s12487_s22 + $0xb40] sm:$0xff] }
  0x89   : > { %544 = vst [vmem:[%s12492_s23 + $0x3c8] sm:$0xff] %v543_v57  ;;  %v671_v57 = vld [vmem:[%s12487_s22 + $0xb48] sm:$0xff] }
  0x8a   : > { %546 = vst [vmem:[%s12492_s23 + $0x3d0] sm:$0xff] %v545_v58  ;;  %v673_v58 = vld [vmem:[%s12487_s22 + $0xb50] sm:$0xff] }
  0x8b   : > { %548 = vst [vmem:[%s12492_s23 + $0x3d8] sm:$0xff] %v547_v59  ;;  %v675_v59 = vld [vmem:[%s12487_s22 + $0xb58] sm:$0xff] }
  0x8c   : > { %550 = vst [vmem:[%s12492_s23 + $0x3e0] sm:$0xff] %v549_v60  ;;  %v677_v60 = vld [vmem:[%s12487_s22 + $0xb60] sm:$0xff] }
  0x8d   : > { %552 = vst [vmem:[%s12492_s23 + $0x3e8] sm:$0xff] %v551_v61  ;;  %v679_v61 = vld [vmem:[%s12487_s22 + $0xb68] sm:$0xff] }
  0x8e   : > { %554 = vst [vmem:[%s12492_s23 + $0x3f0] sm:$0xff] %v553_v62  ;;  %v681_v62 = vld [vmem:[%s12487_s22 + $0xb70] sm:$0xff] }
  0x8f   : > { %556 = vst [vmem:[%s12492_s23 + $0x3f8] sm:$0xff] %v555_v63  ;;  %v683_v63 = vld [vmem:[%s12487_s22 + $0xb78] sm:$0xff] }
  0x90   : > { %558 = vst [vmem:[%s12492_s23 + $0x400] sm:$0xff] %v557_v0  ;;  %v685_v0 = vld [vmem:[%s12487_s22 + $0xc00] sm:$0xff] }
  0x91   : > { %560 = vst [vmem:[%s12492_s23 + $0x408] sm:$0xff] %v559_v1  ;;  %v687_v1 = vld [vmem:[%s12487_s22 + $0xc08] sm:$0xff] }
  0x92   : > { %562 = vst [vmem:[%s12492_s23 + $0x410] sm:$0xff] %v561_v2  ;;  %v689_v2 = vld [vmem:[%s12487_s22 + $0xc10] sm:$0xff] }
  0x93   : > { %564 = vst [vmem:[%s12492_s23 + $0x418] sm:$0xff] %v563_v3  ;;  %v691_v3 = vld [vmem:[%s12487_s22 + $0xc18] sm:$0xff] }
  0x94   : > { %566 = vst [vmem:[%s12492_s23 + $0x420] sm:$0xff] %v565_v4  ;;  %v693_v4 = vld [vmem:[%s12487_s22 + $0xc20] sm:$0xff] }
  0x95   : > { %568 = vst [vmem:[%s12492_s23 + $0x428] sm:$0xff] %v567_v5  ;;  %v695_v5 = vld [vmem:[%s12487_s22 + $0xc28] sm:$0xff] }
  0x96   : > { %570 = vst [vmem:[%s12492_s23 + $0x430] sm:$0xff] %v569_v6  ;;  %v697_v6 = vld [vmem:[%s12487_s22 + $0xc30] sm:$0xff] }
  0x97   : > { %572 = vst [vmem:[%s12492_s23 + $0x438] sm:$0xff] %v571_v7  ;;  %v699_v7 = vld [vmem:[%s12487_s22 + $0xc38] sm:$0xff] }
  0x98   : > { %574 = vst [vmem:[%s12492_s23 + $0x440] sm:$0xff] %v573_v8  ;;  %v701_v8 = vld [vmem:[%s12487_s22 + $0xc40] sm:$0xff] }
  0x99   : > { %576 = vst [vmem:[%s12492_s23 + $0x448] sm:$0xff] %v575_v9  ;;  %v703_v9 = vld [vmem:[%s12487_s22 + $0xc48] sm:$0xff] }
  0x9a   : > { %578 = vst [vmem:[%s12492_s23 + $0x450] sm:$0xff] %v577_v10  ;;  %v705_v10 = vld [vmem:[%s12487_s22 + $0xc50] sm:$0xff] }
  0x9b   : > { %580 = vst [vmem:[%s12492_s23 + $0x458] sm:$0xff] %v579_v11  ;;  %v707_v11 = vld [vmem:[%s12487_s22 + $0xc58] sm:$0xff] }
  0x9c   : > { %582 = vst [vmem:[%s12492_s23 + $0x460] sm:$0xff] %v581_v12  ;;  %v709_v12 = vld [vmem:[%s12487_s22 + $0xc60] sm:$0xff] }
  0x9d   : > { %584 = vst [vmem:[%s12492_s23 + $0x468] sm:$0xff] %v583_v13  ;;  %v711_v13 = vld [vmem:[%s12487_s22 + $0xc68] sm:$0xff] }
  0x9e   : > { %586 = vst [vmem:[%s12492_s23 + $0x470] sm:$0xff] %v585_v14  ;;  %v713_v14 = vld [vmem:[%s12487_s22 + $0xc70] sm:$0xff] }
  0x9f   : > { %588 = vst [vmem:[%s12492_s23 + $0x478] sm:$0xff] %v587_v15  ;;  %v715_v15 = vld [vmem:[%s12487_s22 + $0xc78] sm:$0xff] }
  0xa0   : > { %590 = vst [vmem:[%s12492_s23 + $0x480] sm:$0xff] %v589_v16 }
  0xa1   : > { %592 = vst [vmem:[%s12492_s23 + $0x488] sm:$0xff] %v591_v17 }
  0xa2   : > { %594 = vst [vmem:[%s12492_s23 + $0x490] sm:$0xff] %v593_v18 }
  0xa3   : > { %596 = vst [vmem:[%s12492_s23 + $0x498] sm:$0xff] %v595_v19 }
  0xa4   : > { %598 = vst [vmem:[%s12492_s23 + $0x4a0] sm:$0xff] %v597_v20 }
  0xa5   : > { %600 = vst [vmem:[%s12492_s23 + $0x4a8] sm:$0xff] %v599_v21 }
  0xa6   : > { %602 = vst [vmem:[%s12492_s23 + $0x4b0] sm:$0xff] %v601_v22 }
  0xa7   : > { %604 = vst [vmem:[%s12492_s23 + $0x4b8] sm:$0xff] %v603_v23 }
  0xa8   : > { %606 = vst [vmem:[%s12492_s23 + $0x4c0] sm:$0xff] %v605_v24 }
  0xa9   : > { %608 = vst [vmem:[%s12492_s23 + $0x4c8] sm:$0xff] %v607_v25 }
  0xaa   : > { %610 = vst [vmem:[%s12492_s23 + $0x4d0] sm:$0xff] %v609_v26 }
  0xab   : > { %612 = vst [vmem:[%s12492_s23 + $0x4d8] sm:$0xff] %v611_v27 }
  0xac   : > { %614 = vst [vmem:[%s12492_s23 + $0x4e0] sm:$0xff] %v613_v28 }
  0xad   : > { %616 = vst [vmem:[%s12492_s23 + $0x4e8] sm:$0xff] %v615_v29 }
  0xae   : > { %618 = vst [vmem:[%s12492_s23 + $0x4f0] sm:$0xff] %v617_v30 }
  0xaf   : > { %620 = vst [vmem:[%s12492_s23 + $0x4f8] sm:$0xff] %v619_v31 }
  0xb0   : > { %622 = vst [vmem:[%s12492_s23 + $0x500] sm:$0xff] %v621_v32 }
  0xb1   : > { %624 = vst [vmem:[%s12492_s23 + $0x508] sm:$0xff] %v623_v33 }
  0xb2   : > { %626 = vst [vmem:[%s12492_s23 + $0x510] sm:$0xff] %v625_v34 }
  0xb3   : > { %628 = vst [vmem:[%s12492_s23 + $0x518] sm:$0xff] %v627_v35 }
  0xb4   : > { %630 = vst [vmem:[%s12492_s23 + $0x520] sm:$0xff] %v629_v36 }
  0xb5   : > { %632 = vst [vmem:[%s12492_s23 + $0x528] sm:$0xff] %v631_v37 }
  0xb6   : > { %634 = vst [vmem:[%s12492_s23 + $0x530] sm:$0xff] %v633_v38 }
  0xb7   : > { %636 = vst [vmem:[%s12492_s23 + $0x538] sm:$0xff] %v635_v39 }
  0xb8   : > { %638 = vst [vmem:[%s12492_s23 + $0x540] sm:$0xff] %v637_v40 }
  0xb9   : > { %640 = vst [vmem:[%s12492_s23 + $0x548] sm:$0xff] %v639_v41 }
  0xba   : > { %642 = vst [vmem:[%s12492_s23 + $0x550] sm:$0xff] %v641_v42 }
  0xbb   : > { %644 = vst [vmem:[%s12492_s23 + $0x558] sm:$0xff] %v643_v43 }
  0xbc   : > { %646 = vst [vmem:[%s12492_s23 + $0x560] sm:$0xff] %v645_v44 }
  0xbd   : > { %648 = vst [vmem:[%s12492_s23 + $0x568] sm:$0xff] %v647_v45 }
  0xbe   : > { %650 = vst [vmem:[%s12492_s23 + $0x570] sm:$0xff] %v649_v46 }
  0xbf   : > { %652 = vst [vmem:[%s12492_s23 + $0x578] sm:$0xff] %v651_v47 }
  0xc0   : > { %654 = vst [vmem:[%s12492_s23 + $0x580] sm:$0xff] %v653_v48 }
  0xc1   : > { %656 = vst [vmem:[%s12492_s23 + $0x588] sm:$0xff] %v655_v49 }
  0xc2   : > { %658 = vst [vmem:[%s12492_s23 + $0x590] sm:$0xff] %v657_v50 }
  0xc3   : > { %660 = vst [vmem:[%s12492_s23 + $0x598] sm:$0xff] %v659_v51 }
  0xc4   : > { %662 = vst [vmem:[%s12492_s23 + $0x5a0] sm:$0xff] %v661_v52 }
  0xc5   : > { %664 = vst [vmem:[%s12492_s23 + $0x5a8] sm:$0xff] %v663_v53 }
  0xc6   : > { %666 = vst [vmem:[%s12492_s23 + $0x5b0] sm:$0xff] %v665_v54 }
  0xc7   : > { %668 = vst [vmem:[%s12492_s23 + $0x5b8] sm:$0xff] %v667_v55 }
  0xc8   : > { %670 = vst [vmem:[%s12492_s23 + $0x5c0] sm:$0xff] %v669_v56 }
  0xc9   : > { %672 = vst [vmem:[%s12492_s23 + $0x5c8] sm:$0xff] %v671_v57 }
  0xca   : > { %674 = vst [vmem:[%s12492_s23 + $0x5d0] sm:$0xff] %v673_v58 }
  0xcb   : > { %676 = vst [vmem:[%s12492_s23 + $0x5d8] sm:$0xff] %v675_v59 }
  0xcc   : > { %678 = vst [vmem:[%s12492_s23 + $0x5e0] sm:$0xff] %v677_v60 }
  0xcd   : > { %680 = vst [vmem:[%s12492_s23 + $0x5e8] sm:$0xff] %v679_v61 }
  0xce   : > { %682 = vst [vmem:[%s12492_s23 + $0x5f0] sm:$0xff] %v681_v62 }
  0xcf   : > { %684 = vst [vmem:[%s12492_s23 + $0x5f8] sm:$0xff] %v683_v63 }
  0xd0   : > { %686 = vst [vmem:[%s12492_s23 + $0x600] sm:$0xff] %v685_v0 }
  0xd1   : > { %688 = vst [vmem:[%s12492_s23 + $0x608] sm:$0xff] %v687_v1 }
  0xd2   : > { %690 = vst [vmem:[%s12492_s23 + $0x610] sm:$0xff] %v689_v2 }
  0xd3   : > { %692 = vst [vmem:[%s12492_s23 + $0x618] sm:$0xff] %v691_v3 }
  0xd4   : > { %694 = vst [vmem:[%s12492_s23 + $0x620] sm:$0xff] %v693_v4 }
  0xd5   : > { %696 = vst [vmem:[%s12492_s23 + $0x628] sm:$0xff] %v695_v5 }
  0xd6   : > { %698 = vst [vmem:[%s12492_s23 + $0x630] sm:$0xff] %v697_v6 }
  0xd7   : > { %700 = vst [vmem:[%s12492_s23 + $0x638] sm:$0xff] %v699_v7 }
  0xd8   : > { %702 = vst [vmem:[%s12492_s23 + $0x640] sm:$0xff] %v701_v8 }
  0xd9   : > { %704 = vst [vmem:[%s12492_s23 + $0x648] sm:$0xff] %v703_v9 }
  0xda   : > { %706 = vst [vmem:[%s12492_s23 + $0x650] sm:$0xff] %v705_v10 }
  0xdb   : > { %708 = vst [vmem:[%s12492_s23 + $0x658] sm:$0xff] %v707_v11 }
  0xdc   : > { %710 = vst [vmem:[%s12492_s23 + $0x660] sm:$0xff] %v709_v12 }
  0xdd   : > { %712 = vst [vmem:[%s12492_s23 + $0x668] sm:$0xff] %v711_v13 }
  0xde   : > { %714 = vst [vmem:[%s12492_s23 + $0x670] sm:$0xff] %v713_v14 }
  0xdf   : > { %716 = vst [vmem:[%s12492_s23 + $0x678] sm:$0xff] %v715_v15 }
  0xe0 PF: > { %p8223_p5 = scmp.ge.s32.totalorder %s12401_s11, 1  ;;  %p721_p6 = scmp.lt.s32.totalorder %s12401_s11, 3 }
  0xe2   : > { %p722_p7 = pnand %p8223_p5, %p721_p6 }
  0xe3   : > { %s728_s19 = sand.u32 (!%p722_p7), 1, %s12393_s30   ;;  %s8224_s17 = sshll.u32 (!%p722_p7), %s8216_s12, 1 }
  0xe4   : > { %725 = sbr.rel (%p722_p7) target bundleno = 2210 (0x8a2), region = 75  ;;  %p765_p8 = scmp.lt.s32.totalorder (!%p722_p7), %s8224_s17, 3 }
  0xe5   : > { %s12343_s24 = smul.u32 (!%p722_p7), 1664, %s728_s19 }
  0xe7   : > { %s13006_s29 = scalar_lea.vmem (!%p722_p7), [#allocation2], %s12343_s24 }
  0xe9   : > { %v11709_v16 = vld [vmem:[%s17220_s1 + $0x38] sm:$0xff]  ;;  %v11708_v20 = vld [vmem:[%s17220_s1 + $0x30] sm:$0xff]  ;;  %v11707_v24 = vld [vmem:[%s17220_s1 + $0x28] sm:$0xff]  ;;  %vm8103_vm0 = vcmask 48128   ;;  %s17233_s17 = smov (!%p765_p8, %s8224_s17), 3 }
  0xea   : > { %v11717_v17 = vld [vmem:[%s17220_s1 + $0x78] sm:$0xff]  ;;  %3046 = vmatpush.bf16.msra.mxu0 %v11709_v16  ;;  %v11716_v21 = vld [vmem:[%s17220_s1 + $0x70] sm:$0xff]  ;;  %v11715_v25 = vld [vmem:[%s17220_s1 + $0x68] sm:$0xff]  ;;  %s8225_s18 = sshll.u32 %s17233_s17, 3 }
  0xeb   : > { %v11725_v18 = vld [vmem:[%s17220_s1 + $0xb8] sm:$0xff]  ;;  %3120 = vmatpush.bf16.msra.mxu1 %v11717_v17  ;;  %v11724_v22 = vld [vmem:[%s17220_s1 + $0xb0] sm:$0xff]  ;;  %v11723_v26 = vld [vmem:[%s17220_s1 + $0xa8] sm:$0xff]  ;;  %s768_s19 = scalar_lea.vmem %s17228_s9, %s8225_s18 }
  0xec   : > { %v11733_v19 = vld [vmem:[%s17220_s1 + $0xf8] sm:$0xff]  ;;  %3194 = vmatpush.bf16.msra.mxu2 %v11725_v18  ;;  %v11732_v23 = vld [vmem:[%s17220_s1 + $0xf0] sm:$0xff]  ;;  %v11731_v27 = vld [vmem:[%s17220_s1 + $0xe8] sm:$0xff] }
  0xed   : > { %3268 = vmatpush.bf16.msra.mxu3 %v11733_v19  ;;  %v11706_v28 = vld [vmem:[%s17220_s1 + $0x20] sm:$0xff]  ;;  %v11705_v32 = vld [vmem:[%s17220_s1 + $0x18] sm:$0xff]  ;;  %v11704_v36 = vld [vmem:[%s17220_s1 + $0x10] sm:$0xff] }
  0xee   : > { %3047 = vmatpush.bf16.msra.mxu0 %v11708_v20  ;;  %v11714_v29 = vld [vmem:[%s17220_s1 + $0x60] sm:$0xff]  ;;  %v11713_v33 = vld [vmem:[%s17220_s1 + $0x58] sm:$0xff]  ;;  %v11712_v37 = vld [vmem:[%s17220_s1 + $0x50] sm:$0xff] }
  0xef   : > { %3121 = vmatpush.bf16.msra.mxu1 %v11716_v21  ;;  %v11722_v30 = vld [vmem:[%s17220_s1 + $0xa0] sm:$0xff]  ;;  %v11721_v34 = vld [vmem:[%s17220_s1 + $0x98] sm:$0xff]  ;;  %v11720_v38 = vld [vmem:[%s17220_s1 + $0x90] sm:$0xff] }
  0xf0   : > { %3195 = vmatpush.bf16.msra.mxu2 %v11724_v22  ;;  %v11730_v31 = vld [vmem:[%s17220_s1 + $0xe0] sm:$0xff]  ;;  %v11729_v35 = vld [vmem:[%s17220_s1 + $0xd8] sm:$0xff]  ;;  %v11728_v39 = vld [vmem:[%s17220_s1 + $0xd0] sm:$0xff] }
  0xf1   : > { %3269 = vmatpush.bf16.msra.mxu3 %v11732_v23  ;;  %v11703_v40 = vld [vmem:[%s17220_s1 + $0x8] sm:$0xff]  ;;  %v11702_v44 = vld [vmem:[%s17220_s1] sm:$0xff] }
  0xf2   : > { %3048 = vmatpush.bf16.msra.mxu0 %v11707_v24  ;;  %v11711_v41 = vld [vmem:[%s17220_s1 + $0x48] sm:$0xff]  ;;  %v11710_v45 = vld [vmem:[%s17220_s1 + $0x40] sm:$0xff] }
  0xf3   : > { %3122 = vmatpush.bf16.msra.mxu1 %v11715_v25  ;;  %v11719_v42 = vld [vmem:[%s17220_s1 + $0x88] sm:$0xff]  ;;  %v11718_v46 = vld [vmem:[%s17220_s1 + $0x80] sm:$0xff] }
  0xf4   : > { %3196 = vmatpush.bf16.msra.mxu2 %v11723_v26  ;;  %v11727_v43 = vld [vmem:[%s17220_s1 + $0xc8] sm:$0xff]  ;;  %v11726_v47 = vld [vmem:[%s17220_s1 + $0xc0] sm:$0xff] }
  0xf5   : > { %3270 = vmatpush.bf16.msra.mxu3 %v11731_v27  ;;  %v8228_v48 = vld [vmem:[%s13006_s29] sm:$0xf]  ;;  %v11494_v50 = vld [vmem:[%s13006_s29 + $0x4] sm:$0xf]  ;;  %v8236_v52 = vld [vmem:[%s13006_s29 + $0x8] sm:$0xf] }
  0xf6   : > { %3049 = vmatpush.bf16.msra.mxu0 %v11706_v28  ;;  %v11502_v49 = vld [vmem:[%s13006_s29 + $0x3c] sm:$0xf0]  ;;  %v8230_v51 = vld [vmem:[%s13006_s29 + $0x40] sm:$0xf0]  ;;  %v11503_v53 = vld [vmem:[%s13006_s29 + $0x44] sm:$0xf0] }
  0xf7   : > { %3123 = vmatpush.bf16.msra.mxu1 %v11714_v29  ;;  %v11495_v54 = vld [vmem:[%s13006_s29 + $0xc] sm:$0xf]  ;;  %v8229_v56 = vor.u32 %v11502_v49, %v8228_v48  ;;  %v8233_v57 = vor.u32 %v11494_v50, %v8230_v51  ;;  %v8237_v58 = vor.u32 %v11503_v53, %v8236_v52  ;;  %v8292_v60 = vld [vmem:[%s13006_s29 + $0x80] sm:$0xf]  ;;  %v11510_v62 = vld [vmem:[%s13006_s29 + $0x84] sm:$0xf] }
  0xf8   : > { %3197 = vmatpush.bf16.msra.mxu2 %v11722_v30  ;;  %v8238_v55 = vld [vmem:[%s13006_s29 + $0x48] sm:$0xf0]  ;;  %v11518_v61 = vld [vmem:[%s13006_s29 + $0xbc] sm:$0xf0]  ;;  %v8294_v63 = vld [vmem:[%s13006_s29 + $0xc0] sm:$0xf0] }
  0xf9   : > { %3271 = vmatpush.bf16.msra.mxu3 %v11730_v31  ;;  %v8241_v59 = vor.u32 %v11495_v54, %v8238_v55  ;;  %v8300_v0 = vld [vmem:[%s13006_s29 + $0x88] sm:$0xf]  ;;  %v11511_v2 = vld [vmem:[%s13006_s29 + $0x8c] sm:$0xf]  ;;  %v8293_v4 = vor.u32 %v11518_v61, %v8292_v60  ;;  %v8297_v5 = vor.u32 %v11510_v62, %v8294_v63  ;;  %v8356_v8 = vld [vmem:[%s13006_s29 + $0x100] sm:$0xf] }
  0xfa   : > { %3050 = vmatpush.bf16.msra.mxu0 %v11705_v32  ;;  %v11519_v1 = vld [vmem:[%s13006_s29 + $0xc4] sm:$0xf0]  ;;  %v8302_v3 = vld [vmem:[%s13006_s29 + $0xc8] sm:$0xf0]  ;;  %v11534_v9 = vld [vmem:[%s13006_s29 + $0x13c] sm:$0xf0] }
  0xfb   : > { %3124 = vmatpush.bf16.msra.mxu1 %v11713_v33  ;;  %v8301_v6 = vor.u32 %v11519_v1, %v8300_v0  ;;  %v8305_v7 = vor.u32 %v11511_v2, %v8302_v3  ;;  %v11526_v10 = vld [vmem:[%s13006_s29 + $0x104] sm:$0xf]  ;;  %v8364_v12 = vld [vmem:[%s13006_s29 + $0x108] sm:$0xf]  ;;  %v11527_v14 = vld [vmem:[%s13006_s29 + $0x10c] sm:$0xf]  ;;  %v8357_v16 = vor.u32 %v11534_v9, %v8356_v8 }
  0xfc   : > { %3198 = vmatpush.bf16.msra.mxu2 %v11721_v34  ;;  %v8358_v11 = vld [vmem:[%s13006_s29 + $0x140] sm:$0xf0]  ;;  %v11535_v13 = vld [vmem:[%s13006_s29 + $0x144] sm:$0xf0]  ;;  %v8366_v15 = vld [vmem:[%s13006_s29 + $0x148] sm:$0xf0] }
  0xfd   : > { %3272 = vmatpush.bf16.msra.mxu3 %v11729_v35  ;;  %v8361_v17 = vor.u32 %v11526_v10, %v8358_v11  ;;  %v8365_v18 = vor.u32 %v11535_v13, %v8364_v12  ;;  %v8369_v19 = vor.u32 %v11527_v14, %v8366_v15  ;;  %v8420_v20 = vld [vmem:[%s13006_s29 + $0x180] sm:$0xf]  ;;  %v11542_v22 = vld [vmem:[%s13006_s29 + $0x184] sm:$0xf]  ;;  %v8428_v24 = vld [vmem:[%s13006_s29 + $0x188] sm:$0xf] }
  0xfe   : > { %3051 = vmatpush.bf16.msra.mxu0 %v11704_v36  ;;  %v11550_v21 = vld [vmem:[%s13006_s29 + $0x1bc] sm:$0xf0]  ;;  %v8422_v23 = vld [vmem:[%s13006_s29 + $0x1c0] sm:$0xf0]  ;;  %v11551_v25 = vld [vmem:[%s13006_s29 + $0x1c4] sm:$0xf0] }
  0xff   : > { %3125 = vmatpush.bf16.msra.mxu1 %v11712_v37  ;;  %v11543_v26 = vld [vmem:[%s13006_s29 + $0x18c] sm:$0xf]  ;;  %v8421_v28 = vor.u32 %v11550_v21, %v8420_v20  ;;  %v8425_v29 = vor.u32 %v11542_v22, %v8422_v23  ;;  %v8429_v30 = vor.u32 %v11551_v25, %v8428_v24  ;;  %v8484_v32 = vld [vmem:[%s13006_s29 + $0x200] sm:$0xf]  ;;  %v11558_v34 = vld [vmem:[%s13006_s29 + $0x204] sm:$0xf] }
 0x100   : > { %3199 = vmatpush.bf16.msra.mxu2 %v11720_v38  ;;  %v8430_v27 = vld [vmem:[%s13006_s29 + $0x1c8] sm:$0xf0]  ;;  %v11566_v33 = vld [vmem:[%s13006_s29 + $0x23c] sm:$0xf0]  ;;  %v8486_v35 = vld [vmem:[%s13006_s29 + $0x240] sm:$0xf0] }
 0x101   : > { %3273 = vmatpush.bf16.msra.mxu3 %v11728_v39  ;;  %v8433_v31 = vor.u32 %v11543_v26, %v8430_v27  ;;  %v8492_v36 = vld [vmem:[%s13006_s29 + $0x208] sm:$0xf]  ;;  %v11559_v38 = vld [vmem:[%s13006_s29 + $0x20c] sm:$0xf]  ;;  %v8548_v48 = vld [vmem:[%s13006_s29 + $0x280] sm:$0xf] }
 0x102   : > { %3052 = vmatpush.bf16.msra.mxu0 %v11703_v40  ;;  %v11567_v37 = vld [vmem:[%s13006_s29 + $0x244] sm:$0xf0]  ;;  %v8494_v39 = vld [vmem:[%s13006_s29 + $0x248] sm:$0xf0]  ;;  %v8485_v40 = vor.u32 %v11566_v33, %v8484_v32  ;;  %v11582_v49 = vld [vmem:[%s13006_s29 + $0x2bc] sm:$0xf0] }
 0x103   : > { %3126 = vmatpush.bf16.msra.mxu1 %v11711_v41  ;;  %v8489_v41 = vor.u32 %v11558_v34, %v8486_v35  ;;  %v11574_v50 = vld [vmem:[%s13006_s29 + $0x284] sm:$0xf]  ;;  %v8556_v52 = vld [vmem:[%s13006_s29 + $0x288] sm:$0xf]  ;;  %v11575_v54 = vld [vmem:[%s13006_s29 + $0x28c] sm:$0xf] }
 0x104   : > { %3200 = vmatpush.bf16.msra.mxu2 %v11719_v42  ;;  %v8493_v42 = vor.u32 %v11567_v37, %v8492_v36  ;;  %v8550_v51 = vld [vmem:[%s13006_s29 + $0x2c0] sm:$0xf0]  ;;  %v11583_v53 = vld [vmem:[%s13006_s29 + $0x2c4] sm:$0xf0]  ;;  %v8558_v55 = vld [vmem:[%s13006_s29 + $0x2c8] sm:$0xf0] }
 0x105   : > { %3274 = vmatpush.bf16.msra.mxu3 %v11727_v43  ;;  %v8497_v43 = vor.u32 %v11559_v38, %v8494_v39  ;;  %v8612_v60 = vld [vmem:[%s13006_s29 + $0x300] sm:$0xf]  ;;  %v11590_v62 = vld [vmem:[%s13006_s29 + $0x304] sm:$0xf]  ;;  %v8620_v0 = vld [vmem:[%s13006_s29 + $0x308] sm:$0xf] }
 0x106   : > { %3053 = vmatpush.bf16.msra.mxu0 %v11702_v44  ;;  %v11757_v44 = vld [vmem:[%s17220_s1 + $0x1b8] sm:$0xff]  ;;  %v11598_v61 = vld [vmem:[%s13006_s29 + $0x33c] sm:$0xf0]  ;;  %v8614_v63 = vld [vmem:[%s13006_s29 + $0x340] sm:$0xf0] }
 0x107   : > { %3127 = vmatpush.bf16.msra.mxu1 %v11710_v45  ;;  %v11741_v45 = vld [vmem:[%s17220_s1 + $0x138] sm:$0xff]  ;;  %v11599_v1 = vld [vmem:[%s13006_s29 + $0x344] sm:$0xf0]  ;;  %v11591_v2 = vld [vmem:[%s13006_s29 + $0x30c] sm:$0xf] }
 0x108   : > { %3201 = vmatpush.bf16.msra.mxu2 %v11718_v46  ;;  %v11765_v46 = vld [vmem:[%s17220_s1 + $0x1f8] sm:$0xff]  ;;  %v8622_v3 = vld [vmem:[%s13006_s29 + $0x348] sm:$0xf0]  ;;  %v11756_v8 = vld [vmem:[%s17220_s1 + $0x1b0] sm:$0xff] }
 0x109   : > { %3275 = vmatpush.bf16.msra.mxu3 %v11726_v47  ;;  %3054 = vmatmul.bf16.vlgmr.msra.gmra.mxu0 %v8229_v56  ;;  %v11749_v47 = vld [vmem:[%s17220_s1 + $0x178] sm:$0xff]  ;;  %v8549_v56 = vor.u32 %v11582_v49, %v8548_v48  ;;  %v11740_v9 = vld [vmem:[%s17220_s1 + $0x130] sm:$0xff]  ;;  %v8676_v11 = vld [vmem:[%s13006_s29 + $0x380] sm:$0xf] }
 0x10a   : > { %3128 = vmatmul.bf16.vlgmr.msra.gmra.mxu1 %v8233_v57  ;;  %3342 = vmatpush.bf16.msrb.mxu0 %v11741_v45  ;;  %v8553_v57 = vor.u32 %v11574_v50, %v8550_v51  ;;  %v11764_v10 = vld [vmem:[%s17220_s1 + $0x1f0] sm:$0xff]  ;;  %v11614_v12 = vld [vmem:[%s13006_s29 + $0x3bc] sm:$0xf0]  ;;  %v11606_v14 = vld [vmem:[%s13006_s29 + $0x384] sm:$0xf] }
 0x10b   : > { %3202 = vmatmul.bf16.vlgmr.msra.gmra.mxu2 %v8237_v58  ;;  %3416 = vmatpush.bf16.msrb.mxu1 %v11749_v47  ;;  %v8557_v58 = vor.u32 %v11583_v53, %v8556_v52  ;;  %v11748_v13 = vld [vmem:[%s17220_s1 + $0x170] sm:$0xff]  ;;  %v8678_v15 = vld [vmem:[%s13006_s29 + $0x3c0] sm:$0xf0]  ;;  %v8677_v20 = vor.u32 %v11614_v12, %v8676_v11  ;;  %v13099_v24 = vld [vmem:[%s17221_s2] ss:$0 sm:$0xff] }
 0x10c   : > { %3276 = vmatmul.bf16.vlgmr.msra.gmra.mxu3 %v8241_v59  ;;  %3490 = vmatpush.bf16.msrb.mxu2 %v11757_v44  ;;  %v8561_v59 = vor.u32 %v11575_v54, %v8558_v55  ;;  %v8681_v21 = vor.u32 %v11606_v14, %v8678_v15  ;;  %v8740_v25 = vld [vmem:[%s13006_s29 + $0x400] sm:$0xf]  ;;  %v11622_v27 = vld [vmem:[%s13006_s29 + $0x404] sm:$0xf]  ;;  %v8750_v32 = vld [vmem:[%s13006_s29 + $0x448] sm:$0xf0] }
 0x10d   : > { %3564 = vmatpush.bf16.msrb.mxu3 %v11765_v46  ;;  %v11630_v26 = vld [vmem:[%s13006_s29 + $0x43c] sm:$0xf0]  ;;  %v11747_v44 = vld [vmem:[%s17220_s1 + $0x168] sm:$0xff]  ;;  %v11638_v55 = vld [vmem:[%s13006_s29 + $0x484] sm:$0xf] }
 0x10e   : > { %3343 = vmatpush.bf16.msrb.mxu0 %v11740_v9  ;;  %v8741_v33 = vor.u32 %v11630_v26, %v8740_v25  ;;  %v8804_v53 = vld [vmem:[%s13006_s29 + $0x480] sm:$0xf]  ;;  %v8876_v25 = vld [vmem:[%s13006_s29 + $0x508] sm:$0xf] }
 0x10f   : > { %3417 = vmatpush.bf16.msrb.mxu1 %v11748_v13  ;;  %v11646_v54 = vld [vmem:[%s13006_s29 + $0x4bc] sm:$0xf0] }
 0x110   : > { %3491 = vmatpush.bf16.msrb.mxu2 %v11756_v8  ;;  %v11746_v26 = vld [vmem:[%s17220_s1 + $0x160] sm:$0xff] }
 0x111   : > { %3565 = vmatpush.bf16.msrb.mxu3 %v11764_v10 }
 0x113   : > { %3418 = vmatpush.bf16.msrb.mxu1 %v11747_v44  ;;  %v11753_v44 = vld [vmem:[%s17220_s1 + $0x198] sm:$0xff] }
 0x117   : > { %3419 = vmatpush.bf16.msrb.mxu1 %v11746_v26 }
 0x119   : > { %3059 = vmatmul.bf16.gmra.mxu0 %v8293_v4  ;;  %v8613_v4 = vor.u32 %v11598_v61, %v8612_v60  ;;  %v8814_v60 = vld [vmem:[%s13006_s29 + $0x4c8] sm:$0xf0] }
 0x11a   : > { %3133 = vmatmul.bf16.gmra.mxu1 %v8297_v5  ;;  %v8617_v5 = vor.u32 %v11590_v62, %v8614_v63  ;;  %v8805_v63 = vor.u32 %v11646_v54, %v8804_v53 }
 0x11b   : > { %3207 = vmatmul.bf16.gmra.mxu2 %v8301_v6  ;;  %v8621_v6 = vor.u32 %v11599_v1, %v8620_v0 }
 0x11c   : > { %3281 = vmatmul.bf16.gmra.mxu3 %v8305_v7  ;;  %v8625_v7 = vor.u32 %v11591_v2, %v8622_v3 }
 0x129   : > { %3064 = vmatmul.bf16.gmra.mxu0 %v8357_v16  ;;  %v8684_v16 = vld [vmem:[%s13006_s29 + $0x388] sm:$0xf] }
 0x12a   : > { %3138 = vmatmul.bf16.gmra.mxu1 %v8361_v17  ;;  %v11615_v17 = vld [vmem:[%s13006_s29 + $0x3c4] sm:$0xf0] }
 0x12b   : > { %3212 = vmatmul.bf16.gmra.mxu2 %v8365_v18  ;;  %v11607_v18 = vld [vmem:[%s13006_s29 + $0x38c] sm:$0xf]  ;;  %v8685_v22 = vor.u32 %v11615_v17, %v8684_v16  ;;  %v8868_v16 = vld [vmem:[%s13006_s29 + $0x500] sm:$0xf] }
 0x12c   : > { %3286 = vmatmul.bf16.gmra.mxu3 %v8369_v19  ;;  %v8686_v19 = vld [vmem:[%s13006_s29 + $0x3c8] sm:$0xf0]  ;;  %v11662_v17 = vld [vmem:[%s13006_s29 + $0x53c] sm:$0xf0] }
 0x12d   : > { %v8689_v23 = vor.u32 %v11607_v18, %v8686_v19  ;;  %v11654_v18 = vld [vmem:[%s13006_s29 + $0x504] sm:$0xf] }
 0x139   : > { %3069 = vmatmul.bf16.gmra.mxu0 %v8421_v28  ;;  %v8742_v28 = vld [vmem:[%s13006_s29 + $0x440] sm:$0xf0] }
 0x13a   : > { %3143 = vmatmul.bf16.gmra.mxu1 %v8425_v29  ;;  %v8748_v29 = vld [vmem:[%s13006_s29 + $0x408] sm:$0xf]  ;;  %v8745_v34 = vor.u32 %v11622_v27, %v8742_v28  ;;  %v11655_v28 = vld [vmem:[%s13006_s29 + $0x50c] sm:$0xf] }
 0x13b   : > { %3217 = vmatmul.bf16.gmra.mxu2 %v8429_v30  ;;  %v11631_v30 = vld [vmem:[%s13006_s29 + $0x444] sm:$0xf0] }
 0x13c   : > { %3291 = vmatmul.bf16.gmra.mxu3 %v8433_v31  ;;  %v11623_v31 = vld [vmem:[%s13006_s29 + $0x40c] sm:$0xf]  ;;  %v8749_v37 = vor.u32 %v11631_v30, %v8748_v29  ;;  %v11663_v27 = vld [vmem:[%s13006_s29 + $0x544] sm:$0xf0] }
 0x13d   : > { %v8753_v38 = vor.u32 %v11623_v31, %v8750_v32  ;;  %v8878_v29 = vld [vmem:[%s13006_s29 + $0x548] sm:$0xf0]  ;;  %v8869_v32 = vor.u32 %v11662_v17, %v8868_v16 }
 0x149   : > { %3074 = vmatmul.bf16.gmra.mxu0 %v8485_v40  ;;  %v11755_v40 = vld [vmem:[%s17220_s1 + $0x1a8] sm:$0xff] }
 0x14a   : > { %3148 = vmatmul.bf16.gmra.mxu1 %v8489_v41  ;;  %3492 = vmatpush.bf16.msrb.mxu2 %v11755_v40 }
 0x14b   : > { %3222 = vmatmul.bf16.gmra.mxu2 %v8493_v42  ;;  %v11739_v42 = vld [vmem:[%s17220_s1 + $0x128] sm:$0xff] }
 0x14c   : > { %3296 = vmatmul.bf16.gmra.mxu3 %v8497_v43  ;;  %v11763_v43 = vld [vmem:[%s17220_s1 + $0x1e8] sm:$0xff]  ;;  %3344 = vmatpush.bf16.msrb.mxu0 %v11739_v42  ;;  %v11737_v42 = vld [vmem:[%s17220_s1 + $0x118] sm:$0xff] }
 0x14d   : > { %3566 = vmatpush.bf16.msrb.mxu3 %v11763_v43  ;;  %v11745_v43 = vld [vmem:[%s17220_s1 + $0x158] sm:$0xff] }
 0x14e   : > { %3420 = vmatpush.bf16.msrb.mxu1 %v11745_v43 }
 0x159   : > { %3079 = vmatmul.bf16.gmra.mxu0 %v8549_v56  ;;  %v8806_v56 = vld [vmem:[%s13006_s29 + $0x4c0] sm:$0xf0] }
 0x15a   : > { %3153 = vmatmul.bf16.gmra.mxu1 %v8553_v57  ;;  %v8812_v57 = vld [vmem:[%s13006_s29 + $0x488] sm:$0xf]  ;;  %v8809_v0 = vor.u32 %v11638_v55, %v8806_v56  ;;  %v11760_v55 = vld [vmem:[%s17220_s1 + $0x1d0] sm:$0xff] }
 0x15b   : > { %3227 = vmatmul.bf16.gmra.mxu2 %v8557_v58  ;;  %v11647_v58 = vld [vmem:[%s13006_s29 + $0x4c4] sm:$0xf0] }
 0x15c   : > { %3301 = vmatmul.bf16.gmra.mxu3 %v8561_v59  ;;  %v11639_v59 = vld [vmem:[%s13006_s29 + $0x48c] sm:$0xf] }
 0x169   : > { %3084 = vmatmul.bf16.gmra.mxu0 %v8613_v4  ;;  %v8813_v4 = vor.u32 %v11647_v58, %v8812_v57  ;;  %v8932_v58 = vld [vmem:[%s13006_s29 + $0x580] sm:$0xf] }
 0x16a   : > { %3158 = vmatmul.bf16.gmra.mxu1 %v8617_v5  ;;  %v8817_v5 = vor.u32 %v11639_v59, %v8814_v60  ;;  %v11678_v59 = vld [vmem:[%s13006_s29 + $0x5bc] sm:$0xf0]  ;;  %v11670_v60 = vld [vmem:[%s13006_s29 + $0x584] sm:$0xf] }
 0x16b   : > { %3232 = vmatmul.bf16.gmra.mxu2 %v8621_v6 }
 0x16c   : > { %3306 = vmatmul.bf16.gmra.mxu3 %v8625_v7 }
 0x179   : > { %3089 = vmatmul.bf16.gmra.mxu0 %v8677_v20  ;;  %v11754_v20 = vld [vmem:[%s17220_s1 + $0x1a0] sm:$0xff] }
 0x17a   : > { %3163 = vmatmul.bf16.gmra.mxu1 %v8681_v21  ;;  %v11738_v21 = vld [vmem:[%s17220_s1 + $0x120] sm:$0xff]  ;;  %3493 = vmatpush.bf16.msrb.mxu2 %v11754_v20 }
 0x17b   : > { %3237 = vmatmul.bf16.gmra.mxu2 %v8685_v22  ;;  %v11762_v22 = vld [vmem:[%s17220_s1 + $0x1e0] sm:$0xff]  ;;  %3345 = vmatpush.bf16.msrb.mxu0 %v11738_v21 }
 0x17c   : > { %3311 = vmatmul.bf16.gmra.mxu3 %v8689_v23  ;;  %v8870_v23 = vld [vmem:[%s13006_s29 + $0x540] sm:$0xf0] }
 0x17d   : > { %3567 = vmatpush.bf16.msrb.mxu3 %v11762_v22  ;;  %v11758_v22 = vld [vmem:[%s17220_s1 + $0x1c0] sm:$0xff] }
 0x17e   : > { %3494 = vmatpush.bf16.msrb.mxu2 %v11753_v44 }
 0x17f   : > { %3346 = vmatpush.bf16.msrb.mxu0 %v11737_v42  ;;  %v9006_v42 = vld [vmem:[%s13006_s29 + $0x648] sm:$0xf0] }
 0x186   : > { %v3055_v35 = vpop.f32.mrf.mxu0 }
 0x187   : > { %v3129_v36 = vpop.f32.mrf.mxu1  ;;  %v3056_v39 = vadd.f32 %v13099_v24, %v3055_v35 }
 0x189   : > { %v3130_v41 = vadd.f32 %v3129_v36, %v3056_v39  ;;  %3094 = vmatmul.bf16.gmra.mxu0 %v8741_v33  ;;  %v8873_v33 = vor.u32 %v11654_v18, %v8870_v23 }
 0x18a   : > { %3168 = vmatmul.bf16.gmra.mxu1 %v8745_v34 }
 0x18b   : > { %3242 = vmatmul.bf16.gmra.mxu2 %v8749_v37  ;;  %v8877_v37 = vor.u32 %v11663_v27, %v8876_v25 }
 0x18c   : > { %3316 = vmatmul.bf16.gmra.mxu3 %v8753_v38  ;;  %v8881_v38 = vor.u32 %v11655_v28, %v8878_v29 }
 0x18e   : > { %v3203_v45 = vpop.f32.mrf.mxu2  ;;  %v3057_v48 = vpop.f32.mrf.mxu0 }
 0x18f   : > { %v3277_v46 = vpop.f32.mrf.mxu3  ;;  %v3204_v47 = vadd.f32 %v3203_v45, %v3130_v41  ;;  %v3131_v49 = vpop.f32.mrf.mxu1  ;;  %v3058_v50 = vadd.f32 %v13099_v24, %v3057_v48  ;;  %v11761_v45 = vld [vmem:[%s17220_s1 + $0x1d8] sm:$0xff]  ;;  %v11736_v48 = vld [vmem:[%s17220_s1 + $0x110] sm:$0xff] }
 0x190   : > { %3568 = vmatpush.bf16.msrb.mxu3 %v11761_v45  ;;  %3347 = vmatpush.bf16.msrb.mxu0 %v11736_v48 }
 0x191   : > { %v13123_v51 = vadd.f32 %v3277_v46, %v3204_v47  ;;  %v3132_v52 = vadd.f32 %v3131_v49, %v3058_v50  ;;  %v11744_v49 = vld [vmem:[%s17220_s1 + $0x150] sm:$0xff] }
 0x192   : > { %v11752_v50 = vld [vmem:[%s17220_s1 + $0x190] sm:$0xff]  ;;  %3421 = vmatpush.bf16.msrb.mxu1 %v11744_v49 }
 0x193   : > { %3495 = vmatpush.bf16.msrb.mxu2 %v11752_v50 }
 0x194   : > { %3569 = vmatpush.bf16.msrb.mxu3 %v11760_v55 }
 0x196   : > { %v3205_v61 = vpop.f32.mrf.mxu2  ;;  %v3060_v2 = vpop.f32.mrf.mxu0 }
 0x197   : > { %v3279_v62 = vpop.f32.mrf.mxu3  ;;  %v3206_v1 = vadd.f32 %v3205_v61, %v3132_v52  ;;  %v3134_v3 = vpop.f32.mrf.mxu1  ;;  %v3061_v6 = vadd.f32 %v13099_v24, %v3060_v2  ;;  %v8940_v2 = vld [vmem:[%s13006_s29 + $0x588] sm:$0xf] }
 0x199   : > { %v13134_v7 = vadd.f32 %v3279_v62, %v3206_v1  ;;  %v3135_v8 = vadd.f32 %v3134_v3, %v3061_v6  ;;  %3099 = vmatmul.bf16.gmra.mxu0 %v8805_v63  ;;  %v11735_v62 = vld [vmem:[%s17220_s1 + $0x108] sm:$0xff]  ;;  %v8934_v1 = vld [vmem:[%s13006_s29 + $0x5c0] sm:$0xf0] }
 0x19a   : > { %3173 = vmatmul.bf16.gmra.mxu1 %v8809_v0  ;;  %v11743_v63 = vld [vmem:[%s17220_s1 + $0x148] sm:$0xff]  ;;  %3348 = vmatpush.bf16.msrb.mxu0 %v11735_v62 }
 0x19b   : > { %3247 = vmatmul.bf16.gmra.mxu2 %v8813_v4  ;;  %v11751_v0 = vld [vmem:[%s17220_s1 + $0x188] sm:$0xff]  ;;  %3422 = vmatpush.bf16.msrb.mxu1 %v11743_v63 }
 0x19c   : > { %3321 = vmatmul.bf16.gmra.mxu3 %v8817_v5  ;;  %v11759_v3 = vld [vmem:[%s17220_s1 + $0x1c8] sm:$0xff]  ;;  %3496 = vmatpush.bf16.msrb.mxu2 %v11751_v0 }
 0x19d   : > { %v11679_v4 = vld [vmem:[%s13006_s29 + $0x5c4] sm:$0xf0]  ;;  %v11671_v5 = vld [vmem:[%s13006_s29 + $0x58c] sm:$0xf]  ;;  %3570 = vmatpush.bf16.msrb.mxu3 %v11759_v3  ;;  %v11496_v3 = vld [vmem:[%s13006_s29 + $0x14] sm:$0xf] }
 0x19e   : > { %v3208_v9 = vpop.f32.mrf.mxu2  ;;  %v3062_v12 = vpop.f32.mrf.mxu0  ;;  %v8942_v6 = vld [vmem:[%s13006_s29 + $0x5c8] sm:$0xf0] }
 0x19f   : > { %v3282_v10 = vpop.f32.mrf.mxu3  ;;  %v3209_v11 = vadd.f32 %v3208_v9, %v3135_v8  ;;  %v3136_v13 = vpop.f32.mrf.mxu1  ;;  %v3063_v14 = vadd.f32 %v13099_v24, %v3062_v12  ;;  %v11734_v12 = vld [vmem:[%s17220_s1 + $0x100] sm:$0xff]  ;;  %v8945_v20 = vor.u32 %v11671_v5, %v8942_v6  ;;  %v8252_v5 = vld [vmem:[%s13006_s29 + $0x18] sm:$0xf] }
 0x1a0   : > { %3349 = vmatpush.bf16.msrb.mxu0 %v11734_v12  ;;  %v11505_v6 = vld [vmem:[%s13006_s29 + $0x54] sm:$0xf0] }
 0x1a1   : > { %v13137_v15 = vadd.f32 %v3282_v10, %v3209_v11  ;;  %v3137_v19 = vadd.f32 %v3136_v13, %v3063_v14  ;;  %v8933_v10 = vor.u32 %v11678_v59, %v8932_v58  ;;  %v8937_v11 = vor.u32 %v11670_v60, %v8934_v1  ;;  %v11742_v13 = vld [vmem:[%s17220_s1 + $0x140] sm:$0xff]  ;;  %3571 = vmatpush.bf16.msrb.mxu3 %v11758_v22  ;;  %v8244_v1 = vld [vmem:[%s13006_s29 + $0x10] sm:$0xf] }
 0x1a2   : > { %v11750_v14 = vld [vmem:[%s17220_s1 + $0x180] sm:$0xff]  ;;  %3423 = vmatpush.bf16.msrb.mxu1 %v11742_v13 }
 0x1a3   : > { %3497 = vmatpush.bf16.msrb.mxu2 %v11750_v14 }
 0x1a6   : > { %v3210_v30 = vpop.f32.mrf.mxu2  ;;  %v3065_v35 = vpop.f32.mrf.mxu0 }
 0x1a7   : > { %v3284_v31 = vpop.f32.mrf.mxu3  ;;  %v3211_v34 = vadd.f32 %v3210_v30, %v3137_v19  ;;  %v3139_v36 = vpop.f32.mrf.mxu1  ;;  %v3066_v39 = vadd.f32 %v13099_v24, %v3065_v35  ;;  %v8941_v19 = vor.u32 %v11679_v4, %v8940_v2  ;;  %v11694_v35 = vld [vmem:[%s13006_s29 + $0x63c] sm:$0xf0]  ;;  %v11504_v2 = vld [vmem:[%s13006_s29 + $0x4c] sm:$0xf0]  ;;  %v8246_v4 = vld [vmem:[%s13006_s29 + $0x50] sm:$0xf0] }
 0x1a8   : > { %v8245_v12 = vor.u32 %v11504_v2, %v8244_v1  ;;  %v8249_v13 = vor.u32 %v11496_v3, %v8246_v4  ;;  %v8372_v3 = vld [vmem:[%s13006_s29 + $0x110] sm:$0xf] }
 0x1a9   : > { %v13160_v40 = vadd.f32 %v3284_v31, %v3211_v34  ;;  %v3140_v41 = vadd.f32 %v3139_v36, %v3066_v39  ;;  %3104 = vmatmul.bf16.gmra.mxu0 %v8869_v32  ;;  %v8996_v34 = vld [vmem:[%s13006_s29 + $0x600] sm:$0xf]  ;;  %v11686_v36 = vld [vmem:[%s13006_s29 + $0x604] sm:$0xf]  ;;  %v11695_v39 = vld [vmem:[%s13006_s29 + $0x644] sm:$0xf0] }
 0x1aa   : > { %3178 = vmatmul.bf16.gmra.mxu1 %v8873_v33  ;;  %v8997_v45 = vor.u32 %v11694_v35, %v8996_v34  ;;  %v8308_v34 = vld [vmem:[%s13006_s29 + $0x90] sm:$0xf] }
 0x1ab   : > { %3252 = vmatmul.bf16.gmra.mxu2 %v8877_v37  ;;  %v8998_v37 = vld [vmem:[%s13006_s29 + $0x640] sm:$0xf0]  ;;  %v11520_v35 = vld [vmem:[%s13006_s29 + $0xcc] sm:$0xf0] }
 0x1ac   : > { %3326 = vmatmul.bf16.gmra.mxu3 %v8881_v38  ;;  %v9004_v38 = vld [vmem:[%s13006_s29 + $0x608] sm:$0xf]  ;;  %v11536_v4 = vld [vmem:[%s13006_s29 + $0x14c] sm:$0xf0] }
 0x1ad   : > { %v9005_v50 = vor.u32 %v11695_v39, %v9004_v38  ;;  %v8316_v38 = vld [vmem:[%s13006_s29 + $0x98] sm:$0xf] }
 0x1ae   : > { %v3213_v46 = vpop.f32.mrf.mxu2  ;;  %v3067_v53 = vpop.f32.mrf.mxu0  ;;  %v11521_v39 = vld [vmem:[%s13006_s29 + $0xd4] sm:$0xf0] }
 0x1af   : > { %v3287_v47 = vpop.f32.mrf.mxu3  ;;  %v3214_v52 = vadd.f32 %v3213_v46, %v3140_v41  ;;  %v3141_v54 = vpop.f32.mrf.mxu1  ;;  %v3068_v56 = vadd.f32 %v13099_v24, %v3067_v53  ;;  %v11687_v41 = vld [vmem:[%s13006_s29 + $0x60c] sm:$0xf]  ;;  %v9001_v46 = vor.u32 %v11686_v36, %v8998_v37  ;;  %v11512_v36 = vld [vmem:[%s13006_s29 + $0x94] sm:$0xf] }
 0x1b0   : > { %v8310_v37 = vld [vmem:[%s13006_s29 + $0xd0] sm:$0xf0] }
 0x1b1   : > { %v13187_v57 = vadd.f32 %v3287_v47, %v3214_v52  ;;  %v3142_v61 = vadd.f32 %v3141_v54, %v3068_v56  ;;  %v9009_v52 = vor.u32 %v11687_v41, %v9006_v42  ;;  %v11513_v41 = vld [vmem:[%s13006_s29 + $0x9c] sm:$0xf] }
 0x1b2   : > { %v8318_v42 = vld [vmem:[%s13006_s29 + $0xd8] sm:$0xf0] }
 0x1b6   : > { %v3215_v8 = vpop.f32.mrf.mxu2  ;;  %v3070_v17 = vpop.f32.mrf.mxu0 }
 0x1b7   : > { %v3289_v9 = vpop.f32.mrf.mxu3  ;;  %v3216_v16 = vadd.f32 %v3215_v8, %v3142_v61  ;;  %v3144_v18 = vpop.f32.mrf.mxu1  ;;  %v3071_v21 = vadd.f32 %v13099_v24, %v3070_v17  ;;  %v11497_v8 = vld [vmem:[%s13006_s29 + $0x1c] sm:$0xf] }
 0x1b9   : > { %v13222_v23 = vadd.f32 %v3289_v9, %v3216_v16  ;;  %v3145_v25 = vadd.f32 %v3144_v18, %v3071_v21  ;;  %3109 = vmatmul.bf16.gmra.mxu0 %v8933_v10  ;;  %v8254_v9 = vld [vmem:[%s13006_s29 + $0x58] sm:$0xf0]  ;;  %v8253_v18 = vor.u32 %v11505_v6, %v8252_v5  ;;  %v11528_v5 = vld [vmem:[%s13006_s29 + $0x114] sm:$0xf] }
 0x1ba   : > { %3183 = vmatmul.bf16.gmra.mxu1 %v8937_v11  ;;  %v8374_v6 = vld [vmem:[%s13006_s29 + $0x150] sm:$0xf0] }
 0x1bb   : > { %3257 = vmatmul.bf16.gmra.mxu2 %v8941_v19  ;;  %v8257_v19 = vor.u32 %v11497_v8, %v8254_v9  ;;  %v8380_v8 = vld [vmem:[%s13006_s29 + $0x118] sm:$0xf] }
 0x1bc   : > { %3331 = vmatmul.bf16.gmra.mxu3 %v8945_v20  ;;  %v11537_v9 = vld [vmem:[%s13006_s29 + $0x154] sm:$0xf0] }
 0x1be   : > { %v3218_v26 = vpop.f32.mrf.mxu2  ;;  %v3072_v29 = vpop.f32.mrf.mxu0 }
 0x1bf   : > { %v3292_v27 = vpop.f32.mrf.mxu3  ;;  %v3219_v28 = vadd.f32 %v3218_v26, %v3145_v25  ;;  %v3146_v30 = vpop.f32.mrf.mxu1  ;;  %v3073_v31 = vadd.f32 %v13099_v24, %v3072_v29 }
 0x1c1   : > { %v13225_v32 = vadd.f32 %v3292_v27, %v3219_v28  ;;  %v3147_v33 = vadd.f32 %v3146_v30, %v3073_v31 }
 0x1c6   : > { %v3220_v43 = vpop.f32.mrf.mxu2  ;;  %v3075_v48 = vpop.f32.mrf.mxu0 }
 0x1c7   : > { %v3294_v44 = vpop.f32.mrf.mxu3  ;;  %v3221_v47 = vadd.f32 %v3220_v43, %v3147_v33  ;;  %v3149_v49 = vpop.f32.mrf.mxu1  ;;  %v3076_v53 = vadd.f32 %v13099_v24, %v3075_v48 }
 0x1c9   : > { %v13236_v54 = vadd.f32 %v3294_v44, %v3221_v47  ;;  %v3150_v55 = vadd.f32 %v3149_v49, %v3076_v53  ;;  %3114 = vmatmul.bf16.gmra.mxu0 %v8997_v45  ;;  %v8309_v45 = vor.u32 %v11520_v35, %v8308_v34 }
 0x1ca   : > { %3188 = vmatmul.bf16.gmra.mxu1 %v9001_v46  ;;  %v8313_v46 = vor.u32 %v11512_v36, %v8310_v37 }
 0x1cb   : > { %3262 = vmatmul.bf16.gmra.mxu2 %v9005_v50  ;;  %v8317_v50 = vor.u32 %v11521_v39, %v8316_v38  ;;  %v8436_v38 = vld [vmem:[%s13006_s29 + $0x190] sm:$0xf] }
 0x1cc   : > { %3336 = vmatmul.bf16.gmra.mxu3 %v9009_v52  ;;  %v8321_v52 = vor.u32 %v11513_v41, %v8318_v42  ;;  %v11552_v39 = vld [vmem:[%s13006_s29 + $0x1cc] sm:$0xf0]  ;;  %v11544_v41 = vld [vmem:[%s13006_s29 + $0x194] sm:$0xf] }
 0x1cd   : > { %v8438_v42 = vld [vmem:[%s13006_s29 + $0x1d0] sm:$0xf0] }
 0x1ce   : > { %v3223_v56 = vpop.f32.mrf.mxu2  ;;  %v3077_v60 = vpop.f32.mrf.mxu0 }
 0x1cf   : > { %v3297_v58 = vpop.f32.mrf.mxu3  ;;  %v3224_v59 = vadd.f32 %v3223_v56, %v3150_v55  ;;  %v3151_v61 = vpop.f32.mrf.mxu1  ;;  %v3078_v62 = vadd.f32 %v13099_v24, %v3077_v60 }
 0x1d1   : > { %v13239_v63 = vadd.f32 %v3297_v58, %v3224_v59  ;;  %v3152_v0 = vadd.f32 %v3151_v61, %v3078_v62 }
 0x1d6   : > { %v3225_v10 = vpop.f32.mrf.mxu2  ;;  %v3080_v16 = vpop.f32.mrf.mxu0 }
 0x1d7   : > { %v3299_v11 = vpop.f32.mrf.mxu3  ;;  %v3226_v14 = vadd.f32 %v3225_v10, %v3152_v0  ;;  %v3154_v17 = vpop.f32.mrf.mxu1  ;;  %v3081_v20 = vadd.f32 %v13099_v24, %v3080_v16  ;;  %v11529_v10 = vld [vmem:[%s13006_s29 + $0x11c] sm:$0xf]  ;;  %v8377_v16 = vor.u32 %v11528_v5, %v8374_v6 }
 0x1d9   : > { %v13250_v21 = vadd.f32 %v3299_v11, %v3226_v14  ;;  %v3155_v22 = vadd.f32 %v3154_v17, %v3081_v20  ;;  %3350 = vmatmul.bf16.vlgmr.msrb.gmra.mxu0 %v8245_v12  ;;  %v8382_v11 = vld [vmem:[%s13006_s29 + $0x158] sm:$0xf0]  ;;  %v8373_v14 = vor.u32 %v11536_v4, %v8372_v3  ;;  %v8381_v20 = vor.u32 %v11537_v9, %v8380_v8 }
 0x1da   : > { %3424 = vmatmul.bf16.vlgmr.msrb.gmra.mxu1 %v8249_v13 }
 0x1db   : > { %3498 = vmatmul.bf16.vlgmr.msrb.gmra.mxu2 %v8253_v18 }
 0x1dc   : > { %3572 = vmatmul.bf16.vlgmr.msrb.gmra.mxu3 %v8257_v19 }
 0x1de   : > { %v3228_v25 = vpop.f32.mrf.mxu2  ;;  %v3082_v28 = vpop.f32.mrf.mxu0 }
 0x1df   : > { %v3302_v26 = vpop.f32.mrf.mxu3  ;;  %v3229_v27 = vadd.f32 %v3228_v25, %v3155_v22  ;;  %v3156_v29 = vpop.f32.mrf.mxu1  ;;  %v3083_v30 = vadd.f32 %v13099_v24, %v3082_v28  ;;  %v8385_v22 = vor.u32 %v11529_v10, %v8382_v11  ;;  %v8500_v10 = vld [vmem:[%s13006_s29 + $0x210] sm:$0xf] }
 0x1e0   : > { %v11568_v11 = vld [vmem:[%s13006_s29 + $0x24c] sm:$0xf0] }
 0x1e1   : > { %v13253_v31 = vadd.f32 %v3302_v26, %v3229_v27  ;;  %v3157_v33 = vadd.f32 %v3156_v29, %v3083_v30 }
 0x1e6   : > { %v3230_v43 = vpop.f32.mrf.mxu2  ;;  %v3085_v48 = vpop.f32.mrf.mxu0 }
 0x1e7   : > { %v3304_v44 = vpop.f32.mrf.mxu3  ;;  %v3231_v47 = vadd.f32 %v3230_v43, %v3157_v33  ;;  %v3159_v49 = vpop.f32.mrf.mxu1  ;;  %v3086_v53 = vadd.f32 %v13099_v24, %v3085_v48  ;;  %v8444_v43 = vld [vmem:[%s13006_s29 + $0x198] sm:$0xf] }
 0x1e9   : > { %v13264_v55 = vadd.f32 %v3304_v44, %v3231_v47  ;;  %v3160_v56 = vadd.f32 %v3159_v49, %v3086_v53  ;;  %3355 = vmatmul.bf16.gmra.mxu0 %v8309_v45  ;;  %v11553_v44 = vld [vmem:[%s13006_s29 + $0x1d4] sm:$0xf0]  ;;  %v11545_v45 = vld [vmem:[%s13006_s29 + $0x19c] sm:$0xf]  ;;  %v8437_v49 = vor.u32 %v11552_v39, %v8436_v38 }
 0x1ea   : > { %3429 = vmatmul.bf16.gmra.mxu1 %v8313_v46  ;;  %v8446_v46 = vld [vmem:[%s13006_s29 + $0x1d8] sm:$0xf0] }
 0x1eb   : > { %3503 = vmatmul.bf16.gmra.mxu2 %v8317_v50  ;;  %v8441_v50 = vor.u32 %v11544_v41, %v8438_v42 }
 0x1ec   : > { %3577 = vmatmul.bf16.gmra.mxu3 %v8321_v52 }
 0x1ee   : > { %v3233_v58 = vpop.f32.mrf.mxu2  ;;  %v3087_v61 = vpop.f32.mrf.mxu0 }
 0x1ef   : > { %v3307_v59 = vpop.f32.mrf.mxu3  ;;  %v3234_v60 = vadd.f32 %v3233_v58, %v3160_v56  ;;  %v3161_v62 = vpop.f32.mrf.mxu1  ;;  %v3088_v0 = vadd.f32 %v13099_v24, %v3087_v61  ;;  %v8445_v58 = vor.u32 %v11553_v44, %v8444_v43 }
 0x1f1   : > { %v13267_v1 = vadd.f32 %v3307_v59, %v3234_v60  ;;  %v3162_v2 = vadd.f32 %v3161_v62, %v3088_v0  ;;  %v8449_v59 = vor.u32 %v11545_v45, %v8446_v46  ;;  %v8564_v46 = vld [vmem:[%s13006_s29 + $0x290] sm:$0xf] }
 0x1f6   : > { %v3235_v12 = vpop.f32.mrf.mxu2  ;;  %v3090_v18 = vpop.f32.mrf.mxu0 }
 0x1f7   : > { %v3309_v13 = vpop.f32.mrf.mxu3  ;;  %v3236_v17 = vadd.f32 %v3235_v12, %v3162_v2  ;;  %v3164_v19 = vpop.f32.mrf.mxu1  ;;  %v3091_v25 = vadd.f32 %v13099_v24, %v3090_v18  ;;  %v11560_v12 = vld [vmem:[%s13006_s29 + $0x214] sm:$0xf]  ;;  %v8510_v18 = vld [vmem:[%s13006_s29 + $0x258] sm:$0xf0] }
 0x1f9   : > { %v13278_v26 = vadd.f32 %v3309_v13, %v3236_v17  ;;  %v3165_v27 = vadd.f32 %v3164_v19, %v3091_v25  ;;  %3360 = vmatmul.bf16.gmra.mxu0 %v8373_v14  ;;  %v8502_v13 = vld [vmem:[%s13006_s29 + $0x250] sm:$0xf0]  ;;  %v8508_v14 = vld [vmem:[%s13006_s29 + $0x218] sm:$0xf]  ;;  %v11561_v17 = vld [vmem:[%s13006_s29 + $0x21c] sm:$0xf] }
 0x1fa   : > { %3434 = vmatmul.bf16.gmra.mxu1 %v8377_v16  ;;  %v11569_v16 = vld [vmem:[%s13006_s29 + $0x254] sm:$0xf0]  ;;  %v8505_v25 = vor.u32 %v11560_v12, %v8502_v13 }
 0x1fb   : > { %3508 = vmatmul.bf16.gmra.mxu2 %v8381_v20 }
 0x1fc   : > { %3582 = vmatmul.bf16.gmra.mxu3 %v8385_v22  ;;  %v8501_v22 = vor.u32 %v11568_v11, %v8500_v10 }
 0x1fe   : > { %v3238_v28 = vpop.f32.mrf.mxu2  ;;  %v3092_v33 = vpop.f32.mrf.mxu0 }
 0x1ff   : > { %v3312_v29 = vpop.f32.mrf.mxu3  ;;  %v3239_v30 = vadd.f32 %v3238_v28, %v3165_v27  ;;  %v3166_v34 = vpop.f32.mrf.mxu1  ;;  %v3093_v35 = vadd.f32 %v13099_v24, %v3092_v33  ;;  %v8513_v33 = vor.u32 %v11561_v17, %v8510_v18 }
 0x201   : > { %v13281_v36 = vadd.f32 %v3312_v29, %v3239_v30  ;;  %v3167_v37 = vadd.f32 %v3166_v34, %v3093_v35  ;;  %v8509_v30 = vor.u32 %v11569_v16, %v8508_v14  ;;  %v11781_v14 = vld [vmem:[%s17220_s1 + $0x278] sm:$0xff] }
 0x202   : > { %3712 = vmatpush.bf16.msra.mxu1 %v11781_v14  ;;  %v11780_v14 = vld [vmem:[%s17220_s1 + $0x270] sm:$0xff] }
 0x206   : > { %v3240_v47 = vpop.f32.mrf.mxu2  ;;  %v3095_v53 = vpop.f32.mrf.mxu0  ;;  %3713 = vmatpush.bf16.msra.mxu1 %v11780_v14 }
 0x207   : > { %v3314_v48 = vpop.f32.mrf.mxu3  ;;  %v3241_v52 = vadd.f32 %v3240_v47, %v3167_v37  ;;  %v3169_v56 = vpop.f32.mrf.mxu1  ;;  %v3096_v60 = vadd.f32 %v13099_v24, %v3095_v53  ;;  %v11584_v47 = vld [vmem:[%s13006_s29 + $0x2cc] sm:$0xf0]  ;;  %v11576_v53 = vld [vmem:[%s13006_s29 + $0x294] sm:$0xf] }
 0x209   : > { %v13292_v61 = vadd.f32 %v3314_v48, %v3241_v52  ;;  %v3170_v62 = vadd.f32 %v3169_v56, %v3096_v60  ;;  %3365 = vmatmul.bf16.gmra.mxu0 %v8437_v49  ;;  %v11789_v49 = vld [vmem:[%s17220_s1 + $0x2b8] sm:$0xff]  ;;  %v8566_v56 = vld [vmem:[%s13006_s29 + $0x2d0] sm:$0xf0] }
 0x20a   : > { %3439 = vmatmul.bf16.gmra.mxu1 %v8441_v50  ;;  %v11773_v50 = vld [vmem:[%s17220_s1 + $0x238] sm:$0xff]  ;;  %3786 = vmatpush.bf16.msra.mxu2 %v11789_v49 }
 0x20b   : > { %3513 = vmatmul.bf16.gmra.mxu2 %v8445_v58  ;;  %v11797_v52 = vld [vmem:[%s17220_s1 + $0x2f8] sm:$0xff]  ;;  %3638 = vmatpush.bf16.msra.mxu0 %v11773_v50 }
 0x20c   : > { %3587 = vmatmul.bf16.gmra.mxu3 %v8449_v59  ;;  %v8572_v58 = vld [vmem:[%s13006_s29 + $0x298] sm:$0xf]  ;;  %v11577_v60 = vld [vmem:[%s13006_s29 + $0x29c] sm:$0xf] }
 0x20d   : > { %v11585_v59 = vld [vmem:[%s13006_s29 + $0x2d4] sm:$0xf0]  ;;  %3860 = vmatpush.bf16.msra.mxu3 %v11797_v52 }
 0x20e   : > { %v3243_v0 = vpop.f32.mrf.mxu2  ;;  %v3097_v4 = vpop.f32.mrf.mxu0  ;;  %v8573_v10 = vor.u32 %v11585_v59, %v8572_v58  ;;  %v11788_v59 = vld [vmem:[%s17220_s1 + $0x2b0] sm:$0xff] }
 0x20f   : > { %v3317_v2 = vpop.f32.mrf.mxu3  ;;  %v3244_v3 = vadd.f32 %v3243_v0, %v3170_v62  ;;  %v3171_v5 = vpop.f32.mrf.mxu1  ;;  %v3098_v6 = vadd.f32 %v13099_v24, %v3097_v4  ;;  %v8574_v62 = vld [vmem:[%s13006_s29 + $0x2d8] sm:$0xf0]  ;;  %v8569_v4 = vor.u32 %v11576_v53, %v8566_v56  ;;  %3787 = vmatpush.bf16.msra.mxu2 %v11788_v59  ;;  %v11632_v59 = vld [vmem:[%s13006_s29 + $0x44c] sm:$0xf0] }
 0x210   : > { %v8577_v11 = vor.u32 %v11577_v60, %v8574_v62 }
 0x211   : > { %v13295_v8 = vadd.f32 %v3317_v2, %v3244_v3  ;;  %v3172_v9 = vadd.f32 %v3171_v5, %v3098_v6  ;;  %v8565_v3 = vor.u32 %v11584_v47, %v8564_v46 }
 0x216   : > { %v3245_v19 = vpop.f32.mrf.mxu2  ;;  %v3100_v28 = vpop.f32.mrf.mxu0 }
 0x217   : > { %v3319_v20 = vpop.f32.mrf.mxu3  ;;  %v3246_v27 = vadd.f32 %v3245_v19, %v3172_v9  ;;  %v3174_v29 = vpop.f32.mrf.mxu1  ;;  %v3101_v34 = vadd.f32 %v13099_v24, %v3100_v28 }
 0x219   : > { %v13306_v35 = vadd.f32 %v3319_v20, %v3246_v27  ;;  %v3175_v37 = vadd.f32 %v3174_v29, %v3101_v34  ;;  %3370 = vmatmul.bf16.gmra.mxu0 %v8501_v22  ;;  %v8628_v29 = vld [vmem:[%s13006_s29 + $0x310] sm:$0xf]  ;;  %v8630_v34 = vld [vmem:[%s13006_s29 + $0x350] sm:$0xf0] }
 0x21a   : > { %3444 = vmatmul.bf16.gmra.mxu1 %v8505_v25 }
 0x21b   : > { %3518 = vmatmul.bf16.gmra.mxu2 %v8509_v30  ;;  %v11600_v30 = vld [vmem:[%s13006_s29 + $0x34c] sm:$0xf0] }
 0x21c   : > { %3592 = vmatmul.bf16.gmra.mxu3 %v8513_v33  ;;  %v11592_v33 = vld [vmem:[%s13006_s29 + $0x314] sm:$0xf] }
 0x21d   : > { %v8633_v46 = vor.u32 %v11592_v33, %v8630_v34 }
 0x21e   : > { %v3248_v38 = vpop.f32.mrf.mxu2  ;;  %v3102_v42 = vpop.f32.mrf.mxu0 }
 0x21f   : > { %v3322_v39 = vpop.f32.mrf.mxu3  ;;  %v3249_v41 = vadd.f32 %v3248_v38, %v3175_v37  ;;  %v3176_v43 = vpop.f32.mrf.mxu1  ;;  %v3103_v44 = vadd.f32 %v13099_v24, %v3102_v42  ;;  %v8636_v37 = vld [vmem:[%s13006_s29 + $0x318] sm:$0xf] }
 0x220   : > { %v11601_v38 = vld [vmem:[%s13006_s29 + $0x354] sm:$0xf0] }
 0x221   : > { %v13309_v45 = vadd.f32 %v3322_v39, %v3249_v41  ;;  %v3177_v48 = vadd.f32 %v3176_v43, %v3103_v44  ;;  %v11593_v39 = vld [vmem:[%s13006_s29 + $0x31c] sm:$0xf]  ;;  %v8629_v44 = vor.u32 %v11600_v30, %v8628_v29  ;;  %v8637_v50 = vor.u32 %v11601_v38, %v8636_v37 }
 0x222   : > { %v8638_v41 = vld [vmem:[%s13006_s29 + $0x358] sm:$0xf0] }
 0x223   : > { %v8641_v52 = vor.u32 %v11593_v39, %v8638_v41 }
 0x226   : > { %v3250_v0 = vpop.f32.mrf.mxu2  ;;  %v3105_v6 = vpop.f32.mrf.mxu0 }
 0x227   : > { %v3324_v2 = vpop.f32.mrf.mxu3  ;;  %v3251_v5 = vadd.f32 %v3250_v0, %v3177_v48  ;;  %v3179_v9 = vpop.f32.mrf.mxu1  ;;  %v3106_v12 = vadd.f32 %v13099_v24, %v3105_v6  ;;  %v11772_v6 = vld [vmem:[%s17220_s1 + $0x230] sm:$0xff] }
 0x228   : > { %3639 = vmatpush.bf16.msra.mxu0 %v11772_v6 }
 0x229   : > { %v13329_v13 = vadd.f32 %v3324_v2, %v3251_v5  ;;  %v3180_v16 = vadd.f32 %v3179_v9, %v3106_v12  ;;  %3375 = vmatmul.bf16.gmra.mxu0 %v8565_v3  ;;  %v11796_v9 = vld [vmem:[%s17220_s1 + $0x2f0] sm:$0xff] }
 0x22a   : > { %3449 = vmatmul.bf16.gmra.mxu1 %v8569_v4  ;;  %v11616_v12 = vld [vmem:[%s13006_s29 + $0x3cc] sm:$0xf0]  ;;  %3861 = vmatpush.bf16.msra.mxu3 %v11796_v9 }
 0x22b   : > { %3523 = vmatmul.bf16.gmra.mxu2 %v8573_v10 }
 0x22c   : > { %3597 = vmatmul.bf16.gmra.mxu3 %v8577_v11  ;;  %v8692_v11 = vld [vmem:[%s13006_s29 + $0x390] sm:$0xf] }
 0x22d   : > { %v8693_v29 = vor.u32 %v11616_v12, %v8692_v11 }
 0x22e   : > { %v3253_v17 = vpop.f32.mrf.mxu2  ;;  %v3107_v20 = vpop.f32.mrf.mxu0 }
 0x22f   : > { %v3327_v18 = vpop.f32.mrf.mxu3  ;;  %v3254_v19 = vadd.f32 %v3253_v17, %v3180_v16  ;;  %v3181_v22 = vpop.f32.mrf.mxu1  ;;  %v3108_v25 = vadd.f32 %v13099_v24, %v3107_v20  ;;  %v11608_v16 = vld [vmem:[%s13006_s29 + $0x394] sm:$0xf]  ;;  %v11609_v20 = vld [vmem:[%s13006_s29 + $0x39c] sm:$0xf] }
 0x230   : > { %v8694_v17 = vld [vmem:[%s13006_s29 + $0x3d0] sm:$0xf0] }
 0x231   : > { %v13335_v27 = vadd.f32 %v3327_v18, %v3254_v19  ;;  %v3182_v28 = vadd.f32 %v3181_v22, %v3108_v25  ;;  %v8700_v18 = vld [vmem:[%s13006_s29 + $0x398] sm:$0xf]  ;;  %v8702_v22 = vld [vmem:[%s13006_s29 + $0x3d8] sm:$0xf0]  ;;  %v8697_v30 = vor.u32 %v11608_v16, %v8694_v17 }
 0x232   : > { %v11617_v19 = vld [vmem:[%s13006_s29 + $0x3d4] sm:$0xf0]  ;;  %v8705_v39 = vor.u32 %v11609_v20, %v8702_v22  ;;  %v11787_v20 = vld [vmem:[%s17220_s1 + $0x2a8] sm:$0xff] }
 0x233   : > { %v8701_v38 = vor.u32 %v11617_v19, %v8700_v18  ;;  %3788 = vmatpush.bf16.msra.mxu2 %v11787_v20  ;;  %v11664_v20 = vld [vmem:[%s13006_s29 + $0x54c] sm:$0xf0] }
 0x236   : > { %v3255_v42 = vpop.f32.mrf.mxu2  ;;  %v3110_v48 = vpop.f32.mrf.mxu0 }
 0x237   : > { %v3329_v43 = vpop.f32.mrf.mxu3  ;;  %v3256_v47 = vadd.f32 %v3255_v42, %v3182_v28  ;;  %v3184_v49 = vpop.f32.mrf.mxu1  ;;  %v3111_v53 = vadd.f32 %v13099_v24, %v3110_v48 }
 0x239   : > { %v13346_v56 = vadd.f32 %v3329_v43, %v3256_v47  ;;  %v3185_v58 = vadd.f32 %v3184_v49, %v3111_v53  ;;  %3380 = vmatmul.bf16.gmra.mxu0 %v8629_v44 }
 0x23a   : > { %3454 = vmatmul.bf16.gmra.mxu1 %v8633_v46 }
 0x23b   : > { %3528 = vmatmul.bf16.gmra.mxu2 %v8637_v50 }
 0x23c   : > { %3602 = vmatmul.bf16.gmra.mxu3 %v8641_v52 }
 0x23e   : > { %v3258_v60 = vpop.f32.mrf.mxu2  ;;  %v3112_v2 = vpop.f32.mrf.mxu0 }
 0x23f   : > { %v3332_v62 = vpop.f32.mrf.mxu3  ;;  %v3259_v0 = vadd.f32 %v3258_v60, %v3185_v58  ;;  %v3186_v3 = vpop.f32.mrf.mxu1  ;;  %v3113_v4 = vadd.f32 %v13099_v24, %v3112_v2  ;;  %v8756_v58 = vld [vmem:[%s13006_s29 + $0x410] sm:$0xf]  ;;  %v11624_v60 = vld [vmem:[%s13006_s29 + $0x414] sm:$0xf]  ;;  %v11633_v2 = vld [vmem:[%s13006_s29 + $0x454] sm:$0xf0] }
 0x241   : > { %v13352_v5 = vadd.f32 %v3332_v62, %v3259_v0  ;;  %v3187_v10 = vadd.f32 %v3186_v3, %v3113_v4  ;;  %v8758_v62 = vld [vmem:[%s13006_s29 + $0x450] sm:$0xf0]  ;;  %v8764_v0 = vld [vmem:[%s13006_s29 + $0x418] sm:$0xf]  ;;  %v11625_v3 = vld [vmem:[%s13006_s29 + $0x41c] sm:$0xf] }
 0x242   : > { %v8766_v4 = vld [vmem:[%s13006_s29 + $0x458] sm:$0xf0]  ;;  %v8761_v11 = vor.u32 %v11624_v60, %v8758_v62  ;;  %v8765_v17 = vor.u32 %v11633_v2, %v8764_v0 }
 0x246   : > { %v3260_v25 = vpop.f32.mrf.mxu2  ;;  %v3115_v34 = vpop.f32.mrf.mxu0 }
 0x247   : > { %v3334_v28 = vpop.f32.mrf.mxu3  ;;  %v3261_v33 = vadd.f32 %v3260_v25, %v3187_v10  ;;  %v3189_v37 = vpop.f32.mrf.mxu1  ;;  %v3116_v41 = vadd.f32 %v13099_v24, %v3115_v34  ;;  %v8757_v10 = vor.u32 %v11632_v59, %v8756_v58  ;;  %v11771_v25 = vld [vmem:[%s17220_s1 + $0x228] sm:$0xff] }
 0x248   : > { %3640 = vmatpush.bf16.msra.mxu0 %v11771_v25 }
 0x249   : > { %v13372_v42 = vadd.f32 %v3334_v28, %v3261_v33  ;;  %v3190_v43 = vadd.f32 %v3189_v37, %v3116_v41  ;;  %3385 = vmatmul.bf16.gmra.mxu0 %v8693_v29  ;;  %v11795_v28 = vld [vmem:[%s17220_s1 + $0x2e8] sm:$0xff] }
 0x24a   : > { %3459 = vmatmul.bf16.gmra.mxu1 %v8697_v30  ;;  %3862 = vmatpush.bf16.msra.mxu3 %v11795_v28  ;;  %v11786_v28 = vld [vmem:[%s17220_s1 + $0x2a0] sm:$0xff] }
 0x24b   : > { %3533 = vmatmul.bf16.gmra.mxu2 %v8701_v38 }
 0x24c   : > { %3607 = vmatmul.bf16.gmra.mxu3 %v8705_v39  ;;  %3789 = vmatpush.bf16.msra.mxu2 %v11786_v28  ;;  %v11767_v28 = vld [vmem:[%s17220_s1 + $0x208] sm:$0xff] }
 0x24e   : > { %v3263_v44 = vpop.f32.mrf.mxu2  ;;  %v3117_v48 = vpop.f32.mrf.mxu0 }
 0x24f   : > { %v3337_v46 = vpop.f32.mrf.mxu3  ;;  %v3264_v47 = vadd.f32 %v3263_v44, %v3190_v43  ;;  %v3191_v49 = vpop.f32.mrf.mxu1  ;;  %v3118_v50 = vadd.f32 %v13099_v24, %v3117_v48  ;;  %v8769_v24 = vor.u32 %v11625_v3, %v8766_v4  ;;  %v8820_v43 = vld [vmem:[%s13006_s29 + $0x490] sm:$0xf]  ;;  %v8828_v48 = vld [vmem:[%s13006_s29 + $0x498] sm:$0xf] }
 0x250   : > { %v11648_v44 = vld [vmem:[%s13006_s29 + $0x4cc] sm:$0xf0] }
 0x251   : > { %v13375_v52 = vadd.f32 %v3337_v46, %v3264_v47  ;;  %v3192_v53 = vadd.f32 %v3191_v49, %v3118_v50  ;;  %v11640_v46 = vld [vmem:[%s13006_s29 + $0x494] sm:$0xf]  ;;  %v11649_v49 = vld [vmem:[%s13006_s29 + $0x4d4] sm:$0xf0]  ;;  %v11641_v50 = vld [vmem:[%s13006_s29 + $0x49c] sm:$0xf]  ;;  %v8821_v60 = vor.u32 %v11648_v44, %v8820_v43 }
 0x252   : > { %v8822_v47 = vld [vmem:[%s13006_s29 + $0x4d0] sm:$0xf0]  ;;  %v8829_v4 = vor.u32 %v11649_v49, %v8828_v48 }
 0x253   : > { %v8825_v62 = vor.u32 %v11640_v46, %v8822_v47 }
 0x256   : > { %v3265_v6 = vpop.f32.mrf.mxu2  ;;  %v3351_v14 = vpop.f32.mrf.mxu0 }
 0x257   : > { %v3339_v9 = vpop.f32.mrf.mxu3  ;;  %v3266_v12 = vadd.f32 %v3265_v6, %v3192_v53  ;;  %v3425_v16 = vpop.f32.mrf.mxu1  ;;  %v3352_v18 = vadd.f32 %v3351_v14, %v13123_v51  ;;  %v11779_v51 = vld [vmem:[%s17220_s1 + $0x268] sm:$0xff]  ;;  %v8830_v53 = vld [vmem:[%s13006_s29 + $0x4d8] sm:$0xf0] }
 0x258   : > { %3714 = vmatpush.bf16.msra.mxu1 %v11779_v51  ;;  %v11770_v51 = vld [vmem:[%s17220_s1 + $0x220] sm:$0xff] }
 0x259   : > { %v13386_v19 = vadd.f32 %v3339_v9, %v3266_v12  ;;  %v3426_v22 = vadd.f32 %v3425_v16, %v3352_v18  ;;  %3390 = vmatmul.bf16.gmra.mxu0 %v8757_v10  ;;  %v8884_v18 = vld [vmem:[%s13006_s29 + $0x510] sm:$0xf] }
 0x25a   : > { %3464 = vmatmul.bf16.gmra.mxu1 %v8761_v11  ;;  %3641 = vmatpush.bf16.msra.mxu0 %v11770_v51  ;;  %v8885_v44 = vor.u32 %v11664_v20, %v8884_v18  ;;  %v8948_v18 = vld [vmem:[%s13006_s29 + $0x590] sm:$0xf]  ;;  %v11783_v51 = vld [vmem:[%s17220_s1 + $0x288] sm:$0xff] }
 0x25b   : > { %3538 = vmatmul.bf16.gmra.mxu2 %v8765_v17  ;;  %v11680_v20 = vld [vmem:[%s13006_s29 + $0x5cc] sm:$0xf0] }
 0x25c   : > { %3612 = vmatmul.bf16.gmra.mxu3 %v8769_v24 }
 0x25e   : > { %v3499_v29 = vpop.f32.mrf.mxu2  ;;  %v3353_v34 = vpop.f32.mrf.mxu0 }
 0x25f   : > { %v3573_v30 = vpop.f32.mrf.mxu3  ;;  %v3500_v33 = vadd.f32 %v3499_v29, %v3426_v22  ;;  %v3427_v37 = vpop.f32.mrf.mxu1  ;;  %v3354_v38 = vadd.f32 %v3353_v34, %v13134_v7  ;;  %v8833_v7 = vor.u32 %v11641_v50, %v8830_v53  ;;  %v11656_v22 = vld [vmem:[%s13006_s29 + $0x514] sm:$0xf]  ;;  %v11794_v29 = vld [vmem:[%s17220_s1 + $0x2e0] sm:$0xff]  ;;  %v11665_v34 = vld [vmem:[%s13006_s29 + $0x554] sm:$0xf0] }
 0x260   : > { %3863 = vmatpush.bf16.msra.mxu3 %v11794_v29  ;;  %v8950_v29 = vld [vmem:[%s13006_s29 + $0x5d0] sm:$0xf0] }
 0x261   : > { %v13401_v39 = vadd.f32 %v3573_v30, %v3500_v33  ;;  %v3428_v41 = vadd.f32 %v3427_v37, %v3354_v38  ;;  %v8886_v30 = vld [vmem:[%s13006_s29 + $0x550] sm:$0xf0]  ;;  %v11778_v33 = vld [vmem:[%s17220_s1 + $0x260] sm:$0xff]  ;;  %v11657_v37 = vld [vmem:[%s13006_s29 + $0x51c] sm:$0xf] }
 0x262   : > { %v8894_v38 = vld [vmem:[%s13006_s29 + $0x558] sm:$0xf0]  ;;  %3715 = vmatpush.bf16.msra.mxu1 %v11778_v33  ;;  %v8889_v46 = vor.u32 %v11656_v22, %v8886_v30  ;;  %v11672_v22 = vld [vmem:[%s13006_s29 + $0x594] sm:$0xf]  ;;  %v8956_v30 = vld [vmem:[%s13006_s29 + $0x598] sm:$0xf] }
 0x263   : > { %v8897_v53 = vor.u32 %v11657_v37, %v8894_v38  ;;  %v11681_v33 = vld [vmem:[%s13006_s29 + $0x5d4] sm:$0xf0]  ;;  %v8958_v37 = vld [vmem:[%s13006_s29 + $0x5d8] sm:$0xf0] }
 0x266   : > { %v3501_v58 = vpop.f32.mrf.mxu2  ;;  %v3356_v2 = vpop.f32.mrf.mxu0 }
 0x267   : > { %v3575_v59 = vpop.f32.mrf.mxu3  ;;  %v3502_v0 = vadd.f32 %v3501_v58, %v3428_v41  ;;  %v3430_v3 = vpop.f32.mrf.mxu1  ;;  %v3357_v6 = vadd.f32 %v3356_v2, %v13137_v15  ;;  %v11785_v2 = vld [vmem:[%s17220_s1 + $0x298] sm:$0xff] }
 0x268   : > { %3790 = vmatpush.bf16.msra.mxu2 %v11785_v2 }
 0x269   : > { %v13412_v9 = vadd.f32 %v3575_v59, %v3502_v0  ;;  %v3431_v10 = vadd.f32 %v3430_v3, %v3357_v6  ;;  %3395 = vmatmul.bf16.gmra.mxu0 %v8821_v60  ;;  %v11777_v0 = vld [vmem:[%s17220_s1 + $0x258] sm:$0xff]  ;;  %v11776_v6 = vld [vmem:[%s17220_s1 + $0x250] sm:$0xff] }
 0x26a   : > { %3469 = vmatmul.bf16.gmra.mxu1 %v8825_v62  ;;  %v11769_v62 = vld [vmem:[%s17220_s1 + $0x218] sm:$0xff] }
 0x26b   : > { %3543 = vmatmul.bf16.gmra.mxu2 %v8829_v4  ;;  %3642 = vmatpush.bf16.msra.mxu0 %v11769_v62 }
 0x26c   : > { %3617 = vmatmul.bf16.gmra.mxu3 %v8833_v7  ;;  %3716 = vmatpush.bf16.msra.mxu1 %v11777_v0  ;;  %v11768_v7 = vld [vmem:[%s17220_s1 + $0x210] sm:$0xff]  ;;  %v11790_v0 = vld [vmem:[%s17220_s1 + $0x2c0] sm:$0xff] }
 0x26e   : > { %v3504_v11 = vpop.f32.mrf.mxu2  ;;  %v3358_v16 = vpop.f32.mrf.mxu0 }
 0x26f   : > { %v3578_v12 = vpop.f32.mrf.mxu3  ;;  %v3505_v14 = vadd.f32 %v3504_v11, %v3431_v10  ;;  %v3432_v17 = vpop.f32.mrf.mxu1  ;;  %v3359_v15 = vadd.f32 %v3358_v16, %v13160_v40  ;;  %v8892_v40 = vld [vmem:[%s13006_s29 + $0x518] sm:$0xf]  ;;  %v11784_v10 = vld [vmem:[%s17220_s1 + $0x290] sm:$0xff]  ;;  %3643 = vmatpush.bf16.msra.mxu0 %v11768_v7 }
 0x270   : > { %v8893_v50 = vor.u32 %v11665_v34, %v8892_v40  ;;  %v11792_v16 = vld [vmem:[%s17220_s1 + $0x2d0] sm:$0xff]  ;;  %3717 = vmatpush.bf16.msra.mxu1 %v11776_v6  ;;  %3791 = vmatpush.bf16.msra.mxu2 %v11784_v10  ;;  %v11791_v40 = vld [vmem:[%s17220_s1 + $0x2c8] sm:$0xff]  ;;  %v11673_v34 = vld [vmem:[%s13006_s29 + $0x59c] sm:$0xf] }
 0x271   : > { %v13415_v24 = vadd.f32 %v3578_v12, %v3505_v14  ;;  %v3433_v25 = vadd.f32 %v3432_v17, %v3359_v15 }
 0x273   : > { %3644 = vmatpush.bf16.msra.mxu0 %v11767_v28  ;;  %v9022_v28 = vld [vmem:[%s13006_s29 + $0x658] sm:$0xf0] }
 0x274   : > { %3792 = vmatpush.bf16.msra.mxu2 %v11783_v51 }
 0x276   : > { %v3506_v41 = vpop.f32.mrf.mxu2  ;;  %v3361_v48 = vpop.f32.mrf.mxu0 }
 0x277   : > { %v3580_v43 = vpop.f32.mrf.mxu3  ;;  %v3507_v47 = vadd.f32 %v3506_v41, %v3433_v25  ;;  %v3435_v49 = vpop.f32.mrf.mxu1  ;;  %v3362_v58 = vadd.f32 %v3361_v48, %v13187_v57  ;;  %v11793_v57 = vld [vmem:[%s17220_s1 + $0x2d8] sm:$0xff]  ;;  %v11782_v48 = vld [vmem:[%s17220_s1 + $0x280] sm:$0xff] }
 0x278   : > { %3864 = vmatpush.bf16.msra.mxu3 %v11793_v57  ;;  %3793 = vmatpush.bf16.msra.mxu2 %v11782_v48 }
 0x279   : > { %v13438_v59 = vadd.f32 %v3580_v43, %v3507_v47  ;;  %v3436_v60 = vadd.f32 %v3435_v49, %v3362_v58  ;;  %3400 = vmatmul.bf16.gmra.mxu0 %v8885_v44  ;;  %v8949_v43 = vor.u32 %v11680_v20, %v8948_v18  ;;  %v8953_v44 = vor.u32 %v11672_v22, %v8950_v29  ;;  %v11774_v47 = vld [vmem:[%s17220_s1 + $0x240] sm:$0xff]  ;;  %v9014_v18 = vld [vmem:[%s13006_s29 + $0x650] sm:$0xf0]  ;;  %v9020_v20 = vld [vmem:[%s13006_s29 + $0x618] sm:$0xf] }
 0x27a   : > { %3474 = vmatmul.bf16.gmra.mxu1 %v8889_v46  ;;  %v11766_v46 = vld [vmem:[%s17220_s1 + $0x200] sm:$0xff]  ;;  %v8957_v58 = vor.u32 %v11681_v33, %v8956_v30  ;;  %v11697_v22 = vld [vmem:[%s13006_s29 + $0x654] sm:$0xf0] }
 0x27b   : > { %3548 = vmatmul.bf16.gmra.mxu2 %v8893_v50  ;;  %3645 = vmatpush.bf16.msra.mxu0 %v11766_v46 }
 0x27c   : > { %3622 = vmatmul.bf16.gmra.mxu3 %v8897_v53 }
 0x27d   : > { %3865 = vmatpush.bf16.msra.mxu3 %v11792_v16  ;;  %v11696_v16 = vld [vmem:[%s13006_s29 + $0x64c] sm:$0xf0] }
 0x27e   : > { %v3509_v3 = vpop.f32.mrf.mxu2  ;;  %v3363_v12 = vpop.f32.mrf.mxu0 }
 0x27f   : > { %v3583_v4 = vpop.f32.mrf.mxu3  ;;  %v3510_v11 = vadd.f32 %v3509_v3, %v3436_v60  ;;  %v3437_v14 = vpop.f32.mrf.mxu1  ;;  %v3364_v17 = vadd.f32 %v3363_v12, %v13222_v23  ;;  %v11775_v23 = vld [vmem:[%s17220_s1 + $0x248] sm:$0xff]  ;;  %v8961_v60 = vor.u32 %v11673_v34, %v8958_v37  ;;  %v9021_v37 = vor.u32 %v11697_v22, %v9020_v20 }
 0x280   : > { %3718 = vmatpush.bf16.msra.mxu1 %v11775_v23 }
 0x281   : > { %v13465_v15 = vadd.f32 %v3583_v4, %v3510_v11  ;;  %v3438_v25 = vadd.f32 %v3437_v14, %v3364_v17  ;;  %3866 = vmatpush.bf16.msra.mxu3 %v11791_v40  ;;  %v9012_v14 = vld [vmem:[%s13006_s29 + $0x610] sm:$0xf]  ;;  %v11688_v17 = vld [vmem:[%s13006_s29 + $0x614] sm:$0xf] }
 0x282   : > { %v9013_v29 = vor.u32 %v11696_v16, %v9012_v14  ;;  %v9017_v30 = vor.u32 %v11688_v17, %v9014_v18 }
 0x284   : > { %3719 = vmatpush.bf16.msra.mxu1 %v11774_v47 }
 0x285   : > { %3867 = vmatpush.bf16.msra.mxu3 %v11790_v0  ;;  %v8262_v0 = vld [vmem:[%s13006_s29 + $0x60] sm:$0xf0] }
 0x286   : > { %v3511_v38 = vpop.f32.mrf.mxu2  ;;  %v3366_v50 = vpop.f32.mrf.mxu0 }
 0x287   : > { %v3585_v41 = vpop.f32.mrf.mxu3  ;;  %v3512_v49 = vadd.f32 %v3511_v38, %v3438_v25  ;;  %v3440_v53 = vpop.f32.mrf.mxu1  ;;  %v3367_v62 = vadd.f32 %v3366_v50, %v13225_v32  ;;  %v11689_v25 = vld [vmem:[%s13006_s29 + $0x61c] sm:$0xf] }
 0x289   : > { %v13500_v2 = vadd.f32 %v3585_v41, %v3512_v49  ;;  %v3441_v57 = vadd.f32 %v3440_v53, %v3367_v62  ;;  %3405 = vmatmul.bf16.gmra.mxu0 %v8949_v43  ;;  %v11498_v62 = vld [vmem:[%s13006_s29 + $0x24] sm:$0xf] }
 0x28a   : > { %3479 = vmatmul.bf16.gmra.mxu1 %v8953_v44 }
 0x28b   : > { %3553 = vmatmul.bf16.gmra.mxu2 %v8957_v58  ;;  %v8260_v58 = vld [vmem:[%s13006_s29 + $0x20] sm:$0xf] }
 0x28c   : > { %3627 = vmatmul.bf16.gmra.mxu3 %v8961_v60  ;;  %v11506_v60 = vld [vmem:[%s13006_s29 + $0x5c] sm:$0xf0] }
 0x28e   : > { %v3514_v32 = vpop.f32.mrf.mxu2  ;;  %v3368_v7 = vpop.f32.mrf.mxu0 }
 0x28f   : > { %v3588_v3 = vpop.f32.mrf.mxu3  ;;  %v3515_v4 = vadd.f32 %v3514_v32, %v3441_v57  ;;  %v3442_v6 = vpop.f32.mrf.mxu1  ;;  %v3369_v10 = vadd.f32 %v3368_v7, %v13236_v54  ;;  %v9025_v54 = vor.u32 %v11689_v25, %v9022_v28  ;;  %v8268_v57 = vld [vmem:[%s13006_s29 + $0x28] sm:$0xf] }
 0x290   : > { %v11507_v32 = vld [vmem:[%s13006_s29 + $0x64] sm:$0xf0] }
 0x291   : > { %v13503_v11 = vadd.f32 %v3588_v3, %v3515_v4  ;;  %v3443_v12 = vadd.f32 %v3442_v6, %v3369_v10  ;;  %v11499_v3 = vld [vmem:[%s13006_s29 + $0x2c] sm:$0xf]  ;;  %v8261_v10 = vor.u32 %v11506_v60, %v8260_v58  ;;  %v8269_v18 = vor.u32 %v11507_v32, %v8268_v57 }
 0x292   : > { %v8270_v4 = vld [vmem:[%s13006_s29 + $0x68] sm:$0xf0] }
 0x296   : > { %v3516_v23 = vpop.f32.mrf.mxu2  ;;  %v3371_v33 = vpop.f32.mrf.mxu0 }
 0x297   : > { %v3590_v51 = vpop.f32.mrf.mxu3  ;;  %v3517_v40 = vadd.f32 %v3516_v23, %v3443_v12  ;;  %v3445_v34 = vpop.f32.mrf.mxu1  ;;  %v3372_v38 = vadd.f32 %v3371_v33, %v13239_v63  ;;  %v8265_v12 = vor.u32 %v11498_v62, %v8262_v0 }
 0x299   : > { %v13514_v41 = vadd.f32 %v3590_v51, %v3517_v40  ;;  %v3446_v43 = vadd.f32 %v3445_v34, %v3372_v38  ;;  %3410 = vmatmul.bf16.gmra.mxu0 %v9013_v29  ;;  %v8324_v34 = vld [vmem:[%s13006_s29 + $0xa0] sm:$0xf]  ;;  %v8326_v38 = vld [vmem:[%s13006_s29 + $0xe0] sm:$0xf0] }
 0x29a   : > { %3484 = vmatmul.bf16.gmra.mxu1 %v9017_v30 }
 0x29b   : > { %3558 = vmatmul.bf16.gmra.mxu2 %v9021_v37  ;;  %v11522_v37 = vld [vmem:[%s13006_s29 + $0xdc] sm:$0xf0] }
 0x29c   : > { %3632 = vmatmul.bf16.gmra.mxu3 %v9025_v54  ;;  %v11514_v54 = vld [vmem:[%s13006_s29 + $0xa4] sm:$0xf] }
 0x29e   : > { %v3519_v44 = vpop.f32.mrf.mxu2  ;;  %v3373_v48 = vpop.f32.mrf.mxu0 }
 0x29f   : > { %v3593_v46 = vpop.f32.mrf.mxu3  ;;  %v3520_v47 = vadd.f32 %v3519_v44, %v3446_v43  ;;  %v3447_v49 = vpop.f32.mrf.mxu1  ;;  %v3374_v63 = vadd.f32 %v3373_v48, %v13250_v21  ;;  %v8273_v21 = vor.u32 %v11499_v3, %v8270_v4  ;;  %v8332_v43 = vld [vmem:[%s13006_s29 + $0xa8] sm:$0xf] }
 0x2a0   : > { %v11523_v44 = vld [vmem:[%s13006_s29 + $0xe4] sm:$0xf0] }
 0x2a1   : > { %v13517_v50 = vadd.f32 %v3593_v46, %v3520_v47  ;;  %v3448_v53 = vadd.f32 %v3447_v49, %v3374_v63  ;;  %v11515_v46 = vld [vmem:[%s13006_s29 + $0xac] sm:$0xf]  ;;  %v8325_v63 = vor.u32 %v11522_v37, %v8324_v34  ;;  %v8333_v0 = vor.u32 %v11523_v44, %v8332_v43 }
 0x2a2   : > { %v8334_v47 = vld [vmem:[%s13006_s29 + $0xe8] sm:$0xf0] }
 0x2a6   : > { %v3521_v7 = vpop.f32.mrf.mxu2  ;;  %v3376_v16 = vpop.f32.mrf.mxu0 }
 0x2a7   : > { %v3595_v6 = vpop.f32.mrf.mxu3  ;;  %v3522_v14 = vadd.f32 %v3521_v7, %v3448_v53  ;;  %v3450_v17 = vpop.f32.mrf.mxu1  ;;  %v3377_v20 = vadd.f32 %v3376_v16, %v13253_v31  ;;  %v8329_v53 = vor.u32 %v11514_v54, %v8326_v38 }
 0x2a9   : > { %v13528_v22 = vadd.f32 %v3595_v6, %v3522_v14  ;;  %v3451_v25 = vadd.f32 %v3450_v17, %v3377_v20  ;;  %3646 = vmatmul.bf16.vlgmr.msra.gmra.mxu0 %v8261_v10  ;;  %v8388_v17 = vld [vmem:[%s13006_s29 + $0x120] sm:$0xf]  ;;  %v8390_v20 = vld [vmem:[%s13006_s29 + $0x160] sm:$0xf0] }
 0x2aa   : > { %3720 = vmatmul.bf16.vlgmr.msra.gmra.mxu1 %v8265_v12 }
 0x2ab   : > { %3794 = vmatmul.bf16.vlgmr.msra.gmra.mxu2 %v8269_v18  ;;  %v11538_v18 = vld [vmem:[%s13006_s29 + $0x15c] sm:$0xf0] }
 0x2ac   : > { %3868 = vmatmul.bf16.vlgmr.msra.gmra.mxu3 %v8273_v21  ;;  %v11530_v21 = vld [vmem:[%s13006_s29 + $0x124] sm:$0xf] }
 0x2ae   : > { %v3524_v28 = vpop.f32.mrf.mxu2  ;;  %v3378_v29 = vpop.f32.mrf.mxu0 }
 0x2af   : > { %v3598_v23 = vpop.f32.mrf.mxu3  ;;  %v3525_v51 = vadd.f32 %v3524_v28, %v3451_v25  ;;  %v3452_v30 = vpop.f32.mrf.mxu1  ;;  %v3379_v31 = vadd.f32 %v3378_v29, %v13264_v55  ;;  %v8337_v55 = vor.u32 %v11515_v46, %v8334_v47  ;;  %v8396_v25 = vld [vmem:[%s13006_s29 + $0x128] sm:$0xf] }
 0x2b0   : > { %v11539_v28 = vld [vmem:[%s13006_s29 + $0x164] sm:$0xf0] }
 0x2b1   : > { %v13531_v40 = vadd.f32 %v3598_v23, %v3525_v51  ;;  %v3453_v33 = vadd.f32 %v3452_v30, %v3379_v31  ;;  %v11531_v23 = vld [vmem:[%s13006_s29 + $0x12c] sm:$0xf]  ;;  %v8389_v31 = vor.u32 %v11538_v18, %v8388_v17  ;;  %v8397_v38 = vor.u32 %v11539_v28, %v8396_v25 }
 0x2b2   : > { %v8398_v51 = vld [vmem:[%s13006_s29 + $0x168] sm:$0xf0] }
 0x2b6   : > { %v3526_v48 = vpop.f32.mrf.mxu2  ;;  %v3381_v60 = vpop.f32.mrf.mxu0 }
 0x2b7   : > { %v3600_v49 = vpop.f32.mrf.mxu3  ;;  %v3527_v58 = vadd.f32 %v3526_v48, %v3453_v33  ;;  %v3455_v62 = vpop.f32.mrf.mxu1  ;;  %v3382_v57 = vadd.f32 %v3381_v60, %v13267_v1  ;;  %v8393_v33 = vor.u32 %v11530_v21, %v8390_v20 }
 0x2b9   : > { %v13542_v32 = vadd.f32 %v3600_v49, %v3527_v58  ;;  %v3456_v3 = vadd.f32 %v3455_v62, %v3382_v57  ;;  %3651 = vmatmul.bf16.gmra.mxu0 %v8325_v63  ;;  %v8452_v62 = vld [vmem:[%s13006_s29 + $0x1a0] sm:$0xf]  ;;  %v8454_v57 = vld [vmem:[%s13006_s29 + $0x1e0] sm:$0xf0] }
 0x2ba   : > { %3725 = vmatmul.bf16.gmra.mxu1 %v8329_v53 }
 0x2bb   : > { %3799 = vmatmul.bf16.gmra.mxu2 %v8333_v0  ;;  %v11554_v0 = vld [vmem:[%s13006_s29 + $0x1dc] sm:$0xf0] }
 0x2bc   : > { %3873 = vmatmul.bf16.gmra.mxu3 %v8337_v55  ;;  %v11546_v55 = vld [vmem:[%s13006_s29 + $0x1a4] sm:$0xf] }
 0x2be   : > { %v3529_v4 = vpop.f32.mrf.mxu2  ;;  %v3383_v10 = vpop.f32.mrf.mxu0 }
 0x2bf   : > { %v3603_v7 = vpop.f32.mrf.mxu3  ;;  %v3530_v6 = vadd.f32 %v3529_v4, %v3456_v3  ;;  %v3457_v12 = vpop.f32.mrf.mxu1  ;;  %v3384_v1 = vadd.f32 %v3383_v10, %v13278_v26  ;;  %v8401_v26 = vor.u32 %v11531_v23, %v8398_v51  ;;  %v8460_v3 = vld [vmem:[%s13006_s29 + $0x1a8] sm:$0xf] }
 0x2c0   : > { %v11555_v4 = vld [vmem:[%s13006_s29 + $0x1e4] sm:$0xf0] }
 0x2c1   : > { %v13545_v14 = vadd.f32 %v3603_v7, %v3530_v6  ;;  %v3458_v16 = vadd.f32 %v3457_v12, %v3384_v1  ;;  %v11547_v7 = vld [vmem:[%s13006_s29 + $0x1ac] sm:$0xf]  ;;  %v8453_v1 = vor.u32 %v11554_v0, %v8452_v62  ;;  %v8461_v20 = vor.u32 %v11555_v4, %v8460_v3 }
 0x2c2   : > { %v8462_v6 = vld [vmem:[%s13006_s29 + $0x1e8] sm:$0xf0] }
 0x2c6   : > { %v3531_v29 = vpop.f32.mrf.mxu2  ;;  %v3386_v37 = vpop.f32.mrf.mxu0 }
 0x2c7   : > { %v3605_v30 = vpop.f32.mrf.mxu3  ;;  %v3532_v34 = vadd.f32 %v3531_v29, %v3458_v16  ;;  %v3460_v54 = vpop.f32.mrf.mxu1  ;;  %v3387_v43 = vadd.f32 %v3386_v37, %v13281_v36  ;;  %v8457_v16 = vor.u32 %v11546_v55, %v8454_v57 }
 0x2c9   : > { %v13556_v44 = vadd.f32 %v3605_v30, %v3532_v34  ;;  %v3461_v46 = vadd.f32 %v3460_v54, %v3387_v43  ;;  %3656 = vmatmul.bf16.gmra.mxu0 %v8389_v31  ;;  %v8516_v54 = vld [vmem:[%s13006_s29 + $0x220] sm:$0xf]  ;;  %v8518_v43 = vld [vmem:[%s13006_s29 + $0x260] sm:$0xf0] }
 0x2ca   : > { %3730 = vmatmul.bf16.gmra.mxu1 %v8393_v33 }
 0x2cb   : > { %3804 = vmatmul.bf16.gmra.mxu2 %v8397_v38  ;;  %v11570_v38 = vld [vmem:[%s13006_s29 + $0x25c] sm:$0xf0] }
 0x2cc   : > { %3878 = vmatmul.bf16.gmra.mxu3 %v8401_v26  ;;  %v11562_v26 = vld [vmem:[%s13006_s29 + $0x224] sm:$0xf] }
 0x2ce   : > { %v3534_v47 = vpop.f32.mrf.mxu2  ;;  %v3388_v63 = vpop.f32.mrf.mxu0 }
 0x2cf   : > { %v3608_v48 = vpop.f32.mrf.mxu3  ;;  %v3535_v49 = vadd.f32 %v3534_v47, %v3461_v46  ;;  %v3462_v53 = vpop.f32.mrf.mxu1  ;;  %v3389_v36 = vadd.f32 %v3388_v63, %v13292_v61  ;;  %v8465_v61 = vor.u32 %v11547_v7, %v8462_v6  ;;  %v8524_v46 = vld [vmem:[%s13006_s29 + $0x228] sm:$0xf] }
 0x2d0   : > { %v11571_v47 = vld [vmem:[%s13006_s29 + $0x264] sm:$0xf0] }
 0x2d1   : > { %v13559_v58 = vadd.f32 %v3608_v48, %v3535_v49  ;;  %v3463_v60 = vadd.f32 %v3462_v53, %v3389_v36  ;;  %v11563_v48 = vld [vmem:[%s13006_s29 + $0x22c] sm:$0xf]  ;;  %v8517_v36 = vor.u32 %v11570_v38, %v8516_v54  ;;  %v8525_v57 = vor.u32 %v11571_v47, %v8524_v46 }
 0x2d2   : > { %v8526_v49 = vld [vmem:[%s13006_s29 + $0x268] sm:$0xf0] }
 0x2d6   : > { %v3536_v10 = vpop.f32.mrf.mxu2  ;;  %v3391_v18 = vpop.f32.mrf.mxu0 }
 0x2d7   : > { %v3610_v12 = vpop.f32.mrf.mxu3  ;;  %v3537_v17 = vadd.f32 %v3536_v10, %v3463_v60  ;;  %v3465_v21 = vpop.f32.mrf.mxu1  ;;  %v3392_v25 = vadd.f32 %v3391_v18, %v13295_v8  ;;  %v8521_v60 = vor.u32 %v11562_v26, %v8518_v43  ;;  %v8580_v18 = vld [vmem:[%s13006_s29 + $0x2a0] sm:$0xf] }
 0x2d9   : > { %v13570_v28 = vadd.f32 %v3610_v12, %v3537_v17  ;;  %v3466_v23 = vadd.f32 %v3465_v21, %v3392_v25  ;;  %3661 = vmatmul.bf16.gmra.mxu0 %v8453_v1  ;;  %v11586_v21 = vld [vmem:[%s13006_s29 + $0x2dc] sm:$0xf0]  ;;  %v11805_v25 = vld [vmem:[%s17220_s1 + $0x338] sm:$0xff] }
 0x2da   : > { %3735 = vmatmul.bf16.gmra.mxu1 %v8457_v16  ;;  %3934 = vmatpush.bf16.msrb.mxu0 %v11805_v25  ;;  %v8581_v54 = vor.u32 %v11586_v21, %v8580_v18  ;;  %v8654_v18 = vld [vmem:[%s13006_s29 + $0x368] sm:$0xf0] }
 0x2db   : > { %3809 = vmatmul.bf16.gmra.mxu2 %v8461_v20 }
 0x2dc   : > { %3883 = vmatmul.bf16.gmra.mxu3 %v8465_v61  ;;  %v11821_v61 = vld [vmem:[%s17220_s1 + $0x3b8] sm:$0xff] }
 0x2dd   : > { %4082 = vmatpush.bf16.msrb.mxu2 %v11821_v61 }
 0x2de   : > { %v3539_v51 = vpop.f32.mrf.mxu2  ;;  %v3393_v31 = vpop.f32.mrf.mxu0 }
 0x2df   : > { %v3613_v29 = vpop.f32.mrf.mxu3  ;;  %v3540_v30 = vadd.f32 %v3539_v51, %v3466_v23  ;;  %v3467_v33 = vpop.f32.mrf.mxu1  ;;  %v3394_v8 = vadd.f32 %v3393_v31, %v13306_v35  ;;  %v8529_v35 = vor.u32 %v11563_v48, %v8526_v49  ;;  %v11829_v23 = vld [vmem:[%s17220_s1 + $0x3f8] sm:$0xff]  ;;  %v11578_v51 = vld [vmem:[%s13006_s29 + $0x2a4] sm:$0xf]  ;;  %v11579_v31 = vld [vmem:[%s13006_s29 + $0x2ac] sm:$0xf] }
 0x2e0   : > { %4156 = vmatpush.bf16.msrb.mxu3 %v11829_v23 }
 0x2e1   : > { %v13573_v34 = vadd.f32 %v3613_v29, %v3540_v30  ;;  %v3468_v37 = vadd.f32 %v3467_v33, %v3394_v8  ;;  %v8582_v29 = vld [vmem:[%s13006_s29 + $0x2e0] sm:$0xf0]  ;;  %v11587_v30 = vld [vmem:[%s13006_s29 + $0x2e4] sm:$0xf0]  ;;  %v8590_v33 = vld [vmem:[%s13006_s29 + $0x2e8] sm:$0xf0] }
 0x2e2   : > { %v8585_v38 = vor.u32 %v11578_v51, %v8582_v29  ;;  %v8593_v48 = vor.u32 %v11579_v31, %v8590_v33 }
 0x2e6   : > { %v3541_v63 = vpop.f32.mrf.mxu2  ;;  %v3396_v0 = vpop.f32.mrf.mxu0 }
 0x2e7   : > { %v3615_v53 = vpop.f32.mrf.mxu3  ;;  %v3542_v62 = vadd.f32 %v3541_v63, %v3468_v37  ;;  %v3470_v55 = vpop.f32.mrf.mxu1  ;;  %v3397_v3 = vadd.f32 %v3396_v0, %v13309_v45 }
 0x2e9   : > { %v13584_v4 = vadd.f32 %v3615_v53, %v3542_v62  ;;  %v3471_v7 = vadd.f32 %v3470_v55, %v3397_v3  ;;  %3666 = vmatmul.bf16.gmra.mxu0 %v8517_v36  ;;  %v11813_v53 = vld [vmem:[%s17220_s1 + $0x378] sm:$0xff] }
 0x2ea   : > { %3740 = vmatmul.bf16.gmra.mxu1 %v8521_v60 }
 0x2eb   : > { %3814 = vmatmul.bf16.gmra.mxu2 %v8525_v57  ;;  %4008 = vmatpush.bf16.msrb.mxu1 %v11813_v53  ;;  %v8708_v53 = vld [vmem:[%s13006_s29 + $0x3a0] sm:$0xf] }
 0x2ec   : > { %3888 = vmatmul.bf16.gmra.mxu3 %v8529_v35 }
 0x2ee   : > { %v3544_v6 = vpop.f32.mrf.mxu2  ;;  %v3398_v1 = vpop.f32.mrf.mxu0 }
 0x2ef   : > { %v3618_v10 = vpop.f32.mrf.mxu3  ;;  %v3545_v12 = vadd.f32 %v3544_v6, %v3471_v7  ;;  %v3472_v16 = vpop.f32.mrf.mxu1  ;;  %v3399_v45 = vadd.f32 %v3398_v1, %v13329_v13  ;;  %v8588_v13 = vld [vmem:[%s13006_s29 + $0x2a8] sm:$0xf]  ;;  %v8644_v7 = vld [vmem:[%s13006_s29 + $0x320] sm:$0xf] }
 0x2f0   : > { %v8589_v47 = vor.u32 %v11587_v30, %v8588_v13  ;;  %v11602_v6 = vld [vmem:[%s13006_s29 + $0x35c] sm:$0xf0]  ;;  %v8652_v1 = vld [vmem:[%s13006_s29 + $0x328] sm:$0xf] }
 0x2f1   : > { %v13587_v17 = vadd.f32 %v3618_v10, %v3545_v12  ;;  %v3473_v20 = vadd.f32 %v3472_v16, %v3399_v45  ;;  %v11594_v10 = vld [vmem:[%s13006_s29 + $0x324] sm:$0xf]  ;;  %v11603_v16 = vld [vmem:[%s13006_s29 + $0x364] sm:$0xf0]  ;;  %v11595_v45 = vld [vmem:[%s13006_s29 + $0x32c] sm:$0xf]  ;;  %v8645_v61 = vor.u32 %v11602_v6, %v8644_v7 }
 0x2f2   : > { %v8646_v12 = vld [vmem:[%s13006_s29 + $0x360] sm:$0xf0]  ;;  %v8653_v13 = vor.u32 %v11603_v16, %v8652_v1 }
 0x2f3   : > { %v8649_v25 = vor.u32 %v11594_v10, %v8646_v12 }
 0x2f6   : > { %v3546_v8 = vpop.f32.mrf.mxu2  ;;  %v3401_v43 = vpop.f32.mrf.mxu0 }
 0x2f7   : > { %v3620_v37 = vpop.f32.mrf.mxu3  ;;  %v3547_v26 = vadd.f32 %v3546_v8, %v3473_v20  ;;  %v3475_v46 = vpop.f32.mrf.mxu1  ;;  %v3402_v49 = vadd.f32 %v3401_v43, %v13335_v27  ;;  %v11820_v8 = vld [vmem:[%s17220_s1 + $0x3b0] sm:$0xff] }
 0x2f8   : > { %4083 = vmatpush.bf16.msrb.mxu2 %v11820_v8  ;;  %v11634_v8 = vld [vmem:[%s13006_s29 + $0x45c] sm:$0xf0] }
 0x2f9   : > { %v13607_v63 = vadd.f32 %v3620_v37, %v3547_v26  ;;  %v3476_v36 = vadd.f32 %v3475_v46, %v3402_v49  ;;  %3671 = vmatmul.bf16.gmra.mxu0 %v8581_v54 }
 0x2fa   : > { %3745 = vmatmul.bf16.gmra.mxu1 %v8585_v38 }
 0x2fb   : > { %3819 = vmatmul.bf16.gmra.mxu2 %v8589_v47  ;;  %v11804_v47 = vld [vmem:[%s17220_s1 + $0x330] sm:$0xff] }
 0x2fc   : > { %3893 = vmatmul.bf16.gmra.mxu3 %v8593_v48  ;;  %v11828_v48 = vld [vmem:[%s17220_s1 + $0x3f0] sm:$0xff]  ;;  %3935 = vmatpush.bf16.msrb.mxu0 %v11804_v47 }
 0x2fd   : > { %4157 = vmatpush.bf16.msrb.mxu3 %v11828_v48 }
 0x2fe   : > { %v3549_v27 = vpop.f32.mrf.mxu2  ;;  %v3403_v0 = vpop.f32.mrf.mxu0 }
 0x2ff   : > { %v3623_v60 = vpop.f32.mrf.mxu3  ;;  %v3550_v62 = vadd.f32 %v3549_v27, %v3476_v36  ;;  %v3477_v55 = vpop.f32.mrf.mxu1  ;;  %v3404_v57 = vadd.f32 %v3403_v0, %v13346_v56  ;;  %v8657_v56 = vor.u32 %v11595_v45, %v8654_v18  ;;  %v11618_v36 = vld [vmem:[%s13006_s29 + $0x3dc] sm:$0xf0]  ;;  %v11812_v27 = vld [vmem:[%s17220_s1 + $0x370] sm:$0xff]  ;;  %v11619_v0 = vld [vmem:[%s13006_s29 + $0x3e4] sm:$0xf0] }
 0x300   : > { %4009 = vmatpush.bf16.msrb.mxu1 %v11812_v27  ;;  %v8709_v6 = vor.u32 %v11618_v36, %v8708_v53 }
 0x301   : > { %v13613_v35 = vadd.f32 %v3623_v60, %v3550_v62  ;;  %v3478_v3 = vadd.f32 %v3477_v55, %v3404_v57  ;;  %v11610_v60 = vld [vmem:[%s13006_s29 + $0x3a4] sm:$0xf]  ;;  %v11611_v55 = vld [vmem:[%s13006_s29 + $0x3ac] sm:$0xf] }
 0x302   : > { %v8710_v62 = vld [vmem:[%s13006_s29 + $0x3e0] sm:$0xf0]  ;;  %v8718_v57 = vld [vmem:[%s13006_s29 + $0x3e8] sm:$0xf0] }
 0x303   : > { %v8713_v10 = vor.u32 %v11610_v60, %v8710_v62  ;;  %v8721_v18 = vor.u32 %v11611_v55, %v8718_v57  ;;  %v11819_v55 = vld [vmem:[%s17220_s1 + $0x3a8] sm:$0xff] }
 0x304   : > { %4084 = vmatpush.bf16.msrb.mxu2 %v11819_v55  ;;  %v11666_v55 = vld [vmem:[%s13006_s29 + $0x55c] sm:$0xf0] }
 0x306   : > { %v3551_v21 = vpop.f32.mrf.mxu2  ;;  %v3406_v51 = vpop.f32.mrf.mxu0 }
 0x307   : > { %v3625_v20 = vpop.f32.mrf.mxu3  ;;  %v3552_v23 = vadd.f32 %v3551_v21, %v3478_v3  ;;  %v3480_v29 = vpop.f32.mrf.mxu1  ;;  %v3407_v30 = vadd.f32 %v3406_v51, %v13352_v5 }
 0x309   : > { %v13624_v31 = vadd.f32 %v3625_v20, %v3552_v23  ;;  %v3481_v33 = vadd.f32 %v3480_v29, %v3407_v30  ;;  %3676 = vmatmul.bf16.gmra.mxu0 %v8645_v61 }
 0x30a   : > { %3750 = vmatmul.bf16.gmra.mxu1 %v8649_v25 }
 0x30b   : > { %3824 = vmatmul.bf16.gmra.mxu2 %v8653_v13 }
 0x30c   : > { %3898 = vmatmul.bf16.gmra.mxu3 %v8657_v56 }
 0x30e   : > { %v3554_v37 = vpop.f32.mrf.mxu2  ;;  %v3408_v38 = vpop.f32.mrf.mxu0 }
 0x30f   : > { %v3628_v54 = vpop.f32.mrf.mxu3  ;;  %v3555_v5 = vadd.f32 %v3554_v37, %v3481_v33  ;;  %v3482_v26 = vpop.f32.mrf.mxu1  ;;  %v3409_v43 = vadd.f32 %v3408_v38, %v13372_v42  ;;  %v8716_v42 = vld [vmem:[%s13006_s29 + $0x3a8] sm:$0xf]  ;;  %v8772_v33 = vld [vmem:[%s13006_s29 + $0x420] sm:$0xf]  ;;  %v11626_v37 = vld [vmem:[%s13006_s29 + $0x424] sm:$0xf] }
 0x310   : > { %v8717_v45 = vor.u32 %v11619_v0, %v8716_v42  ;;  %v11635_v38 = vld [vmem:[%s13006_s29 + $0x464] sm:$0xf0] }
 0x311   : > { %v13630_v46 = vadd.f32 %v3628_v54, %v3555_v5  ;;  %v3483_v49 = vadd.f32 %v3482_v26, %v3409_v43  ;;  %v8774_v54 = vld [vmem:[%s13006_s29 + $0x460] sm:$0xf0]  ;;  %v8780_v5 = vld [vmem:[%s13006_s29 + $0x428] sm:$0xf]  ;;  %v11627_v26 = vld [vmem:[%s13006_s29 + $0x42c] sm:$0xf] }
 0x312   : > { %v8782_v43 = vld [vmem:[%s13006_s29 + $0x468] sm:$0xf0]  ;;  %v8777_v53 = vor.u32 %v11626_v37, %v8774_v54  ;;  %v8781_v62 = vor.u32 %v11635_v38, %v8780_v5 }
 0x316   : > { %v3556_v3 = vpop.f32.mrf.mxu2  ;;  %v3411_v1 = vpop.f32.mrf.mxu0 }
 0x317   : > { %v3630_v7 = vpop.f32.mrf.mxu3  ;;  %v3557_v12 = vadd.f32 %v3556_v3, %v3483_v49  ;;  %v3485_v16 = vpop.f32.mrf.mxu1  ;;  %v3412_v21 = vadd.f32 %v3411_v1, %v13375_v52  ;;  %v8773_v49 = vor.u32 %v11634_v8, %v8772_v33  ;;  %v11803_v3 = vld [vmem:[%s17220_s1 + $0x328] sm:$0xff] }
 0x318   : > { %3936 = vmatpush.bf16.msrb.mxu0 %v11803_v3 }
 0x319   : > { %v13650_v20 = vadd.f32 %v3630_v7, %v3557_v12  ;;  %v3486_v61 = vadd.f32 %v3485_v16, %v3412_v21  ;;  %3681 = vmatmul.bf16.gmra.mxu0 %v8709_v6  ;;  %v11827_v7 = vld [vmem:[%s17220_s1 + $0x3e8] sm:$0xff] }
 0x31a   : > { %3755 = vmatmul.bf16.gmra.mxu1 %v8713_v10  ;;  %4158 = vmatpush.bf16.msrb.mxu3 %v11827_v7  ;;  %v11818_v7 = vld [vmem:[%s17220_s1 + $0x3a0] sm:$0xff] }
 0x31b   : > { %3829 = vmatmul.bf16.gmra.mxu2 %v8717_v45 }
 0x31c   : > { %3903 = vmatmul.bf16.gmra.mxu3 %v8721_v18  ;;  %4085 = vmatpush.bf16.msrb.mxu2 %v11818_v7  ;;  %v11799_v7 = vld [vmem:[%s17220_s1 + $0x308] sm:$0xff] }
 0x31e   : > { %v3559_v25 = vpop.f32.mrf.mxu2  ;;  %v3413_v29 = vpop.f32.mrf.mxu0 }
 0x31f   : > { %v3633_v23 = vpop.f32.mrf.mxu3  ;;  %v3560_v51 = vadd.f32 %v3559_v25, %v3486_v61  ;;  %v3487_v13 = vpop.f32.mrf.mxu1  ;;  %v3414_v52 = vadd.f32 %v3413_v29, %v13386_v19  ;;  %v8785_v19 = vor.u32 %v11627_v26, %v8782_v43  ;;  %v8836_v61 = vld [vmem:[%s13006_s29 + $0x4a0] sm:$0xf]  ;;  %v8844_v29 = vld [vmem:[%s13006_s29 + $0x4a8] sm:$0xf] }
 0x320   : > { %v11650_v25 = vld [vmem:[%s13006_s29 + $0x4dc] sm:$0xf0] }
 0x321   : > { %v13653_v56 = vadd.f32 %v3633_v23, %v3560_v51  ;;  %v3488_v30 = vadd.f32 %v3487_v13, %v3414_v52  ;;  %v11642_v23 = vld [vmem:[%s13006_s29 + $0x4a4] sm:$0xf]  ;;  %v11651_v13 = vld [vmem:[%s13006_s29 + $0x4e4] sm:$0xf0]  ;;  %v11643_v52 = vld [vmem:[%s13006_s29 + $0x4ac] sm:$0xf]  ;;  %v8837_v37 = vor.u32 %v11650_v25, %v8836_v61 }
 0x322   : > { %v8838_v51 = vld [vmem:[%s13006_s29 + $0x4e0] sm:$0xf0]  ;;  %v8845_v43 = vor.u32 %v11651_v13, %v8844_v29 }
 0x323   : > { %v8841_v54 = vor.u32 %v11642_v23, %v8838_v51 }
 0x326   : > { %v3561_v47 = vpop.f32.mrf.mxu2  ;;  %v3647_v27 = vpop.f32.mrf.mxu0 }
 0x327   : > { %v3635_v48 = vpop.f32.mrf.mxu3  ;;  %v3562_v36 = vadd.f32 %v3561_v47, %v3488_v30  ;;  %v3721_v60 = vpop.f32.mrf.mxu1  ;;  %v3648_v42 = vadd.f32 %v3647_v27, %v13401_v39  ;;  %v11811_v39 = vld [vmem:[%s17220_s1 + $0x368] sm:$0xff] }
 0x328   : > { %4010 = vmatpush.bf16.msrb.mxu1 %v11811_v39  ;;  %v8846_v30 = vld [vmem:[%s13006_s29 + $0x4e8] sm:$0xf0]  ;;  %v11802_v39 = vld [vmem:[%s17220_s1 + $0x320] sm:$0xff] }
 0x329   : > { %v13664_v0 = vadd.f32 %v3635_v48, %v3562_v36  ;;  %v3722_v57 = vadd.f32 %v3721_v60, %v3648_v42  ;;  %3686 = vmatmul.bf16.gmra.mxu0 %v8773_v49  ;;  %v8900_v42 = vld [vmem:[%s13006_s29 + $0x520] sm:$0xf] }
 0x32a   : > { %3760 = vmatmul.bf16.gmra.mxu1 %v8777_v53  ;;  %3937 = vmatpush.bf16.msrb.mxu0 %v11802_v39  ;;  %v8901_v25 = vor.u32 %v11666_v55, %v8900_v42  ;;  %v8964_v42 = vld [vmem:[%s13006_s29 + $0x5a0] sm:$0xf]  ;;  %v11815_v39 = vld [vmem:[%s17220_s1 + $0x388] sm:$0xff] }
 0x32b   : > { %3834 = vmatmul.bf16.gmra.mxu2 %v8781_v62  ;;  %v11682_v55 = vld [vmem:[%s13006_s29 + $0x5dc] sm:$0xf0] }
 0x32c   : > { %3908 = vmatmul.bf16.gmra.mxu3 %v8785_v19 }
 0x32e   : > { %v3795_v6 = vpop.f32.mrf.mxu2  ;;  %v3649_v1 = vpop.f32.mrf.mxu0 }
 0x32f   : > { %v3869_v10 = vpop.f32.mrf.mxu3  ;;  %v3796_v12 = vadd.f32 %v3795_v6, %v3722_v57  ;;  %v3723_v16 = vpop.f32.mrf.mxu1  ;;  %v3650_v45 = vadd.f32 %v3649_v1, %v13412_v9  ;;  %v8849_v9 = vor.u32 %v11643_v52, %v8846_v30  ;;  %v11658_v57 = vld [vmem:[%s13006_s29 + $0x524] sm:$0xf]  ;;  %v11667_v1 = vld [vmem:[%s13006_s29 + $0x564] sm:$0xf0] }
 0x330   : > { %v11826_v6 = vld [vmem:[%s17220_s1 + $0x3e0] sm:$0xff] }
 0x331   : > { %v13679_v18 = vadd.f32 %v3869_v10, %v3796_v12  ;;  %v3724_v21 = vadd.f32 %v3723_v16, %v3650_v45  ;;  %v8902_v10 = vld [vmem:[%s13006_s29 + $0x560] sm:$0xf0]  ;;  %v11659_v16 = vld [vmem:[%s13006_s29 + $0x52c] sm:$0xf]  ;;  %4159 = vmatpush.bf16.msrb.mxu3 %v11826_v6 }
 0x332   : > { %v11810_v12 = vld [vmem:[%s17220_s1 + $0x360] sm:$0xff]  ;;  %v8910_v45 = vld [vmem:[%s13006_s29 + $0x568] sm:$0xf0]  ;;  %v8905_v23 = vor.u32 %v11658_v57, %v8902_v10  ;;  %v8972_v10 = vld [vmem:[%s13006_s29 + $0x5a8] sm:$0xf] }
 0x333   : > { %4011 = vmatpush.bf16.msrb.mxu1 %v11810_v12  ;;  %v8913_v30 = vor.u32 %v11659_v16, %v8910_v45  ;;  %v11674_v57 = vld [vmem:[%s13006_s29 + $0x5a4] sm:$0xf]  ;;  %v11683_v12 = vld [vmem:[%s13006_s29 + $0x5e4] sm:$0xf0]  ;;  %v8974_v16 = vld [vmem:[%s13006_s29 + $0x5e8] sm:$0xf0] }
 0x334   : > { %v8966_v6 = vld [vmem:[%s13006_s29 + $0x5e0] sm:$0xf0] }
 0x336   : > { %v3797_v33 = vpop.f32.mrf.mxu2  ;;  %v3652_v38 = vpop.f32.mrf.mxu0 }
 0x337   : > { %v3871_v8 = vpop.f32.mrf.mxu3  ;;  %v3798_v5 = vadd.f32 %v3797_v33, %v3724_v21  ;;  %v3726_v26 = vpop.f32.mrf.mxu1  ;;  %v3653_v47 = vadd.f32 %v3652_v38, %v13415_v24  ;;  %v11817_v38 = vld [vmem:[%s17220_s1 + $0x398] sm:$0xff] }
 0x338   : > { %4086 = vmatpush.bf16.msrb.mxu2 %v11817_v38 }
 0x339   : > { %v13690_v48 = vadd.f32 %v3871_v8, %v3798_v5  ;;  %v3727_v49 = vadd.f32 %v3726_v26, %v3653_v47  ;;  %3691 = vmatmul.bf16.gmra.mxu0 %v8837_v37  ;;  %v11809_v5 = vld [vmem:[%s17220_s1 + $0x358] sm:$0xff]  ;;  %v11808_v47 = vld [vmem:[%s17220_s1 + $0x350] sm:$0xff] }
 0x33a   : > { %3765 = vmatmul.bf16.gmra.mxu1 %v8841_v54  ;;  %v11801_v54 = vld [vmem:[%s17220_s1 + $0x318] sm:$0xff] }
 0x33b   : > { %3839 = vmatmul.bf16.gmra.mxu2 %v8845_v43  ;;  %3938 = vmatpush.bf16.msrb.mxu0 %v11801_v54 }
 0x33c   : > { %3913 = vmatmul.bf16.gmra.mxu3 %v8849_v9  ;;  %4012 = vmatpush.bf16.msrb.mxu1 %v11809_v5  ;;  %v11800_v9 = vld [vmem:[%s17220_s1 + $0x310] sm:$0xff]  ;;  %v11822_v5 = vld [vmem:[%s17220_s1 + $0x3c0] sm:$0xff] }
 0x33e   : > { %v3800_v53 = vpop.f32.mrf.mxu2  ;;  %v3654_v60 = vpop.f32.mrf.mxu0 }
 0x33f   : > { %v3874_v36 = vpop.f32.mrf.mxu3  ;;  %v3801_v27 = vadd.f32 %v3800_v53, %v3727_v49  ;;  %v3728_v62 = vpop.f32.mrf.mxu1  ;;  %v3655_v24 = vadd.f32 %v3654_v60, %v13438_v59  ;;  %v8908_v59 = vld [vmem:[%s13006_s29 + $0x528] sm:$0xf]  ;;  %v11816_v49 = vld [vmem:[%s17220_s1 + $0x390] sm:$0xff]  ;;  %3939 = vmatpush.bf16.msrb.mxu0 %v11800_v9 }
 0x340   : > { %v8909_v52 = vor.u32 %v11667_v1, %v8908_v59  ;;  %v11824_v60 = vld [vmem:[%s17220_s1 + $0x3d0] sm:$0xff]  ;;  %4013 = vmatpush.bf16.msrb.mxu1 %v11808_v47  ;;  %4087 = vmatpush.bf16.msrb.mxu2 %v11816_v49  ;;  %v11823_v59 = vld [vmem:[%s17220_s1 + $0x3c8] sm:$0xff] }
 0x341   : > { %v13693_v19 = vadd.f32 %v3874_v36, %v3801_v27  ;;  %v3729_v3 = vadd.f32 %v3728_v62, %v3655_v24  ;;  %v11675_v1 = vld [vmem:[%s13006_s29 + $0x5ac] sm:$0xf] }
 0x343   : > { %3940 = vmatpush.bf16.msrb.mxu0 %v11799_v7  ;;  %v9038_v7 = vld [vmem:[%s13006_s29 + $0x668] sm:$0xf0] }
 0x344   : > { %4088 = vmatpush.bf16.msrb.mxu2 %v11815_v39 }
 0x346   : > { %v3802_v21 = vpop.f32.mrf.mxu2  ;;  %v3657_v29 = vpop.f32.mrf.mxu0 }
 0x347   : > { %v3876_v61 = vpop.f32.mrf.mxu3  ;;  %v3803_v51 = vadd.f32 %v3802_v21, %v3729_v3  ;;  %v3731_v13 = vpop.f32.mrf.mxu1  ;;  %v3658_v33 = vadd.f32 %v3657_v29, %v13465_v15  ;;  %v11825_v15 = vld [vmem:[%s17220_s1 + $0x3d8] sm:$0xff]  ;;  %v11814_v29 = vld [vmem:[%s17220_s1 + $0x380] sm:$0xff] }
 0x348   : > { %4160 = vmatpush.bf16.msrb.mxu3 %v11825_v15  ;;  %4089 = vmatpush.bf16.msrb.mxu2 %v11814_v29 }
 0x349   : > { %v13716_v8 = vadd.f32 %v3876_v61, %v3803_v51  ;;  %v3732_v37 = vadd.f32 %v3731_v13, %v3658_v33  ;;  %3696 = vmatmul.bf16.gmra.mxu0 %v8901_v25  ;;  %v8965_v61 = vor.u32 %v11682_v55, %v8964_v42  ;;  %v8969_v25 = vor.u32 %v11674_v57, %v8966_v6  ;;  %v11806_v51 = vld [vmem:[%s17220_s1 + $0x340] sm:$0xff]  ;;  %v9036_v55 = vld [vmem:[%s13006_s29 + $0x628] sm:$0xf] }
 0x34a   : > { %3770 = vmatmul.bf16.gmra.mxu1 %v8905_v23  ;;  %v11798_v23 = vld [vmem:[%s17220_s1 + $0x300] sm:$0xff]  ;;  %v8973_v33 = vor.u32 %v11683_v12, %v8972_v10  ;;  %v11699_v57 = vld [vmem:[%s13006_s29 + $0x664] sm:$0xf0] }
 0x34b   : > { %3844 = vmatmul.bf16.gmra.mxu2 %v8909_v52  ;;  %3941 = vmatpush.bf16.msrb.mxu0 %v11798_v23  ;;  %v9030_v42 = vld [vmem:[%s13006_s29 + $0x660] sm:$0xf0] }
 0x34c   : > { %3918 = vmatmul.bf16.gmra.mxu3 %v8913_v30 }
 0x34d   : > { %4161 = vmatpush.bf16.msrb.mxu3 %v11824_v60  ;;  %v11698_v60 = vld [vmem:[%s13006_s29 + $0x65c] sm:$0xf0] }
 0x34e   : > { %v3805_v26 = vpop.f32.mrf.mxu2  ;;  %v3659_v36 = vpop.f32.mrf.mxu0 }
 0x34f   : > { %v3879_v43 = vpop.f32.mrf.mxu3  ;;  %v3806_v53 = vadd.f32 %v3805_v26, %v3732_v37  ;;  %v3733_v27 = vpop.f32.mrf.mxu1  ;;  %v3660_v62 = vadd.f32 %v3659_v36, %v13500_v2  ;;  %v11807_v2 = vld [vmem:[%s17220_s1 + $0x348] sm:$0xff]  ;;  %v8977_v37 = vor.u32 %v11675_v1, %v8974_v16  ;;  %v9037_v16 = vor.u32 %v11699_v57, %v9036_v55 }
 0x350   : > { %4014 = vmatpush.bf16.msrb.mxu1 %v11807_v2 }
 0x351   : > { %v13743_v24 = vadd.f32 %v3879_v43, %v3806_v53  ;;  %v3734_v3 = vadd.f32 %v3733_v27, %v3660_v62  ;;  %4162 = vmatpush.bf16.msrb.mxu3 %v11823_v59  ;;  %v9028_v27 = vld [vmem:[%s13006_s29 + $0x620] sm:$0xf]  ;;  %v11690_v62 = vld [vmem:[%s13006_s29 + $0x624] sm:$0xf] }
 0x352   : > { %v9029_v6 = vor.u32 %v11698_v60, %v9028_v27  ;;  %v9033_v10 = vor.u32 %v11690_v62, %v9030_v42 }
 0x354   : > { %4015 = vmatpush.bf16.msrb.mxu1 %v11806_v51 }
 0x355   : > { %4163 = vmatpush.bf16.msrb.mxu3 %v11822_v5  ;;  %v8278_v5 = vld [vmem:[%s13006_s29 + $0x70] sm:$0xf0] }
 0x356   : > { %v3807_v45 = vpop.f32.mrf.mxu2  ;;  %v3662_v52 = vpop.f32.mrf.mxu0 }
 0x357   : > { %v3881_v21 = vpop.f32.mrf.mxu3  ;;  %v3808_v13 = vadd.f32 %v3807_v45, %v3734_v3  ;;  %v3736_v30 = vpop.f32.mrf.mxu1  ;;  %v3663_v54 = vadd.f32 %v3662_v52, %v13503_v11  ;;  %v11691_v3 = vld [vmem:[%s13006_s29 + $0x62c] sm:$0xf] }
 0x359   : > { %v13778_v38 = vadd.f32 %v3881_v21, %v3808_v13  ;;  %v3737_v15 = vadd.f32 %v3736_v30, %v3663_v54  ;;  %3701 = vmatmul.bf16.gmra.mxu0 %v8965_v61  ;;  %v11500_v54 = vld [vmem:[%s13006_s29 + $0x34] sm:$0xf] }
 0x35a   : > { %3775 = vmatmul.bf16.gmra.mxu1 %v8969_v25 }
 0x35b   : > { %3849 = vmatmul.bf16.gmra.mxu2 %v8973_v33  ;;  %v8276_v33 = vld [vmem:[%s13006_s29 + $0x30] sm:$0xf] }
 0x35c   : > { %3923 = vmatmul.bf16.gmra.mxu3 %v8977_v37  ;;  %v11508_v37 = vld [vmem:[%s13006_s29 + $0x6c] sm:$0xf0] }
 0x35e   : > { %v3810_v11 = vpop.f32.mrf.mxu2  ;;  %v3664_v9 = vpop.f32.mrf.mxu0 }
 0x35f   : > { %v3884_v26 = vpop.f32.mrf.mxu3  ;;  %v3811_v43 = vadd.f32 %v3810_v11, %v3737_v15  ;;  %v3738_v47 = vpop.f32.mrf.mxu1  ;;  %v3665_v49 = vadd.f32 %v3664_v9, %v13514_v41  ;;  %v9041_v41 = vor.u32 %v11691_v3, %v9038_v7  ;;  %v8284_v15 = vld [vmem:[%s13006_s29 + $0x38] sm:$0xf] }
 0x360   : > { %v11509_v11 = vld [vmem:[%s13006_s29 + $0x74] sm:$0xf0] }
 0x361   : > { %v13781_v53 = vadd.f32 %v3884_v26, %v3811_v43  ;;  %v3739_v36 = vadd.f32 %v3738_v47, %v3665_v49  ;;  %v11501_v26 = vld [vmem:[%s13006_s29 + $0x3c] sm:$0xf]  ;;  %v8277_v49 = vor.u32 %v11508_v37, %v8276_v33  ;;  %v8285_v42 = vor.u32 %v11509_v11, %v8284_v15 }
 0x362   : > { %v8286_v43 = vld [vmem:[%s13006_s29 + $0x78] sm:$0xf0] }
 0x366   : > { %v3812_v2 = vpop.f32.mrf.mxu2  ;;  %v3667_v12 = vpop.f32.mrf.mxu0 }
 0x367   : > { %v3886_v39 = vpop.f32.mrf.mxu3  ;;  %v3813_v59 = vadd.f32 %v3812_v2, %v3739_v36  ;;  %v3741_v1 = vpop.f32.mrf.mxu1  ;;  %v3668_v45 = vadd.f32 %v3667_v12, %v13517_v50  ;;  %v8281_v36 = vor.u32 %v11500_v54, %v8278_v5 }
 0x369   : > { %v13792_v21 = vadd.f32 %v3886_v39, %v3813_v59  ;;  %v3742_v61 = vadd.f32 %v3741_v1, %v3668_v45  ;;  %3706 = vmatmul.bf16.gmra.mxu0 %v9029_v6  ;;  %v8340_v1 = vld [vmem:[%s13006_s29 + $0xb0] sm:$0xf]  ;;  %v8342_v45 = vld [vmem:[%s13006_s29 + $0xf0] sm:$0xf0] }
 0x36a   : > { %3780 = vmatmul.bf16.gmra.mxu1 %v9033_v10 }
 0x36b   : > { %3854 = vmatmul.bf16.gmra.mxu2 %v9037_v16  ;;  %v11524_v16 = vld [vmem:[%s13006_s29 + $0xec] sm:$0xf0] }
 0x36c   : > { %3928 = vmatmul.bf16.gmra.mxu3 %v9041_v41  ;;  %v11516_v41 = vld [vmem:[%s13006_s29 + $0xb4] sm:$0xf] }
 0x36e   : > { %v3815_v25 = vpop.f32.mrf.mxu2  ;;  %v3669_v29 = vpop.f32.mrf.mxu0 }
 0x36f   : > { %v3889_v23 = vpop.f32.mrf.mxu3  ;;  %v3816_v51 = vadd.f32 %v3815_v25, %v3742_v61  ;;  %v3743_v13 = vpop.f32.mrf.mxu1  ;;  %v3670_v50 = vadd.f32 %v3669_v29, %v13528_v22  ;;  %v8289_v22 = vor.u32 %v11501_v26, %v8286_v43  ;;  %v8348_v61 = vld [vmem:[%s13006_s29 + $0xb8] sm:$0xf] }
 0x370   : > { %v11525_v25 = vld [vmem:[%s13006_s29 + $0xf4] sm:$0xf0] }
 0x371   : > { %v13795_v52 = vadd.f32 %v3889_v23, %v3816_v51  ;;  %v3744_v30 = vadd.f32 %v3743_v13, %v3670_v50  ;;  %v11517_v23 = vld [vmem:[%s13006_s29 + $0xbc] sm:$0xf]  ;;  %v8341_v50 = vor.u32 %v11524_v16, %v8340_v1  ;;  %v8349_v5 = vor.u32 %v11525_v25, %v8348_v61 }
 0x372   : > { %v8350_v51 = vld [vmem:[%s13006_s29 + $0xf8] sm:$0xf0] }
 0x376   : > { %v3817_v9 = vpop.f32.mrf.mxu2  ;;  %v3672_v60 = vpop.f32.mrf.mxu0 }
 0x377   : > { %v3891_v47 = vpop.f32.mrf.mxu3  ;;  %v3818_v27 = vadd.f32 %v3817_v9, %v3744_v30  ;;  %v3746_v62 = vpop.f32.mrf.mxu1  ;;  %v3673_v55 = vadd.f32 %v3672_v60, %v13531_v40  ;;  %v8345_v30 = vor.u32 %v11516_v41, %v8342_v45 }
 0x379   : > { %v13806_v57 = vadd.f32 %v3891_v47, %v3818_v27  ;;  %v3747_v3 = vadd.f32 %v3746_v62, %v3673_v55  ;;  %3942 = vmatmul.bf16.vlgmr.msrb.gmra.mxu0 %v8277_v49  ;;  %v8404_v62 = vld [vmem:[%s13006_s29 + $0x130] sm:$0xf]  ;;  %v8406_v55 = vld [vmem:[%s13006_s29 + $0x170] sm:$0xf0] }
 0x37a   : > { %4016 = vmatmul.bf16.vlgmr.msrb.gmra.mxu1 %v8281_v36 }
 0x37b   : > { %4090 = vmatmul.bf16.vlgmr.msrb.gmra.mxu2 %v8285_v42  ;;  %v11540_v42 = vld [vmem:[%s13006_s29 + $0x16c] sm:$0xf0] }
 0x37c   : > { %4164 = vmatmul.bf16.vlgmr.msrb.gmra.mxu3 %v8289_v22  ;;  %v11532_v22 = vld [vmem:[%s13006_s29 + $0x134] sm:$0xf] }
 0x37e   : > { %v3820_v7 = vpop.f32.mrf.mxu2  ;;  %v3674_v6 = vpop.f32.mrf.mxu0 }
 0x37f   : > { %v3894_v2 = vpop.f32.mrf.mxu3  ;;  %v3821_v39 = vadd.f32 %v3820_v7, %v3747_v3  ;;  %v3748_v10 = vpop.f32.mrf.mxu1  ;;  %v3675_v40 = vadd.f32 %v3674_v6, %v13542_v32  ;;  %v8353_v32 = vor.u32 %v11517_v23, %v8350_v51  ;;  %v8412_v3 = vld [vmem:[%s13006_s29 + $0x138] sm:$0xf] }
 0x380   : > { %v11541_v7 = vld [vmem:[%s13006_s29 + $0x174] sm:$0xf0] }
 0x381   : > { %v13809_v59 = vadd.f32 %v3894_v2, %v3821_v39  ;;  %v3749_v12 = vadd.f32 %v3748_v10, %v3675_v40  ;;  %v11533_v2 = vld [vmem:[%s13006_s29 + $0x13c] sm:$0xf]  ;;  %v8405_v40 = vor.u32 %v11540_v42, %v8404_v62  ;;  %v8413_v45 = vor.u32 %v11541_v7, %v8412_v3 }
 0x382   : > { %v8414_v39 = vld [vmem:[%s13006_s29 + $0x178] sm:$0xf0] }
 0x386   : > { %v3822_v29 = vpop.f32.mrf.mxu2  ;;  %v3677_v37 = vpop.f32.mrf.mxu0 }
 0x387   : > { %v3896_v13 = vpop.f32.mrf.mxu3  ;;  %v3823_v33 = vadd.f32 %v3822_v29, %v3749_v12  ;;  %v3751_v54 = vpop.f32.mrf.mxu1  ;;  %v3678_v15 = vadd.f32 %v3677_v37, %v13545_v14  ;;  %v8409_v12 = vor.u32 %v11532_v22, %v8406_v55 }
 0x389   : > { %v13820_v11 = vadd.f32 %v3896_v13, %v3823_v33  ;;  %v3752_v26 = vadd.f32 %v3751_v54, %v3678_v15  ;;  %3947 = vmatmul.bf16.gmra.mxu0 %v8341_v50  ;;  %v8468_v54 = vld [vmem:[%s13006_s29 + $0x1b0] sm:$0xf]  ;;  %v8470_v15 = vld [vmem:[%s13006_s29 + $0x1f0] sm:$0xf0] }
 0x38a   : > { %4021 = vmatmul.bf16.gmra.mxu1 %v8345_v30 }
 0x38b   : > { %4095 = vmatmul.bf16.gmra.mxu2 %v8349_v5  ;;  %v11556_v5 = vld [vmem:[%s13006_s29 + $0x1ec] sm:$0xf0] }
 0x38c   : > { %4169 = vmatmul.bf16.gmra.mxu3 %v8353_v32  ;;  %v11548_v32 = vld [vmem:[%s13006_s29 + $0x1b4] sm:$0xf] }
 0x38e   : > { %v3825_v43 = vpop.f32.mrf.mxu2  ;;  %v3679_v49 = vpop.f32.mrf.mxu0 }
 0x38f   : > { %v3899_v9 = vpop.f32.mrf.mxu3  ;;  %v3826_v47 = vadd.f32 %v3825_v43, %v3752_v26  ;;  %v3753_v36 = vpop.f32.mrf.mxu1  ;;  %v3680_v14 = vadd.f32 %v3679_v49, %v13556_v44  ;;  %v8417_v44 = vor.u32 %v11533_v2, %v8414_v39  ;;  %v8476_v26 = vld [vmem:[%s13006_s29 + $0x1b8] sm:$0xf] }
 0x390   : > { %v11557_v43 = vld [vmem:[%s13006_s29 + $0x1f4] sm:$0xf0] }
 0x391   : > { %v13823_v27 = vadd.f32 %v3899_v9, %v3826_v47  ;;  %v3754_v60 = vadd.f32 %v3753_v36, %v3680_v14  ;;  %v11549_v9 = vld [vmem:[%s13006_s29 + $0x1bc] sm:$0xf]  ;;  %v8469_v14 = vor.u32 %v11556_v5, %v8468_v54  ;;  %v8477_v55 = vor.u32 %v11557_v43, %v8476_v26 }
 0x392   : > { %v8478_v47 = vld [vmem:[%s13006_s29 + $0x1f8] sm:$0xf0] }
 0x396   : > { %v3827_v6 = vpop.f32.mrf.mxu2  ;;  %v3682_v16 = vpop.f32.mrf.mxu0 }
 0x397   : > { %v3901_v10 = vpop.f32.mrf.mxu3  ;;  %v3828_v1 = vadd.f32 %v3827_v6, %v3754_v60  ;;  %v3756_v41 = vpop.f32.mrf.mxu1  ;;  %v3683_v61 = vadd.f32 %v3682_v16, %v13559_v58  ;;  %v8473_v60 = vor.u32 %v11548_v32, %v8470_v15 }
 0x399   : > { %v13834_v25 = vadd.f32 %v3901_v10, %v3828_v1  ;;  %v3757_v23 = vadd.f32 %v3756_v41, %v3683_v61  ;;  %3952 = vmatmul.bf16.gmra.mxu0 %v8405_v40  ;;  %v8532_v41 = vld [vmem:[%s13006_s29 + $0x230] sm:$0xf]  ;;  %v8534_v61 = vld [vmem:[%s13006_s29 + $0x270] sm:$0xf0] }
 0x39a   : > { %4026 = vmatmul.bf16.gmra.mxu1 %v8409_v12 }
 0x39b   : > { %4100 = vmatmul.bf16.gmra.mxu2 %v8413_v45  ;;  %v11572_v45 = vld [vmem:[%s13006_s29 + $0x26c] sm:$0xf0] }
 0x39c   : > { %4174 = vmatmul.bf16.gmra.mxu3 %v8417_v44  ;;  %v11564_v44 = vld [vmem:[%s13006_s29 + $0x234] sm:$0xf] }
 0x39e   : > { %v3830_v51 = vpop.f32.mrf.mxu2  ;;  %v3684_v50 = vpop.f32.mrf.mxu0 }
 0x39f   : > { %v3904_v29 = vpop.f32.mrf.mxu3  ;;  %v3831_v13 = vadd.f32 %v3830_v51, %v3757_v23  ;;  %v3758_v30 = vpop.f32.mrf.mxu1  ;;  %v3685_v58 = vadd.f32 %v3684_v50, %v13570_v28  ;;  %v8481_v28 = vor.u32 %v11549_v9, %v8478_v47  ;;  %v8540_v23 = vld [vmem:[%s13006_s29 + $0x238] sm:$0xf] }
 0x3a0   : > { %v11573_v51 = vld [vmem:[%s13006_s29 + $0x274] sm:$0xf0] }
 0x3a1   : > { %v13837_v33 = vadd.f32 %v3904_v29, %v3831_v13  ;;  %v3759_v37 = vadd.f32 %v3758_v30, %v3685_v58  ;;  %v11565_v29 = vld [vmem:[%s13006_s29 + $0x23c] sm:$0xf]  ;;  %v8533_v58 = vor.u32 %v11572_v45, %v8532_v41  ;;  %v8541_v15 = vor.u32 %v11573_v51, %v8540_v23 }
 0x3a2   : > { %v8542_v13 = vld [vmem:[%s13006_s29 + $0x278] sm:$0xf0] }
 0x3a6   : > { %v3832_v49 = vpop.f32.mrf.mxu2  ;;  %v3687_v42 = vpop.f32.mrf.mxu0 }
 0x3a7   : > { %v3906_v36 = vpop.f32.mrf.mxu3  ;;  %v3833_v62 = vadd.f32 %v3832_v49, %v3759_v37  ;;  %v3761_v22 = vpop.f32.mrf.mxu1  ;;  %v3688_v3 = vadd.f32 %v3687_v42, %v13573_v34  ;;  %v8537_v37 = vor.u32 %v11564_v44, %v8534_v61 }
 0x3a9   : > { %v13848_v7 = vadd.f32 %v3906_v36, %v3833_v62  ;;  %v3762_v2 = vadd.f32 %v3761_v22, %v3688_v3  ;;  %3957 = vmatmul.bf16.gmra.mxu0 %v8469_v14  ;;  %v8596_v22 = vld [vmem:[%s13006_s29 + $0x2b0] sm:$0xf]  ;;  %v8598_v3 = vld [vmem:[%s13006_s29 + $0x2f0] sm:$0xf0] }
 0x3aa   : > { %4031 = vmatmul.bf16.gmra.mxu1 %v8473_v60 }
 0x3ab   : > { %4105 = vmatmul.bf16.gmra.mxu2 %v8477_v55  ;;  %v11588_v55 = vld [vmem:[%s13006_s29 + $0x2ec] sm:$0xf0] }
 0x3ac   : > { %4179 = vmatmul.bf16.gmra.mxu3 %v8481_v28  ;;  %v11580_v28 = vld [vmem:[%s13006_s29 + $0x2b4] sm:$0xf] }
 0x3ae   : > { %v3835_v39 = vpop.f32.mrf.mxu2  ;;  %v3689_v40 = vpop.f32.mrf.mxu0 }
 0x3af   : > { %v3909_v6 = vpop.f32.mrf.mxu3  ;;  %v3836_v10 = vadd.f32 %v3835_v39, %v3762_v2  ;;  %v3763_v12 = vpop.f32.mrf.mxu1  ;;  %v3690_v34 = vadd.f32 %v3689_v40, %v13584_v4  ;;  %v8545_v4 = vor.u32 %v11565_v29, %v8542_v13  ;;  %v8604_v2 = vld [vmem:[%s13006_s29 + $0x2b8] sm:$0xf] }
 0x3b0   : > { %v11589_v39 = vld [vmem:[%s13006_s29 + $0x2f4] sm:$0xf0] }
 0x3b1   : > { %v13851_v1 = vadd.f32 %v3909_v6, %v3836_v10  ;;  %v3764_v16 = vadd.f32 %v3763_v12, %v3690_v34  ;;  %v11581_v6 = vld [vmem:[%s13006_s29 + $0x2bc] sm:$0xf]  ;;  %v8597_v34 = vor.u32 %v11588_v55, %v8596_v22  ;;  %v8605_v61 = vor.u32 %v11589_v39, %v8604_v2 }
 0x3b2   : > { %v8606_v10 = vld [vmem:[%s13006_s29 + $0x2f8] sm:$0xf0] }
 0x3b6   : > { %v3837_v50 = vpop.f32.mrf.mxu2  ;;  %v3692_v5 = vpop.f32.mrf.mxu0 }
 0x3b7   : > { %v3911_v30 = vpop.f32.mrf.mxu3  ;;  %v3838_v54 = vadd.f32 %v3837_v50, %v3764_v16  ;;  %v3766_v32 = vpop.f32.mrf.mxu1  ;;  %v3693_v26 = vadd.f32 %v3692_v5, %v13587_v17  ;;  %v8601_v16 = vor.u32 %v11580_v28, %v8598_v3 }
 0x3b9   : > { %v13862_v43 = vadd.f32 %v3911_v30, %v3838_v54  ;;  %v3767_v9 = vadd.f32 %v3766_v32, %v3693_v26  ;;  %3962 = vmatmul.bf16.gmra.mxu0 %v8533_v58  ;;  %v8660_v32 = vld [vmem:[%s13006_s29 + $0x330] sm:$0xf]  ;;  %v8662_v26 = vld [vmem:[%s13006_s29 + $0x370] sm:$0xf0] }
 0x3ba   : > { %4036 = vmatmul.bf16.gmra.mxu1 %v8537_v37 }
 0x3bb   : > { %4110 = vmatmul.bf16.gmra.mxu2 %v8541_v15  ;;  %v11604_v15 = vld [vmem:[%s13006_s29 + $0x36c] sm:$0xf0] }
 0x3bc   : > { %4184 = vmatmul.bf16.gmra.mxu3 %v8545_v4  ;;  %v11596_v4 = vld [vmem:[%s13006_s29 + $0x334] sm:$0xf] }
 0x3be   : > { %v3840_v47 = vpop.f32.mrf.mxu2  ;;  %v3694_v14 = vpop.f32.mrf.mxu0 }
 0x3bf   : > { %v3914_v49 = vpop.f32.mrf.mxu3  ;;  %v3841_v36 = vadd.f32 %v3840_v47, %v3767_v9  ;;  %v3768_v60 = vpop.f32.mrf.mxu1  ;;  %v3695_v17 = vadd.f32 %v3694_v14, %v13607_v63  ;;  %v8609_v63 = vor.u32 %v11581_v6, %v8606_v10  ;;  %v8668_v9 = vld [vmem:[%s13006_s29 + $0x338] sm:$0xf] }
 0x3c0   : > { %v11605_v47 = vld [vmem:[%s13006_s29 + $0x374] sm:$0xf0] }
 0x3c1   : > { %v13865_v62 = vadd.f32 %v3914_v49, %v3841_v36  ;;  %v3769_v42 = vadd.f32 %v3768_v60, %v3695_v17  ;;  %v11597_v49 = vld [vmem:[%s13006_s29 + $0x33c] sm:$0xf]  ;;  %v8661_v17 = vor.u32 %v11604_v15, %v8660_v32  ;;  %v8669_v3 = vor.u32 %v11605_v47, %v8668_v9 }
 0x3c2   : > { %v8670_v36 = vld [vmem:[%s13006_s29 + $0x378] sm:$0xf0] }
 0x3c6   : > { %v3842_v40 = vpop.f32.mrf.mxu2  ;;  %v3697_v45 = vpop.f32.mrf.mxu0 }
 0x3c7   : > { %v3916_v12 = vpop.f32.mrf.mxu3  ;;  %v3843_v41 = vadd.f32 %v3842_v40, %v3769_v42  ;;  %v3771_v44 = vpop.f32.mrf.mxu1  ;;  %v3698_v23 = vadd.f32 %v3697_v45, %v13613_v35  ;;  %v8665_v42 = vor.u32 %v11596_v4, %v8662_v26 }
 0x3c9   : > { %v13876_v51 = vadd.f32 %v3916_v12, %v3843_v41  ;;  %v3772_v29 = vadd.f32 %v3771_v44, %v3698_v23  ;;  %3967 = vmatmul.bf16.gmra.mxu0 %v8597_v34  ;;  %v8724_v44 = vld [vmem:[%s13006_s29 + $0x3b0] sm:$0xf]  ;;  %v8726_v23 = vld [vmem:[%s13006_s29 + $0x3f0] sm:$0xf0] }
 0x3ca   : > { %4041 = vmatmul.bf16.gmra.mxu1 %v8601_v16 }
 0x3cb   : > { %4115 = vmatmul.bf16.gmra.mxu2 %v8605_v61  ;;  %v11620_v61 = vld [vmem:[%s13006_s29 + $0x3ec] sm:$0xf0] }
 0x3cc   : > { %4189 = vmatmul.bf16.gmra.mxu3 %v8609_v63  ;;  %v11612_v63 = vld [vmem:[%s13006_s29 + $0x3b4] sm:$0xf] }
 0x3ce   : > { %v3845_v13 = vpop.f32.mrf.mxu2  ;;  %v3699_v58 = vpop.f32.mrf.mxu0 }
 0x3cf   : > { %v3919_v50 = vpop.f32.mrf.mxu3  ;;  %v3846_v30 = vadd.f32 %v3845_v13, %v3772_v29  ;;  %v3773_v37 = vpop.f32.mrf.mxu1  ;;  %v3700_v35 = vadd.f32 %v3699_v58, %v13624_v31  ;;  %v8673_v31 = vor.u32 %v11597_v49, %v8670_v36  ;;  %v8732_v29 = vld [vmem:[%s13006_s29 + $0x3b8] sm:$0xf] }
 0x3d0   : > { %v11621_v13 = vld [vmem:[%s13006_s29 + $0x3f4] sm:$0xf0] }
 0x3d1   : > { %v13879_v54 = vadd.f32 %v3919_v50, %v3846_v30  ;;  %v3774_v5 = vadd.f32 %v3773_v37, %v3700_v35  ;;  %v11613_v50 = vld [vmem:[%s13006_s29 + $0x3bc] sm:$0xf]  ;;  %v8725_v35 = vor.u32 %v11620_v61, %v8724_v44  ;;  %v8733_v26 = vor.u32 %v11621_v13, %v8732_v29 }
 0x3d2   : > { %v8734_v30 = vld [vmem:[%s13006_s29 + $0x3f8] sm:$0xf0] }
 0x3d6   : > { %v3847_v14 = vpop.f32.mrf.mxu2  ;;  %v3702_v55 = vpop.f32.mrf.mxu0 }
 0x3d7   : > { %v3921_v60 = vpop.f32.mrf.mxu3  ;;  %v3848_v22 = vadd.f32 %v3847_v14, %v3774_v5  ;;  %v3776_v28 = vpop.f32.mrf.mxu1  ;;  %v3703_v2 = vadd.f32 %v3702_v55, %v13630_v46  ;;  %v8729_v5 = vor.u32 %v11612_v63, %v8726_v23 }
 0x3d9   : > { %v13890_v39 = vadd.f32 %v3921_v60, %v3848_v22  ;;  %v3777_v6 = vadd.f32 %v3776_v28, %v3703_v2  ;;  %3972 = vmatmul.bf16.gmra.mxu0 %v8661_v17  ;;  %v8788_v28 = vld [vmem:[%s13006_s29 + $0x430] sm:$0xf]  ;;  %v8790_v2 = vld [vmem:[%s13006_s29 + $0x470] sm:$0xf0] }
 0x3da   : > { %4046 = vmatmul.bf16.gmra.mxu1 %v8665_v42 }
 0x3db   : > { %4120 = vmatmul.bf16.gmra.mxu2 %v8669_v3  ;;  %v11636_v3 = vld [vmem:[%s13006_s29 + $0x46c] sm:$0xf0] }
 0x3dc   : > { %4194 = vmatmul.bf16.gmra.mxu3 %v8673_v31  ;;  %v11628_v31 = vld [vmem:[%s13006_s29 + $0x434] sm:$0xf] }
 0x3de   : > { %v3850_v10 = vpop.f32.mrf.mxu2  ;;  %v3704_v34 = vpop.f32.mrf.mxu0 }
 0x3df   : > { %v3924_v40 = vpop.f32.mrf.mxu3  ;;  %v3851_v12 = vadd.f32 %v3850_v10, %v3777_v6  ;;  %v3778_v16 = vpop.f32.mrf.mxu1  ;;  %v3705_v46 = vadd.f32 %v3704_v34, %v13650_v20  ;;  %v8737_v20 = vor.u32 %v11613_v50, %v8734_v30  ;;  %v8796_v6 = vld [vmem:[%s13006_s29 + $0x438] sm:$0xf]  ;;  %v9684_v30 = vld [vmem:[%s17222_s3 + $0xe0] sm:$0xf] }
 0x3e0   : > { %v11637_v10 = vld [vmem:[%s13006_s29 + $0x474] sm:$0xf0] }
 0x3e1   : > { %v13893_v41 = vadd.f32 %v3924_v40, %v3851_v12  ;;  %v3779_v45 = vadd.f32 %v3778_v16, %v3705_v46  ;;  %v11629_v40 = vld [vmem:[%s13006_s29 + $0x43c] sm:$0xf]  ;;  %v8789_v46 = vor.u32 %v11636_v3, %v8788_v28  ;;  %v8797_v23 = vor.u32 %v11637_v10, %v8796_v6  ;;  %v11653_v3 = vld [vmem:[%s13006_s29 + $0x4f4] sm:$0xf0]  ;;  %v11852_v6 = vld [vmem:[%s17222_s3 + $0xac] sm:$0xf0] }
 0x3e2   : > { %v8798_v12 = vld [vmem:[%s13006_s29 + $0x478] sm:$0xf0]  ;;  %v9796_v10 = vld [vmem:[%s17222_s3 + $0x1c0] sm:$0xf] }
 0x3e6   : > { %v3852_v58 = vpop.f32.mrf.mxu2  ;;  %v3707_v15 = vpop.f32.mrf.mxu0 }
 0x3e7   : > { %v3926_v37 = vpop.f32.mrf.mxu3  ;;  %v3853_v32 = vadd.f32 %v3852_v58, %v3779_v45  ;;  %v3781_v4 = vpop.f32.mrf.mxu1  ;;  %v3708_v9 = vadd.f32 %v3707_v15, %v13653_v56  ;;  %v8793_v45 = vor.u32 %v11628_v31, %v8790_v2  ;;  %v11860_v58 = vld [vmem:[%s17222_s3 + $0xec] sm:$0xf0]  ;;  %v11645_v31 = vld [vmem:[%s13006_s29 + $0x4bc] sm:$0xf] }
 0x3e8   : > { %v8862_v2 = vld [vmem:[%s13006_s29 + $0x4f8] sm:$0xf0] }
 0x3e9   : > { %v13904_v47 = vadd.f32 %v3926_v37, %v3853_v32  ;;  %v3782_v49 = vadd.f32 %v3781_v4, %v3708_v9  ;;  %3977 = vmatmul.bf16.gmra.mxu0 %v8725_v35  ;;  %v9685_v37 = vor.u32 %v11860_v58, %v9684_v30  ;;  %v9668_v4 = vld [vmem:[%s17222_s3 + $0xc0] sm:$0xf] }
 0x3ea   : > { %4051 = vmatmul.bf16.gmra.mxu1 %v8729_v5  ;;  %v9636_v58 = vld [vmem:[%s17222_s3 + $0x80] sm:$0xf] }
 0x3eb   : > { %4125 = vmatmul.bf16.gmra.mxu2 %v8733_v26  ;;  %6775 = vmatpush.bf16.msra.mxu0 %v9685_v37  ;;  %v11856_v26 = vld [vmem:[%s17222_s3 + $0xcc] sm:$0xf0] }
 0x3ec   : > { %4199 = vmatmul.bf16.gmra.mxu3 %v8737_v20  ;;  %v9812_v20 = vld [vmem:[%s17222_s3 + $0x1e0] sm:$0xf] }
 0x3ee   : > { %v3855_v36 = vpop.f32.mrf.mxu2  ;;  %v3709_v17 = vpop.f32.mrf.mxu0 }
 0x3ef   : > { %v3929_v14 = vpop.f32.mrf.mxu3  ;;  %v3856_v60 = vadd.f32 %v3855_v36, %v3782_v49  ;;  %v3783_v42 = vpop.f32.mrf.mxu1  ;;  %v3710_v56 = vadd.f32 %v3709_v17, %v13664_v0  ;;  %v8801_v0 = vor.u32 %v11629_v40, %v8798_v12  ;;  %v8852_v36 = vld [vmem:[%s13006_s29 + $0x4b0] sm:$0xf] }
 0x3f0   : > { %v11892_v17 = vld [vmem:[%s17222_s3 + $0x1ec] sm:$0xf0] }
 0x3f1   : > { %v13907_v22 = vadd.f32 %v3929_v14, %v3856_v60  ;;  %v3784_v55 = vadd.f32 %v3783_v42, %v3710_v56  ;;  %v11652_v14 = vld [vmem:[%s13006_s29 + $0x4ec] sm:$0xf0]  ;;  %v9669_v60 = vor.u32 %v11856_v26, %v9668_v4  ;;  %v11644_v42 = vld [vmem:[%s13006_s29 + $0x4b4] sm:$0xf]  ;;  %v9813_v28 = vor.u32 %v11892_v17, %v9812_v20  ;;  %v9940_v4 = vld [vmem:[%s17222_s3 + $0x2e0] sm:$0xf] }
 0x3f2   : > { %v8854_v56 = vld [vmem:[%s13006_s29 + $0x4f0] sm:$0xf0]  ;;  %v11924_v26 = vld [vmem:[%s17222_s3 + $0x2ec] sm:$0xf0]  ;;  %v9620_v17 = vld [vmem:[%s17222_s3 + $0x60] sm:$0xf] }
 0x3f3   : > { %6776 = vmatpush.bf16.msra.mxu0 %v9669_v60  ;;  %6789 = vmatpush.bf16.msra.mxu1 %v9813_v28  ;;  %v11956_v60 = vld [vmem:[%s17222_s3 + $0x3ec] sm:$0xf0]  ;;  %v9764_v28 = vld [vmem:[%s17222_s3 + $0x180] sm:$0xf] }
 0x3f6   : > { %v3857_v34 = vpop.f32.mrf.mxu2  ;;  %v3943_v61 = vpop.f32.mrf.mxu0 }
 0x3f7   : > { %v3931_v16 = vpop.f32.mrf.mxu3  ;;  %v3858_v44 = vadd.f32 %v3857_v34, %v3784_v55  ;;  %v4017_v63 = vpop.f32.mrf.mxu1  ;;  %v3944_v29 = vadd.f32 %v3943_v61, %v13679_v18  ;;  %v8860_v55 = vld [vmem:[%s13006_s29 + $0x4b8] sm:$0xf]  ;;  %v11888_v34 = vld [vmem:[%s17222_s3 + $0x1cc] sm:$0xf0] }
 0x3f8   : > { %v9797_v61 = vor.u32 %v11888_v34, %v9796_v10  ;;  %v9924_v10 = vld [vmem:[%s17222_s3 + $0x2c0] sm:$0xf] }
 0x3f9   : > { %v13918_v13 = vadd.f32 %v3931_v16, %v3858_v44  ;;  %v4018_v50 = vadd.f32 %v4017_v63, %v3944_v29  ;;  %3982 = vmatmul.bf16.gmra.mxu0 %v8789_v46  ;;  %v8857_v44 = vor.u32 %v11644_v42, %v8854_v56  ;;  %v8861_v29 = vor.u32 %v11653_v3, %v8860_v55  ;;  %v11880_v3 = vld [vmem:[%s17222_s3 + $0x18c] sm:$0xf0] }
 0x3fa   : > { %4056 = vmatmul.bf16.gmra.mxu1 %v8793_v45  ;;  %v8853_v45 = vor.u32 %v11652_v14, %v8852_v36  ;;  %v9941_v36 = vor.u32 %v11924_v26, %v9940_v4  ;;  %v10068_v14 = vld [vmem:[%s17222_s3 + $0x3e0] sm:$0xf]  ;;  %v11669_v4 = vld [vmem:[%s13006_s29 + $0x574] sm:$0xf0]  ;;  %v11661_v26 = vld [vmem:[%s13006_s29 + $0x53c] sm:$0xf] }
 0x3fb   : > { %4130 = vmatmul.bf16.gmra.mxu2 %v8797_v23  ;;  %6790 = vmatpush.bf16.msra.mxu1 %v9797_v61  ;;  %v10069_v55 = vor.u32 %v11956_v60, %v10068_v14  ;;  %v9588_v60 = vld [vmem:[%s17222_s3 + $0x20] sm:$0xf] }
 0x3fc   : > { %4204 = vmatmul.bf16.gmra.mxu3 %v8801_v0  ;;  %6803 = vmatpush.bf16.msra.mxu2 %v9941_v36  ;;  %v8926_v36 = vld [vmem:[%s13006_s29 + $0x578] sm:$0xf0] }
 0x3fd   : > { %6817 = vmatpush.bf16.msra.mxu3 %v10069_v55 }
 0x3fe   : > { %v4091_v18 = vpop.f32.mrf.mxu2  ;;  %v3945_v32 = vpop.f32.mrf.mxu0 }
 0x3ff   : > { %v4165_v35 = vpop.f32.mrf.mxu3  ;;  %v4092_v5 = vadd.f32 %v4091_v18, %v4018_v50  ;;  %v4019_v15 = vpop.f32.mrf.mxu1  ;;  %v3946_v49 = vadd.f32 %v3945_v32, %v13690_v48  ;;  %v9652_v48 = vld [vmem:[%s17222_s3 + $0xa0] sm:$0xf]  ;;  %v8865_v50 = vor.u32 %v11645_v31, %v8862_v2 }
 0x400   : > { %v9653_v12 = vor.u32 %v11852_v6, %v9652_v48  ;;  %v9765_v6 = vor.u32 %v11880_v3, %v9764_v28  ;;  %v9892_v28 = vld [vmem:[%s17222_s3 + $0x280] sm:$0xf] }
 0x401   : > { %v4166_v9 = vadd.f32 %v4165_v35, %v4092_v5  ;;  %v4020_v40 = vadd.f32 %v4019_v15, %v3946_v49  ;;  %v11848_v35 = vld [vmem:[%s17222_s3 + $0x8c] sm:$0xf0]  ;;  %v9780_v5 = vld [vmem:[%s17222_s3 + $0x1a0] sm:$0xf] }
 0x402   : > { %6777 = vmatpush.bf16.msra.mxu0 %v9653_v12  ;;  %v9637_v32 = vor.u32 %v11848_v35, %v9636_v58  ;;  %v11884_v15 = vld [vmem:[%s17222_s3 + $0x1ac] sm:$0xf0]  ;;  %v10052_v12 = vld [vmem:[%s17222_s3 + $0x3c0] sm:$0xf] }
 0x403   : > { %v4230_v37 = vmax.f32 %v4166_v9, 0.0  ;;  %v9781_v49 = vor.u32 %v11884_v15, %v9780_v5  ;;  %v9748_v58 = vld [vmem:[%s17222_s3 + $0x160] sm:$0xf]  ;;  %v11948_v5 = vld [vmem:[%s17222_s3 + $0x3ac] sm:$0xf0] }
 0x404   : > { %v10036_v35 = vld [vmem:[%s17222_s3 + $0x3a0] sm:$0xf]  ;;  %v8924_v15 = vld [vmem:[%s13006_s29 + $0x538] sm:$0xf] }
 0x405   : > { %6791 = vmatpush.bf16.msra.mxu1 %v9781_v49  ;;  %v10037_v14 = vor.u32 %v11948_v5, %v10036_v35  ;;  %v11868_v35 = vld [vmem:[%s17222_s3 + $0x12c] sm:$0xf0]  ;;  %v9876_v5 = vld [vmem:[%s17222_s3 + $0x260] sm:$0xf] }
 0x406   : > { %v4093_v16 = vpop.f32.mrf.mxu2  ;;  %v3948_v23 = vpop.f32.mrf.mxu0  ;;  %6778 = vmatpush.bf16.msra.mxu0 %v9637_v32 }
 0x407   : > { %v4167_v46 = vpop.f32.mrf.mxu3  ;;  %v4094_v63 = vadd.f32 %v4093_v16, %v4020_v40  ;;  %v4022_v0 = vpop.f32.mrf.mxu1  ;;  %v3949_v9 = vadd.f32 %v3948_v23, %v13693_v19  ;;  %v11844_v19 = vld [vmem:[%s17222_s3 + $0x6c] sm:$0xf0] }
 0x408   : > { %v9621_v48 = vor.u32 %v11844_v19, %v9620_v17  ;;  %v11920_v40 = vld [vmem:[%s17222_s3 + $0x2cc] sm:$0xf0] }
 0x409   : > { %v4168_v30 = vadd.f32 %v4167_v46, %v4094_v63  ;;  %3987 = vmatmul.bf16.gmra.mxu0 %v8853_v45  ;;  %v9925_v34 = vor.u32 %v11920_v40, %v9924_v10  ;;  %v11952_v16 = vld [vmem:[%s17222_s3 + $0x3cc] sm:$0xf0]  ;;  %v9604_v46 = vld [vmem:[%s17222_s3 + $0x40] sm:$0xf]  ;;  %6792 = vmatpush.bf16.msra.mxu1 %v9765_v6  ;;  %v8925_v10 = vor.u32 %v11669_v4, %v8924_v15 }
 0x40a   : > { %4061 = vmatmul.bf16.gmra.mxu1 %v8857_v44  ;;  %v11840_v45 = vld [vmem:[%s17222_s3 + $0x4c] sm:$0xf0]  ;;  %v4023_v44 = vadd.f32 %v4022_v0, %v3949_v9  ;;  %6779 = vmatpush.bf16.msra.mxu0 %v9621_v48  ;;  %v10020_v40 = vld [vmem:[%s17222_s3 + $0x380] sm:$0xf] }
 0x40b   : > { %v4231_v18 = vmax.f32 %v4168_v30, 0.0  ;;  %4135 = vmatmul.bf16.gmra.mxu2 %v8861_v29  ;;  %v8916_v63 = vld [vmem:[%s13006_s29 + $0x530] sm:$0xf]  ;;  %v11660_v29 = vld [vmem:[%s13006_s29 + $0x534] sm:$0xf]  ;;  %v10053_v30 = vor.u32 %v11952_v16, %v10052_v12  ;;  %v9605_v0 = vor.u32 %v11840_v45, %v9604_v46 }
 0x40c   : > { %4209 = vmatmul.bf16.gmra.mxu3 %v8865_v50  ;;  %v11668_v23 = vld [vmem:[%s13006_s29 + $0x56c] sm:$0xf0]  ;;  %v8918_v50 = vld [vmem:[%s13006_s29 + $0x570] sm:$0xf0]  ;;  %6804 = vmatpush.bf16.msra.mxu2 %v9925_v34 }
 0x40d   : > { %v13977_v20 = vpack.c.bf16 %v4231_v18, %v4230_v37  ;;  %v11876_v37 = vld [vmem:[%s17222_s3 + $0x16c] sm:$0xf0]  ;;  %6818 = vmatpush.bf16.msra.mxu3 %v10053_v30  ;;  %v8917_v48 = vor.u32 %v11668_v23, %v8916_v63  ;;  %v8921_v6 = vor.u32 %v11660_v29, %v8918_v50  ;;  %v9572_v30 = vld [vmem:[%s17222_s3] sm:$0xf] }
 0x40e   : > { %v4096_v42 = vpop.f32.mrf.mxu2  ;;  %v3950_v31 = vpop.f32.mrf.mxu0  ;;  %v11916_v18 = vld [vmem:[%s17222_s3 + $0x2ac] sm:$0xf0]  ;;  %v9749_v9 = vor.u32 %v11876_v37, %v9748_v58  ;;  %6780 = vmatpush.bf16.msra.mxu0 %v9605_v0 }
 0x40f   : > { %v4170_v56 = vpop.f32.mrf.mxu3  ;;  %v4024_v2 = vpop.f32.mrf.mxu1  ;;  %v3951_v61 = vadd.f32 %v3950_v31, %v13716_v8  ;;  %v9908_v8 = vld [vmem:[%s17222_s3 + $0x2a0] sm:$0xf]  ;;  %v4097_v32 = vadd.f32 %v4096_v42, %v4023_v44  ;;  %v11836_v17 = vld [vmem:[%s17222_s3 + $0x2c] sm:$0xf0]  ;;  %v8929_v44 = vor.u32 %v11661_v26, %v8926_v36 }
 0x410   : > { %v9909_v49 = vor.u32 %v11916_v18, %v9908_v8  ;;  %v9732_v42 = vld [vmem:[%s17222_s3 + $0x140] sm:$0xf]  ;;  %v11872_v19 = vld [vmem:[%s17222_s3 + $0x14c] sm:$0xf0]  ;;  %6793 = vmatpush.bf16.msra.mxu1 %v9749_v9 }
 0x411   : > { %v4025_v55 = vadd.f32 %v4024_v2, %v3951_v61  ;;  %v11912_v2 = vld [vmem:[%s17222_s3 + $0x28c] sm:$0xf0]  ;;  %v4171_v34 = vadd.f32 %v4170_v56, %v4097_v32  ;;  %6819 = vmatpush.bf16.msra.mxu3 %v10037_v14  ;;  %v9589_v61 = vor.u32 %v11836_v17, %v9588_v60  ;;  %v9733_v63 = vor.u32 %v11872_v19, %v9732_v42  ;;  %v9716_v8 = vld [vmem:[%s17222_s3 + $0x120] sm:$0xf] }
 0x412   : > { %v11944_v12 = vld [vmem:[%s17222_s3 + $0x38c] sm:$0xf0]  ;;  %6805 = vmatpush.bf16.msra.mxu2 %v9909_v49  ;;  %v9893_v29 = vor.u32 %v11912_v2, %v9892_v28  ;;  %v10004_v26 = vld [vmem:[%s17222_s3 + $0x360] sm:$0xf] }
 0x413   : > { %v10021_v50 = vor.u32 %v11944_v12, %v10020_v40  ;;  %v4232_v58 = vmax.f32 %v4171_v34, 0.0  ;;  %v11832_v37 = vld [vmem:[%s17222_s3 + $0xc] sm:$0xf0]  ;;  %6781 = vmatpush.bf16.msra.mxu0 %v9589_v61  ;;  %v10196_v49 = vld [vmem:[%s17222_s3 + $0x4e0] sm:$0xf] }
 0x414   : > { %6794 = vmatpush.bf16.msra.mxu1 %v9733_v63  ;;  %v9573_v18 = vor.u32 %v11832_v37, %v9572_v30  ;;  %v11908_v32 = vld [vmem:[%s17222_s3 + $0x26c] sm:$0xf0]  ;;  %v10180_v12 = vld [vmem:[%s17222_s3 + $0x4c0] sm:$0xf]  ;;  %v8982_v61 = vld [vmem:[%s13006_s29 + $0x5f0] sm:$0xf0] }
 0x415   : > { %6820 = vmatpush.bf16.msra.mxu3 %v10021_v50  ;;  %v9877_v4 = vor.u32 %v11908_v32, %v9876_v5  ;;  %v11940_v9 = vld [vmem:[%s17222_s3 + $0x36c] sm:$0xf0]  ;;  %v9844_v50 = vld [vmem:[%s17222_s3 + $0x220] sm:$0xf]  ;;  %v11677_v5 = vld [vmem:[%s13006_s29 + $0x5bc] sm:$0xf] }
 0x416   : > { %v4098_v3 = vpop.f32.mrf.mxu2  ;;  %v3953_v46 = vpop.f32.mrf.mxu0  ;;  %6806 = vmatpush.bf16.msra.mxu2 %v9893_v29  ;;  %v10005_v60 = vor.u32 %v11940_v9, %v10004_v26  ;;  %v11988_v17 = vld [vmem:[%s17222_s3 + $0x4ec] sm:$0xf0]  ;;  %v10324_v29 = vld [vmem:[%s17222_s3 + $0x5e0] sm:$0xf]  ;;  %v8990_v32 = vld [vmem:[%s13006_s29 + $0x5f8] sm:$0xf0] }
 0x417   : > { %v4172_v31 = vpop.f32.mrf.mxu3  ;;  %v4099_v16 = vadd.f32 %v4098_v3, %v4025_v55  ;;  %v4027_v45 = vpop.f32.mrf.mxu1  ;;  %v3954_v0 = vadd.f32 %v3953_v46, %v13743_v24  ;;  %v9717_v24 = vor.u32 %v11868_v35, %v9716_v8  ;;  %v9700_v55 = vld [vmem:[%s17222_s3 + $0x100] sm:$0xf]  ;;  %v11864_v42 = vld [vmem:[%s17222_s3 + $0x10c] sm:$0xf0]  ;;  %v10197_v3 = vor.u32 %v11988_v17, %v10196_v49  ;;  %6782 = vmatpush.bf16.msra.mxu0 %v9573_v18  ;;  %v8988_v18 = vld [vmem:[%s13006_s29 + $0x5b8] sm:$0xf] }
 0x418   : > { %v9701_v2 = vor.u32 %v11864_v42, %v9700_v55  ;;  %v11936_v40 = vld [vmem:[%s17222_s3 + $0x34c] sm:$0xf0]  ;;  %v9972_v37 = vld [vmem:[%s17222_s3 + $0x320] sm:$0xf]  ;;  %v11685_v35 = vld [vmem:[%s13006_s29 + $0x5f4] sm:$0xf0] }
 0x419   : > { %v4173_v23 = vadd.f32 %v4172_v31, %v4099_v16  ;;  %3992 = vmatmul.bf16.gmra.mxu0 %v8917_v48  ;;  %v9860_v31 = vld [vmem:[%s17222_s3 + $0x240] sm:$0xf]  ;;  %v11904_v48 = vld [vmem:[%s17222_s3 + $0x24c] sm:$0xf0]  ;;  %6795 = vmatpush.bf16.msra.mxu1 %v9717_v24 }
 0x41a   : > { %4066 = vmatmul.bf16.gmra.mxu1 %v8921_v6  ;;  %v9988_v6 = vld [vmem:[%s17222_s3 + $0x340] sm:$0xf]  ;;  %v11984_v34 = vld [vmem:[%s17222_s3 + $0x4cc] sm:$0xf0]  ;;  %6807 = vmatpush.bf16.msra.mxu2 %v9877_v4  ;;  %v9861_v63 = vor.u32 %v11904_v48, %v9860_v31 }
 0x41b   : > { %v4233_v56 = vmax.f32 %v4173_v23, 0.0  ;;  %4140 = vmatmul.bf16.gmra.mxu2 %v8925_v10  ;;  %v4028_v10 = vadd.f32 %v4027_v45, %v3954_v0  ;;  %v8980_v46 = vld [vmem:[%s13006_s29 + $0x5b0] sm:$0xf]  ;;  %v11676_v45 = vld [vmem:[%s13006_s29 + $0x5b4] sm:$0xf]  ;;  %6821 = vmatpush.bf16.msra.mxu3 %v10005_v60  ;;  %v9989_v23 = vor.u32 %v11936_v40, %v9988_v6  ;;  %v10181_v30 = vor.u32 %v11984_v34, %v10180_v12 }
 0x41c   : > { %4214 = vmatmul.bf16.gmra.mxu3 %v8929_v44  ;;  %v11684_v44 = vld [vmem:[%s13006_s29 + $0x5ec] sm:$0xf0]  ;;  %6831 = vmatpush.bf16.msrb.mxu0 %v10197_v3  ;;  %v10164_v24 = vld [vmem:[%s17222_s3 + $0x4a0] sm:$0xf]  ;;  %v8989_v12 = vor.u32 %v11685_v35, %v8988_v18  ;;  %v8993_v34 = vor.u32 %v11677_v5, %v8990_v32 }
 0x41d   : > { %v14086_v15 = vpack.c.bf16 %v4233_v56, %v4232_v58  ;;  %v11900_v56 = vld [vmem:[%s17222_s3 + $0x22c] sm:$0xf0]  ;;  %6796 = vmatpush.bf16.msra.mxu1 %v9701_v2  ;;  %v9828_v17 = vld [vmem:[%s17222_s3 + $0x200] sm:$0xf] }
 0x41e   : > { %v4101_v36 = vpop.f32.mrf.mxu2  ;;  %v3955_v19 = vpop.f32.mrf.mxu0  ;;  %v11932_v8 = vld [vmem:[%s17222_s3 + $0x32c] sm:$0xf0]  ;;  %6808 = vmatpush.bf16.msra.mxu2 %v9861_v63  ;;  %v9845_v9 = vor.u32 %v11900_v56, %v9844_v50  ;;  %v9956_v31 = vld [vmem:[%s17222_s3 + $0x300] sm:$0xf] }
 0x41f   : > { %v4175_v14 = vpop.f32.mrf.mxu3  ;;  %v4029_v28 = vpop.f32.mrf.mxu1  ;;  %v3956_v16 = vadd.f32 %v3955_v19, %v13778_v38  ;;  %v12020_v38 = vld [vmem:[%s17222_s3 + $0x5ec] sm:$0xf0]  ;;  %v4102_v0 = vadd.f32 %v4101_v36, %v4028_v10  ;;  %6822 = vmatpush.bf16.msra.mxu3 %v9989_v23  ;;  %v9973_v49 = vor.u32 %v11932_v8, %v9972_v37  ;;  %v10308_v36 = vld [vmem:[%s17222_s3 + $0x5c0] sm:$0xf]  ;;  %v8981_v19 = vor.u32 %v11684_v44, %v8980_v46 }
 0x420   : > { %v10325_v58 = vor.u32 %v12020_v38, %v10324_v29  ;;  %v11980_v4 = vld [vmem:[%s17222_s3 + $0x4ac] sm:$0xf0]  ;;  %6832 = vmatpush.bf16.msrb.mxu0 %v10181_v30  ;;  %v10148_v44 = vld [vmem:[%s17222_s3 + $0x480] sm:$0xf] }
 0x421   : > { %v4030_v26 = vadd.f32 %v4029_v28, %v3956_v16  ;;  %v12016_v60 = vld [vmem:[%s17222_s3 + $0x5cc] sm:$0xf0]  ;;  %v8985_v28 = vor.u32 %v11676_v45, %v8982_v61  ;;  %v4176_v6 = vadd.f32 %v4175_v14, %v4102_v0  ;;  %v10165_v16 = vor.u32 %v11980_v4, %v10164_v24  ;;  %v10292_v23 = vld [vmem:[%s17222_s3 + $0x5a0] sm:$0xf] }
 0x422   : > { %6845 = vmatpush.bf16.msrb.mxu1 %v10325_v58  ;;  %v11896_v3 = vld [vmem:[%s17222_s3 + $0x20c] sm:$0xf0]  ;;  %v10309_v46 = vor.u32 %v12016_v60, %v10308_v36  ;;  %6809 = vmatpush.bf16.msra.mxu2 %v9845_v9  ;;  %v10132_v56 = vld [vmem:[%s17222_s3 + $0x460] sm:$0xf] }
 0x423   : > { %v11928_v48 = vld [vmem:[%s17222_s3 + $0x30c] sm:$0xf0]  ;;  %6823 = vmatpush.bf16.msra.mxu3 %v9973_v49  ;;  %v9829_v61 = vor.u32 %v11896_v3, %v9828_v17  ;;  %v4234_v38 = vmax.f32 %v4176_v6, 0.0  ;;  %v10276_v18 = vld [vmem:[%s17222_s3 + $0x580] sm:$0xf] }
 0x424   : > { %v9957_v63 = vor.u32 %v11928_v48, %v9956_v31  ;;  %v11976_v14 = vld [vmem:[%s17222_s3 + $0x48c] sm:$0xf0]  ;;  %6833 = vmatpush.bf16.msrb.mxu0 %v10165_v16  ;;  %v10116_v60 = vld [vmem:[%s17222_s3 + $0x440] sm:$0xf]  ;;  %v11692_v48 = vld [vmem:[%s13006_s29 + $0x634] sm:$0xf] }
 0x425   : > { %v12012_v29 = vld [vmem:[%s17222_s3 + $0x5ac] sm:$0xf0]  ;;  %v10149_v30 = vor.u32 %v11976_v14, %v10148_v44  ;;  %v10260_v3 = vld [vmem:[%s17222_s3 + $0x560] sm:$0xf]  ;;  %v11693_v16 = vld [vmem:[%s13006_s29 + $0x63c] sm:$0xf] }
 0x426   : > { %v4103_v55 = vpop.f32.mrf.mxu2  ;;  %v3958_v2 = vpop.f32.mrf.mxu0  ;;  %6846 = vmatpush.bf16.msrb.mxu1 %v10309_v46  ;;  %v10293_v58 = vor.u32 %v12012_v29, %v10292_v23  ;;  %6810 = vmatpush.bf16.msra.mxu2 %v9829_v61  ;;  %v11972_v0 = vld [vmem:[%s17222_s3 + $0x46c] sm:$0xf0]  ;;  %v9054_v46 = vld [vmem:[%s13006_s29 + $0x678] sm:$0xf0]  ;;  %v10100_v61 = vld [vmem:[%s17222_s3 + $0x420] sm:$0xf] }
 0x427   : > { %v4177_v42 = vpop.f32.mrf.mxu3  ;;  %v4104_v10 = vadd.f32 %v4103_v55, %v4030_v26  ;;  %v4032_v40 = vpop.f32.mrf.mxu1  ;;  %v3959_v8 = vadd.f32 %v3958_v2, %v13781_v53  ;;  %6824 = vmatpush.bf16.msra.mxu3 %v9957_v63  ;;  %v12008_v35 = vld [vmem:[%s17222_s3 + $0x58c] sm:$0xf0]  ;;  %v10452_v53 = vld [vmem:[%s17222_s3 + $0x6e0] sm:$0xf]  ;;  %v10133_v49 = vor.u32 %v11972_v0, %v10132_v56  ;;  %v9046_v2 = vld [vmem:[%s13006_s29 + $0x670] sm:$0xf0] }
 0x428   : > { %v12052_v24 = vld [vmem:[%s17222_s3 + $0x6ec] sm:$0xf0]  ;;  %6834 = vmatpush.bf16.msrb.mxu0 %v10149_v30  ;;  %v10277_v36 = vor.u32 %v12008_v35, %v10276_v18  ;;  %v10244_v23 = vld [vmem:[%s17222_s3 + $0x540] sm:$0xf] }
 0x429   : > { %v4178_v45 = vadd.f32 %v4177_v42, %v4104_v10  ;;  %3997 = vmatmul.bf16.gmra.mxu0 %v8981_v19  ;;  %v10453_v9 = vor.u32 %v12052_v24, %v10452_v53  ;;  %v4033_v17 = vadd.f32 %v4032_v40, %v3959_v8  ;;  %v9044_v42 = vld [vmem:[%s13006_s29 + $0x630] sm:$0xf]  ;;  %v9052_v40 = vld [vmem:[%s13006_s29 + $0x638] sm:$0xf]  ;;  %v10420_v8 = vld [vmem:[%s17222_s3 + $0x6a0] sm:$0xf]  ;;  %v9057_v24 = vor.u32 %v11693_v16, %v9054_v46 }
 0x42a   : > { %4071 = vmatmul.bf16.gmra.mxu1 %v8985_v28  ;;  %v11700_v19 = vld [vmem:[%s13006_s29 + $0x66c] sm:$0xf0] }
 0x42b   : > { %v4235_v50 = vmax.f32 %v4178_v45, 0.0  ;;  %4145 = vmatmul.bf16.gmra.mxu2 %v8989_v12  ;;  %6847 = vmatpush.bf16.msrb.mxu1 %v10293_v58  ;;  %v11968_v28 = vld [vmem:[%s17222_s3 + $0x44c] sm:$0xf0]  ;;  %v11701_v12 = vld [vmem:[%s13006_s29 + $0x674] sm:$0xf0]  ;;  %v9045_v30 = vor.u32 %v11700_v19, %v9044_v42  ;;  %v9049_v58 = vor.u32 %v11692_v48, %v9046_v2 }
 0x42c   : > { %4219 = vmatmul.bf16.gmra.mxu3 %v8993_v34  ;;  %v12004_v31 = vld [vmem:[%s17222_s3 + $0x56c] sm:$0xf0]  ;;  %6859 = vmatpush.bf16.msrb.mxu2 %v10453_v9  ;;  %v10117_v44 = vor.u32 %v11968_v28, %v10116_v60  ;;  %v9053_v56 = vor.u32 %v11701_v12, %v9052_v40  ;;  %v10388_v40 = vld [vmem:[%s17222_s3 + $0x660] sm:$0xf] }
 0x42d   : > { %v14190_v37 = vpack.c.bf16 %v4235_v50, %v4234_v38  ;;  %v12048_v6 = vld [vmem:[%s17222_s3 + $0x6cc] sm:$0xf0]  ;;  %6835 = vmatpush.bf16.msrb.mxu0 %v10133_v49  ;;  %v10261_v45 = vor.u32 %v12004_v31, %v10260_v3  ;;  %v10084_v49 = vld [vmem:[%s17222_s3 + $0x400] sm:$0xf] }
 0x42e   : > { %v4106_v5 = vpop.f32.mrf.mxu2  ;;  %v3960_v4 = vpop.f32.mrf.mxu0  ;;  %v11964_v14 = vld [vmem:[%s17222_s3 + $0x42c] sm:$0xf0] }
 0x42f   : > { %v4180_v32 = vpop.f32.mrf.mxu3  ;;  %v4034_v26 = vpop.f32.mrf.mxu1  ;;  %v3961_v55 = vadd.f32 %v3960_v4, %v13792_v21  ;;  %v10436_v21 = vld [vmem:[%s17222_s3 + $0x6c0] sm:$0xf]  ;;  %v4107_v10 = vadd.f32 %v4106_v5, %v4033_v17  ;;  %6848 = vmatpush.bf16.msrb.mxu1 %v10277_v36  ;;  %v12000_v29 = vld [vmem:[%s17222_s3 + $0x54c] sm:$0xf0] }
 0x430   : > { %v10437_v34 = vor.u32 %v12048_v6, %v10436_v21  ;;  %v12044_v0 = vld [vmem:[%s17222_s3 + $0x6ac] sm:$0xf0]  ;;  %v10245_v9 = vor.u32 %v12000_v29, %v10244_v23  ;;  %v10212_v21 = vld [vmem:[%s17222_s3 + $0x500] sm:$0xf] }
 0x431   : > { %v4035_v63 = vadd.f32 %v4034_v26, %v3961_v55  ;;  %v4181_v18 = vadd.f32 %v4180_v32, %v4107_v10  ;;  %v10421_v4 = vor.u32 %v12044_v0, %v10420_v8  ;;  %6836 = vmatpush.bf16.msrb.mxu0 %v10117_v44  ;;  %v10101_v26 = vor.u32 %v11964_v14, %v10100_v61  ;;  %v11960_v36 = vld [vmem:[%s17222_s3 + $0x40c] sm:$0xf0]  ;;  %v10228_v32 = vld [vmem:[%s17222_s3 + $0x520] sm:$0xf] }
 0x432   : > { %6860 = vmatpush.bf16.msrb.mxu2 %v10437_v34  ;;  %v11996_v17 = vld [vmem:[%s17222_s3 + $0x52c] sm:$0xf0]  ;;  %v10404_v55 = vld [vmem:[%s17222_s3 + $0x680] sm:$0xf]  ;;  %v10085_v31 = vor.u32 %v11960_v36, %v10084_v49 }
 0x433   : > { %6849 = vmatpush.bf16.msrb.mxu1 %v10261_v45  ;;  %v12040_v42 = vld [vmem:[%s17222_s3 + $0x68c] sm:$0xf0]  ;;  %v4236_v19 = vmax.f32 %v4181_v18, 0.0  ;;  %v10229_v48 = vor.u32 %v11996_v17, %v10228_v32  ;;  %v10580_v34 = vld [vmem:[%s17222_s3 + $0x7e0] sm:$0xf] }
 0x434   : > { %v10405_v3 = vor.u32 %v12040_v42, %v10404_v55  ;;  %v11992_v6 = vld [vmem:[%s17222_s3 + $0x50c] sm:$0xf0]  ;;  %v10836_v0 = vld [vmem:[%s17222_s3 + $0x9e0] sm:$0xf] }
 0x435   : > { %6837 = vmatpush.bf16.msrb.mxu0 %v10101_v26  ;;  %v12036_v12 = vld [vmem:[%s17222_s3 + $0x66c] sm:$0xf0]  ;;  %v10213_v14 = vor.u32 %v11992_v6, %v10212_v21  ;;  %v10532_v21 = vld [vmem:[%s17222_s3 + $0x780] sm:$0xf] }
 0x436   : > { %v4108_v38 = vpop.f32.mrf.mxu2  ;;  %v3963_v5 = vpop.f32.mrf.mxu0  ;;  %6861 = vmatpush.bf16.msrb.mxu2 %v10421_v4  ;;  %v10389_v44 = vor.u32 %v12036_v12, %v10388_v40  ;;  %v12148_v18 = vld [vmem:[%s17222_s3 + $0x9ec] sm:$0xf0] }
 0x437   : > { %v4182_v50 = vpop.f32.mrf.mxu3  ;;  %v4109_v35 = vadd.f32 %v4108_v38, %v4035_v63  ;;  %v4037_v53 = vpop.f32.mrf.mxu1  ;;  %6850 = vmatpush.bf16.msrb.mxu1 %v10245_v9  ;;  %v3964_v2 = vadd.f32 %v3963_v5, %v13795_v52  ;;  %v12084_v52 = vld [vmem:[%s17222_s3 + $0x7ec] sm:$0xf0]  ;;  %v10372_v38 = vld [vmem:[%s17222_s3 + $0x640] sm:$0xf]  ;;  %v10837_v42 = vor.u32 %v12148_v18, %v10836_v0 }
 0x438   : > { %v10581_v63 = vor.u32 %v12084_v52, %v10580_v34  ;;  %v10356_v5 = vld [vmem:[%s17222_s3 + $0x620] sm:$0xf]  ;;  %v12076_v49 = vld [vmem:[%s17222_s3 + $0x7ac] sm:$0xf0] }
 0x439   : > { %v4183_v60 = vadd.f32 %v4182_v50, %v4109_v35  ;;  %4002 = vmatmul.bf16.gmra.mxu0 %v9045_v30  ;;  %v4038_v23 = vadd.f32 %v4037_v53, %v3964_v2  ;;  %v12032_v50 = vld [vmem:[%s17222_s3 + $0x64c] sm:$0xf0]  ;;  %v10564_v30 = vld [vmem:[%s17222_s3 + $0x7c0] sm:$0xf] }
 0x43a   : > { %4076 = vmatmul.bf16.gmra.mxu1 %v9049_v58  ;;  %6862 = vmatpush.bf16.msrb.mxu2 %v10405_v3  ;;  %v10373_v58 = vor.u32 %v12032_v50, %v10372_v38  ;;  %v12028_v53 = vld [vmem:[%s17222_s3 + $0x62c] sm:$0xf0] }
 0x43b   : > { %v4237_v28 = vmax.f32 %v4183_v60, 0.0  ;;  %4150 = vmatmul.bf16.gmra.mxu2 %v9053_v56  ;;  %6838 = vmatpush.bf16.msrb.mxu0 %v10085_v31  ;;  %v12080_v56 = vld [vmem:[%s17222_s3 + $0x7cc] sm:$0xf0]  ;;  %v10357_v9 = vor.u32 %v12028_v53, %v10356_v5  ;;  %v10340_v31 = vld [vmem:[%s17222_s3 + $0x600] sm:$0xf] }
 0x43c   : > { %4224 = vmatmul.bf16.gmra.mxu3 %v9057_v24  ;;  %6851 = vmatpush.bf16.msrb.mxu1 %v10229_v48  ;;  %v10565_v8 = vor.u32 %v12080_v56, %v10564_v30  ;;  %v10548_v24 = vld [vmem:[%s17222_s3 + $0x7a0] sm:$0xf]  ;;  %v12024_v48 = vld [vmem:[%s17222_s3 + $0x60c] sm:$0xf0] }
 0x43d   : > { %v14277_v10 = vpack.c.bf16 %v4237_v28, %v4236_v19  ;;  %6873 = vmatpush.bf16.msrb.mxu3 %v10581_v63  ;;  %v10549_v55 = vor.u32 %v12076_v49, %v10548_v24  ;;  %v10820_v19 = vld [vmem:[%s17222_s3 + $0x9c0] sm:$0xf]  ;;  %v12144_v28 = vld [vmem:[%s17222_s3 + $0x9cc] sm:$0xf0]  ;;  %v10341_v6 = vor.u32 %v12024_v48, %v10340_v31 }
 0x43e   : > { %v4111_v16 = vpop.f32.mrf.mxu2  ;;  %v3965_v45 = vpop.f32.mrf.mxu0  ;;  %6863 = vmatpush.bf16.msrb.mxu2 %v10389_v44  ;;  %v12072_v2 = vld [vmem:[%s17222_s3 + $0x78c] sm:$0xf0]  ;;  %v10692_v53 = vld [vmem:[%s17222_s3 + $0x8c0] sm:$0xf] }
 0x43f   : > { %v4185_v46 = vpop.f32.mrf.mxu3  ;;  %v4039_v61 = vpop.f32.mrf.mxu1  ;;  %v3966_v29 = vadd.f32 %v3965_v45, %v13806_v57  ;;  %v4112_v57 = vadd.f32 %v4111_v16, %v4038_v23  ;;  %v10533_v34 = vor.u32 %v12072_v2, %v10532_v21  ;;  %v10821_v16 = vor.u32 %v12144_v28, %v10820_v19  ;;  %v12140_v44 = vld [vmem:[%s17222_s3 + $0x9ac] sm:$0xf0]  ;;  %v10676_v28 = vld [vmem:[%s17222_s3 + $0x8a0] sm:$0xf] }
 0x440   : > { %6852 = vmatpush.bf16.msrb.mxu1 %v10213_v14  ;;  %v12068_v63 = vld [vmem:[%s17222_s3 + $0x76c] sm:$0xf0]  ;;  %v10708_v14 = vld [vmem:[%s17222_s3 + $0x8e0] sm:$0xf] }
 0x441   : > { %v4040_v35 = vadd.f32 %v4039_v61, %v3966_v29  ;;  %6874 = vmatpush.bf16.msrb.mxu3 %v10565_v8  ;;  %v4186_v36 = vadd.f32 %v4185_v46, %v4112_v57  ;;  %v10804_v46 = vld [vmem:[%s17222_s3 + $0x9a0] sm:$0xf]  ;;  %v12136_v8 = vld [vmem:[%s17222_s3 + $0x98c] sm:$0xf0] }
 0x442   : > { %6864 = vmatpush.bf16.msrb.mxu2 %v10373_v58  ;;  %v10516_v61 = vld [vmem:[%s17222_s3 + $0x760] sm:$0xf]  ;;  %v10805_v56 = vor.u32 %v12140_v44, %v10804_v46  ;;  %v12064_v5 = vld [vmem:[%s17222_s3 + $0x74c] sm:$0xf0] }
 0x443   : > { %v4238_v40 = vmax.f32 %v4186_v36, 0.0  ;;  %v10517_v38 = vor.u32 %v12068_v63, %v10516_v61  ;;  %v10788_v57 = vld [vmem:[%s17222_s3 + $0x980] sm:$0xf]  ;;  %v12180_v49 = vld [vmem:[%s17222_s3 + $0xaec] sm:$0xf0] }
 0x444   : > { %v10789_v36 = vor.u32 %v12136_v8, %v10788_v57  ;;  %v12060_v19 = vld [vmem:[%s17222_s3 + $0x72c] sm:$0xf0]  ;;  %v10932_v57 = vld [vmem:[%s17222_s3 + $0xaa0] sm:$0xf] }
 0x445   : > { %6875 = vmatpush.bf16.msrb.mxu3 %v10549_v55  ;;  %v12108_v21 = vld [vmem:[%s17222_s3 + $0x8ac] sm:$0xf0] }
 0x446   : > { %v4113_v4 = vpop.f32.mrf.mxu2  ;;  %v3968_v32 = vpop.f32.mrf.mxu0  ;;  %6865 = vmatpush.bf16.msrb.mxu2 %v10357_v9  ;;  %v10964_v9 = vld [vmem:[%s17222_s3 + $0xae0] sm:$0xf]  ;;  %v12176_v46 = vld [vmem:[%s17222_s3 + $0xacc] sm:$0xf0] }
 0x447   : > { %v4187_v26 = vpop.f32.mrf.mxu3  ;;  %v4114_v60 = vadd.f32 %v4113_v4, %v4040_v35  ;;  %v4042_v17 = vpop.f32.mrf.mxu1  ;;  %v3969_v45 = vadd.f32 %v3968_v32, %v13809_v59  ;;  %v12116_v59 = vld [vmem:[%s17222_s3 + $0x8ec] sm:$0xf0]  ;;  %v10500_v35 = vld [vmem:[%s17222_s3 + $0x740] sm:$0xf] }
 0x448   : > { %v10709_v58 = vor.u32 %v12116_v59, %v10708_v14  ;;  %v10501_v24 = vor.u32 %v12064_v5, %v10500_v35  ;;  %v12112_v4 = vld [vmem:[%s17222_s3 + $0x8cc] sm:$0xf0] }
 0x449   : > { %v4188_v3 = vadd.f32 %v4187_v26, %v4114_v60  ;;  %6783 = vmatmul.bf16.vlgmr.msra.gmra.mxu0 %v13977_v20  ;;  %6876 = vmatpush.bf16.msrb.mxu3 %v10533_v34  ;;  %v4043_v0 = vadd.f32 %v4042_v17, %v3969_v45  ;;  %v10693_v26 = vor.u32 %v12112_v4, %v10692_v53  ;;  %v10772_v60 = vld [vmem:[%s17222_s3 + $0x960] sm:$0xf]  ;;  %v12132_v32 = vld [vmem:[%s17222_s3 + $0x96c] sm:$0xf0] }
 0x44a   : > { %6797 = vmatmul.bf16.vlgmr.msra.gmra.mxu1 %v14086_v15  ;;  %6866 = vmatpush.bf16.msrb.mxu2 %v10341_v6  ;;  %v10965_v17 = vor.u32 %v12180_v49, %v10964_v9  ;;  %v10677_v34 = vor.u32 %v12108_v21, %v10676_v28  ;;  %v10773_v44 = vor.u32 %v12132_v32, %v10772_v60  ;;  %v10756_v45 = vld [vmem:[%s17222_s3 + $0x940] sm:$0xf]  ;;  %v12128_v61 = vld [vmem:[%s17222_s3 + $0x94c] sm:$0xf0]  ;;  %v11858_v28 = vld [vmem:[%s17222_s3 + $0xe4] sm:$0xf] }
 0x44b   : > { %v4239_v12 = vmax.f32 %v4188_v3, 0.0  ;;  %6811 = vmatmul.bf16.vlgmr.msra.gmra.mxu2 %v14190_v37  ;;  %6901 = vmatpush.bf16.msra.mxu1 %v10837_v42  ;;  %v10484_v42 = vld [vmem:[%s17222_s3 + $0x720] sm:$0xf]  ;;  %v12172_v8 = vld [vmem:[%s17222_s3 + $0xaac] sm:$0xf0] }
 0x44c   : > { %6825 = vmatmul.bf16.vlgmr.msra.gmra.mxu3 %v14277_v10  ;;  %6887 = vmatpush.bf16.msra.mxu0 %v10709_v58  ;;  %v10485_v48 = vor.u32 %v12060_v19, %v10484_v42  ;;  %v10933_v35 = vor.u32 %v12172_v8, %v10932_v57  ;;  %v10644_v4 = vld [vmem:[%s17222_s3 + $0x860] sm:$0xf]  ;;  %v12168_v32 = vld [vmem:[%s17222_s3 + $0xa8c] sm:$0xf0] }
 0x44d   : > { %v14351_v52 = vpack.c.bf16 %v4239_v12, %v4238_v40  ;;  %6877 = vmatpush.bf16.msrb.mxu3 %v10517_v38  ;;  %v10660_v38 = vld [vmem:[%s17222_s3 + $0x880] sm:$0xf]  ;;  %v12120_v42 = vld [vmem:[%s17222_s3 + $0x90c] sm:$0xf0] }
 0x44e   : > { %v4116_v23 = vpop.f32.mrf.mxu2  ;;  %v3970_v50 = vpop.f32.mrf.mxu0  ;;  %6915 = vmatpush.bf16.msra.mxu2 %v10965_v17  ;;  %v10628_v21 = vld [vmem:[%s17222_s3 + $0x840] sm:$0xf] }
 0x44f   : > { %v4190_v29 = vpop.f32.mrf.mxu3  ;;  %v4044_v30 = vpop.f32.mrf.mxu1  ;;  %6902 = vmatpush.bf16.msra.mxu1 %v10821_v16  ;;  %v3971_v18 = vadd.f32 %v3970_v50, %v13820_v11  ;;  %v4117_v11 = vadd.f32 %v4116_v23, %v4043_v0  ;;  %v10948_v16 = vld [vmem:[%s17222_s3 + $0xac0] sm:$0xf]  ;;  %v12104_v50 = vld [vmem:[%s17222_s3 + $0x88c] sm:$0xf0]  ;;  %v10757_v0 = vor.u32 %v12128_v61, %v10756_v45  ;;  %v11854_v61 = vld [vmem:[%s17222_s3 + $0xc4] sm:$0xf] }
 0x450   : > { %6888 = vmatpush.bf16.msra.mxu0 %v10693_v26  ;;  %v10949_v63 = vor.u32 %v12176_v46, %v10948_v16  ;;  %v10468_v23 = vld [vmem:[%s17222_s3 + $0x700] sm:$0xf]  ;;  %v12212_v46 = vld [vmem:[%s17222_s3 + $0xbec] sm:$0xf0] }
 0x451   : > { %v4045_v55 = vadd.f32 %v4044_v30, %v3971_v18  ;;  %6878 = vmatpush.bf16.msrb.mxu3 %v10501_v24  ;;  %v4191_v6 = vadd.f32 %v4190_v29, %v4117_v11  ;;  %v12056_v29 = vld [vmem:[%s17222_s3 + $0x70c] sm:$0xf0]  ;;  %v10740_v18 = vld [vmem:[%s17222_s3 + $0x920] sm:$0xf] }
 0x452   : > { %6916 = vmatpush.bf16.msra.mxu2 %v10949_v63  ;;  %v10469_v59 = vor.u32 %v12056_v29, %v10468_v23  ;;  %v12124_v24 = vld [vmem:[%s17222_s3 + $0x92c] sm:$0xf0]  ;;  %v9670_v23 = vld [vmem:[%s17222_s3 + $0xd0] sm:$0xf0]  ;;  %v10612_v29 = vld [vmem:[%s17222_s3 + $0x820] sm:$0xf] }
 0x453   : > { %6903 = vmatpush.bf16.msra.mxu1 %v10805_v56  ;;  %v4240_v30 = vmax.f32 %v4191_v6, 0.0  ;;  %v10661_v56 = vor.u32 %v12104_v50, %v10660_v38  ;;  %v12100_v11 = vld [vmem:[%s17222_s3 + $0x86c] sm:$0xf0]  ;;  %v10741_v17 = vor.u32 %v12124_v24, %v10740_v18  ;;  %v11076_v57 = vld [vmem:[%s17222_s3 + $0xbc0] sm:$0xf] }
 0x454   : > { %6889 = vmatpush.bf16.msra.mxu0 %v10677_v34  ;;  %v10645_v49 = vor.u32 %v12100_v11, %v10644_v4  ;;  %v12096_v6 = vld [vmem:[%s17222_s3 + $0x84c] sm:$0xf0]  ;;  %v11850_v11 = vld [vmem:[%s17222_s3 + $0xa4] sm:$0xf] }
 0x455   : > { %6879 = vmatpush.bf16.msrb.mxu3 %v10485_v48  ;;  %v9686_v48 = vld [vmem:[%s17222_s3 + $0xf0] sm:$0xf0]  ;;  %v12092_v38 = vld [vmem:[%s17222_s3 + $0x82c] sm:$0xf0] }
 0x456   : > { %v4118_v3 = vpop.f32.mrf.mxu2  ;;  %v3973_v40 = vpop.f32.mrf.mxu0  ;;  %6917 = vmatpush.bf16.msra.mxu2 %v10933_v35  ;;  %v12208_v24 = vld [vmem:[%s17222_s3 + $0xbcc] sm:$0xf0] }
 0x457   : > { %v4192_v31 = vpop.f32.mrf.mxu3  ;;  %v4119_v2 = vadd.f32 %v4118_v3, %v4045_v55  ;;  %v4047_v12 = vpop.f32.mrf.mxu1  ;;  %6904 = vmatpush.bf16.msra.mxu1 %v10789_v36  ;;  %v3974_v53 = vadd.f32 %v3973_v40, %v13823_v27  ;;  %v10916_v27 = vld [vmem:[%s17222_s3 + $0xa80] sm:$0xf]  ;;  %v11077_v4 = vor.u32 %v12208_v24, %v11076_v57  ;;  %v9798_v24 = vld [vmem:[%s17222_s3 + $0x1d0] sm:$0xf0] }
 0x458   : > { %6890 = vmatpush.bf16.msra.mxu0 %v10661_v56  ;;  %v10724_v55 = vld [vmem:[%s17222_s3 + $0x900] sm:$0xf]  ;;  %v10917_v19 = vor.u32 %v12168_v32, %v10916_v27  ;;  %v12160_v56 = vld [vmem:[%s17222_s3 + $0xa4c] sm:$0xf0] }
 0x459   : > { %v4193_v14 = vadd.f32 %v4192_v31, %v4119_v2  ;;  %6839 = vmatmul.bf16.vlgmr.msrb.gmra.mxu0 %v14351_v52  ;;  %6880 = vmatpush.bf16.msrb.mxu3 %v10469_v59  ;;  %v4048_v3 = vadd.f32 %v4047_v12, %v3974_v53  ;;  %v10629_v2 = vor.u32 %v12096_v6, %v10628_v21  ;;  %v10900_v40 = vld [vmem:[%s17222_s3 + $0xa60] sm:$0xf] }
 0x45a   : > { %6918 = vmatpush.bf16.msra.mxu2 %v10917_v19  ;;  %v11092_v12 = vld [vmem:[%s17222_s3 + $0xbe0] sm:$0xf] }
 0x45b   : > { %v4241_v58 = vmax.f32 %v4193_v14, 0.0  ;;  %6905 = vmatpush.bf16.msra.mxu1 %v10773_v44  ;;  %v10725_v44 = vor.u32 %v12120_v42, %v10724_v55  ;;  %v11093_v45 = vor.u32 %v12212_v46, %v11092_v12  ;;  %v9689_v14 = vor.u32 %v11858_v28, %v9686_v48  ;;  %v10596_v27 = vld [vmem:[%s17222_s3 + $0x800] sm:$0xf] }
 0x45c   : > { %6891 = vmatpush.bf16.msra.mxu0 %v10645_v49  ;;  %v9673_v49 = vor.u32 %v11854_v61, %v9670_v23  ;;  %v10868_v32 = vld [vmem:[%s17222_s3 + $0xa20] sm:$0xf]  ;;  %v12200_v61 = vld [vmem:[%s17222_s3 + $0xb8c] sm:$0xf0]  ;;  %v9814_v23 = vld [vmem:[%s17222_s3 + $0x1f0] sm:$0xf0] }
 0x45d   : > { %v14443_v5 = vpack.c.bf16 %v4241_v58, %v4240_v30  ;;  %6929 = vmatpush.bf16.msra.mxu3 %v11093_v45  ;;  %v10613_v30 = vor.u32 %v12092_v38, %v10612_v29  ;;  %v10884_v58 = vld [vmem:[%s17222_s3 + $0xa40] sm:$0xf] }
 0x45e   : > { %v4121_v26 = vpop.f32.mrf.mxu2  ;;  %v3975_v36 = vpop.f32.mrf.mxu0  ;;  %v10885_v53 = vor.u32 %v12160_v56, %v10884_v58  ;;  %v11060_v55 = vld [vmem:[%s17222_s3 + $0xba0] sm:$0xf] }
 0x45f   : > { %v4195_v9 = vpop.f32.mrf.mxu3  ;;  %6853 = vmatmul.bf16.vlgmr.msrb.gmra.mxu1 %v14443_v5  ;;  %v4049_v60 = vpop.f32.mrf.mxu1  ;;  %v3976_v31 = vadd.f32 %v3975_v36, %v13834_v25  ;;  %v12164_v25 = vld [vmem:[%s17222_s3 + $0xa6c] sm:$0xf0]  ;;  %v4122_v34 = vadd.f32 %v4121_v26, %v4048_v3  ;;  %v11028_v56 = vld [vmem:[%s17222_s3 + $0xb60] sm:$0xf] }
 0x460   : > { %6906 = vmatpush.bf16.msra.mxu1 %v10757_v0  ;;  %v10901_v16 = vor.u32 %v12164_v25, %v10900_v40  ;;  %6892 = vmatpush.bf16.msra.mxu0 %v10629_v2  ;;  %v12088_v36 = vld [vmem:[%s17222_s3 + $0x80c] sm:$0xf0]  ;;  %v11846_v2 = vld [vmem:[%s17222_s3 + $0x84] sm:$0xf]  ;;  %v9638_v40 = vld [vmem:[%s17222_s3 + $0x90] sm:$0xf0] }
 0x461   : > { %v4050_v63 = vadd.f32 %v4049_v60, %v3976_v31  ;;  %v4196_v8 = vadd.f32 %v4195_v9, %v4122_v34  ;;  %v9654_v9 = vld [vmem:[%s17222_s3 + $0xb0] sm:$0xf0]  ;;  %6930 = vmatpush.bf16.msra.mxu3 %v11077_v4  ;;  %v10597_v60 = vor.u32 %v12088_v36, %v10596_v27  ;;  %v12204_v3 = vld [vmem:[%s17222_s3 + $0xbac] sm:$0xf0]  ;;  %v10852_v34 = vld [vmem:[%s17222_s3 + $0xa00] sm:$0xf] }
 0x462   : > { %6919 = vmatpush.bf16.msra.mxu2 %v10901_v16  ;;  %v11061_v31 = vor.u32 %v12204_v3, %v11060_v55  ;;  %v9657_v6 = vor.u32 %v11850_v11, %v9654_v9  ;;  %v11044_v16 = vld [vmem:[%s17222_s3 + $0xb80] sm:$0xf] }
 0x463   : > { %v4242_v42 = vmax.f32 %v4196_v8, 0.0  ;;  %v11220_v57 = vld [vmem:[%s17222_s3 + $0xce0] sm:$0xf] }
 0x464   : > { %6907 = vmatpush.bf16.msra.mxu1 %v10741_v17  ;;  %6893 = vmatpush.bf16.msra.mxu0 %v10613_v30  ;;  %v12156_v17 = vld [vmem:[%s17222_s3 + $0xa2c] sm:$0xf0]  ;;  %v9622_v30 = vld [vmem:[%s17222_s3 + $0x70] sm:$0xf0] }
 0x465   : > { %v10869_v28 = vor.u32 %v12156_v17, %v10868_v32  ;;  %6931 = vmatpush.bf16.msra.mxu3 %v11061_v31  ;;  %v12192_v32 = vld [vmem:[%s17222_s3 + $0xb4c] sm:$0xf0]  ;;  %v11204_v17 = vld [vmem:[%s17222_s3 + $0xcc0] sm:$0xf] }
 0x466   : > { %v4123_v59 = vpop.f32.mrf.mxu2  ;;  %v3978_v18 = vpop.f32.mrf.mxu0  ;;  %6920 = vmatpush.bf16.msra.mxu2 %v10885_v53  ;;  %v11886_v53 = vld [vmem:[%s17222_s3 + $0x1c4] sm:$0xf]  ;;  %v12240_v31 = vld [vmem:[%s17222_s3 + $0xccc] sm:$0xf0] }
 0x467   : > { %v4197_v50 = vpop.f32.mrf.mxu3  ;;  %v4124_v0 = vadd.f32 %v4123_v59, %v4050_v63  ;;  %v4052_v35 = vpop.f32.mrf.mxu1  ;;  %v3979_v21 = vadd.f32 %v3978_v18, %v13837_v33  ;;  %v12152_v33 = vld [vmem:[%s17222_s3 + $0xa0c] sm:$0xf0]  ;;  %v11045_v63 = vor.u32 %v12200_v61, %v11044_v16  ;;  %v9641_v59 = vor.u32 %v11846_v2, %v9638_v40  ;;  %v9782_v2 = vld [vmem:[%s17222_s3 + $0x1b0] sm:$0xf0]  ;;  %v10996_v16 = vld [vmem:[%s17222_s3 + $0xb20] sm:$0xf] }
 0x468   : > { %6908 = vmatpush.bf16.msra.mxu1 %v10725_v44  ;;  %6894 = vmatpush.bf16.msra.mxu0 %v10597_v60  ;;  %v10853_v45 = vor.u32 %v12152_v33, %v10852_v34  ;;  %v12244_v18 = vld [vmem:[%s17222_s3 + $0xcec] sm:$0xf0]  ;;  %v9801_v9 = vor.u32 %v11886_v53, %v9798_v24  ;;  %v11012_v60 = vld [vmem:[%s17222_s3 + $0xb40] sm:$0xf]  ;;  %v9590_v34 = vld [vmem:[%s17222_s3 + $0x30] sm:$0xf0] }
 0x469   : > { %v4198_v26 = vadd.f32 %v4197_v50, %v4124_v0  ;;  %v4053_v29 = vadd.f32 %v4052_v35, %v3979_v21  ;;  %v11842_v50 = vld [vmem:[%s17222_s3 + $0x64] sm:$0xf]  ;;  %6932 = vmatpush.bf16.msra.mxu3 %v11045_v63  ;;  %v11221_v35 = vor.u32 %v12244_v18, %v11220_v57  ;;  %v11013_v3 = vor.u32 %v12192_v32, %v11012_v60  ;;  %v9574_v57 = vld [vmem:[%s17222_s3 + $0x10] sm:$0xf0]  ;;  %v10980_v18 = vld [vmem:[%s17222_s3 + $0xb00] sm:$0xf] }
 0x46a   : > { %6921 = vmatpush.bf16.msra.mxu2 %v10869_v28  ;;  %v9625_v11 = vor.u32 %v11842_v50, %v9622_v30  ;;  %v11205_v21 = vor.u32 %v12240_v31, %v11204_v17  ;;  %v11172_v53 = vld [vmem:[%s17222_s3 + $0xc80] sm:$0xf]  ;;  %v11922_v32 = vld [vmem:[%s17222_s3 + $0x2e4] sm:$0xf]  ;;  %v9942_v17 = vld [vmem:[%s17222_s3 + $0x2f0] sm:$0xf0] }
 0x46b   : > { %v4243_v19 = vmax.f32 %v4198_v26, 0.0  ;;  %v11838_v26 = vld [vmem:[%s17222_s3 + $0x44] sm:$0xf]  ;;  %v9734_v31 = vld [vmem:[%s17222_s3 + $0x150] sm:$0xf0] }
 0x46c   : > { %6957 = vmatpush.bf16.msrb.mxu1 %v9689_v14  ;;  %v11890_v14 = vld [vmem:[%s17222_s3 + $0x1e4] sm:$0xf]  ;;  %6943 = vmatpush.bf16.msrb.mxu0 %v11221_v35  ;;  %v12184_v35 = vld [vmem:[%s17222_s3 + $0xb0c] sm:$0xf0] }
 0x46d   : > { %v14541_v48 = vpack.c.bf16 %v4243_v19, %v4242_v42  ;;  %v9817_v58 = vor.u32 %v11890_v14, %v9814_v23  ;;  %v12236_v14 = vld [vmem:[%s17222_s3 + $0xcac] sm:$0xf0] }
 0x46e   : > { %v4126_v25 = vpop.f32.mrf.mxu2  ;;  %v3980_v46 = vpop.f32.mrf.mxu0  ;;  %6922 = vmatpush.bf16.msra.mxu2 %v10853_v45 }
 0x46f   : > { %v4200_v12 = vpop.f32.mrf.mxu3  ;;  %6867 = vmatmul.bf16.vlgmr.msrb.gmra.mxu2 %v14541_v48  ;;  %v4054_v44 = vpop.f32.mrf.mxu1  ;;  %v3981_v38 = vadd.f32 %v3980_v46, %v13848_v7  ;;  %v12196_v7 = vld [vmem:[%s17222_s3 + $0xb6c] sm:$0xf0]  ;;  %v4127_v8 = vadd.f32 %v4126_v25, %v4053_v29 }
 0x470   : > { %6958 = vmatpush.bf16.msrb.mxu1 %v9673_v49  ;;  %v11029_v0 = vor.u32 %v12196_v7, %v11028_v56  ;;  %v9606_v49 = vld [vmem:[%s17222_s3 + $0x50] sm:$0xf0]  ;;  %6944 = vmatpush.bf16.msrb.mxu0 %v11205_v21  ;;  %v12188_v46 = vld [vmem:[%s17222_s3 + $0xb2c] sm:$0xf0]  ;;  %v11918_v21 = vld [vmem:[%s17222_s3 + $0x2c4] sm:$0xf] }
 0x471   : > { %v4055_v4 = vadd.f32 %v4054_v44, %v3981_v38  ;;  %v4201_v55 = vadd.f32 %v4200_v12, %v4127_v8  ;;  %v9609_v25 = vor.u32 %v11838_v26, %v9606_v49  ;;  %v11834_v12 = vld [vmem:[%s17222_s3 + $0x24] sm:$0xf]  ;;  %v11188_v44 = vld [vmem:[%s17222_s3 + $0xca0] sm:$0xf]  ;;  %v10997_v63 = vor.u32 %v12188_v46, %v10996_v16  ;;  %v9750_v49 = vld [vmem:[%s17222_s3 + $0x170] sm:$0xf0] }
 0x472   : > { %6971 = vmatpush.bf16.msrb.mxu2 %v9817_v58  ;;  %6933 = vmatpush.bf16.msra.mxu3 %v11029_v0  ;;  %v11189_v29 = vor.u32 %v12236_v14, %v11188_v44  ;;  %v11878_v38 = vld [vmem:[%s17222_s3 + $0x184] sm:$0xf]  ;;  %v9593_v30 = vor.u32 %v11834_v12, %v9590_v34 }
 0x473   : > { %v4244_v45 = vmax.f32 %v4201_v55, 0.0  ;;  %v11874_v26 = vld [vmem:[%s17222_s3 + $0x164] sm:$0xf]  ;;  %v9945_v55 = vor.u32 %v11922_v32, %v9942_v17 }
 0x474   : > { %6959 = vmatpush.bf16.msrb.mxu1 %v9657_v6  ;;  %v11882_v6 = vld [vmem:[%s17222_s3 + $0x1a4] sm:$0xf]  ;;  %6945 = vmatpush.bf16.msrb.mxu0 %v11189_v29  ;;  %v9753_v60 = vor.u32 %v11874_v26, %v9750_v49 }
 0x475   : > { %v9785_v33 = vor.u32 %v11882_v6, %v9782_v2  ;;  %v11866_v14 = vld [vmem:[%s17222_s3 + $0x124] sm:$0xf] }
 0x476   : > { %v4128_v27 = vpop.f32.mrf.mxu2  ;;  %v3983_v19 = vpop.f32.mrf.mxu0  ;;  %6972 = vmatpush.bf16.msrb.mxu2 %v9801_v9  ;;  %6934 = vmatpush.bf16.msra.mxu3 %v11013_v3  ;;  %v11870_v3 = vld [vmem:[%s17222_s3 + $0x144] sm:$0xf] }
 0x477   : > { %v4202_v36 = vpop.f32.mrf.mxu3  ;;  %v4129_v42 = vadd.f32 %v4128_v27, %v4055_v4  ;;  %v4057_v28 = vpop.f32.mrf.mxu1  ;;  %v3984_v23 = vadd.f32 %v3983_v19, %v13851_v1  ;;  %v11830_v1 = vld [vmem:[%s17222_s3 + $0x4] sm:$0xf]  ;;  %v10981_v4 = vor.u32 %v12184_v35, %v10980_v18  ;;  %v12228_v19 = vld [vmem:[%s17222_s3 + $0xc6c] sm:$0xf0]  ;;  %v9737_v2 = vor.u32 %v11870_v3, %v9734_v31  ;;  %v9702_v18 = vld [vmem:[%s17222_s3 + $0x110] sm:$0xf0] }
 0x478   : > { %6960 = vmatpush.bf16.msrb.mxu1 %v9641_v59  ;;  %v9766_v59 = vld [vmem:[%s17222_s3 + $0x190] sm:$0xf0]  ;;  %v9577_v27 = vor.u32 %v11830_v1, %v9574_v57  ;;  %v11914_v29 = vld [vmem:[%s17222_s3 + $0x2a4] sm:$0xf]  ;;  %v11124_v1 = vld [vmem:[%s17222_s3 + $0xc20] sm:$0xf] }
 0x479   : > { %v4203_v40 = vadd.f32 %v4202_v36, %v4129_v42  ;;  %v9769_v58 = vor.u32 %v11878_v38, %v9766_v59  ;;  %v4058_v24 = vadd.f32 %v4057_v28, %v3984_v23  ;;  %v9718_v23 = vld [vmem:[%s17222_s3 + $0x130] sm:$0xf0]  ;;  %v12220_v57 = vld [vmem:[%s17222_s3 + $0xc2c] sm:$0xf0]  ;;  %v11910_v35 = vld [vmem:[%s17222_s3 + $0x284] sm:$0xf] }
 0x47a   : > { %6973 = vmatpush.bf16.msrb.mxu2 %v9785_v33  ;;  %6935 = vmatpush.bf16.msra.mxu3 %v10997_v63  ;;  %v9721_v59 = vor.u32 %v11866_v14, %v9718_v23  ;;  %v11906_v17 = vld [vmem:[%s17222_s3 + $0x264] sm:$0xf]  ;;  %v10070_v3 = vld [vmem:[%s17222_s3 + $0x3f0] sm:$0xf0] }
 0x47b   : > { %v4245_v61 = vmax.f32 %v4203_v40, 0.0  ;;  %v9926_v40 = vld [vmem:[%s17222_s3 + $0x2d0] sm:$0xf0]  ;;  %v11946_v23 = vld [vmem:[%s17222_s3 + $0x3a4] sm:$0xf] }
 0x47c   : > { %6961 = vmatpush.bf16.msrb.mxu1 %v9625_v11  ;;  %v12232_v11 = vld [vmem:[%s17222_s3 + $0xc8c] sm:$0xf0]  ;;  %v9929_v34 = vor.u32 %v11918_v21, %v9926_v40  ;;  %v9846_v14 = vld [vmem:[%s17222_s3 + $0x230] sm:$0xf0] }
 0x47d   : > { %v14643_v50 = vpack.c.bf16 %v4245_v61, %v4244_v45  ;;  %v11173_v36 = vor.u32 %v12232_v11, %v11172_v53  ;;  %v11140_v45 = vld [vmem:[%s17222_s3 + $0xc40] sm:$0xf]  ;;  %v12224_v61 = vld [vmem:[%s17222_s3 + $0xc4c] sm:$0xf0]  ;;  %v9894_v11 = vld [vmem:[%s17222_s3 + $0x290] sm:$0xf0] }
 0x47e   : > { %v4131_v56 = vpop.f32.mrf.mxu2  ;;  %v3985_v8 = vpop.f32.mrf.mxu0  ;;  %6974 = vmatpush.bf16.msrb.mxu2 %v9769_v58  ;;  %6936 = vmatpush.bf16.msra.mxu3 %v10981_v4  ;;  %v11141_v63 = vor.u32 %v12224_v61, %v11140_v45 }
 0x47f   : > { %v4205_v7 = vpop.f32.mrf.mxu3  ;;  %6881 = vmatmul.bf16.vlgmr.msrb.gmra.mxu3 %v14643_v50  ;;  %v4059_v0 = vpop.f32.mrf.mxu1  ;;  %v3986_v9 = vadd.f32 %v3985_v8, %v13862_v43  ;;  %v4132_v42 = vadd.f32 %v4131_v56, %v4058_v24  ;;  %6946 = vmatpush.bf16.msrb.mxu0 %v11173_v36  ;;  %v11156_v43 = vld [vmem:[%s17222_s3 + $0xc60] sm:$0xf]  ;;  %v11125_v8 = vor.u32 %v12220_v57, %v11124_v1 }
 0x480   : > { %6962 = vmatpush.bf16.msrb.mxu1 %v9609_v25  ;;  %v11157_v28 = vor.u32 %v12228_v19, %v11156_v43 }
 0x481   : > { %v4060_v6 = vadd.f32 %v4059_v0, %v3986_v9  ;;  %v4206_v33 = vadd.f32 %v4205_v7, %v4132_v42  ;;  %v11862_v0 = vld [vmem:[%s17222_s3 + $0x104] sm:$0xf]  ;;  %v9897_v9 = vor.u32 %v11910_v35, %v9894_v11  ;;  %v10182_v11 = vld [vmem:[%s17222_s3 + $0x4d0] sm:$0xf0] }
 0x482   : > { %6975 = vmatpush.bf16.msrb.mxu2 %v9753_v60  ;;  %6985 = vmatpush.bf16.msrb.mxu3 %v9945_v55  ;;  %v9705_v4 = vor.u32 %v11862_v0, %v9702_v18  ;;  %v11108_v60 = vld [vmem:[%s17222_s3 + $0xc00] sm:$0xf]  ;;  %v9878_v55 = vld [vmem:[%s17222_s3 + $0x270] sm:$0xf0]  ;;  %v11954_v42 = vld [vmem:[%s17222_s3 + $0x3e4] sm:$0xf] }
 0x483   : > { %6947 = vmatpush.bf16.msrb.mxu0 %v11157_v28  ;;  %v4246_v56 = vmax.f32 %v4206_v33, 0.0  ;;  %v9881_v28 = vor.u32 %v11906_v17, %v9878_v55  ;;  %v10073_v31 = vor.u32 %v11954_v42, %v10070_v3  ;;  %v9830_v0 = vld [vmem:[%s17222_s3 + $0x210] sm:$0xf0]  ;;  %v11942_v18 = vld [vmem:[%s17222_s3 + $0x384] sm:$0xf] }
 0x484   : > { %6963 = vmatpush.bf16.msrb.mxu1 %v9593_v30  ;;  %v9910_v30 = vld [vmem:[%s17222_s3 + $0x2b0] sm:$0xf0] }
 0x485   : > { %v9913_v58 = vor.u32 %v11914_v29, %v9910_v30  ;;  %v10166_v42 = vld [vmem:[%s17222_s3 + $0x4b0] sm:$0xf0] }
 0x486   : > { %v4133_v25 = vpop.f32.mrf.mxu2  ;;  %v3988_v46 = vpop.f32.mrf.mxu0  ;;  %6976 = vmatpush.bf16.msrb.mxu2 %v9737_v2  ;;  %6986 = vmatpush.bf16.msrb.mxu3 %v9929_v34  ;;  %v9862_v2 = vld [vmem:[%s17222_s3 + $0x250] sm:$0xf0] }
 0x487   : > { %v4207_v12 = vpop.f32.mrf.mxu3  ;;  %v4134_v16 = vadd.f32 %v4133_v25, %v4060_v6  ;;  %v4062_v44 = vpop.f32.mrf.mxu1  ;;  %6948 = vmatpush.bf16.msrb.mxu0 %v11141_v63  ;;  %v3989_v24 = vadd.f32 %v3988_v46, %v13865_v62  ;;  %v12216_v62 = vld [vmem:[%s17222_s3 + $0xc0c] sm:$0xf0]  ;;  %v11902_v6 = vld [vmem:[%s17222_s3 + $0x244] sm:$0xf] }
 0x488   : > { %6964 = vmatpush.bf16.msrb.mxu1 %v9577_v27  ;;  %v11109_v32 = vor.u32 %v12216_v62, %v11108_v60  ;;  %v9865_v25 = vor.u32 %v11902_v6, %v9862_v2  ;;  %v11898_v63 = vld [vmem:[%s17222_s3 + $0x224] sm:$0xf]  ;;  %v10150_v6 = vld [vmem:[%s17222_s3 + $0x490] sm:$0xf0] }
 0x489   : > { %v4208_v38 = vadd.f32 %v4207_v12, %v4134_v16  ;;  %v4063_v43 = vadd.f32 %v4062_v44, %v3989_v24  ;;  %v10054_v12 = vld [vmem:[%s17222_s3 + $0x3d0] sm:$0xf0]  ;;  %v9849_v30 = vor.u32 %v11898_v63, %v9846_v14  ;;  %v11934_v2 = vld [vmem:[%s17222_s3 + $0x344] sm:$0xf] }
 0x48a   : > { %6977 = vmatpush.bf16.msrb.mxu2 %v9721_v59  ;;  %6987 = vmatpush.bf16.msrb.mxu3 %v9913_v58  ;;  %v10198_v59 = vld [vmem:[%s17222_s3 + $0x4f0] sm:$0xf0]  ;;  %v12018_v63 = vld [vmem:[%s17222_s3 + $0x5e4] sm:$0xf] }
 0x48b   : > { %v4247_v7 = vmax.f32 %v4208_v38, 0.0  ;;  %6949 = vmatpush.bf16.msrb.mxu0 %v11125_v8  ;;  %v11986_v38 = vld [vmem:[%s17222_s3 + $0x4e4] sm:$0xf]  ;;  %v10038_v58 = vld [vmem:[%s17222_s3 + $0x3b0] sm:$0xf0] }
 0x48c   : > { %v10201_v57 = vor.u32 %v11986_v38, %v10198_v59  ;;  %v11894_v8 = vld [vmem:[%s17222_s3 + $0x204] sm:$0xf]  ;;  %v9974_v38 = vld [vmem:[%s17222_s3 + $0x330] sm:$0xf0] }
 0x48d   : > { %v14728_v53 = vpack.c.bf16 %v4247_v7, %v4246_v56  ;;  %v10041_v56 = vor.u32 %v11946_v23, %v10038_v58  ;;  %v10326_v23 = vld [vmem:[%s17222_s3 + $0x5f0] sm:$0xf0] }
 0x48e   : > { %v4136_v26 = vpop.f32.mrf.mxu2  ;;  %v3990_v27 = vpop.f32.mrf.mxu0  ;;  %6978 = vmatpush.bf16.msrb.mxu2 %v9705_v4  ;;  %6988 = vmatpush.bf16.msrb.mxu3 %v9897_v9  ;;  %v11982_v4 = vld [vmem:[%s17222_s3 + $0x4c4] sm:$0xf] }
 0x48f   : > { %v4210_v49 = vpop.f32.mrf.mxu3  ;;  %6895 = vmatmul.bf16.vlgmr.msra.gmra.mxu0 %v14728_v53  ;;  %v4064_v36 = vpop.f32.mrf.mxu1  ;;  %v3991_v19 = vadd.f32 %v3990_v27, %v13876_v51  ;;  %v4137_v21 = vadd.f32 %v4136_v26, %v4063_v43  ;;  %v11950_v51 = vld [vmem:[%s17222_s3 + $0x3c4] sm:$0xf]  ;;  %v9833_v26 = vor.u32 %v11894_v8, %v9830_v0  ;;  %v10185_v62 = vor.u32 %v11982_v4, %v10182_v11  ;;  %v9958_v11 = vld [vmem:[%s17222_s3 + $0x310] sm:$0xf0] }
 0x490   : > { %6950 = vmatpush.bf16.msrb.mxu0 %v11109_v32  ;;  %v10057_v16 = vor.u32 %v11950_v51, %v10054_v12  ;;  %v11978_v32 = vld [vmem:[%s17222_s3 + $0x4a4] sm:$0xf]  ;;  %v9990_v51 = vld [vmem:[%s17222_s3 + $0x350] sm:$0xf0] }
 0x491   : > { %v4065_v40 = vadd.f32 %v4064_v36, %v3991_v19  ;;  %v4211_v46 = vadd.f32 %v4210_v49, %v4137_v21  ;;  %v10022_v49 = vld [vmem:[%s17222_s3 + $0x390] sm:$0xf0]  ;;  %v11938_v43 = vld [vmem:[%s17222_s3 + $0x364] sm:$0xf]  ;;  %v9993_v12 = vor.u32 %v11934_v2, %v9990_v51 }
 0x492   : > { %6989 = vmatpush.bf16.msrb.mxu3 %v9881_v28  ;;  %v10025_v36 = vor.u32 %v11942_v18, %v10022_v49  ;;  %v10006_v19 = vld [vmem:[%s17222_s3 + $0x370] sm:$0xf0]  ;;  %v12014_v8 = vld [vmem:[%s17222_s3 + $0x5c4] sm:$0xf] }
 0x493   : > { %v4248_v7 = vmax.f32 %v4211_v46, 0.0  ;;  %v10009_v28 = vor.u32 %v11938_v43, %v10006_v19  ;;  %v11926_v4 = vld [vmem:[%s17222_s3 + $0x304] sm:$0xf] }
 0x494   : > { %6999 = vmatpush.bf16.msra.mxu0 %v10073_v31  ;;  %v10169_v31 = vor.u32 %v11978_v32, %v10166_v42  ;;  %v10294_v42 = vld [vmem:[%s17222_s3 + $0x5b0] sm:$0xf0]  ;;  %v12114_v51 = vld [vmem:[%s17222_s3 + $0x8e4] sm:$0xf] }
 0x496   : > { %v4138_v34 = vpop.f32.mrf.mxu2  ;;  %v3993_v45 = vpop.f32.mrf.mxu0  ;;  %6990 = vmatpush.bf16.msrb.mxu3 %v9865_v25 }
 0x497   : > { %v4212_v33 = vpop.f32.mrf.mxu3  ;;  %v4139_v44 = vadd.f32 %v4138_v34, %v4065_v40  ;;  %v4067_v61 = vpop.f32.mrf.mxu1  ;;  %v3994_v24 = vadd.f32 %v3993_v45, %v13879_v54  ;;  %v11970_v45 = vld [vmem:[%s17222_s3 + $0x464] sm:$0xf] }
 0x498   : > { %7000 = vmatpush.bf16.msra.mxu0 %v10057_v16 }
 0x499   : > { %v4213_v29 = vadd.f32 %v4212_v33, %v4139_v44  ;;  %v4068_v17 = vadd.f32 %v4067_v61, %v3994_v24  ;;  %v10134_v61 = vld [vmem:[%s17222_s3 + $0x470] sm:$0xf0] }
 0x49a   : > { %6991 = vmatpush.bf16.msrb.mxu3 %v9849_v30  ;;  %v10310_v24 = vld [vmem:[%s17222_s3 + $0x5d0] sm:$0xf0] }
 0x49b   : > { %v4249_v1 = vmax.f32 %v4213_v29, 0.0  ;;  %v11930_v29 = vld [vmem:[%s17222_s3 + $0x324] sm:$0xf] }
 0x49c   : > { %7001 = vmatpush.bf16.msra.mxu0 %v10041_v56  ;;  %v9977_v59 = vor.u32 %v11930_v29, %v9974_v38  ;;  %v10137_v56 = vor.u32 %v11970_v45, %v10134_v61  ;;  %v12002_v61 = vld [vmem:[%s17222_s3 + $0x564] sm:$0xf]  ;;  %v10694_v38 = vld [vmem:[%s17222_s3 + $0x8d0] sm:$0xf0] }
 0x49d   : > { %v14793_v35 = vpack.c.bf16 %v4249_v1, %v4248_v7  ;;  %v10329_v7 = vor.u32 %v12018_v63, %v10326_v23  ;;  %v11966_v1 = vld [vmem:[%s17222_s3 + $0x444] sm:$0xf]  ;;  %v10262_v63 = vld [vmem:[%s17222_s3 + $0x570] sm:$0xf0] }
 0x49e   : > { %v4141_v9 = vpop.f32.mrf.mxu2  ;;  %v3995_v54 = vpop.f32.mrf.mxu0  ;;  %6992 = vmatpush.bf16.msrb.mxu3 %v9833_v26  ;;  %v10454_v23 = vld [vmem:[%s17222_s3 + $0x6f0] sm:$0xf0]  ;;  %v12110_v29 = vld [vmem:[%s17222_s3 + $0x8c4] sm:$0xf] }
 0x49f   : > { %v4215_v27 = vpop.f32.mrf.mxu3  ;;  %6909 = vmatmul.bf16.vlgmr.msra.gmra.mxu1 %v14793_v35  ;;  %v4069_v60 = vpop.f32.mrf.mxu1  ;;  %v3996_v55 = vadd.f32 %v3995_v54, %v13890_v39  ;;  %v4142_v3 = vadd.f32 %v4141_v9, %v4068_v17  ;;  %v11974_v39 = vld [vmem:[%s17222_s3 + $0x484] sm:$0xf]  ;;  %v9961_v9 = vor.u32 %v11926_v4, %v9958_v11  ;;  %v10313_v54 = vor.u32 %v12014_v8, %v10310_v24  ;;  %v10102_v17 = vld [vmem:[%s17222_s3 + $0x430] sm:$0xf0] }
 0x4a0   : > { %7013 = vmatpush.bf16.msra.mxu1 %v10201_v57  ;;  %7002 = vmatpush.bf16.msra.mxu0 %v10025_v36  ;;  %v10153_v44 = vor.u32 %v11974_v39, %v10150_v6  ;;  %v10118_v57 = vld [vmem:[%s17222_s3 + $0x450] sm:$0xf0]  ;;  %v12006_v39 = vld [vmem:[%s17222_s3 + $0x584] sm:$0xf]  ;;  %v10697_v8 = vor.u32 %v12110_v29, %v10694_v38 }
 0x4a1   : > { %v4070_v21 = vadd.f32 %v4069_v60, %v3996_v55  ;;  %v4216_v34 = vadd.f32 %v4215_v27, %v4142_v3  ;;  %v10121_v36 = vor.u32 %v11966_v1, %v10118_v57  ;;  %v11962_v60 = vld [vmem:[%s17222_s3 + $0x424] sm:$0xf]  ;;  %v10438_v4 = vld [vmem:[%s17222_s3 + $0x6d0] sm:$0xf0] }
 0x4a2   : > { %v12010_v55 = vld [vmem:[%s17222_s3 + $0x5a4] sm:$0xf]  ;;  %v10105_v19 = vor.u32 %v11962_v60, %v10102_v17  ;;  %v10230_v17 = vld [vmem:[%s17222_s3 + $0x530] sm:$0xf0] }
 0x4a3   : > { %v4250_v30 = vmax.f32 %v4216_v34, 0.0  ;;  %v12046_v24 = vld [vmem:[%s17222_s3 + $0x6c4] sm:$0xf] }
 0x4a4   : > { %7014 = vmatpush.bf16.msra.mxu1 %v10185_v62  ;;  %7003 = vmatpush.bf16.msra.mxu0 %v10009_v28  ;;  %v10297_v28 = vor.u32 %v12010_v55, %v10294_v42  ;;  %v12042_v55 = vld [vmem:[%s17222_s3 + $0x6a4] sm:$0xf]  ;;  %v14958_v42 = vld [vmem:[%s17223_s4] sm:$0xf] }
 0x4a6   : > { %v4143_v40 = vpop.f32.mrf.mxu2  ;;  %v3998_v16 = vpop.f32.mrf.mxu0 }
 0x4a7   : > { %v4217_v25 = vpop.f32.mrf.mxu3  ;;  %v4144_v33 = vadd.f32 %v4143_v40, %v4070_v21  ;;  %v4072_v46 = vpop.f32.mrf.mxu1  ;;  %v3999_v18 = vadd.f32 %v3998_v16, %v13893_v41  ;;  %v10278_v21 = vld [vmem:[%s17222_s3 + $0x590] sm:$0xf0] }
 0x4a8   : > { %7015 = vmatpush.bf16.msra.mxu1 %v10169_v31  ;;  %7004 = vmatpush.bf16.msra.mxu0 %v9993_v12  ;;  %v10086_v31 = vld [vmem:[%s17222_s3 + $0x410] sm:$0xf0] }
 0x4a9   : > { %v4218_v14 = vadd.f32 %v4217_v25, %v4144_v33  ;;  %v4073_v62 = vadd.f32 %v4072_v46, %v3999_v18  ;;  %v10710_v40 = vld [vmem:[%s17222_s3 + $0x8f0] sm:$0xf0]  ;;  %v10281_v46 = vor.u32 %v12006_v39, %v10278_v21 }
 0x4aa   : > { %v10713_v45 = vor.u32 %v12114_v51, %v10710_v40  ;;  %v10246_v18 = vld [vmem:[%s17222_s3 + $0x550] sm:$0xf0]  ;;  %v12038_v51 = vld [vmem:[%s17222_s3 + $0x684] sm:$0xf] }
 0x4ab   : > { %v4251_v58 = vmax.f32 %v4218_v14, 0.0  ;;  %v12050_v14 = vld [vmem:[%s17222_s3 + $0x6e4] sm:$0xf] }
 0x4ac   : > { %7016 = vmatpush.bf16.msra.mxu1 %v10153_v44  ;;  %7005 = vmatpush.bf16.msra.mxu0 %v9977_v59  ;;  %v10457_v57 = vor.u32 %v12050_v14, %v10454_v23 }
 0x4ad   : > { %v14858_v0 = vpack.c.bf16 %v4251_v58, %v4250_v30  ;;  %v10265_v58 = vor.u32 %v12002_v61, %v10262_v63  ;;  %v10838_v61 = vld [vmem:[%s17222_s3 + $0x9f0] sm:$0xf0] }
 0x4ae   : > { %v4146_v26 = vpop.f32.mrf.mxu2  ;;  %v4000_v41 = vpop.f32.mrf.mxu0 }
 0x4af   : > { %v4220_v49 = vpop.f32.mrf.mxu3  ;;  %6923 = vmatmul.bf16.vlgmr.msra.gmra.mxu2 %v14858_v0  ;;  %6965 = vmatmul.bf16.vlgmr.msrb.gmra.mxu1 %v13977_v20  ;;  %v4074_v27 = vpop.f32.mrf.mxu1  ;;  %v4001_v32 = vadd.f32 %v4000_v41, %v13904_v47  ;;  %v4147_v43 = vadd.f32 %v4146_v26, %v4073_v62  ;;  %v11958_v47 = vld [vmem:[%s17222_s3 + $0x404] sm:$0xf] }
 0x4b0   : > { %7017 = vmatpush.bf16.msra.mxu1 %v10137_v56  ;;  %7027 = vmatpush.bf16.msra.mxu2 %v10329_v7  ;;  %v10089_v16 = vor.u32 %v11958_v47, %v10086_v31  ;;  %v11998_v56 = vld [vmem:[%s17222_s3 + $0x544] sm:$0xf] }
 0x4b1   : > { %7006 = vmatpush.bf16.msra.mxu0 %v9961_v9  ;;  %v4075_v3 = vadd.f32 %v4074_v27, %v4001_v32  ;;  %v4221_v25 = vadd.f32 %v4220_v49, %v4147_v43  ;;  %v10678_v49 = vld [vmem:[%s17222_s3 + $0x8b0] sm:$0xf0]  ;;  %v10249_v27 = vor.u32 %v11998_v56, %v10246_v18  ;;  %v12094_v18 = vld [vmem:[%s17222_s3 + $0x844] sm:$0xf] }
 0x4b2   : > { %v10422_v43 = vld [vmem:[%s17222_s3 + $0x6b0] sm:$0xf0] }
 0x4b3   : > { %v4252_v59 = vmax.f32 %v4221_v25, 0.0  ;;  %v10425_v39 = vor.u32 %v12042_v55, %v10422_v43  ;;  %v10582_v56 = vld [vmem:[%s17222_s3 + $0x7f0] sm:$0xf0]  ;;  %v12090_v55 = vld [vmem:[%s17222_s3 + $0x824] sm:$0xf] }
 0x4b4   : > { %7018 = vmatpush.bf16.msra.mxu1 %v10121_v36  ;;  %7028 = vmatpush.bf16.msra.mxu2 %v10313_v54  ;;  %v10441_v36 = vor.u32 %v12046_v24, %v10438_v4  ;;  %v11994_v54 = vld [vmem:[%s17222_s3 + $0x524] sm:$0xf]  ;;  %v10630_v24 = vld [vmem:[%s17222_s3 + $0x850] sm:$0xf0] }
 0x4b5   : > { %v10233_v47 = vor.u32 %v11994_v54, %v10230_v17  ;;  %v12078_v54 = vld [vmem:[%s17222_s3 + $0x7c4] sm:$0xf]  ;;  %v10374_v17 = vld [vmem:[%s17222_s3 + $0x650] sm:$0xf0] }
 0x4b6   : > { %v4148_v6 = vpop.f32.mrf.mxu2  ;;  %v4003_v34 = vpop.f32.mrf.mxu0  ;;  %v10614_v43 = vld [vmem:[%s17222_s3 + $0x830] sm:$0xf0] }
 0x4b7   : > { %v4222_v2 = vpop.f32.mrf.mxu3  ;;  %v4149_v12 = vadd.f32 %v4148_v6, %v4075_v3  ;;  %v4077_v33 = vpop.f32.mrf.mxu1  ;;  %v4004_v1 = vadd.f32 %v4003_v34, %v13907_v22  ;;  %v12106_v22 = vld [vmem:[%s17222_s3 + $0x8a4] sm:$0xf]  ;;  %v4687_v3 = vperm.slane %v14958_v42, 0  ;;  %v10796_v42 = vld [vmem:[%s17222_s3 + $0x988] sm:$0xf] }
 0x4b8   : > { %7019 = vmatpush.bf16.msra.mxu1 %v10105_v19  ;;  %7029 = vmatpush.bf16.msra.mxu2 %v10297_v28  ;;  %v10681_v32 = vor.u32 %v12106_v22, %v10678_v49  ;;  %v10662_v19 = vld [vmem:[%s17222_s3 + $0x890] sm:$0xf0]  ;;  %v11990_v6 = vld [vmem:[%s17222_s3 + $0x504] sm:$0xf] }
 0x4b9   : > { %v4223_v44 = vadd.f32 %v4222_v2, %v4149_v12  ;;  %v4078_v60 = vadd.f32 %v4077_v33, %v4004_v1  ;;  %v10214_v2 = vld [vmem:[%s17222_s3 + $0x510] sm:$0xf0]  ;;  %v12098_v34 = vld [vmem:[%s17222_s3 + $0x864] sm:$0xf] }
 0x4ba   : > { %v10406_v12 = vld [vmem:[%s17222_s3 + $0x690] sm:$0xf0]  ;;  %v10217_v14 = vor.u32 %v11990_v6, %v10214_v2 }
 0x4bb   : > { %v4253_v30 = vmax.f32 %v4223_v44, 0.0  ;;  %v10646_v33 = vld [vmem:[%s17222_s3 + $0x870] sm:$0xf0]  ;;  %v10409_v38 = vor.u32 %v12038_v51, %v10406_v12  ;;  %v10617_v51 = vor.u32 %v12090_v55, %v10614_v43  ;;  %v12174_v55 = vld [vmem:[%s17222_s3 + $0xac4] sm:$0xf] }
 0x4bc   : > { %7020 = vmatpush.bf16.msra.mxu1 %v10089_v16  ;;  %7030 = vmatpush.bf16.msra.mxu2 %v10281_v46  ;;  %v10822_v22 = vld [vmem:[%s17222_s3 + $0x9d0] sm:$0xf0] }
 0x4bd   : > { %v14924_v7 = vpack.c.bf16 %v4253_v30, %v4252_v59  ;;  %v10649_v59 = vor.u32 %v12098_v34, %v10646_v33  ;;  %v12034_v30 = vld [vmem:[%s17222_s3 + $0x664] sm:$0xf]  ;;  %v10550_v12 = vld [vmem:[%s17222_s3 + $0x7b0] sm:$0xf0] }
 0x4be   : > { %v4151_v11 = vpop.f32.mrf.mxu2  ;;  %v4005_v9 = vpop.f32.mrf.mxu0  ;;  %v12086_v33 = vld [vmem:[%s17222_s3 + $0x804] sm:$0xf]  ;;  %v10950_v43 = vld [vmem:[%s17222_s3 + $0xad0] sm:$0xf0] }
 0x4bf   : > { %v4225_v26 = vpop.f32.mrf.mxu3  ;;  %6937 = vmatmul.bf16.vlgmr.msra.gmra.mxu3 %v14924_v7  ;;  %6979 = vmatmul.bf16.vlgmr.msrb.gmra.mxu2 %v14086_v15  ;;  %v4079_v41 = vpop.f32.mrf.mxu1  ;;  %v4006_v62 = vadd.f32 %v4005_v9, %v13918_v13  ;;  %v12102_v13 = vld [vmem:[%s17222_s3 + $0x884] sm:$0xf]  ;;  %v4152_v28 = vadd.f32 %v4151_v11, %v4078_v60  ;;  %v10566_v60 = vld [vmem:[%s17222_s3 + $0x7d0] sm:$0xf0] }
 0x4c0   : > { %7069 = vmatpush.bf16.msrb.mxu1 %v10713_v45  ;;  %7031 = vmatpush.bf16.msra.mxu2 %v10265_v58  ;;  %v10665_v21 = vor.u32 %v12102_v13, %v10662_v19  ;;  %v12146_v45 = vld [vmem:[%s17222_s3 + $0x9e4] sm:$0xf] }
 0x4c1   : > { %7021 = vmatmul.bf16.vlgmr.msra.gmra.mxu1 %v14351_v52  ;;  %7041 = vmatpush.bf16.msra.mxu3 %v10457_v57  ;;  %v4080_v31 = vadd.f32 %v4079_v41, %v4006_v62  ;;  %v4226_v16 = vadd.f32 %v4225_v26, %v4152_v28  ;;  %v12082_v58 = vld [vmem:[%s17222_s3 + $0x7e4] sm:$0xf]  ;;  %v10841_v57 = vor.u32 %v12146_v45, %v10838_v61  ;;  %v11222_v61 = vld [vmem:[%s17222_s3 + $0xcf0] sm:$0xf0] }
 0x4c2   : > { %v12142_v26 = vld [vmem:[%s17222_s3 + $0x9c4] sm:$0xf]  ;;  %v10585_v49 = vor.u32 %v12082_v58, %v10582_v56 }
 0x4c3   : > { %v4254_v4 = vmax.f32 %v4226_v16, 0.0  ;;  %v12138_v28 = vld [vmem:[%s17222_s3 + $0x9a4] sm:$0xf]  ;;  %v10598_v16 = vld [vmem:[%s17222_s3 + $0x810] sm:$0xf0] }
 0x4c4   : > { %7070 = vmatpush.bf16.msrb.mxu1 %v10697_v8  ;;  %7032 = vmatpush.bf16.msra.mxu2 %v10249_v27  ;;  %v10390_v8 = vld [vmem:[%s17222_s3 + $0x670] sm:$0xf0]  ;;  %v10633_v27 = vor.u32 %v12094_v18, %v10630_v24  ;;  %v12242_v45 = vld [vmem:[%s17222_s3 + $0xce4] sm:$0xf] }
 0x4c5   : > { %7042 = vmatpush.bf16.msra.mxu3 %v10441_v36  ;;  %v10393_v41 = vor.u32 %v12034_v30, %v10390_v8  ;;  %v12030_v36 = vld [vmem:[%s17222_s3 + $0x644] sm:$0xf]  ;;  %v11225_v58 = vor.u32 %v12242_v45, %v11222_v61  ;;  %v10774_v18 = vld [vmem:[%s17222_s3 + $0x970] sm:$0xf0] }
 0x4c6   : > { %v4153_v40 = vpop.f32.mrf.mxu2  ;;  %v6784_v44 = vpop.f32.mrf.mxu0  ;;  %v10377_v2 = vor.u32 %v12030_v36, %v10374_v17  ;;  %v12022_v56 = vld [vmem:[%s17222_s3 + $0x604] sm:$0xf]  ;;  %v10518_v36 = vld [vmem:[%s17222_s3 + $0x770] sm:$0xf0] }
 0x4c7   : > { %v4227_v25 = vpop.f32.mrf.mxu3  ;;  %v4154_v46 = vadd.f32 %v4153_v40, %v4080_v31  ;;  %v6785_v63 = vadd.f32 %v6784_v44, %v4687_v3  ;;  %v6798_v29 = vpop.f32.mrf.mxu1  ;;  %v10358_v40 = vld [vmem:[%s17222_s3 + $0x630] sm:$0xf0]  ;;  %v12178_v24 = vld [vmem:[%s17222_s3 + $0xae4] sm:$0xf] }
 0x4c8   : > { %7071 = vmatpush.bf16.msrb.mxu1 %v10681_v32  ;;  %7033 = vmatpush.bf16.msra.mxu2 %v10233_v47  ;;  %v10825_v32 = vor.u32 %v12142_v26, %v10822_v22  ;;  %v10806_v47 = vld [vmem:[%s17222_s3 + $0x9b0] sm:$0xf0]  ;;  %v12238_v22 = vld [vmem:[%s17222_s3 + $0xcc4] sm:$0xf] }
 0x4c9   : > { %v4228_v23 = vadd.f32 %v4227_v25, %v4154_v46  ;;  %7043 = vmatpush.bf16.msra.mxu3 %v10425_v39  ;;  %v6799_v1 = vadd.f32 %v6798_v29, %v6785_v63  ;;  %v10569_v39 = vor.u32 %v12078_v54, %v10566_v60  ;;  %v12074_v25 = vld [vmem:[%s17222_s3 + $0x7a4] sm:$0xf]  ;;  %v10809_v34 = vor.u32 %v12138_v28, %v10806_v47  ;;  %v10790_v44 = vld [vmem:[%s17222_s3 + $0x990] sm:$0xf0] }
 0x4ca   : > { %v12134_v46 = vld [vmem:[%s17222_s3 + $0x984] sm:$0xf]  ;;  %v10601_v29 = vor.u32 %v12086_v33, %v10598_v16  ;;  %v10758_v17 = vld [vmem:[%s17222_s3 + $0x950] sm:$0xf0] }
 0x4cb   : > { %v4255_v11 = vmax.f32 %v4228_v23, 0.0  ;;  %v10793_v30 = vor.u32 %v12134_v46, %v10790_v44  ;;  %v12234_v47 = vld [vmem:[%s17222_s3 + $0xca4] sm:$0xf]  ;;  %v10934_v33 = vld [vmem:[%s17222_s3 + $0xab0] sm:$0xf0] }
 0x4cc   : > { %7072 = vmatpush.bf16.msrb.mxu1 %v10665_v21  ;;  %7034 = vmatpush.bf16.msra.mxu2 %v10217_v14  ;;  %v12026_v21 = vld [vmem:[%s17222_s3 + $0x624] sm:$0xf]  ;;  %v10553_v14 = vor.u32 %v12074_v25, %v10550_v12  ;;  %v10742_v12 = vld [vmem:[%s17222_s3 + $0x930] sm:$0xf0] }
 0x4cd   : > { %v15020_v9 = vpack.c.bf16 %v4255_v11, %v4254_v4  ;;  %7044 = vmatpush.bf16.msra.mxu3 %v10409_v38  ;;  %v10361_v23 = vor.u32 %v12026_v21, %v10358_v40  ;;  %v12070_v38 = vld [vmem:[%s17222_s3 + $0x784] sm:$0xf]  ;;  %v10966_v4 = vld [vmem:[%s17222_s3 + $0xaf0] sm:$0xf0] }
 0x4ce   : > { %v6812_v62 = vpop.f32.mrf.mxu2  ;;  %v15042_v19 = vpop.f32.mrf.mxu0  ;;  %v10969_v60 = vor.u32 %v12178_v24, %v10966_v4  ;;  %v12062_v21 = vld [vmem:[%s17222_s3 + $0x744] sm:$0xf]  ;;  %v11174_v44 = vld [vmem:[%s17222_s3 + $0xc90] sm:$0xf0] }
 0x4cf   : > { %v6813_v13 = vadd.f32 %v6812_v62, %v6799_v1  ;;  %6951 = vmatmul.bf16.vlgmr.msrb.gmra.mxu0 %v15020_v9  ;;  %6993 = vmatmul.bf16.vlgmr.msrb.gmra.mxu3 %v14190_v37  ;;  %v6826_v31 = vpop.f32.mrf.mxu3  ;;  %v15081_v63 = vpop.f32.mrf.mxu1  ;;  %v10342_v1 = vld [vmem:[%s17222_s3 + $0x610] sm:$0xf0]  ;;  %v12126_v62 = vld [vmem:[%s17222_s3 + $0x944] sm:$0xf] }
 0x4d0   : > { %7073 = vmatpush.bf16.msrb.mxu1 %v10649_v59  ;;  %7083 = vmatpush.bf16.msrb.mxu2 %v10841_v57  ;;  %v10534_v59 = vld [vmem:[%s17222_s3 + $0x790] sm:$0xf0]  ;;  %v12130_v57 = vld [vmem:[%s17222_s3 + $0x964] sm:$0xf] }
 0x4d1   : > { %7035 = vmatmul.bf16.vlgmr.msra.gmra.mxu2 %v14443_v5  ;;  %7055 = vmatpush.bf16.msrb.mxu0 %v10585_v49  ;;  %v6827_v6 = vadd.f32 %v6826_v31, %v6813_v13  ;;  %v10537_v26 = vor.u32 %v12070_v38, %v10534_v59  ;;  %v11206_v49 = vld [vmem:[%s17222_s3 + $0xcd0] sm:$0xf0]  ;;  %v10777_v54 = vor.u32 %v12130_v57, %v10774_v18  ;;  %v12122_v40 = vld [vmem:[%s17222_s3 + $0x924] sm:$0xf]  ;;  %v11861_v18 = vld [vmem:[%s17222_s3 + $0xf4] sm:$0xf0] }
 0x4d2   : > { %7045 = vmatpush.bf16.msra.mxu3 %v10393_v41  ;;  %v10345_v41 = vor.u32 %v12022_v56, %v10342_v1  ;;  %v11190_v31 = vld [vmem:[%s17222_s3 + $0xcb0] sm:$0xf0]  ;;  %v12230_v46 = vld [vmem:[%s17222_s3 + $0xc84] sm:$0xf] }
 0x4d3   : > { %v11193_v25 = vor.u32 %v12234_v47, %v11190_v31  ;;  %v12058_v45 = vld [vmem:[%s17222_s3 + $0x724] sm:$0xf]  ;;  %v10486_v61 = vld [vmem:[%s17222_s3 + $0x730] sm:$0xf0]  ;;  %v11177_v59 = vor.u32 %v12230_v46, %v11174_v44 }
 0x4d4   : > { %7074 = vmatpush.bf16.msrb.mxu1 %v10633_v27  ;;  %7084 = vmatpush.bf16.msrb.mxu2 %v10825_v32  ;;  %v12066_v27 = vld [vmem:[%s17222_s3 + $0x764] sm:$0xf]  ;;  %v11209_v32 = vor.u32 %v12238_v22, %v11206_v49  ;;  %v10726_v38 = vld [vmem:[%s17222_s3 + $0x910] sm:$0xf0]  ;;  %v10489_v1 = vor.u32 %v12058_v45, %v10486_v61 }
 0x4d5   : > { %7056 = vmatpush.bf16.msrb.mxu0 %v10569_v39  ;;  %v10521_v28 = vor.u32 %v12066_v27, %v10518_v36  ;;  %v12226_v56 = vld [vmem:[%s17222_s3 + $0xc64] sm:$0xf]  ;;  %v11158_v57 = vld [vmem:[%s17222_s3 + $0xc70] sm:$0xf0] }
 0x4d6   : > { %7046 = vmatpush.bf16.msra.mxu3 %v10377_v2  ;;  %v6840_v8 = vpop.f32.mrf.mxu0  ;;  %v10761_v2 = vor.u32 %v12126_v62, %v10758_v17  ;;  %v12054_v24 = vld [vmem:[%s17222_s3 + $0x704] sm:$0xf]  ;;  %v10470_v4 = vld [vmem:[%s17222_s3 + $0x710] sm:$0xf0]  ;;  %v9676_v17 = vld [vmem:[%s17222_s3 + $0xc8] sm:$0xf] }
 0x4d7   : > { %v6841_v11 = vadd.f32 %v6840_v8, %v6827_v6  ;;  %v10502_v6 = vld [vmem:[%s17222_s3 + $0x750] sm:$0xf0]  ;;  %v9692_v8 = vld [vmem:[%s17222_s3 + $0xe8] sm:$0xf]  ;;  %v12210_v22 = vld [vmem:[%s17222_s3 + $0xbe4] sm:$0xf]  ;;  %v10473_v62 = vor.u32 %v12054_v24, %v10470_v4 }
 0x4d8   : > { %7075 = vmatpush.bf16.msrb.mxu1 %v10617_v51  ;;  %7085 = vmatpush.bf16.msrb.mxu2 %v10809_v34  ;;  %v10953_v51 = vor.u32 %v12174_v55, %v10950_v43  ;;  %v12170_v34 = vld [vmem:[%s17222_s3 + $0xaa4] sm:$0xf]  ;;  %v10505_v16 = vor.u32 %v12062_v21, %v10502_v6  ;;  %v11094_v49 = vld [vmem:[%s17222_s3 + $0xbf0] sm:$0xf0]  ;;  %v9693_v27 = vor.u32 %v11861_v18, %v9692_v8  ;;  %v11857_v55 = vld [vmem:[%s17222_s3 + $0xd4] sm:$0xf0] }
 0x4d9   : > { %7057 = vmatpush.bf16.msrb.mxu0 %v10553_v14  ;;  %v10745_v14 = vor.u32 %v12122_v40, %v10742_v12  ;;  %v12162_v36 = vld [vmem:[%s17222_s3 + $0xa64] sm:$0xf]  ;;  %v11097_v43 = vor.u32 %v12210_v22, %v11094_v49  ;;  %v11078_v31 = vld [vmem:[%s17222_s3 + $0xbd0] sm:$0xf0]  ;;  %v9677_v6 = vor.u32 %v11857_v55, %v9676_v17  ;;  %v9660_v12 = vld [vmem:[%s17222_s3 + $0xa8] sm:$0xf] }
 0x4da   : > { %7047 = vmatpush.bf16.msra.mxu3 %v10361_v23  ;;  %v10937_v23 = vor.u32 %v12170_v34, %v10934_v33  ;;  %v12206_v47 = vld [vmem:[%s17222_s3 + $0xbc4] sm:$0xf]  ;;  %v11853_v34 = vld [vmem:[%s17222_s3 + $0xb4] sm:$0xf0]  ;;  %v11062_v44 = vld [vmem:[%s17222_s3 + $0xbb0] sm:$0xf0] }
 0x4db   : > { %v12218_v40 = vld [vmem:[%s17222_s3 + $0xc24] sm:$0xf]  ;;  %v11081_v33 = vor.u32 %v12206_v47, %v11078_v31  ;;  %v9661_v61 = vor.u32 %v11853_v34, %v9660_v12  ;;  %v11046_v24 = vld [vmem:[%s17222_s3 + $0xb90] sm:$0xf0]  ;;  %v9612_v31 = vld [vmem:[%s17222_s3 + $0x48] sm:$0xf]  ;;  %v15341_v34 = vpop.f32.mrf.mxu3 }
 0x4dc   : > { %7076 = vmatpush.bf16.msrb.mxu1 %v10601_v29  ;;  %7086 = vmatpush.bf16.msrb.mxu2 %v10793_v30  ;;  %v6854_v13 = vpop.f32.mrf.mxu1  ;;  %v12118_v29 = vld [vmem:[%s17222_s3 + $0x904] sm:$0xf]  ;;  %v10854_v49 = vld [vmem:[%s17222_s3 + $0xa10] sm:$0xf0]  ;;  %v11949_v12 = vld [vmem:[%s17222_s3 + $0x3b4] sm:$0xf0] }
 0x4dd   : > { %7058 = vmatpush.bf16.msrb.mxu0 %v10537_v26  ;;  %v15138_v39 = vadd.f32 %v6854_v13, %v6841_v11  ;;  %v12166_v30 = vld [vmem:[%s17222_s3 + $0xa84] sm:$0xf]  ;;  %v10729_v11 = vor.u32 %v12118_v29, %v10726_v38  ;;  %v15226_v13 = vpop.f32.mrf.mxu2  ;;  %v11110_v38 = vld [vmem:[%s17222_s3 + $0xc10] sm:$0xf0] }
 0x4de   : > { %7048 = vmatpush.bf16.msra.mxu3 %v10345_v41  ;;  %v11161_v41 = vor.u32 %v12226_v56, %v11158_v57  ;;  %v12202_v46 = vld [vmem:[%s17222_s3 + $0xba4] sm:$0xf]  ;;  %v10076_v56 = vld [vmem:[%s17222_s3 + $0x3e8] sm:$0xf] }
 0x4df   : > { %7077 = vmatmul.bf16.vlgmr.msrb.gmra.mxu1 %v14728_v53  ;;  %7007 = vmatmul.bf16.vlgmr.msra.gmra.mxu0 %v14277_v10  ;;  %v12214_v29 = vld [vmem:[%s17222_s3 + $0xc04] sm:$0xf] }
 0x4e0   : > { %7125 = vmatpush.bf16.msra.mxu1 %v11225_v58  ;;  %7087 = vmatpush.bf16.msrb.mxu2 %v10777_v54  ;;  %v10918_v58 = vld [vmem:[%s17222_s3 + $0xa90] sm:$0xf0]  ;;  %v12198_v18 = vld [vmem:[%s17222_s3 + $0xb84] sm:$0xf] }
 0x4e1   : > { %7049 = vmatmul.bf16.vlgmr.msra.gmra.mxu3 %v14541_v48  ;;  %7059 = vmatpush.bf16.msrb.mxu0 %v10521_v28  ;;  %v10921_v26 = vor.u32 %v12166_v30, %v10918_v58  ;;  %v10902_v54 = vld [vmem:[%s17222_s3 + $0xa70] sm:$0xf0]  ;;  %v11849_v30 = vld [vmem:[%s17222_s3 + $0x94] sm:$0xf0]  ;;  %v11065_v58 = vor.u32 %v12202_v46, %v11062_v44  ;;  %v12150_v22 = vld [vmem:[%s17222_s3 + $0xa04] sm:$0xf] }
 0x4e2   : > { %7097 = vmatpush.bf16.msrb.mxu3 %v10969_v60  ;;  %v12222_v60 = vld [vmem:[%s17222_s3 + $0xc44] sm:$0xf]  ;;  %v10905_v28 = vor.u32 %v12162_v36, %v10902_v54  ;;  %v9820_v36 = vld [vmem:[%s17222_s3 + $0x1e8] sm:$0xf]  ;;  %v11893_v54 = vld [vmem:[%s17222_s3 + $0x1f4] sm:$0xf0]  ;;  %v10857_v17 = vor.u32 %v12150_v22, %v10854_v49 }
 0x4e3   : > { %v12194_v55 = vld [vmem:[%s17222_s3 + $0xb64] sm:$0xf]  ;;  %v9821_v47 = vor.u32 %v11893_v54, %v9820_v36  ;;  %v10012_v22 = vld [vmem:[%s17222_s3 + $0x368] sm:$0xf] }
 0x4e4   : > { %7126 = vmatpush.bf16.msra.mxu1 %v11209_v32  ;;  %7088 = vmatpush.bf16.msrb.mxu2 %v10761_v2  ;;  %v11142_v32 = vld [vmem:[%s17222_s3 + $0xc50] sm:$0xf0]  ;;  %v12158_v2 = vld [vmem:[%s17222_s3 + $0xa44] sm:$0xf] }
 0x4e5   : > { %7060 = vmatpush.bf16.msrb.mxu0 %v10505_v16  ;;  %v11145_v21 = vor.u32 %v12222_v60, %v11142_v32  ;;  %v11049_v60 = vor.u32 %v12198_v18, %v11046_v24  ;;  %v11953_v32 = vld [vmem:[%s17222_s3 + $0x3d4] sm:$0xf0]  ;;  %v12182_v54 = vld [vmem:[%s17222_s3 + $0xb04] sm:$0xf] }
 0x4e6   : > { %7098 = vmatpush.bf16.msrb.mxu3 %v10953_v51  ;;  %v10886_v51 = vld [vmem:[%s17222_s3 + $0xa50] sm:$0xf0]  ;;  %v11833_v18 = vld [vmem:[%s17222_s3 + $0x14] sm:$0xf0] }
 0x4e7   : > { %v10889_v16 = vor.u32 %v12158_v2, %v10886_v51  ;;  %v9804_v2 = vld [vmem:[%s17222_s3 + $0x1c8] sm:$0xf]  ;;  %v11889_v51 = vld [vmem:[%s17222_s3 + $0x1d4] sm:$0xf0] }
 0x4e8   : > { %7127 = vmatpush.bf16.msra.mxu1 %v11193_v25  ;;  %7089 = vmatpush.bf16.msrb.mxu2 %v10745_v14  ;;  %v11126_v25 = vld [vmem:[%s17222_s3 + $0xc30] sm:$0xf0]  ;;  %v12154_v14 = vld [vmem:[%s17222_s3 + $0xa24] sm:$0xf]  ;;  %v9805_v44 = vor.u32 %v11889_v51, %v9804_v2  ;;  %v11937_v51 = vld [vmem:[%s17222_s3 + $0x354] sm:$0xf0] }
 0x4e9   : > { %7061 = vmatpush.bf16.msrb.mxu0 %v10489_v1  ;;  %v11129_v45 = vor.u32 %v12218_v40, %v11126_v25  ;;  %v11957_v1 = vld [vmem:[%s17222_s3 + $0x3f4] sm:$0xf0]  ;;  %v10044_v25 = vld [vmem:[%s17222_s3 + $0x3a8] sm:$0xf] }
 0x4ea   : > { %7099 = vmatpush.bf16.msrb.mxu3 %v10937_v23  ;;  %v10870_v23 = vld [vmem:[%s17222_s3 + $0xa30] sm:$0xf0] }
 0x4eb   : > { %v10873_v8 = vor.u32 %v12154_v14, %v10870_v23  ;;  %v11837_v14 = vld [vmem:[%s17222_s3 + $0x34] sm:$0xf0]  ;;  %v9788_v23 = vld [vmem:[%s17222_s3 + $0x1a8] sm:$0xf] }
 0x4ec   : > { %7128 = vmatpush.bf16.msra.mxu1 %v11177_v59  ;;  %7090 = vmatpush.bf16.msrb.mxu2 %v10729_v11  ;;  %v9644_v59 = vld [vmem:[%s17222_s3 + $0x88] sm:$0xf]  ;;  %v11113_v11 = vor.u32 %v12214_v29, %v11110_v38  ;;  %v11885_v29 = vld [vmem:[%s17222_s3 + $0x1b4] sm:$0xf0] }
 0x4ed   : > { %7062 = vmatpush.bf16.msrb.mxu0 %v10473_v62  ;;  %v10060_v62 = vld [vmem:[%s17222_s3 + $0x3c8] sm:$0xf] }
 0x4ee   : > { %7100 = vmatpush.bf16.msrb.mxu3 %v10921_v26  ;;  %v9645_v26 = vor.u32 %v11849_v30, %v9644_v59  ;;  %v10028_v59 = vld [vmem:[%s17222_s3 + $0x388] sm:$0xf]  ;;  %v11945_v30 = vld [vmem:[%s17222_s3 + $0x394] sm:$0xf0] }
 0x4ef   : > { %7091 = vmatmul.bf16.vlgmr.msrb.gmra.mxu2 %v14793_v35  ;;  %v10029_v24 = vor.u32 %v11945_v30, %v10028_v59  ;;  %v11981_v59 = vld [vmem:[%s17222_s3 + $0x4b4] sm:$0xf0] }
 0x4f0   : > { %7129 = vmatpush.bf16.msra.mxu1 %v11161_v41  ;;  %7139 = vmatpush.bf16.msra.mxu2 %v9693_v27  ;;  %v9628_v41 = vld [vmem:[%s17222_s3 + $0x68] sm:$0xf]  ;;  %v10077_v27 = vor.u32 %v11957_v1, %v10076_v56  ;;  %v10998_v56 = vld [vmem:[%s17222_s3 + $0xb30] sm:$0xf0] }
 0x4f1   : > { %7111 = vmatpush.bf16.msra.mxu0 %v11097_v43  ;;  %v11030_v43 = vld [vmem:[%s17222_s3 + $0xb70] sm:$0xf0] }
 0x4f2   : > { %7101 = vmatpush.bf16.msrb.mxu3 %v10905_v28  ;;  %7063 = vmatmul.bf16.vlgmr.msrb.gmra.mxu0 %v14643_v50  ;;  %v6868_v57 = vpop.f32.mrf.mxu2  ;;  %v11033_v40 = vor.u32 %v12194_v55, %v11030_v43  ;;  %v9948_v55 = vld [vmem:[%s17222_s3 + $0x2e8] sm:$0xf]  ;;  %v11925_v43 = vld [vmem:[%s17222_s3 + $0x2f4] sm:$0xf0] }
 0x4f3   : > { %v15291_v4 = vadd.f32 %v6868_v57, %v15138_v39  ;;  %v11845_v39 = vld [vmem:[%s17222_s3 + $0x74] sm:$0xf0]  ;;  %v9789_v57 = vor.u32 %v11885_v29, %v9788_v23  ;;  %v9980_v23 = vld [vmem:[%s17222_s3 + $0x328] sm:$0xf] }
 0x4f4   : > { %7130 = vmatpush.bf16.msra.mxu1 %v11145_v21  ;;  %7140 = vmatpush.bf16.msra.mxu2 %v9677_v6  ;;  %v9629_v28 = vor.u32 %v11845_v39, %v9628_v41  ;;  %v10061_v21 = vor.u32 %v11953_v32, %v10060_v62  ;;  %v11841_v6 = vld [vmem:[%s17222_s3 + $0x54] sm:$0xf0] }
 0x4f5   : > { %7112 = vmatpush.bf16.msra.mxu0 %v11081_v33  ;;  %v12190_v33 = vld [vmem:[%s17222_s3 + $0xb44] sm:$0xf]  ;;  %v9613_v46 = vor.u32 %v11841_v6, %v9612_v31  ;;  %v11941_v41 = vld [vmem:[%s17222_s3 + $0x374] sm:$0xf0]  ;;  %v9996_v6 = vld [vmem:[%s17222_s3 + $0x348] sm:$0xf] }
 0x4f6   : > { %7102 = vmatpush.bf16.msrb.mxu3 %v10889_v16  ;;  %v11014_v16 = vld [vmem:[%s17222_s3 + $0xb50] sm:$0xf0]  ;;  %v11989_v39 = vld [vmem:[%s17222_s3 + $0x4f4] sm:$0xf0] }
 0x4f7   : > { %v11017_v38 = vor.u32 %v12190_v33, %v11014_v16  ;;  %v9932_v16 = vld [vmem:[%s17222_s3 + $0x2c8] sm:$0xf]  ;;  %v11933_v29 = vld [vmem:[%s17222_s3 + $0x334] sm:$0xf0] }
 0x4f8   : > { %7131 = vmatpush.bf16.msra.mxu1 %v11129_v45  ;;  %7141 = vmatpush.bf16.msra.mxu2 %v9661_v61  ;;  %v9596_v45 = vld [vmem:[%s17222_s3 + $0x28] sm:$0xf]  ;;  %v10045_v61 = vor.u32 %v11949_v12, %v10044_v25  ;;  %v11985_v25 = vld [vmem:[%s17222_s3 + $0x4d4] sm:$0xf0]  ;;  %v9949_v12 = vor.u32 %v11925_v43, %v9948_v55 }
 0x4f9   : > { %7113 = vmatpush.bf16.msra.mxu0 %v11065_v58  ;;  %v12186_v58 = vld [vmem:[%s17222_s3 + $0xb24] sm:$0xf]  ;;  %v9597_v1 = vor.u32 %v11837_v14, %v9596_v45  ;;  %v11873_v14 = vld [vmem:[%s17222_s3 + $0x154] sm:$0xf0]  ;;  %v9708_v43 = vld [vmem:[%s17222_s3 + $0x108] sm:$0xf] }
 0x4fa   : > { %7103 = vmatpush.bf16.msrb.mxu3 %v10873_v8  ;;  %v9580_v8 = vld [vmem:[%s17222_s3 + $0x8] sm:$0xf]  ;;  %v11001_v49 = vor.u32 %v12186_v58, %v10998_v56 }
 0x4fb   : > { %v9581_v32 = vor.u32 %v11833_v18, %v9580_v8  ;;  %v9916_v56 = vld [vmem:[%s17222_s3 + $0x2a8] sm:$0xf]  ;;  %v9981_v8 = vor.u32 %v11933_v29, %v9980_v23  ;;  %v11969_v23 = vld [vmem:[%s17222_s3 + $0x454] sm:$0xf0] }
 0x4fc   : > { %7132 = vmatpush.bf16.msra.mxu1 %v11113_v11  ;;  %7142 = vmatpush.bf16.msra.mxu2 %v9645_v26  ;;  %v9772_v11 = vld [vmem:[%s17222_s3 + $0x188] sm:$0xf]  ;;  %v11881_v26 = vld [vmem:[%s17222_s3 + $0x194] sm:$0xf0] }
 0x4fd   : > { %7114 = vmatpush.bf16.msra.mxu0 %v11049_v60  ;;  %v10982_v60 = vld [vmem:[%s17222_s3 + $0xb10] sm:$0xf0]  ;;  %v10316_v29 = vld [vmem:[%s17222_s3 + $0x5c8] sm:$0xf] }
 0x4fe   : > { %7104 = vmatpush.bf16.msrb.mxu3 %v10857_v17  ;;  %v9773_v17 = vor.u32 %v11881_v26, %v9772_v11  ;;  %v10985_v2 = vor.u32 %v12182_v54, %v10982_v60  ;;  %v11869_v11 = vld [vmem:[%s17222_s3 + $0x134] sm:$0xf0]  ;;  %v9964_v26 = vld [vmem:[%s17222_s3 + $0x308] sm:$0xf] }
 0x4ff   : > { %7133 = vmatmul.bf16.vlgmr.msra.gmra.mxu1 %v15020_v9  ;;  %v12085_v54 = vld [vmem:[%s17222_s3 + $0x7f4] sm:$0xf0] }
 0x500   : > { %7181 = vmatpush.bf16.msrb.mxu1 %v10077_v27  ;;  %7143 = vmatpush.bf16.msra.mxu2 %v9629_v28  ;;  %v10204_v27 = vld [vmem:[%s17222_s3 + $0x4e8] sm:$0xf]  ;;  %v15412_v28 = vpop.f32.mrf.mxu0 }
 0x501   : > { %7105 = vmatmul.bf16.vlgmr.msrb.gmra.mxu3 %v14858_v0  ;;  %7115 = vmatpush.bf16.msra.mxu0 %v11033_v40  ;;  %v10205_v31 = vor.u32 %v11989_v39, %v10204_v27  ;;  %v10188_v40 = vld [vmem:[%s17222_s3 + $0x4c8] sm:$0xf]  ;;  %v11977_v27 = vld [vmem:[%s17222_s3 + $0x494] sm:$0xf0] }
 0x502   : > { %7153 = vmatpush.bf16.msra.mxu3 %v9821_v47  ;;  %v6882_v36 = vpop.f32.mrf.mxu3  ;;  %v10013_v47 = vor.u32 %v11941_v41, %v10012_v22  ;;  %v10189_v45 = vor.u32 %v11985_v25, %v10188_v40  ;;  %v10156_v41 = vld [vmem:[%s17222_s3 + $0x488] sm:$0xf]  ;;  %v12081_v25 = vld [vmem:[%s17222_s3 + $0x7d4] sm:$0xf0] }
 0x503   : > { %v6883_v62 = vadd.f32 %v6882_v36, %v15291_v4  ;;  %v11877_v4 = vld [vmem:[%s17222_s3 + $0x174] sm:$0xf0]  ;;  %v10588_v36 = vld [vmem:[%s17222_s3 + $0x7e8] sm:$0xf]  ;;  %v10157_v55 = vor.u32 %v11977_v27, %v10156_v41 }
 0x504   : > { %7182 = vmatpush.bf16.msrb.mxu1 %v10061_v21  ;;  %7144 = vmatpush.bf16.msra.mxu2 %v9613_v46  ;;  %v9756_v21 = vld [vmem:[%s17222_s3 + $0x168] sm:$0xf]  ;;  %v11921_v46 = vld [vmem:[%s17222_s3 + $0x2d4] sm:$0xf0] }
 0x505   : > { %7116 = vmatpush.bf16.msra.mxu0 %v11017_v38  ;;  %v9757_v33 = vor.u32 %v11877_v4, %v9756_v21  ;;  %v10172_v38 = vld [vmem:[%s17222_s3 + $0x4a8] sm:$0xf]  ;;  %v9933_v30 = vor.u32 %v11921_v46, %v9932_v16  ;;  %v10589_v21 = vor.u32 %v12085_v54, %v10588_v36  ;;  %v11973_v4 = vld [vmem:[%s17222_s3 + $0x474] sm:$0xf0]  ;;  %v15526_v46 = vpop.f32.mrf.mxu1 }
 0x506   : > { %7154 = vmatpush.bf16.msra.mxu3 %v9805_v44  ;;  %v9997_v44 = vor.u32 %v11937_v51, %v9996_v6  ;;  %v10173_v18 = vor.u32 %v11981_v59, %v10172_v38  ;;  %v10332_v6 = vld [vmem:[%s17222_s3 + $0x5e8] sm:$0xf]  ;;  %v11909_v16 = vld [vmem:[%s17222_s3 + $0x274] sm:$0xf0] }
 0x507   : > { %v10572_v40 = vld [vmem:[%s17222_s3 + $0x7c8] sm:$0xf]  ;;  %v12017_v38 = vld [vmem:[%s17222_s3 + $0x5d4] sm:$0xf0] }
 0x508   : > { %7183 = vmatpush.bf16.msrb.mxu1 %v10045_v61  ;;  %7145 = vmatpush.bf16.msra.mxu2 %v9597_v1  ;;  %v9740_v61 = vld [vmem:[%s17222_s3 + $0x148] sm:$0xf]  ;;  %v11917_v1 = vld [vmem:[%s17222_s3 + $0x2b4] sm:$0xf0] }
 0x509   : > { %7117 = vmatpush.bf16.msra.mxu0 %v11001_v49  ;;  %v9741_v58 = vor.u32 %v11873_v14, %v9740_v61  ;;  %v11929_v49 = vld [vmem:[%s17222_s3 + $0x314] sm:$0xf0]  ;;  %v9917_v39 = vor.u32 %v11917_v1, %v9916_v56  ;;  %v10124_v61 = vld [vmem:[%s17222_s3 + $0x448] sm:$0xf]  ;;  %v10573_v14 = vor.u32 %v12081_v25, %v10572_v40 }
 0x50a   : > { %7155 = vmatpush.bf16.msra.mxu3 %v9789_v57  ;;  %v9868_v56 = vld [vmem:[%s17222_s3 + $0x248] sm:$0xf]  ;;  %v11905_v1 = vld [vmem:[%s17222_s3 + $0x254] sm:$0xf0] }
 0x50b   : > { %v9869_v41 = vor.u32 %v11905_v1, %v9868_v56  ;;  %v10540_v27 = vld [vmem:[%s17222_s3 + $0x788] sm:$0xf]  ;;  %v11901_v54 = vld [vmem:[%s17222_s3 + $0x234] sm:$0xf0] }
 0x50c   : > { %7184 = vmatpush.bf16.msrb.mxu1 %v10029_v24  ;;  %7146 = vmatpush.bf16.msra.mxu2 %v9581_v32  ;;  %v6896_v57 = vpop.f32.mrf.mxu0  ;;  %v9724_v24 = vld [vmem:[%s17222_s3 + $0x128] sm:$0xf]  ;;  %v11913_v32 = vld [vmem:[%s17222_s3 + $0x294] sm:$0xf0] }
 0x50d   : > { %7118 = vmatpush.bf16.msra.mxu0 %v10985_v2  ;;  %v15473_v22 = vadd.f32 %v6896_v57, %v6883_v62  ;;  %v9725_v60 = vor.u32 %v11869_v11, %v9724_v24  ;;  %v9900_v62 = vld [vmem:[%s17222_s3 + $0x288] sm:$0xf]  ;;  %v12021_v2 = vld [vmem:[%s17222_s3 + $0x5f4] sm:$0xf0]  ;;  %v10125_v57 = vor.u32 %v11969_v23, %v10124_v61 }
 0x50e   : > { %7156 = vmatpush.bf16.msra.mxu3 %v9773_v17  ;;  %v9965_v17 = vor.u32 %v11929_v49, %v9964_v26  ;;  %v9901_v51 = vor.u32 %v11913_v32, %v9900_v62  ;;  %v11965_v11 = vld [vmem:[%s17222_s3 + $0x434] sm:$0xf0]  ;;  %v10300_v26 = vld [vmem:[%s17222_s3 + $0x5a8] sm:$0xf] }
 0x50f   : > { %7147 = vmatmul.bf16.vlgmr.msra.gmra.mxu2 %v13977_v20  ;;  %v12013_v49 = vld [vmem:[%s17222_s3 + $0x5b4] sm:$0xf0]  ;;  %v9852_v36 = vld [vmem:[%s17222_s3 + $0x228] sm:$0xf] }
 0x510   : > { %7185 = vmatpush.bf16.msrb.mxu1 %v10013_v47  ;;  %7195 = vmatpush.bf16.msrb.mxu2 %v10205_v31  ;;  %v11865_v47 = vld [vmem:[%s17222_s3 + $0x114] sm:$0xf0]  ;;  %v10140_v31 = vld [vmem:[%s17222_s3 + $0x468] sm:$0xf]  ;;  %v10301_v32 = vor.u32 %v12013_v49, %v10300_v26 }
 0x511   : > { %7167 = vmatpush.bf16.msrb.mxu0 %v9949_v12  ;;  %v9709_v12 = vor.u32 %v11865_v47, %v9708_v43  ;;  %v9836_v40 = vld [vmem:[%s17222_s3 + $0x208] sm:$0xf]  ;;  %v11897_v25 = vld [vmem:[%s17222_s3 + $0x214] sm:$0xf0] }
 0x512   : > { %7157 = vmatpush.bf16.msra.mxu3 %v9757_v33  ;;  %7119 = vmatmul.bf16.vlgmr.msra.gmra.mxu0 %v14924_v7  ;;  %v9884_v33 = vld [vmem:[%s17222_s3 + $0x268] sm:$0xf]  ;;  %v12005_v23 = vld [vmem:[%s17222_s3 + $0x574] sm:$0xf0] }
 0x513   : > { %v9885_v59 = vor.u32 %v11909_v16, %v9884_v33  ;;  %v10460_v16 = vld [vmem:[%s17222_s3 + $0x6e8] sm:$0xf]  ;;  %v12001_v26 = vld [vmem:[%s17222_s3 + $0x554] sm:$0xf0] }
 0x514   : > { %7186 = vmatpush.bf16.msrb.mxu1 %v9997_v44  ;;  %7196 = vmatpush.bf16.msrb.mxu2 %v10189_v45  ;;  %v10141_v44 = vor.u32 %v11973_v4, %v10140_v31  ;;  %v10333_v45 = vor.u32 %v12021_v2, %v10332_v6  ;;  %v10284_v31 = vld [vmem:[%s17222_s3 + $0x588] sm:$0xf]  ;;  %v9853_v6 = vor.u32 %v11901_v54, %v9852_v36 }
 0x515   : > { %7168 = vmatpush.bf16.msrb.mxu0 %v9933_v30  ;;  %v10556_v30 = vld [vmem:[%s17222_s3 + $0x7a8] sm:$0xf] }
 0x516   : > { %7158 = vmatpush.bf16.msra.mxu3 %v9741_v58  ;;  %v12077_v58 = vld [vmem:[%s17222_s3 + $0x7b4] sm:$0xf0]  ;;  %v10524_v4 = vld [vmem:[%s17222_s3 + $0x768] sm:$0xf] }
 0x517   : > { %v10557_v24 = vor.u32 %v12077_v58, %v10556_v30  ;;  %v10716_v2 = vld [vmem:[%s17222_s3 + $0x8e8] sm:$0xf]  ;;  %v12113_v58 = vld [vmem:[%s17222_s3 + $0x8d4] sm:$0xf0] }
 0x518   : > { %7187 = vmatpush.bf16.msrb.mxu1 %v9981_v8  ;;  %7197 = vmatpush.bf16.msrb.mxu2 %v10173_v18  ;;  %v10317_v8 = vor.u32 %v12017_v38, %v10316_v29  ;;  %v10108_v18 = vld [vmem:[%s17222_s3 + $0x428] sm:$0xf]  ;;  %v9837_v38 = vor.u32 %v11897_v25, %v9836_v40  ;;  %v12213_v40 = vld [vmem:[%s17222_s3 + $0xbf4] sm:$0xf0] }
 0x519   : > { %7169 = vmatpush.bf16.msrb.mxu0 %v9917_v39  ;;  %v12073_v39 = vld [vmem:[%s17222_s3 + $0x794] sm:$0xf0]  ;;  %v10109_v62 = vor.u32 %v11965_v11, %v10108_v18  ;;  %v10508_v29 = vld [vmem:[%s17222_s3 + $0x748] sm:$0xf] }
 0x51a   : > { %7159 = vmatpush.bf16.msra.mxu3 %v9725_v60  ;;  %v10541_v47 = vor.u32 %v12073_v39, %v10540_v27  ;;  %v10700_v30 = vld [vmem:[%s17222_s3 + $0x8c8] sm:$0xf]  ;;  %v12109_v39 = vld [vmem:[%s17222_s3 + $0x8b4] sm:$0xf0] }
 0x51b   : > { %v10252_v11 = vld [vmem:[%s17222_s3 + $0x548] sm:$0xf] }
 0x51c   : > { %7188 = vmatpush.bf16.msrb.mxu1 %v9965_v17  ;;  %7198 = vmatpush.bf16.msrb.mxu2 %v10157_v55  ;;  %v6910_v60 = vpop.f32.mrf.mxu1  ;;  %v10092_v17 = vld [vmem:[%s17222_s3 + $0x408] sm:$0xf]  ;;  %v11961_v55 = vld [vmem:[%s17222_s3 + $0x414] sm:$0xf0]  ;;  %v10253_v54 = vor.u32 %v12001_v26, %v10252_v11 }
 0x51d   : > { %7170 = vmatpush.bf16.msrb.mxu0 %v9901_v51  ;;  %v15585_v43 = vadd.f32 %v6910_v60, %v15473_v22  ;;  %v12069_v22 = vld [vmem:[%s17222_s3 + $0x774] sm:$0xf0]  ;;  %v10492_v49 = vld [vmem:[%s17222_s3 + $0x728] sm:$0xf] }
 0x51e   : > { %7160 = vmatpush.bf16.msra.mxu3 %v9709_v12  ;;  %v12117_v51 = vld [vmem:[%s17222_s3 + $0x8f4] sm:$0xf0]  ;;  %v10093_v12 = vor.u32 %v11961_v55, %v10092_v17  ;;  %v10684_v27 = vld [vmem:[%s17222_s3 + $0x8a8] sm:$0xf] }
 0x51f   : > { %7189 = vmatmul.bf16.vlgmr.msrb.gmra.mxu1 %v14277_v10  ;;  %v10717_v61 = vor.u32 %v12117_v51, %v10716_v2  ;;  %v10428_v60 = vld [vmem:[%s17222_s3 + $0x6a8] sm:$0xf]  ;;  %v10685_v17 = vor.u32 %v12109_v39, %v10684_v27  ;;  %v12145_v39 = vld [vmem:[%s17222_s3 + $0x9d4] sm:$0xf0] }
 0x520   : > { %7237 = vmatpush.bf16.msra.mxu1 %v10589_v21  ;;  %7199 = vmatpush.bf16.msrb.mxu2 %v10141_v44  ;;  %v12009_v21 = vld [vmem:[%s17222_s3 + $0x594] sm:$0xf0]  ;;  %v10236_v55 = vld [vmem:[%s17222_s3 + $0x528] sm:$0xf] }
 0x521   : > { %7161 = vmatmul.bf16.vlgmr.msra.gmra.mxu3 %v14086_v15  ;;  %7171 = vmatpush.bf16.msrb.mxu0 %v9885_v59  ;;  %v10285_v33 = vor.u32 %v12009_v21, %v10284_v31  ;;  %v12053_v44 = vld [vmem:[%s17222_s3 + $0x6f4] sm:$0xf0]  ;;  %v10476_v31 = vld [vmem:[%s17222_s3 + $0x708] sm:$0xf]  ;;  %v15675_v21 = vpop.f32.mrf.mxu2 }
 0x522   : > { %7209 = vmatpush.bf16.msrb.mxu3 %v10333_v45  ;;  %v10525_v45 = vor.u32 %v12069_v22, %v10524_v4  ;;  %v12065_v59 = vld [vmem:[%s17222_s3 + $0x754] sm:$0xf0]  ;;  %v10461_v56 = vor.u32 %v12053_v44, %v10460_v16  ;;  %v11100_v51 = vld [vmem:[%s17222_s3 + $0xbe8] sm:$0xf] }
 0x523   : > { %v10509_v18 = vor.u32 %v12065_v59, %v10508_v29  ;;  %v12057_v4 = vld [vmem:[%s17222_s3 + $0x714] sm:$0xf0]  ;;  %v10636_v11 = vld [vmem:[%s17222_s3 + $0x848] sm:$0xf] }
 0x524   : > { %7238 = vmatpush.bf16.msra.mxu1 %v10573_v14  ;;  %7200 = vmatpush.bf16.msrb.mxu2 %v10125_v57  ;;  %v10268_v14 = vld [vmem:[%s17222_s3 + $0x568] sm:$0xf]  ;;  %v12105_v22 = vld [vmem:[%s17222_s3 + $0x894] sm:$0xf0]  ;;  %v10477_v16 = vor.u32 %v12057_v4, %v10476_v31 }
 0x525   : > { %7172 = vmatpush.bf16.msrb.mxu0 %v9869_v41  ;;  %v10269_v1 = vor.u32 %v12005_v23, %v10268_v14  ;;  %v10444_v57 = vld [vmem:[%s17222_s3 + $0x6c8] sm:$0xf]  ;;  %v12061_v41 = vld [vmem:[%s17222_s3 + $0x734] sm:$0xf0]  ;;  %v11101_v23 = vor.u32 %v12213_v40, %v11100_v51 }
 0x526   : > { %7210 = vmatpush.bf16.msrb.mxu3 %v10317_v8  ;;  %v12049_v8 = vld [vmem:[%s17222_s3 + $0x6d4] sm:$0xf0]  ;;  %v10652_v14 = vld [vmem:[%s17222_s3 + $0x868] sm:$0xf] }
 0x527   : > { %v10445_v36 = vor.u32 %v12049_v8, %v10444_v57  ;;  %v12101_v29 = vld [vmem:[%s17222_s3 + $0x874] sm:$0xf0]  ;;  %v10396_v57 = vld [vmem:[%s17222_s3 + $0x668] sm:$0xf] }
 0x528   : > { %7239 = vmatpush.bf16.msra.mxu1 %v10557_v24  ;;  %7201 = vmatpush.bf16.msrb.mxu2 %v10109_v62  ;;  %v10701_v24 = vor.u32 %v12113_v58, %v10700_v30  ;;  %v12045_v62 = vld [vmem:[%s17222_s3 + $0x6b4] sm:$0xf0]  ;;  %v11084_v58 = vld [vmem:[%s17222_s3 + $0xbc8] sm:$0xf] }
 0x529   : > { %7173 = vmatpush.bf16.msrb.mxu0 %v9853_v6  ;;  %v10668_v6 = vld [vmem:[%s17222_s3 + $0x888] sm:$0xf]  ;;  %v10429_v2 = vor.u32 %v12045_v62, %v10428_v60  ;;  %v12149_v59 = vld [vmem:[%s17222_s3 + $0x9f4] sm:$0xf0] }
 0x52a   : > { %7211 = vmatpush.bf16.msrb.mxu3 %v10301_v32  ;;  %v10493_v32 = vor.u32 %v12061_v41, %v10492_v49  ;;  %v10669_v44 = vor.u32 %v12105_v22, %v10668_v6  ;;  %v12037_v8 = vld [vmem:[%s17222_s3 + $0x674] sm:$0xf0]  ;;  %v10828_v27 = vld [vmem:[%s17222_s3 + $0x9c8] sm:$0xf] }
 0x52b   : > { %v12097_v41 = vld [vmem:[%s17222_s3 + $0x854] sm:$0xf0]  ;;  %v11068_v60 = vld [vmem:[%s17222_s3 + $0xba8] sm:$0xf] }
 0x52c   : > { %7240 = vmatpush.bf16.msra.mxu1 %v10541_v47  ;;  %7202 = vmatpush.bf16.msrb.mxu2 %v10093_v12  ;;  %v11997_v47 = vld [vmem:[%s17222_s3 + $0x534] sm:$0xf0]  ;;  %v10412_v12 = vld [vmem:[%s17222_s3 + $0x688] sm:$0xf] }
 0x52d   : > { %7174 = vmatpush.bf16.msrb.mxu0 %v9837_v38  ;;  %v10237_v25 = vor.u32 %v11997_v47, %v10236_v55  ;;  %v10844_v38 = vld [vmem:[%s17222_s3 + $0x9e8] sm:$0xf]  ;;  %v12205_v62 = vld [vmem:[%s17222_s3 + $0xbb4] sm:$0xf0]  ;;  %v10829_v55 = vor.u32 %v12145_v39, %v10828_v27 }
 0x52e   : > { %7212 = vmatpush.bf16.msrb.mxu3 %v10285_v33  ;;  %v12041_v33 = vld [vmem:[%s17222_s3 + $0x694] sm:$0xf0]  ;;  %v10620_v47 = vld [vmem:[%s17222_s3 + $0x828] sm:$0xf]  ;;  %v11069_v31 = vor.u32 %v12205_v62, %v11068_v60 }
 0x52f   : > { %7203 = vmatmul.bf16.vlgmr.msrb.gmra.mxu2 %v14351_v52  ;;  %v10413_v30 = vor.u32 %v12041_v33, %v10412_v12  ;;  %v12093_v4 = vld [vmem:[%s17222_s3 + $0x834] sm:$0xf0]  ;;  %v10812_v6 = vld [vmem:[%s17222_s3 + $0x9a8] sm:$0xf]  ;;  %v6787_v33 = vadd.f32 %v15042_v19, %v4687_v3 }
 0x530   : > { %7241 = vmatpush.bf16.msra.mxu1 %v10525_v45  ;;  %7251 = vmatpush.bf16.msra.mxu2 %v10717_v61  ;;  %v10220_v45 = vld [vmem:[%s17222_s3 + $0x508] sm:$0xf]  ;;  %v11993_v61 = vld [vmem:[%s17222_s3 + $0x514] sm:$0xf0] }
 0x531   : > { %7223 = vmatpush.bf16.msra.mxu0 %v10461_v56  ;;  %v12209_v56 = vld [vmem:[%s17222_s3 + $0xbd4] sm:$0xf0]  ;;  %v11052_v51 = vld [vmem:[%s17222_s3 + $0xb88] sm:$0xf] }
 0x532   : > { %7213 = vmatpush.bf16.msrb.mxu3 %v10269_v1  ;;  %7175 = vmatmul.bf16.vlgmr.msrb.gmra.mxu0 %v14190_v37  ;;  %v10221_v1 = vor.u32 %v11993_v61, %v10220_v45  ;;  %v6924_v26 = vpop.f32.mrf.mxu2  ;;  %v11085_v49 = vor.u32 %v12209_v56, %v11084_v58  ;;  %v12141_v22 = vld [vmem:[%s17222_s3 + $0x9b4] sm:$0xf0]  ;;  %v10604_v45 = vld [vmem:[%s17222_s3 + $0x808] sm:$0xf] }
 0x533   : > { %v12201_v40 = vld [vmem:[%s17222_s3 + $0xb94] sm:$0xf0]  ;;  %v11036_v19 = vld [vmem:[%s17222_s3 + $0xb68] sm:$0xf] }
 0x534   : > { %7242 = vmatpush.bf16.msra.mxu1 %v10509_v18  ;;  %7252 = vmatpush.bf16.msra.mxu2 %v10701_v24  ;;  %v10653_v18 = vor.u32 %v12101_v29, %v10652_v14  ;;  %v10845_v24 = vor.u32 %v12149_v59, %v10844_v38  ;;  %v12029_v12 = vld [vmem:[%s17222_s3 + $0x634] sm:$0xf0]  ;;  %v15791_v14 = vpop.f32.mrf.mxu3  ;;  %v11228_v59 = vld [vmem:[%s17222_s3 + $0xce8] sm:$0xf] }
 0x535   : > { %7224 = vmatpush.bf16.msra.mxu0 %v10445_v36  ;;  %v15742_v36 = vadd.f32 %v6924_v26, %v15585_v43  ;;  %v12033_v43 = vld [vmem:[%s17222_s3 + $0x654] sm:$0xf0]  ;;  %v10348_v58 = vld [vmem:[%s17222_s3 + $0x608] sm:$0xf] }
 0x536   : > { %7214 = vmatpush.bf16.msrb.mxu3 %v10253_v54  ;;  %v10397_v54 = vor.u32 %v12037_v8, %v10396_v57  ;;  %v12089_v61 = vld [vmem:[%s17222_s3 + $0x814] sm:$0xf0]  ;;  %v11212_v60 = vld [vmem:[%s17222_s3 + $0xcc8] sm:$0xf] }
 0x537   : > { %v12137_v3 = vld [vmem:[%s17222_s3 + $0x994] sm:$0xf0]  ;;  %v10605_v57 = vor.u32 %v12089_v61, %v10604_v45 }
 0x538   : > { %7243 = vmatpush.bf16.msra.mxu1 %v10493_v32  ;;  %7253 = vmatpush.bf16.msra.mxu2 %v10685_v17  ;;  %v10380_v32 = vld [vmem:[%s17222_s3 + $0x648] sm:$0xf]  ;;  %v10637_v17 = vor.u32 %v12097_v41, %v10636_v11  ;;  %v12197_v38 = vld [vmem:[%s17222_s3 + $0xb74] sm:$0xf0]  ;;  %v10797_v8 = vor.u32 %v12137_v3, %v10796_v42 }
 0x539   : > { %7225 = vmatpush.bf16.msra.mxu0 %v10429_v2  ;;  %v10381_v2 = vor.u32 %v12033_v43, %v10380_v32  ;;  %v12025_v56 = vld [vmem:[%s17222_s3 + $0x614] sm:$0xf0]  ;;  %v11037_v11 = vor.u32 %v12197_v38, %v11036_v19  ;;  %v11020_v41 = vld [vmem:[%s17222_s3 + $0xb48] sm:$0xf] }
 0x53a   : > { %7215 = vmatpush.bf16.msrb.mxu3 %v10237_v25  ;;  %v10364_v25 = vld [vmem:[%s17222_s3 + $0x628] sm:$0xf]  ;;  %v10349_v39 = vor.u32 %v12025_v56, %v10348_v58  ;;  %v12241_v62 = vld [vmem:[%s17222_s3 + $0xcd4] sm:$0xf0]  ;;  %v9950_v58 = vld [vmem:[%s17222_s3 + $0x2f8] sm:$0xf0] }
 0x53b   : > { %v10365_v29 = vor.u32 %v12029_v12, %v10364_v25  ;;  %v11196_v25 = vld [vmem:[%s17222_s3 + $0xca8] sm:$0xf]  ;;  %v12237_v12 = vld [vmem:[%s17222_s3 + $0xcb4] sm:$0xf0] }
 0x53c   : > { %7244 = vmatpush.bf16.msra.mxu1 %v10477_v16  ;;  %7254 = vmatpush.bf16.msra.mxu2 %v10669_v44  ;;  %v10621_v16 = vor.u32 %v12093_v4, %v10620_v47  ;;  %v10813_v44 = vor.u32 %v12141_v22, %v10812_v6  ;;  %v10764_v4 = vld [vmem:[%s17222_s3 + $0x948] sm:$0xf]  ;;  %v12129_v6 = vld [vmem:[%s17222_s3 + $0x954] sm:$0xf0] }
 0x53d   : > { %7226 = vmatpush.bf16.msra.mxu0 %v10413_v30  ;;  %v12245_v30 = vld [vmem:[%s17222_s3 + $0xcf4] sm:$0xf0]  ;;  %v11004_v22 = vld [vmem:[%s17222_s3 + $0xb28] sm:$0xf] }
 0x53e   : > { %7216 = vmatpush.bf16.msrb.mxu3 %v10221_v1  ;;  %v6801_v1 = vadd.f32 %v15081_v63, %v6787_v33  ;;  %v11229_v26 = vor.u32 %v12245_v30, %v11228_v59  ;;  %v12133_v63 = vld [vmem:[%s17222_s3 + $0x974] sm:$0xf0]  ;;  %v6898_v33 = vpop.f32.mrf.mxu0  ;;  %v10748_v42 = vld [vmem:[%s17222_s3 + $0x928] sm:$0xf] }
 0x53f   : > { %7245 = vmatmul.bf16.vlgmr.msra.gmra.mxu1 %v14643_v50  ;;  %v12173_v45 = vld [vmem:[%s17222_s3 + $0xab4] sm:$0xf0]  ;;  %v10988_v3 = vld [vmem:[%s17222_s3 + $0xb08] sm:$0xf] }
 0x540   : > { %7293 = vmatpush.bf16.msrb.mxu1 %v11101_v23  ;;  %7255 = vmatpush.bf16.msra.mxu2 %v10653_v18  ;;  %v11053_v23 = vor.u32 %v12201_v40, %v11052_v51  ;;  %v10972_v18 = vld [vmem:[%s17222_s3 + $0xae8] sm:$0xf]  ;;  %v6815_v27 = vadd.f32 %v15226_v13, %v6801_v1  ;;  %v12189_v40 = vld [vmem:[%s17222_s3 + $0xb34] sm:$0xf0] }
 0x541   : > { %7217 = vmatmul.bf16.vlgmr.msrb.gmra.mxu3 %v14443_v5  ;;  %7227 = vmatpush.bf16.msra.mxu0 %v10397_v54  ;;  %v12193_v54 = vld [vmem:[%s17222_s3 + $0xb54] sm:$0xf0]  ;;  %v10956_v13 = vld [vmem:[%s17222_s3 + $0xac8] sm:$0xf]  ;;  %v11005_v61 = vor.u32 %v12189_v40, %v11004_v22 }
 0x542   : > { %7265 = vmatpush.bf16.msra.mxu3 %v10845_v24  ;;  %v12181_v24 = vld [vmem:[%s17222_s3 + $0xaf4] sm:$0xf0]  ;;  %v11021_v47 = vor.u32 %v12193_v54, %v11020_v41  ;;  %v11180_v38 = vld [vmem:[%s17222_s3 + $0xc88] sm:$0xf]  ;;  %v6912_v54 = vpop.f32.mrf.mxu1 }
 0x543   : > { %v10973_v32 = vor.u32 %v12181_v24, %v10972_v18  ;;  %v12233_v59 = vld [vmem:[%s17222_s3 + $0xc94] sm:$0xf0] }
 0x544   : > { %7294 = vmatpush.bf16.msrb.mxu1 %v11085_v49  ;;  %7256 = vmatpush.bf16.msra.mxu2 %v10637_v17  ;;  %v10780_v49 = vld [vmem:[%s17222_s3 + $0x968] sm:$0xf]  ;;  %v12177_v17 = vld [vmem:[%s17222_s3 + $0xad4] sm:$0xf0]  ;;  %v11181_v24 = vor.u32 %v12233_v59, %v11180_v38  ;;  %v11851_v59 = vld [vmem:[%s17222_s3 + $0xac] sm:$0xf] }
 0x545   : > { %7228 = vmatpush.bf16.msra.mxu0 %v10381_v2  ;;  %v10781_v43 = vor.u32 %v12133_v63, %v10780_v49  ;;  %v6829_v2 = vadd.f32 %v15341_v34, %v6815_v27  ;;  %v10957_v34 = vor.u32 %v12177_v17, %v10956_v13  ;;  %v12229_v41 = vld [vmem:[%s17222_s3 + $0xc74] sm:$0xf0]  ;;  %v11859_v27 = vld [vmem:[%s17222_s3 + $0xec] sm:$0xf]  ;;  %v10908_v17 = vld [vmem:[%s17222_s3 + $0xa68] sm:$0xf] }
 0x546   : > { %7266 = vmatpush.bf16.msra.mxu3 %v10829_v55  ;;  %v6938_v55 = vpop.f32.mrf.mxu3  ;;  %v12225_v40 = vld [vmem:[%s17222_s3 + $0xc54] sm:$0xf0] }
 0x547   : > { %v15860_v51 = vadd.f32 %v6938_v55, %v15742_v36  ;;  %v6843_v36 = vadd.f32 %v15412_v28, %v6829_v2  ;;  %v12125_v28 = vld [vmem:[%s17222_s3 + $0x934] sm:$0xf0] }
 0x548   : > { %7295 = vmatpush.bf16.msrb.mxu1 %v11069_v31  ;;  %7257 = vmatpush.bf16.msra.mxu2 %v10621_v16  ;;  %v11213_v31 = vor.u32 %v12241_v62, %v11212_v60  ;;  %v10765_v16 = vor.u32 %v12129_v6, %v10764_v4  ;;  %v10749_v1 = vor.u32 %v12125_v28, %v10748_v42  ;;  %v12165_v55 = vld [vmem:[%s17222_s3 + $0xa74] sm:$0xf0]  ;;  %v11148_v6 = vld [vmem:[%s17222_s3 + $0xc48] sm:$0xf] }
 0x549   : > { %7229 = vmatpush.bf16.msra.mxu0 %v10365_v29  ;;  %v6857_v19 = vadd.f32 %v15526_v46, %v6843_v36  ;;  %v12185_v29 = vld [vmem:[%s17222_s3 + $0xb14] sm:$0xf0]  ;;  %v11923_v46 = vld [vmem:[%s17222_s3 + $0x2ec] sm:$0xf]  ;;  %v11132_v28 = vld [vmem:[%s17222_s3 + $0xc28] sm:$0xf] }
 0x54a   : > { %7267 = vmatpush.bf16.msra.mxu3 %v10813_v44  ;;  %v10940_v44 = vld [vmem:[%s17222_s3 + $0xaa8] sm:$0xf]  ;;  %v10989_v18 = vor.u32 %v12185_v29, %v10988_v3  ;;  %v9953_v63 = vor.u32 %v11923_v46, %v9950_v58  ;;  %v11915_v36 = vld [vmem:[%s17222_s3 + $0x2ac] sm:$0xf]  ;;  %v12221_v38 = vld [vmem:[%s17222_s3 + $0xc34] sm:$0xf0] }
 0x54b   : > { %v10941_v30 = vor.u32 %v12173_v45, %v10940_v44  ;;  %v6871_v56 = vadd.f32 %v15675_v21, %v6857_v19  ;;  %v12121_v21 = vld [vmem:[%s17222_s3 + $0x914] sm:$0xf0]  ;;  %v10892_v45 = vld [vmem:[%s17222_s3 + $0xa48] sm:$0xf] }
 0x54c   : > { %7296 = vmatpush.bf16.msrb.mxu1 %v11053_v23  ;;  %7258 = vmatpush.bf16.msra.mxu2 %v10605_v57  ;;  %v11197_v23 = vor.u32 %v12237_v12, %v11196_v25  ;;  %v10924_v57 = vld [vmem:[%s17222_s3 + $0xa88] sm:$0xf]  ;;  %v6952_v60 = vpop.f32.mrf.mxu0  ;;  %v11855_v25 = vld [vmem:[%s17222_s3 + $0xcc] sm:$0xf]  ;;  %v9678_v12 = vld [vmem:[%s17222_s3 + $0xd8] sm:$0xf0] }
 0x54d   : > { %7230 = vmatpush.bf16.msra.mxu0 %v10349_v39  ;;  %v6885_v49 = vadd.f32 %v15791_v14, %v6871_v56  ;;  %v9694_v39 = vld [vmem:[%s17222_s3 + $0xf8] sm:$0xf0]  ;;  %v11919_v14 = vld [vmem:[%s17222_s3 + $0x2cc] sm:$0xf]  ;;  %v9681_v42 = vor.u32 %v11855_v25, %v9678_v12  ;;  %v6953_v19 = vadd.f32 %v6952_v60, %v15860_v51 }
 0x54e   : > { %7268 = vmatpush.bf16.msra.mxu3 %v10797_v8  ;;  %v12169_v8 = vld [vmem:[%s17222_s3 + $0xa94] sm:$0xf0]  ;;  %v9697_v4 = vor.u32 %v11859_v27, %v9694_v39  ;;  %v11911_v51 = vld [vmem:[%s17222_s3 + $0x28c] sm:$0xf]  ;;  %v9902_v56 = vld [vmem:[%s17222_s3 + $0x298] sm:$0xf0] }
 0x54f   : > { %7259 = vmatmul.bf16.vlgmr.msra.gmra.mxu2 %v14728_v53  ;;  %v10925_v62 = vor.u32 %v12169_v8, %v10924_v57  ;;  %v10876_v57 = vld [vmem:[%s17222_s3 + $0xa28] sm:$0xf]  ;;  %v12157_v8 = vld [vmem:[%s17222_s3 + $0xa34] sm:$0xf0]  ;;  %v9646_v27 = vld [vmem:[%s17222_s3 + $0x98] sm:$0xf0] }
 0x550   : > { %7297 = vmatpush.bf16.msrb.mxu1 %v11037_v11  ;;  %7307 = vmatpush.bf16.msrb.mxu2 %v11229_v26  ;;  %v10732_v11 = vld [vmem:[%s17222_s3 + $0x908] sm:$0xf]  ;;  %v11907_v39 = vld [vmem:[%s17222_s3 + $0x26c] sm:$0xf]  ;;  %v9886_v60 = vld [vmem:[%s17222_s3 + $0x278] sm:$0xf0] }
 0x551   : > { %7279 = vmatpush.bf16.msrb.mxu0 %v10973_v32  ;;  %v11164_v26 = vld [vmem:[%s17222_s3 + $0xc68] sm:$0xf]  ;;  %v9934_v32 = vld [vmem:[%s17222_s3 + $0x2d8] sm:$0xf0]  ;;  %v10733_v13 = vor.u32 %v12121_v21, %v10732_v11  ;;  %v12217_v21 = vld [vmem:[%s17222_s3 + $0xc14] sm:$0xf0] }
 0x552   : > { %7269 = vmatpush.bf16.msra.mxu3 %v10781_v43  ;;  %7231 = vmatmul.bf16.vlgmr.msra.gmra.mxu0 %v14541_v48  ;;  %v6899_v43 = vadd.f32 %v6898_v33, %v6885_v49  ;;  %v9937_v2 = vor.u32 %v11919_v14, %v9934_v32  ;;  %v6940_v33 = vpop.f32.mrf.mxu3  ;;  %v11116_v11 = vld [vmem:[%s17222_s3 + $0xc08] sm:$0xf]  ;;  %v7503_v49 = vmax.f32 %v6953_v19, 0.0  ;;  %v10078_v14 = vld [vmem:[%s17222_s3 + $0x3f8] sm:$0xf0] }
 0x553   : > { %v9870_v12 = vld [vmem:[%s17222_s3 + $0x258] sm:$0xf0] }
 0x554   : > { %7298 = vmatpush.bf16.msrb.mxu1 %v11021_v47  ;;  %7308 = vmatpush.bf16.msrb.mxu2 %v11213_v31  ;;  %v6926_v47 = vpop.f32.mrf.mxu2  ;;  %v11165_v31 = vor.u32 %v12229_v41, %v11164_v26  ;;  %v6913_v22 = vadd.f32 %v6912_v54, %v6899_v43  ;;  %v6954_v46 = vpop.f32.mrf.mxu0  ;;  %v11847_v26 = vld [vmem:[%s17222_s3 + $0x8c] sm:$0xf]  ;;  %v9905_v41 = vor.u32 %v11911_v51, %v9902_v56  ;;  %v10860_v43 = vld [vmem:[%s17222_s3 + $0xa08] sm:$0xf]  ;;  %v9854_v19 = vld [vmem:[%s17222_s3 + $0x238] sm:$0xf0] }
 0x555   : > { %7280 = vmatpush.bf16.msrb.mxu0 %v10957_v34  ;;  %v10909_v34 = vor.u32 %v12165_v55, %v10908_v17  ;;  %v10877_v54 = vor.u32 %v12157_v8, %v10876_v57  ;;  %v11117_v17 = vor.u32 %v12217_v21, %v11116_v11  ;;  %v9649_v55 = vor.u32 %v11847_v26, %v9646_v27  ;;  %v9598_v57 = vld [vmem:[%s17222_s3 + $0x38] sm:$0xf0]  ;;  %v11895_v8 = vld [vmem:[%s17222_s3 + $0x20c] sm:$0xf] }
 0x556   : > { %7270 = vmatpush.bf16.msra.mxu3 %v10765_v16  ;;  %v9918_v16 = vld [vmem:[%s17222_s3 + $0x2b8] sm:$0xf0]  ;;  %v6927_v44 = vadd.f32 %v6926_v47, %v6913_v22  ;;  %v11891_v47 = vld [vmem:[%s17222_s3 + $0x1ec] sm:$0xf] }
 0x557   : > { %v9921_v29 = vor.u32 %v11915_v36, %v9918_v16  ;;  %v11843_v22 = vld [vmem:[%s17222_s3 + $0x6c] sm:$0xf]  ;;  %v10030_v11 = vld [vmem:[%s17222_s3 + $0x398] sm:$0xf0] }
 0x558   : > { %7299 = vmatpush.bf16.msrb.mxu1 %v11005_v61  ;;  %7309 = vmatpush.bf16.msrb.mxu2 %v11197_v23  ;;  %v12161_v61 = vld [vmem:[%s17222_s3 + $0xa54] sm:$0xf0]  ;;  %v11149_v23 = vor.u32 %v12225_v40, %v11148_v6  ;;  %v6941_v3 = vadd.f32 %v6940_v33, %v6927_v44  ;;  %v11903_v40 = vld [vmem:[%s17222_s3 + $0x24c] sm:$0xf]  ;;  %v9774_v27 = vld [vmem:[%s17222_s3 + $0x198] sm:$0xf0] }
 0x559   : > { %7281 = vmatpush.bf16.msrb.mxu0 %v10941_v30  ;;  %v9662_v30 = vld [vmem:[%s17222_s3 + $0xb8] sm:$0xf0]  ;;  %v10893_v58 = vor.u32 %v12161_v61, %v10892_v45  ;;  %v11951_v33 = vld [vmem:[%s17222_s3 + $0x3cc] sm:$0xf]  ;;  %v9873_v61 = vor.u32 %v11903_v40, %v9870_v12 }
 0x55a   : > { %7271 = vmatpush.bf16.msra.mxu3 %v10749_v1  ;;  %v6955_v1 = vadd.f32 %v6954_v46, %v6941_v3  ;;  %v11887_v44 = vld [vmem:[%s17222_s3 + $0x1cc] sm:$0xf]  ;;  %v9806_v45 = vld [vmem:[%s17222_s3 + $0x1d8] sm:$0xf0] }
 0x55b   : > { %v11899_v3 = vld [vmem:[%s17222_s3 + $0x22c] sm:$0xf] }
 0x55c   : > { %7300 = vmatpush.bf16.msrb.mxu1 %v10989_v18  ;;  %7310 = vmatpush.bf16.msrb.mxu2 %v11181_v24  ;;  %v11133_v18 = vor.u32 %v12221_v38, %v11132_v28  ;;  %v9665_v24 = vor.u32 %v11851_v59, %v9662_v30  ;;  %v9614_v28 = vld [vmem:[%s17222_s3 + $0x58] sm:$0xf0]  ;;  %v9809_v59 = vor.u32 %v11887_v44, %v9806_v45  ;;  %v11883_v46 = vld [vmem:[%s17222_s3 + $0x1ac] sm:$0xf] }
 0x55d   : > { %7282 = vmatpush.bf16.msrb.mxu0 %v10925_v62  ;;  %v11955_v62 = vld [vmem:[%s17222_s3 + $0x3ec] sm:$0xf]  ;;  %v10046_v38 = vld [vmem:[%s17222_s3 + $0x3b8] sm:$0xf0]  ;;  %v9857_v51 = vor.u32 %v11899_v3, %v9854_v19 }
 0x55e   : > { %7272 = vmatpush.bf16.msra.mxu3 %v10733_v13  ;;  %v12153_v13 = vld [vmem:[%s17222_s3 + $0xa14] sm:$0xf0]  ;;  %v10081_v6 = vor.u32 %v11955_v62, %v10078_v14  ;;  %v12051_v26 = vld [vmem:[%s17222_s3 + $0x6ec] sm:$0xf]  ;;  %v9582_v62 = vld [vmem:[%s17222_s3 + $0x18] sm:$0xf0] }
 0x55f   : > { %7301 = vmatmul.bf16.vlgmr.msrb.gmra.mxu1 %v14924_v7  ;;  %v10861_v25 = vor.u32 %v12153_v13, %v10860_v43  ;;  %v11939_v14 = vld [vmem:[%s17222_s3 + $0x36c] sm:$0xf]  ;;  %v10014_v13 = vld [vmem:[%s17222_s3 + $0x378] sm:$0xf0] }
 0x560   : > { %7349 = vmatpush.bf16.msra.mxu1 %v9953_v63  ;;  %7311 = vmatpush.bf16.msrb.mxu2 %v11165_v31  ;;  %v7507_v63 = vmax.f32 %v6955_v1, 0.0  ;;  %v9822_v31 = vld [vmem:[%s17222_s3 + $0x1f8] sm:$0xf0]  ;;  %v11835_v1 = vld [vmem:[%s17222_s3 + $0x2c] sm:$0xf]  ;;  %v10017_v40 = vor.u32 %v11939_v14, %v10014_v13 }
 0x561   : > { %7273 = vmatmul.bf16.vlgmr.msra.gmra.mxu3 %v14793_v35  ;;  %7283 = vmatpush.bf16.msrb.mxu0 %v10909_v34  ;;  %v10062_v34 = vld [vmem:[%s17222_s3 + $0x3d8] sm:$0xf0]  ;;  %v9825_v36 = vor.u32 %v11891_v47, %v9822_v31  ;;  %v12047_v31 = vld [vmem:[%s17222_s3 + $0x6cc] sm:$0xf] }
 0x562   : > { %7321 = vmatpush.bf16.msrb.mxu3 %v9697_v4  ;;  %v16018_v32 = vpack.c.bf16 %v7507_v63, %v7503_v49  ;;  %v9889_v4 = vor.u32 %v11907_v39, %v9886_v60  ;;  %v10462_v49 = vld [vmem:[%s17222_s3 + $0x6f8] sm:$0xf0]  ;;  %v9601_v63 = vor.u32 %v11835_v1, %v9598_v57  ;;  %v11831_v60 = vld [vmem:[%s17222_s3 + $0xc] sm:$0xf]  ;;  %v16192_v1 = vpop.f32.mrf.mxu1 }
 0x563   : > { %v10465_v43 = vor.u32 %v12051_v26, %v10462_v49  ;;  %v11935_v12 = vld [vmem:[%s17222_s3 + $0x34c] sm:$0xf]  ;;  %v10334_v13 = vld [vmem:[%s17222_s3 + $0x5f8] sm:$0xf0] }
 0x564   : > { %7350 = vmatpush.bf16.msra.mxu1 %v9937_v2  ;;  %7312 = vmatpush.bf16.msrb.mxu2 %v11149_v23  ;;  %v9630_v2 = vld [vmem:[%s17222_s3 + $0x78] sm:$0xf0]  ;;  %v10065_v23 = vor.u32 %v11951_v33, %v10062_v34  ;;  %v12043_v45 = vld [vmem:[%s17222_s3 + $0x6ac] sm:$0xf] }
 0x565   : > { %7284 = vmatpush.bf16.msrb.mxu0 %v10893_v58  ;;  %v9633_v16 = vor.u32 %v11843_v22, %v9630_v2  ;;  %v9790_v58 = vld [vmem:[%s17222_s3 + $0x1b8] sm:$0xf0]  ;;  %v11875_v22 = vld [vmem:[%s17222_s3 + $0x16c] sm:$0xf] }
 0x566   : > { %7322 = vmatpush.bf16.msrb.mxu3 %v9681_v42  ;;  %v11839_v42 = vld [vmem:[%s17222_s3 + $0x4c] sm:$0xf]  ;;  %v9793_v21 = vor.u32 %v11883_v46, %v9790_v58  ;;  %v9758_v2 = vld [vmem:[%s17222_s3 + $0x178] sm:$0xf0] }
 0x567   : > { %v9617_v30 = vor.u32 %v11839_v42, %v9614_v28  ;;  %v9998_v34 = vld [vmem:[%s17222_s3 + $0x358] sm:$0xf0]  ;;  %v9761_v44 = vor.u32 %v11875_v22, %v9758_v2  ;;  %v11931_v19 = vld [vmem:[%s17222_s3 + $0x32c] sm:$0xf] }
 0x568   : > { %7351 = vmatpush.bf16.msra.mxu1 %v9921_v29  ;;  %7313 = vmatpush.bf16.msrb.mxu2 %v11133_v18  ;;  %v11947_v29 = vld [vmem:[%s17222_s3 + $0x3ac] sm:$0xf]  ;;  %v9838_v18 = vld [vmem:[%s17222_s3 + $0x218] sm:$0xf0]  ;;  %v10001_v28 = vor.u32 %v11935_v12, %v9998_v34 }
 0x569   : > { %7285 = vmatpush.bf16.msrb.mxu0 %v10877_v54  ;;  %v10049_v56 = vor.u32 %v11947_v29, %v10046_v38  ;;  %v9841_v39 = vor.u32 %v11895_v8, %v9838_v18  ;;  %v9742_v42 = vld [vmem:[%s17222_s3 + $0x158] sm:$0xf0]  ;;  %v11979_v38 = vld [vmem:[%s17222_s3 + $0x4ac] sm:$0xf] }
 0x56a   : > { %7323 = vmatpush.bf16.msrb.mxu3 %v9665_v24  ;;  %v11943_v24 = vld [vmem:[%s17222_s3 + $0x38c] sm:$0xf]  ;;  %v10414_v58 = vld [vmem:[%s17222_s3 + $0x698] sm:$0xf0] }
 0x56b   : > { %v10033_v54 = vor.u32 %v11943_v24, %v10030_v11  ;;  %v12039_v46 = vld [vmem:[%s17222_s3 + $0x68c] sm:$0xf]  ;;  %v9966_v18 = vld [vmem:[%s17222_s3 + $0x318] sm:$0xf0] }
 0x56c   : > { %7352 = vmatpush.bf16.msra.mxu1 %v9905_v41  ;;  %7314 = vmatpush.bf16.msrb.mxu2 %v11117_v17  ;;  %v11879_v41 = vld [vmem:[%s17222_s3 + $0x18c] sm:$0xf]  ;;  %v10417_v24 = vor.u32 %v12039_v46, %v10414_v58  ;;  %v10382_v22 = vld [vmem:[%s17222_s3 + $0x658] sm:$0xf0] }
 0x56d   : > { %7286 = vmatpush.bf16.msrb.mxu0 %v10861_v25  ;;  %v11987_v17 = vld [vmem:[%s17222_s3 + $0x4ec] sm:$0xf]  ;;  %v9777_v47 = vor.u32 %v11879_v41, %v9774_v27  ;;  %v10590_v27 = vld [vmem:[%s17222_s3 + $0x7f8] sm:$0xf0] }
 0x56e   : > { %7324 = vmatpush.bf16.msrb.mxu3 %v9649_v55  ;;  %v10206_v55 = vld [vmem:[%s17222_s3 + $0x4f8] sm:$0xf0]  ;;  %v11927_v8 = vld [vmem:[%s17222_s3 + $0x30c] sm:$0xf] }
 0x56f   : > { %7315 = vmatmul.bf16.vlgmr.msrb.gmra.mxu2 %v15020_v9  ;;  %v10209_v25 = vor.u32 %v11987_v17, %v10206_v55  ;;  %v11975_v11 = vld [vmem:[%s17222_s3 + $0x48c] sm:$0xf]  ;;  %v10318_v34 = vld [vmem:[%s17222_s3 + $0x5d8] sm:$0xf0] }
 0x570   : > { %7353 = vmatpush.bf16.msra.mxu1 %v9889_v4  ;;  %7363 = vmatpush.bf16.msra.mxu2 %v10081_v6  ;;  %v10446_v4 = vld [vmem:[%s17222_s3 + $0x6d8] sm:$0xf0]  ;;  %v9585_v6 = vor.u32 %v11831_v60, %v9582_v62  ;;  %v12035_v26 = vld [vmem:[%s17222_s3 + $0x66c] sm:$0xf]  ;;  %v9969_v62 = vor.u32 %v11927_v8, %v9966_v18 }
 0x571   : > { %7335 = vmatpush.bf16.msra.mxu0 %v9825_v36  ;;  %v10449_v33 = vor.u32 %v12047_v31, %v10446_v4  ;;  %v11983_v36 = vld [vmem:[%s17222_s3 + $0x4cc] sm:$0xf]  ;;  %v9710_v60 = vld [vmem:[%s17222_s3 + $0x118] sm:$0xf0] }
 0x572   : > { %7325 = vmatpush.bf16.msrb.mxu3 %v9633_v16  ;;  %7287 = vmatmul.bf16.vlgmr.msrb.gmra.mxu0 %v14858_v0  ;;  %v10190_v16 = vld [vmem:[%s17222_s3 + $0x4d8] sm:$0xf0]  ;;  %v12083_v41 = vld [vmem:[%s17222_s3 + $0x7ec] sm:$0xf] }
 0x573   : > { %v10193_v3 = vor.u32 %v11983_v36, %v10190_v16  ;;  %v10593_v55 = vor.u32 %v12083_v41, %v10590_v27  ;;  %v10142_v31 = vld [vmem:[%s17222_s3 + $0x478] sm:$0xf0]  ;;  %v12031_v4 = vld [vmem:[%s17222_s3 + $0x64c] sm:$0xf] }
 0x574   : > { %7354 = vmatpush.bf16.msra.mxu1 %v9873_v61  ;;  %7364 = vmatpush.bf16.msra.mxu2 %v10065_v23  ;;  %v10430_v61 = vld [vmem:[%s17222_s3 + $0x6b8] sm:$0xf0]  ;;  %v11871_v23 = vld [vmem:[%s17222_s3 + $0x14c] sm:$0xf]  ;;  %v10385_v36 = vor.u32 %v12031_v4, %v10382_v22 }
 0x575   : > { %7336 = vmatpush.bf16.msra.mxu0 %v9809_v59  ;;  %v10433_v29 = vor.u32 %v12043_v45, %v10430_v61  ;;  %v10174_v59 = vld [vmem:[%s17222_s3 + $0x4b8] sm:$0xf0]  ;;  %v12079_v2 = vld [vmem:[%s17222_s3 + $0x7cc] sm:$0xf] }
 0x576   : > { %7326 = vmatpush.bf16.msrb.mxu3 %v9617_v30  ;;  %v9745_v30 = vor.u32 %v11871_v23, %v9742_v42  ;;  %v10177_v57 = vor.u32 %v11979_v38, %v10174_v59  ;;  %v10126_v45 = vld [vmem:[%s17222_s3 + $0x458] sm:$0xf0]  ;;  %v12027_v61 = vld [vmem:[%s17222_s3 + $0x62c] sm:$0xf]  ;;  %v16265_v23 = vpop.f32.mrf.mxu1 }
 0x577   : > { %v10366_v42 = vld [vmem:[%s17222_s3 + $0x638] sm:$0xf0]  ;;  %v12011_v38 = vld [vmem:[%s17222_s3 + $0x5ac] sm:$0xf] }
 0x578   : > { %7355 = vmatpush.bf16.msra.mxu1 %v9857_v51  ;;  %7365 = vmatpush.bf16.msra.mxu2 %v10049_v56  ;;  %v11867_v51 = vld [vmem:[%s17222_s3 + $0x12c] sm:$0xf]  ;;  %v9726_v56 = vld [vmem:[%s17222_s3 + $0x138] sm:$0xf0]  ;;  %v10369_v46 = vor.u32 %v12027_v61, %v10366_v42 }
 0x579   : > { %7337 = vmatpush.bf16.msra.mxu0 %v9793_v21  ;;  %v10158_v21 = vld [vmem:[%s17222_s3 + $0x498] sm:$0xf0]  ;;  %v9729_v49 = vor.u32 %v11867_v51, %v9726_v56  ;;  %v11963_v58 = vld [vmem:[%s17222_s3 + $0x42c] sm:$0xf] }
 0x57a   : > { %7327 = vmatpush.bf16.msrb.mxu3 %v9601_v63  ;;  %v10398_v63 = vld [vmem:[%s17222_s3 + $0x678] sm:$0xf0]  ;;  %v10161_v14 = vor.u32 %v11975_v11, %v10158_v21  ;;  %v12023_v56 = vld [vmem:[%s17222_s3 + $0x60c] sm:$0xf] }
 0x57b   : > { %v10401_v17 = vor.u32 %v12035_v26, %v10398_v63  ;;  %v10302_v59 = vld [vmem:[%s17222_s3 + $0x5b8] sm:$0xf0]  ;;  %v12007_v21 = vld [vmem:[%s17222_s3 + $0x58c] sm:$0xf] }
 0x57c   : > { %7356 = vmatpush.bf16.msra.mxu1 %v9841_v39  ;;  %7366 = vmatpush.bf16.msra.mxu2 %v10033_v54  ;;  %v16218_v39 = vpop.f32.mrf.mxu2  ;;  %v11863_v54 = vld [vmem:[%s17222_s3 + $0x10c] sm:$0xf]  ;;  %v10110_v51 = vld [vmem:[%s17222_s3 + $0x438] sm:$0xf0]  ;;  %v10305_v18 = vor.u32 %v12011_v38, %v10302_v59 }
 0x57d   : > { %7338 = vmatpush.bf16.msra.mxu0 %v9777_v47  ;;  %v11971_v47 = vld [vmem:[%s17222_s3 + $0x46c] sm:$0xf]  ;;  %v10542_v8 = vld [vmem:[%s17222_s3 + $0x798] sm:$0xf0]  ;;  %v10113_v11 = vor.u32 %v11963_v58, %v10110_v51 }
 0x57e   : > { %7328 = vmatpush.bf16.msrb.mxu3 %v9585_v6  ;;  %v9713_v6 = vor.u32 %v11863_v54, %v9710_v60  ;;  %v10145_v12 = vor.u32 %v11971_v47, %v10142_v31  ;;  %v10286_v26 = vld [vmem:[%s17222_s3 + $0x598] sm:$0xf0]  ;;  %v11959_v27 = vld [vmem:[%s17222_s3 + $0x40c] sm:$0xf]  ;;  %v16344_v31 = vpop.f32.mrf.mxu1 }
 0x57f   : > { %7357 = vmatmul.bf16.vlgmr.msra.gmra.mxu1 %v14190_v37  ;;  %v9982_v37 = vld [vmem:[%s17222_s3 + $0x338] sm:$0xf0]  ;;  %v12067_v60 = vld [vmem:[%s17222_s3 + $0x76c] sm:$0xf] }
 0x580   : > { %7405 = vmatpush.bf16.msrb.mxu1 %v10465_v43  ;;  %7367 = vmatpush.bf16.msra.mxu2 %v10017_v40  ;;  %v12019_v43 = vld [vmem:[%s17222_s3 + $0x5ec] sm:$0xf]  ;;  %v10574_v40 = vld [vmem:[%s17222_s3 + $0x7d8] sm:$0xf0] }
 0x581   : > { %7329 = vmatmul.bf16.vlgmr.msrb.gmra.mxu3 %v13977_v20  ;;  %7339 = vmatpush.bf16.msra.mxu0 %v9761_v44  ;;  %v9985_v20 = vor.u32 %v11931_v19, %v9982_v37  ;;  %v10577_v16 = vor.u32 %v12079_v2, %v10574_v40  ;;  %v11967_v44 = vld [vmem:[%s17222_s3 + $0x44c] sm:$0xf]  ;;  %v10094_v54 = vld [vmem:[%s17222_s3 + $0x418] sm:$0xf0] }
 0x582   : > { %7377 = vmatpush.bf16.msra.mxu3 %v10209_v25  ;;  %v10337_v25 = vor.u32 %v12019_v43, %v10334_v13  ;;  %v10129_v37 = vor.u32 %v11967_v44, %v10126_v45  ;;  %v12115_v43 = vld [vmem:[%s17222_s3 + $0x8ec] sm:$0xf]  ;;  %v10718_v13 = vld [vmem:[%s17222_s3 + $0x8f8] sm:$0xf0]  ;;  %v10097_v4 = vor.u32 %v11959_v27, %v10094_v54 }
 0x583   : > { %v10958_v47 = vld [vmem:[%s17222_s3 + $0xad8] sm:$0xf0]  ;;  %v10721_v40 = vor.u32 %v12115_v43, %v10718_v13  ;;  %v12171_v61 = vld [vmem:[%s17222_s3 + $0xaac] sm:$0xf] }
 0x584   : > { %7406 = vmatpush.bf16.msrb.mxu1 %v10449_v33  ;;  %7368 = vmatpush.bf16.msra.mxu2 %v10001_v28  ;;  %v12015_v33 = vld [vmem:[%s17222_s3 + $0x5cc] sm:$0xf]  ;;  %v10270_v22 = vld [vmem:[%s17222_s3 + $0x578] sm:$0xf0] }
 0x585   : > { %7340 = vmatpush.bf16.msra.mxu0 %v9745_v30  ;;  %v12075_v28 = vld [vmem:[%s17222_s3 + $0x7ac] sm:$0xf]  ;;  %v10321_v19 = vor.u32 %v12015_v33, %v10318_v34  ;;  %v16285_v30 = vpop.f32.mrf.mxu2  ;;  %v10510_v34 = vld [vmem:[%s17222_s3 + $0x758] sm:$0xf0] }
 0x586   : > { %7378 = vmatpush.bf16.msra.mxu3 %v10193_v3  ;;  %v10558_v3 = vld [vmem:[%s17222_s3 + $0x7b8] sm:$0xf0]  ;;  %v12059_v38 = vld [vmem:[%s17222_s3 + $0x72c] sm:$0xf] }
 0x587   : > { %v10942_v42 = vld [vmem:[%s17222_s3 + $0xab8] sm:$0xf0]  ;;  %v11991_v43 = vld [vmem:[%s17222_s3 + $0x50c] sm:$0xf] }
 0x588   : > { %7407 = vmatpush.bf16.msrb.mxu1 %v10433_v29  ;;  %7369 = vmatpush.bf16.msra.mxu2 %v9985_v20  ;;  %v16277_v29 = vpop.f32.mrf.mxu3  ;;  %v10350_v20 = vld [vmem:[%s17222_s3 + $0x618] sm:$0xf0]  ;;  %v10945_v59 = vor.u32 %v12171_v61, %v10942_v42  ;;  %v12207_v61 = vld [vmem:[%s17222_s3 + $0xbcc] sm:$0xf] }
 0x589   : > { %7341 = vmatpush.bf16.msra.mxu0 %v9729_v49  ;;  %v16318_v49 = vpop.f32.mrf.mxu0  ;;  %v10353_v63 = vor.u32 %v12023_v56, %v10350_v20  ;;  %v12167_v56 = vld [vmem:[%s17222_s3 + $0xa8c] sm:$0xf]  ;;  %v10926_v20 = vld [vmem:[%s17222_s3 + $0xa98] sm:$0xf0] }
 0x58a   : > { %7379 = vmatpush.bf16.msra.mxu3 %v10177_v57  ;;  %v12071_v57 = vld [vmem:[%s17222_s3 + $0x78c] sm:$0xf]  ;;  %v10910_v54 = vld [vmem:[%s17222_s3 + $0xa78] sm:$0xf0] }
 0x58b   : > { %v10545_v41 = vor.u32 %v12071_v57, %v10542_v8  ;;  %v11995_v57 = vld [vmem:[%s17222_s3 + $0x52c] sm:$0xf]  ;;  %v10238_v8 = vld [vmem:[%s17222_s3 + $0x538] sm:$0xf0] }
 0x58c   : > { %7408 = vmatpush.bf16.msrb.mxu1 %v10417_v24  ;;  %7370 = vmatpush.bf16.msra.mxu2 %v9969_v62  ;;  %v12179_v24 = vld [vmem:[%s17222_s3 + $0xaec] sm:$0xf]  ;;  %v10241_v27 = vor.u32 %v11995_v57, %v10238_v8  ;;  %v10222_v13 = vld [vmem:[%s17222_s3 + $0x518] sm:$0xf0] }
 0x58d   : > { %7342 = vmatpush.bf16.msra.mxu0 %v9713_v6  ;;  %v12003_v6 = vld [vmem:[%s17222_s3 + $0x56c] sm:$0xf]  ;;  %v16366_v44 = vpop.f32.mrf.mxu2  ;;  %v11086_v42 = vld [vmem:[%s17222_s3 + $0xbd8] sm:$0xf0] }
 0x58e   : > { %7380 = vmatpush.bf16.msra.mxu3 %v10161_v14  ;;  %v10526_v14 = vld [vmem:[%s17222_s3 + $0x778] sm:$0xf0]  ;;  %v10273_v45 = vor.u32 %v12003_v6, %v10270_v22  ;;  %v12147_v22 = vld [vmem:[%s17222_s3 + $0x9ec] sm:$0xf] }
 0x58f   : > { %7371 = vmatmul.bf16.vlgmr.msra.gmra.mxu2 %v14277_v10  ;;  %v10561_v10 = vor.u32 %v12075_v28, %v10558_v3  ;;  %v10529_v2 = vor.u32 %v12067_v60, %v10526_v14  ;;  %v11999_v28 = vld [vmem:[%s17222_s3 + $0x54c] sm:$0xf]  ;;  %v10254_v3 = vld [vmem:[%s17222_s3 + $0x558] sm:$0xf0] }
 0x590   : > { %7409 = vmatpush.bf16.msrb.mxu1 %v10401_v17  ;;  %7419 = vmatpush.bf16.msrb.mxu2 %v10593_v55  ;;  %v10289_v17 = vor.u32 %v12007_v21, %v10286_v26  ;;  %v12175_v55 = vld [vmem:[%s17222_s3 + $0xacc] sm:$0xf]  ;;  %v10257_v51 = vor.u32 %v11999_v28, %v10254_v3  ;;  %v10929_v21 = vor.u32 %v12167_v56, %v10926_v20  ;;  %v10638_v56 = vld [vmem:[%s17222_s3 + $0x858] sm:$0xf0] }
 0x591   : > { %7391 = vmatpush.bf16.msrb.mxu0 %v10337_v25  ;;  %v12063_v25 = vld [vmem:[%s17222_s3 + $0x74c] sm:$0xf]  ;;  %v10961_v33 = vor.u32 %v12175_v55, %v10958_v47  ;;  %v16393_v58 = vpop.f32.mrf.mxu0  ;;  %v10878_v57 = vld [vmem:[%s17222_s3 + $0xa38] sm:$0xf0] }
 0x592   : > { %7381 = vmatpush.bf16.msra.mxu3 %v10145_v12  ;;  %7343 = vmatmul.bf16.vlgmr.msra.gmra.mxu0 %v14086_v15  ;;  %v10974_v15 = vld [vmem:[%s17222_s3 + $0xaf8] sm:$0xf0]  ;;  %v16355_v12 = vpop.f32.mrf.mxu3  ;;  %v12103_v26 = vld [vmem:[%s17222_s3 + $0x88c] sm:$0xf] }
 0x593   : > { %v10977_v62 = vor.u32 %v12179_v24, %v10974_v15  ;;  %v12055_v24 = vld [vmem:[%s17222_s3 + $0x70c] sm:$0xf]  ;;  %v10478_v15 = vld [vmem:[%s17222_s3 + $0x718] sm:$0xf0] }
 0x594   : > { %7410 = vmatpush.bf16.msrb.mxu1 %v10385_v36  ;;  %7420 = vmatpush.bf16.msrb.mxu2 %v10577_v16  ;;  %v12111_v36 = vld [vmem:[%s17222_s3 + $0x8cc] sm:$0xf]  ;;  %v10702_v16 = vld [vmem:[%s17222_s3 + $0x8d8] sm:$0xf0] }
 0x595   : > { %7392 = vmatpush.bf16.msrb.mxu0 %v10321_v19  ;;  %v10513_v19 = vor.u32 %v12063_v25, %v10510_v34  ;;  %v12211_v60 = vld [vmem:[%s17222_s3 + $0xbec] sm:$0xf]  ;;  %v16448_v47 = vpop.f32.mrf.mxu2  ;;  %v10654_v34 = vld [vmem:[%s17222_s3 + $0x878] sm:$0xf0] }
 0x596   : > { %7382 = vmatpush.bf16.msra.mxu3 %v10129_v37  ;;  %v10705_v37 = vor.u32 %v12111_v36, %v10702_v16  ;;  %v12159_v36 = vld [vmem:[%s17222_s3 + $0xa4c] sm:$0xf]  ;;  %v10225_v16 = vor.u32 %v11991_v43, %v10222_v13  ;;  %v11054_v43 = vld [vmem:[%s17222_s3 + $0xb98] sm:$0xf0] }
 0x597   : > { %v12155_v20 = vld [vmem:[%s17222_s3 + $0xa2c] sm:$0xf] }
 0x598   : > { %7411 = vmatpush.bf16.msrb.mxu1 %v10369_v46  ;;  %7421 = vmatpush.bf16.msrb.mxu2 %v10561_v10  ;;  %v12107_v46 = vld [vmem:[%s17222_s3 + $0x8ac] sm:$0xf]  ;;  %v10686_v10 = vld [vmem:[%s17222_s3 + $0x8b8] sm:$0xf0] }
 0x599   : > { %7393 = vmatpush.bf16.msrb.mxu0 %v10305_v18  ;;  %v10689_v18 = vor.u32 %v12107_v46, %v10686_v10  ;;  %v12203_v8 = vld [vmem:[%s17222_s3 + $0xbac] sm:$0xf] }
 0x59a   : > { %7383 = vmatpush.bf16.msra.mxu3 %v10113_v11  ;;  %v16414_v11 = vpop.f32.mrf.mxu1  ;;  %v16434_v14 = vpop.f32.mrf.mxu3 }
 0x59c   : > { %7412 = vmatpush.bf16.msrb.mxu1 %v10353_v63  ;;  %7422 = vmatpush.bf16.msrb.mxu2 %v10545_v41  ;;  %v10670_v63 = vld [vmem:[%s17222_s3 + $0x898] sm:$0xf0]  ;;  %v12163_v41 = vld [vmem:[%s17222_s3 + $0xa6c] sm:$0xf] }
 0x59d   : > { %7394 = vmatpush.bf16.msrb.mxu0 %v10289_v17  ;;  %v16445_v17 = vld [vmem:[%s17223_s4] sm:$0xf]  ;;  %v10673_v6 = vor.u32 %v12103_v26, %v10670_v63  ;;  %v12139_v26 = vld [vmem:[%s17222_s3 + $0x9ac] sm:$0xf]  ;;  %v10814_v63 = vld [vmem:[%s17222_s3 + $0x9b8] sm:$0xf0] }
 0x59e   : > { %7384 = vmatpush.bf16.msra.mxu3 %v10097_v4  ;;  %v4688_v55 = vperm.slane %v16445_v17, 1  ;;  %v10481_v4 = vor.u32 %v12055_v24, %v10478_v15  ;;  %v16509_v15 = vpop.f32.mrf.mxu2 }
 0x59f   : > { %7413 = vmatmul.bf16.vlgmr.msrb.gmra.mxu1 %v14541_v48  ;;  %v10494_v48 = vld [vmem:[%s17222_s3 + $0x738] sm:$0xf0] }
 0x5a0   : > { %7461 = vmatpush.bf16.msra.mxu1 %v10977_v62  ;;  %7423 = vmatpush.bf16.msrb.mxu2 %v10529_v2  ;;  %v11102_v62 = vld [vmem:[%s17222_s3 + $0xbf8] sm:$0xf0]  ;;  %v6969_v28 = vadd.f32 %v16265_v23, %v4688_v55  ;;  %v11089_v23 = vor.u32 %v12207_v61, %v11086_v42  ;;  %v12243_v61 = vld [vmem:[%s17222_s3 + $0xcec] sm:$0xf] }
 0x5a1   : > { %7385 = vmatmul.bf16.vlgmr.msra.gmra.mxu3 %v14351_v52  ;;  %7395 = vmatpush.bf16.msrb.mxu0 %v10273_v45  ;;  %v10497_v52 = vor.u32 %v12059_v38, %v10494_v48  ;;  %v10846_v2 = vld [vmem:[%s17222_s3 + $0x9f8] sm:$0xf0]  ;;  %v11105_v25 = vor.u32 %v12211_v60, %v11102_v62  ;;  %v12151_v60 = vld [vmem:[%s17222_s3 + $0xa0c] sm:$0xf] }
 0x5a2   : > { %7433 = vmatpush.bf16.msrb.mxu3 %v10721_v40  ;;  %v10913_v40 = vor.u32 %v12163_v41, %v10910_v54  ;;  %v10894_v45 = vld [vmem:[%s17222_s3 + $0xa58] sm:$0xf0]  ;;  %v10849_v3 = vor.u32 %v12147_v22, %v10846_v2  ;;  %v6983_v46 = vadd.f32 %v16285_v30, %v6969_v28  ;;  %v16485_v10 = vpop.f32.mrf.mxu1  ;;  %v16518_v41 = vpop.f32.mrf.mxu3  ;;  %v12199_v62 = vld [vmem:[%s17222_s3 + $0xb8c] sm:$0xf] }
 0x5a3   : > { %v10830_v48 = vld [vmem:[%s17222_s3 + $0x9d8] sm:$0xf0]  ;;  %v12135_v22 = vld [vmem:[%s17222_s3 + $0x98c] sm:$0xf] }
 0x5a4   : > { %7462 = vmatpush.bf16.msra.mxu1 %v10961_v33  ;;  %7424 = vmatpush.bf16.msrb.mxu2 %v10513_v19  ;;  %v12099_v33 = vld [vmem:[%s17222_s3 + $0x86c] sm:$0xf]  ;;  %v6967_v19 = vadd.f32 %v16192_v1, %v4688_v55  ;;  %v10897_v1 = vor.u32 %v12159_v36, %v10894_v45  ;;  %v10622_v54 = vld [vmem:[%s17222_s3 + $0x838] sm:$0xf0]  ;;  %v10817_v55 = vor.u32 %v12139_v26, %v10814_v63 }
 0x5a5   : > { %7396 = vmatpush.bf16.msrb.mxu0 %v10257_v51  ;;  %v10657_v38 = vor.u32 %v12099_v33, %v10654_v34  ;;  %v12095_v51 = vld [vmem:[%s17222_s3 + $0x84c] sm:$0xf]  ;;  %v10606_v34 = vld [vmem:[%s17222_s3 + $0x818] sm:$0xf0] }
 0x5a6   : > { %7434 = vmatpush.bf16.msrb.mxu3 %v10705_v37  ;;  %v16476_v37 = vpop.f32.mrf.mxu0  ;;  %v6981_v30 = vadd.f32 %v16218_v39, %v6967_v19  ;;  %v12087_v33 = vld [vmem:[%s17222_s3 + $0x80c] sm:$0xf]  ;;  %v11230_v42 = vld [vmem:[%s17222_s3 + $0xcf8] sm:$0xf0] }
 0x5a7   : > { %v12195_v36 = vld [vmem:[%s17222_s3 + $0xb6c] sm:$0xf] }
 0x5a8   : > { %7463 = vmatpush.bf16.msra.mxu1 %v10945_v59  ;;  %7425 = vmatpush.bf16.msrb.mxu2 %v10497_v52  ;;  %v12143_v59 = vld [vmem:[%s17222_s3 + $0x9cc] sm:$0xf]  ;;  %v11070_v52 = vld [vmem:[%s17222_s3 + $0xbb8] sm:$0xf0]  ;;  %v6995_v39 = vadd.f32 %v16277_v29, %v6981_v30  ;;  %v16592_v30 = vpop.f32.mrf.mxu2 }
 0x5a9   : > { %7397 = vmatpush.bf16.msrb.mxu0 %v10241_v27  ;;  %v10833_v24 = vor.u32 %v12143_v59, %v10830_v48  ;;  %v11073_v29 = vor.u32 %v12203_v8, %v11070_v52  ;;  %v12091_v27 = vld [vmem:[%s17222_s3 + $0x82c] sm:$0xf]  ;;  %v12275_v59 = vld [vmem:[%s17224_s5 + $0xe4] sm:$0xf0]  ;;  %v10609_v48 = vor.u32 %v12087_v33, %v10606_v34  ;;  %v11022_v8 = vld [vmem:[%s17222_s3 + $0xb58] sm:$0xf0] }
 0x5aa   : > { %7435 = vmatpush.bf16.msrb.mxu3 %v10689_v18  ;;  %v6997_v18 = vadd.f32 %v16355_v12, %v6983_v46  ;;  %v7009_v13 = vadd.f32 %v16318_v49, %v6995_v39  ;;  %v10798_v49 = vld [vmem:[%s17222_s3 + $0x998] sm:$0xf0]  ;;  %v12131_v46 = vld [vmem:[%s17222_s3 + $0x96c] sm:$0xf]  ;;  %v11340_v39 = vld [vmem:[%s17224_s5 + $0xd0] sm:$0xf] }
 0x5ab   : > { %v10801_v19 = vor.u32 %v12135_v22, %v10798_v49  ;;  %v11214_v52 = vld [vmem:[%s17222_s3 + $0xcd8] sm:$0xf0]  ;;  %v12127_v26 = vld [vmem:[%s17222_s3 + $0x94c] sm:$0xf]  ;;  %v11324_v34 = vld [vmem:[%s17224_s5 + $0xb0] sm:$0xf] }
 0x5ac   : > { %7464 = vmatpush.bf16.msra.mxu1 %v10929_v21  ;;  %7426 = vmatpush.bf16.msrb.mxu2 %v10481_v4  ;;  %v10641_v21 = vor.u32 %v12095_v51, %v10638_v56  ;;  %v7011_v12 = vadd.f32 %v16393_v58, %v6997_v18  ;;  %v10862_v58 = vld [vmem:[%s17222_s3 + $0xa18] sm:$0xf0]  ;;  %v12277_v4 = vld [vmem:[%s17224_s5 + $0xf4] sm:$0xf0]  ;;  %v7023_v28 = vadd.f32 %v16344_v31, %v7009_v13  ;;  %v12183_v49 = vld [vmem:[%s17222_s3 + $0xb0c] sm:$0xf] }
 0x5ad   : > { %7398 = vmatpush.bf16.msrb.mxu0 %v10225_v16  ;;  %v10782_v31 = vld [vmem:[%s17222_s3 + $0x978] sm:$0xf0]  ;;  %v11233_v56 = vor.u32 %v12243_v61, %v11230_v42  ;;  %v11420_v61 = vld [vmem:[%s17224_s5 + $0x170] sm:$0xf]  ;;  %v12293_v42 = vld [vmem:[%s17224_s5 + $0x174] sm:$0xf0] }
 0x5ae   : > { %7436 = vmatpush.bf16.msrb.mxu3 %v10673_v6  ;;  %v10625_v6 = vor.u32 %v12091_v27, %v10622_v54  ;;  %v7025_v2 = vadd.f32 %v16414_v11, %v7011_v12  ;;  %v7066_v16 = vpop.f32.mrf.mxu0  ;;  %v11038_v11 = vld [vmem:[%s17222_s3 + $0xb78] sm:$0xf0]  ;;  %v7037_v18 = vadd.f32 %v16366_v44, %v7023_v28  ;;  %v12119_v28 = vld [vmem:[%s17222_s3 + $0x90c] sm:$0xf] }
 0x5af   : > { %7427 = vmatmul.bf16.vlgmr.msrb.gmra.mxu2 %v14643_v50  ;;  %v10881_v50 = vor.u32 %v12155_v20, %v10878_v57  ;;  %v11041_v51 = vor.u32 %v12195_v36, %v11038_v11  ;;  %v12191_v20 = vld [vmem:[%s17222_s3 + $0xb4c] sm:$0xf]  ;;  %v10766_v44 = vld [vmem:[%s17222_s3 + $0x958] sm:$0xf0]  ;;  %v12269_v11 = vld [vmem:[%s17224_s5 + $0xb4] sm:$0xf0] }
 0x5b0   : > { %7465 = vmatpush.bf16.msra.mxu1 %v10913_v40  ;;  %7475 = vmatpush.bf16.msra.mxu2 %v11105_v25  ;;  %v10865_v40 = vor.u32 %v12151_v60, %v10862_v58  ;;  %v11057_v25 = vor.u32 %v12199_v62, %v11054_v43  ;;  %v11025_v12 = vor.u32 %v12191_v20, %v11022_v8  ;;  %v11006_v54 = vld [vmem:[%s17222_s3 + $0xb38] sm:$0xf0]  ;;  %v12267_v8 = vld [vmem:[%s17224_s5 + $0xa4] sm:$0xf0] }
 0x5b1   : > { %7447 = vmatpush.bf16.msra.mxu0 %v10849_v3  ;;  %v16572_v3 = vpop.f32.mrf.mxu1  ;;  %v11198_v60 = vld [vmem:[%s17222_s3 + $0xcb8] sm:$0xf0]  ;;  %v7051_v58 = vadd.f32 %v16434_v14, %v7037_v18  ;;  %v10769_v13 = vor.u32 %v12127_v26, %v10766_v44  ;;  %v11412_v18 = vld [vmem:[%s17224_s5 + $0x160] sm:$0xf] }
 0x5b2   : > { %7437 = vmatpush.bf16.msrb.mxu3 %v10657_v38  ;;  %7399 = vmatmul.bf16.vlgmr.msrb.gmra.mxu0 %v14443_v5  ;;  %v11356_v5 = vld [vmem:[%s17224_s5 + $0xf0] sm:$0xf]  ;;  %v11348_v38 = vld [vmem:[%s17224_s5 + $0xe0] sm:$0xf]  ;;  %v10750_v14 = vld [vmem:[%s17222_s3 + $0x938] sm:$0xf0] }
 0x5b3   : > { %v11357_v45 = vor.u32 %v12277_v4, %v11356_v5  ;;  %v11349_v57 = vor.u32 %v12275_v59, %v11348_v38  ;;  %v12271_v5 = vld [vmem:[%s17224_s5 + $0xc4] sm:$0xf0]  ;;  %v12123_v4 = vld [vmem:[%s17222_s3 + $0x92c] sm:$0xf]  ;;  %v11182_v33 = vld [vmem:[%s17222_s3 + $0xc98] sm:$0xf0] }
 0x5b4   : > { %7466 = vmatpush.bf16.msra.mxu1 %v10897_v1  ;;  %7476 = vmatpush.bf16.msra.mxu2 %v11089_v23  ;;  %v7039_v1 = vadd.f32 %v16448_v47, %v7025_v2  ;;  %v16587_v23 = vpop.f32.mrf.mxu3  ;;  %v12239_v47 = vld [vmem:[%s17222_s3 + $0xccc] sm:$0xf]  ;;  %v10990_v2 = vld [vmem:[%s17222_s3 + $0xb18] sm:$0xf0]  ;;  %v11284_v44 = vld [vmem:[%s17224_s5 + $0x60] sm:$0xf] }
 0x5b5   : > { %7448 = vmatpush.bf16.msra.mxu0 %v10833_v24  ;;  %v10785_v24 = vor.u32 %v12131_v46, %v10782_v31  ;;  %v10993_v38 = vor.u32 %v12183_v49, %v10990_v2  ;;  %v12261_v46 = vld [vmem:[%s17224_s5 + $0x74] sm:$0xf0]  ;;  %v11325_v31 = vor.u32 %v12269_v11, %v11324_v34  ;;  %v11300_v49 = vld [vmem:[%s17224_s5 + $0x80] sm:$0xf]  ;;  %v12263_v2 = vld [vmem:[%s17224_s5 + $0x84] sm:$0xf0] }
 0x5b6   : > { %7438 = vmatpush.bf16.msrb.mxu3 %v10641_v21  ;;  %v12273_v21 = vld [vmem:[%s17224_s5 + $0xd4] sm:$0xf0]  ;;  %v7053_v63 = vadd.f32 %v16518_v41, %v7039_v1  ;;  %v16621_v27 = vpop.f32.mrf.mxu0  ;;  %v12235_v41 = vld [vmem:[%s17222_s3 + $0xcac] sm:$0xf]  ;;  %v11396_v34 = vld [vmem:[%s17224_s5 + $0x140] sm:$0xf] }
 0x5b7   : > { %v11201_v22 = vor.u32 %v12235_v41, %v11198_v60  ;;  %v12227_v1 = vld [vmem:[%s17222_s3 + $0xc6c] sm:$0xf]  ;;  %v11308_v41 = vld [vmem:[%s17224_s5 + $0x90] sm:$0xf]  ;;  %v12265_v60 = vld [vmem:[%s17224_s5 + $0x94] sm:$0xf0] }
 0x5b8   : > { %7467 = vmatpush.bf16.msra.mxu1 %v10881_v50  ;;  %7477 = vmatpush.bf16.msra.mxu2 %v11073_v29  ;;  %v11217_v50 = vor.u32 %v12239_v47, %v11214_v52  ;;  %v12187_v29 = vld [vmem:[%s17222_s3 + $0xb2c] sm:$0xf]  ;;  %v7067_v62 = vadd.f32 %v7066_v16, %v7053_v63  ;;  %v12259_v63 = vld [vmem:[%s17224_s5 + $0x64] sm:$0xf0] }
 0x5b9   : > { %7449 = vmatpush.bf16.msra.mxu0 %v10817_v55  ;;  %v16633_v43 = vpop.f32.mrf.mxu1  ;;  %v11332_v55 = vld [vmem:[%s17224_s5 + $0xc0] sm:$0xf] }
 0x5ba   : > { %7439 = vmatpush.bf16.msrb.mxu3 %v10625_v6  ;;  %v11009_v6 = vor.u32 %v12187_v29, %v11006_v54  ;;  %v7081_v36 = vadd.f32 %v16572_v3, %v7067_v62  ;;  %v10734_v3 = vld [vmem:[%s17222_s3 + $0x918] sm:$0xf0] }
 0x5bb   : > { %v10737_v20 = vor.u32 %v12119_v28, %v10734_v3  ;;  %v12255_v28 = vld [vmem:[%s17224_s5 + $0x44] sm:$0xf0]  ;;  %v11301_v3 = vor.u32 %v12263_v2, %v11300_v49 }
 0x5bc   : > { %7468 = vmatpush.bf16.msra.mxu1 %v10865_v40  ;;  %7478 = vmatpush.bf16.msra.mxu2 %v11057_v25  ;;  %v16655_v40 = vpop.f32.mrf.mxu2  ;;  %v11333_v25 = vor.u32 %v12271_v5, %v11332_v55  ;;  %v7108_v16 = vpop.f32.mrf.mxu3  ;;  %v12289_v55 = vld [vmem:[%s17224_s5 + $0x154] sm:$0xf0] }
 0x5bd   : > { %7450 = vmatpush.bf16.msra.mxu0 %v10801_v19 }
 0x5be   : > { %7440 = vmatpush.bf16.msrb.mxu3 %v10609_v48  ;;  %v11292_v48 = vld [vmem:[%s17224_s5 + $0x70] sm:$0xf]  ;;  %v7122_v47 = vpop.f32.mrf.mxu0 }
 0x5bf   : > { %7469 = vmatmul.bf16.vlgmr.msra.gmra.mxu1 %v14858_v0  ;;  %v11341_v0 = vor.u32 %v12273_v21, %v11340_v39  ;;  %v11293_v52 = vor.u32 %v12261_v46, %v11292_v48  ;;  %v12274_v48 = vld [vmem:[%s17224_s5 + $0xe4] sm:$0xf] }
 0x5c0   : > { %7919 = vmatpush.bf16.msrb.mxu1 %v11357_v45  ;;  %7479 = vmatpush.bf16.msra.mxu2 %v11041_v51  ;;  %v10753_v45 = vor.u32 %v12123_v4, %v10750_v14  ;;  %v11421_v51 = vor.u32 %v12293_v42, %v11420_v61  ;;  %v11276_v14 = vld [vmem:[%s17224_s5 + $0x50] sm:$0xf]  ;;  %v11268_v42 = vld [vmem:[%s17224_s5 + $0x40] sm:$0xf] }
 0x5c1   : > { %7441 = vmatmul.bf16.vlgmr.msrb.gmra.mxu3 %v14728_v53  ;;  %7451 = vmatpush.bf16.msra.mxu0 %v10785_v24  ;;  %v7065_v53 = vadd.f32 %v16476_v37, %v7051_v58  ;;  %v12231_v37 = vld [vmem:[%s17222_s3 + $0xc8c] sm:$0xf]  ;;  %v7136_v39 = vpop.f32.mrf.mxu1 }
 0x5c2   : > { %7489 = vmatpush.bf16.msra.mxu3 %v11233_v56  ;;  %v11185_v59 = vor.u32 %v12231_v37, %v11182_v33  ;;  %v7095_v56 = vadd.f32 %v16592_v30, %v7081_v36  ;;  %v12291_v30 = vld [vmem:[%s17224_s5 + $0x164] sm:$0xf0]  ;;  %v11358_v33 = vld [vmem:[%s17224_s5 + $0xf8] sm:$0xf0] }
 0x5c3   : > { %v7079_v19 = vadd.f32 %v16485_v10, %v7065_v53  ;;  %v11166_v10 = vld [vmem:[%s17222_s3 + $0xc78] sm:$0xf0]  ;;  %v11413_v58 = vor.u32 %v12291_v30, %v11412_v18  ;;  %v11309_v53 = vor.u32 %v12265_v60, %v11308_v41  ;;  %v12287_v36 = vld [vmem:[%s17224_s5 + $0x144] sm:$0xf0]  ;;  %v4689_v18 = vperm.slane %v16445_v17, 2 }
 0x5c4   : > { %7920 = vmatpush.bf16.msrb.mxu1 %v11349_v57  ;;  %7480 = vmatpush.bf16.msra.mxu2 %v11025_v12  ;;  %v11316_v57 = vld [vmem:[%s17224_s5 + $0xa0] sm:$0xf]  ;;  %v7109_v21 = vadd.f32 %v7108_v16, %v7095_v56  ;;  %v11169_v26 = vor.u32 %v12227_v1, %v11166_v10  ;;  %v16722_v54 = vpop.f32.mrf.mxu3  ;;  %v16730_v62 = vpop.f32.mrf.mxu2  ;;  %v11397_v46 = vor.u32 %v12287_v36, %v11396_v34  ;;  %v11350_v10 = vld [vmem:[%s17224_s5 + $0xe8] sm:$0xf0]  ;;  %v12285_v56 = vld [vmem:[%s17224_s5 + $0x134] sm:$0xf0] }
 0x5c5   : > { %7452 = vmatpush.bf16.msra.mxu0 %v10769_v13  ;;  %v7093_v24 = vadd.f32 %v16509_v15, %v7079_v19  ;;  %v11317_v12 = vor.u32 %v12267_v8, %v11316_v57  ;;  %v11150_v15 = vld [vmem:[%s17222_s3 + $0xc58] sm:$0xf0]  ;;  %v11285_v13 = vor.u32 %v12259_v63, %v11284_v44  ;;  %v11269_v1 = vor.u32 %v12255_v28, %v11268_v42  ;;  %v11380_v63 = vld [vmem:[%s17224_s5 + $0x120] sm:$0xf]  ;;  %v12270_v60 = vld [vmem:[%s17224_s5 + $0xc4] sm:$0xf] }
 0x5c6   : > { %7490 = vmatpush.bf16.msra.mxu3 %v11217_v50  ;;  %v12223_v50 = vld [vmem:[%s17222_s3 + $0xc4c] sm:$0xf]  ;;  %v16774_v11 = vpop.f32.mrf.mxu0  ;;  %v11118_v19 = vld [vmem:[%s17222_s3 + $0xc18] sm:$0xf0]  ;;  %v12292_v34 = vld [vmem:[%s17224_s5 + $0x174] sm:$0xf] }
 0x5c7   : > { %v7107_v29 = vadd.f32 %v16587_v23, %v7093_v24  ;;  %v11404_v23 = vld [vmem:[%s17224_s5 + $0x150] sm:$0xf]  ;;  %v11153_v4 = vor.u32 %v12223_v50, %v11150_v15  ;;  %v11353_v24 = vor.u32 %v12274_v48, %v11350_v10  ;;  %v11342_v44 = vld [vmem:[%s17224_s5 + $0xd8] sm:$0xf0]  ;;  %v11252_v50 = vld [vmem:[%s17224_s5 + $0x20] sm:$0xf] }
 0x5c8   : > { %7921 = vmatpush.bf16.msrb.mxu1 %v11341_v0  ;;  %7481 = vmatpush.bf16.msra.mxu2 %v11009_v6  ;;  %v7123_v0 = vadd.f32 %v7122_v47, %v7109_v21  ;;  %v12219_v6 = vld [vmem:[%s17222_s3 + $0xc2c] sm:$0xf]  ;;  %v11260_v47 = vld [vmem:[%s17224_s5 + $0x30] sm:$0xf]  ;;  %v12251_v15 = vld [vmem:[%s17224_s5 + $0x24] sm:$0xf0] }
 0x5c9   : > { %7453 = vmatpush.bf16.msra.mxu0 %v10753_v45  ;;  %v7121_v5 = vadd.f32 %v16621_v27, %v7107_v29  ;;  %v11134_v27 = vld [vmem:[%s17222_s3 + $0xc38] sm:$0xf0]  ;;  %v16772_v45 = vpop.f32.mrf.mxu1  ;;  %v11318_v48 = vld [vmem:[%s17224_s5 + $0xa8] sm:$0xf0]  ;;  %v12290_v10 = vld [vmem:[%s17224_s5 + $0x164] sm:$0xf] }
 0x5ca   : > { %7491 = vmatpush.bf16.msra.mxu3 %v11201_v22  ;;  %v7137_v22 = vadd.f32 %v7136_v39, %v7123_v0  ;;  %v11137_v61 = vor.u32 %v12219_v6, %v11134_v27  ;;  %v12272_v39 = vld [vmem:[%s17224_s5 + $0xd4] sm:$0xf]  ;;  %v11422_v36 = vld [vmem:[%s17224_s5 + $0x178] sm:$0xf0] }
 0x5cb   : > { %v7135_v16 = vadd.f32 %v16633_v43, %v7121_v5  ;;  %v12215_v43 = vld [vmem:[%s17222_s3 + $0xc0c] sm:$0xf]  ;;  %v11345_v41 = vor.u32 %v12272_v39, %v11342_v44  ;;  %v11372_v5 = vld [vmem:[%s17224_s5 + $0x110] sm:$0xf]  ;;  %v12268_v27 = vld [vmem:[%s17224_s5 + $0xb4] sm:$0xf] }
 0x5cc   : > { %7922 = vmatpush.bf16.msrb.mxu1 %v11333_v25  ;;  %7482 = vmatpush.bf16.msra.mxu2 %v10993_v38  ;;  %v11405_v25 = vor.u32 %v12289_v55, %v11404_v23  ;;  %v7508_v38 = vmax.f32 %v7137_v22, 0.0  ;;  %v16802_v57 = vpop.f32.mrf.mxu3  ;;  %v11121_v8 = vor.u32 %v12215_v43, %v11118_v19  ;;  %v11253_v23 = vor.u32 %v12251_v15, %v11252_v50  ;;  %v11334_v55 = vld [vmem:[%s17224_s5 + $0xc8] sm:$0xf0]  ;;  %v11326_v22 = vld [vmem:[%s17224_s5 + $0xb8] sm:$0xf0] }
 0x5cd   : > { %7454 = vmatpush.bf16.msra.mxu0 %v10737_v20  ;;  %v7504_v20 = vmax.f32 %v7135_v16, 0.0  ;;  %v11337_v6 = vor.u32 %v12270_v60, %v11334_v55  ;;  %v7151_v16 = vadd.f32 %v16730_v62, %v4689_v18  ;;  %v11278_v50 = vld [vmem:[%s17224_s5 + $0x58] sm:$0xf0]  ;;  %v12286_v55 = vld [vmem:[%s17224_s5 + $0x144] sm:$0xf] }
 0x5ce   : > { %7492 = vmatpush.bf16.msra.mxu3 %v11185_v59  ;;  %v7178_v0 = vpop.f32.mrf.mxu0 }
 0x5cf   : > { %7483 = vmatmul.bf16.vlgmr.msra.gmra.mxu2 %v14924_v7  ;;  %v12257_v7 = vld [vmem:[%s17224_s5 + $0x54] sm:$0xf0]  ;;  %v16811_v30 = vpack.c.bf16 %v7508_v38, %v7504_v20  ;;  %v7165_v19 = vadd.f32 %v16802_v57, %v7151_v16  ;;  %v12258_v20 = vld [vmem:[%s17224_s5 + $0x64] sm:$0xf]  ;;  %v11286_v57 = vld [vmem:[%s17224_s5 + $0x68] sm:$0xf0] }
 0x5d0   : > { %7923 = vmatpush.bf16.msrb.mxu1 %v11325_v31  ;;  %7933 = vmatpush.bf16.msrb.mxu2 %v11421_v51  ;;  %v11277_v37 = vor.u32 %v12257_v7, %v11276_v14  ;;  %v16791_v31 = vpop.f32.mrf.mxu2  ;;  %v11388_v51 = vld [vmem:[%s17224_s5 + $0x130] sm:$0xf] }
 0x5d1   : > { %7905 = vmatpush.bf16.msrb.mxu0 %v11293_v52  ;;  %v12253_v52 = vld [vmem:[%s17224_s5 + $0x34] sm:$0xf0]  ;;  %v11389_v21 = vor.u32 %v12285_v56, %v11388_v51  ;;  %v16832_v29 = vpop.f32.mrf.mxu1  ;;  %v7179_v51 = vadd.f32 %v7178_v0, %v7165_v19  ;;  %v11254_v19 = vld [vmem:[%s17224_s5 + $0x28] sm:$0xf0] }
 0x5d2   : > { %7493 = vmatpush.bf16.msra.mxu3 %v11169_v26  ;;  %7455 = vmatmul.bf16.vlgmr.msra.gmra.mxu0 %v14793_v35  ;;  %v12276_v35 = vld [vmem:[%s17224_s5 + $0xf4] sm:$0xf]  ;;  %v11261_v26 = vor.u32 %v12253_v52, %v11260_v47 }
 0x5d3   : > { %v11361_v59 = vor.u32 %v12276_v35, %v11358_v33  ;;  %v12247_v33 = vld [vmem:[%s17224_s5 + $0x4] sm:$0xf0]  ;;  %v7193_v44 = vadd.f32 %v16832_v29, %v7179_v51  ;;  %v11302_v29 = vld [vmem:[%s17224_s5 + $0x88] sm:$0xf0]  ;;  %v11246_v51 = vld [vmem:[%s17224_s5 + $0x18] sm:$0xf0] }
 0x5d4   : > { %7924 = vmatpush.bf16.msrb.mxu1 %v11317_v12  ;;  %7934 = vmatpush.bf16.msrb.mxu2 %v11413_v58  ;;  %v12283_v12 = vld [vmem:[%s17224_s5 + $0x124] sm:$0xf0]  ;;  %v7218_v14 = vpop.f32.mrf.mxu3 }
 0x5d5   : > { %7906 = vmatpush.bf16.msrb.mxu0 %v11285_v13  ;;  %v11381_v58 = vor.u32 %v12283_v12, %v11380_v63  ;;  %v7149_v13 = vadd.f32 %v16655_v40, %v4689_v18  ;;  %v11244_v40 = vld [vmem:[%s17224_s5 + $0x10] sm:$0xf]  ;;  %v12264_v18 = vld [vmem:[%s17224_s5 + $0x94] sm:$0xf] }
 0x5d6   : > { %7494 = vmatpush.bf16.msra.mxu3 %v11153_v4  ;;  %v12281_v4 = vld [vmem:[%s17224_s5 + $0x114] sm:$0xf0]  ;;  %v7232_v28 = vpop.f32.mrf.mxu0  ;;  %v12256_v12 = vld [vmem:[%s17224_s5 + $0x54] sm:$0xf] }
 0x5d7   : > { %v7163_v7 = vadd.f32 %v16722_v54, %v7149_v13  ;;  %v11373_v49 = vor.u32 %v12281_v4, %v11372_v5  ;;  %v11236_v54 = vld [vmem:[%s17224_s5] sm:$0xf]  ;;  %v11398_v5 = vld [vmem:[%s17224_s5 + $0x148] sm:$0xf0] }
 0x5d8   : > { %7925 = vmatpush.bf16.msrb.mxu1 %v11309_v53  ;;  %7935 = vmatpush.bf16.msrb.mxu2 %v11405_v25  ;;  %v16855_v53 = vpop.f32.mrf.mxu2  ;;  %v11364_v25 = vld [vmem:[%s17224_s5 + $0x100] sm:$0xf]  ;;  %v11237_v62 = vor.u32 %v12247_v33, %v11236_v54 }
 0x5d9   : > { %7907 = vmatpush.bf16.msrb.mxu0 %v11277_v37  ;;  %v7177_v2 = vadd.f32 %v16774_v11, %v7163_v7  ;;  %v12279_v37 = vld [vmem:[%s17224_s5 + $0x104] sm:$0xf0]  ;;  %v12260_v11 = vld [vmem:[%s17224_s5 + $0x74] sm:$0xf]  ;;  %v7246_v42 = vpop.f32.mrf.mxu1  ;;  %v7207_v4 = vadd.f32 %v16855_v53, %v7193_v44 }
 0x5da   : > { %7495 = vmatpush.bf16.msra.mxu3 %v11137_v61  ;;  %v11294_v61 = vld [vmem:[%s17224_s5 + $0x78] sm:$0xf0]  ;;  %v11365_v43 = vor.u32 %v12279_v37, %v11364_v25  ;;  %v12284_v53 = vld [vmem:[%s17224_s5 + $0x134] sm:$0xf] }
 0x5db   : > { %v7191_v38 = vadd.f32 %v16772_v45, %v7177_v2  ;;  %v11414_v45 = vld [vmem:[%s17224_s5 + $0x168] sm:$0xf0]  ;;  %v12252_v25 = vld [vmem:[%s17224_s5 + $0x34] sm:$0xf]  ;;  %v11262_v37 = vld [vmem:[%s17224_s5 + $0x38] sm:$0xf0] }
 0x5dc   : > { %7926 = vmatpush.bf16.msrb.mxu1 %v11301_v3  ;;  %7936 = vmatpush.bf16.msrb.mxu2 %v11397_v46  ;;  %v11329_v3 = vor.u32 %v12268_v27, %v11326_v22  ;;  %v11425_v46 = vor.u32 %v12292_v34, %v11422_v36  ;;  %v11417_v39 = vor.u32 %v12290_v10, %v11414_v45  ;;  %v12248_v45 = vld [vmem:[%s17224_s5 + $0x14] sm:$0xf] }
 0x5dd   : > { %7908 = vmatpush.bf16.msrb.mxu0 %v11269_v1  ;;  %v11297_v1 = vor.u32 %v12260_v11, %v11294_v61  ;;  %v7205_v52 = vadd.f32 %v16791_v31, %v7191_v38  ;;  %v11406_v31 = vld [vmem:[%s17224_s5 + $0x158] sm:$0xf0]  ;;  %v11265_v11 = vor.u32 %v12252_v25, %v11262_v37  ;;  %v12282_v61 = vld [vmem:[%s17224_s5 + $0x124] sm:$0xf]  ;;  %v12299_v25 = vld [vmem:[%s17224_s5 + $0x1a4] sm:$0xf0] }
 0x5de   : > { %7496 = vmatpush.bf16.msra.mxu3 %v11121_v8  ;;  %v7220_v8 = vpop.f32.mrf.mxu3  ;;  %v7234_v13 = vpop.f32.mrf.mxu0 }
 0x5df   : > { %7927 = vmatmul.bf16.vlgmr.msrb.gmra.mxu1 %v16811_v30  ;;  %v7219_v63 = vadd.f32 %v7218_v14, %v7205_v52  ;;  %v12254_v14 = vld [vmem:[%s17224_s5 + $0x44] sm:$0xf] }
 0x5e0   : > { %7975 = vmatpush.bf16.msra.mxu1 %v11361_v59  ;;  %7937 = vmatpush.bf16.msrb.mxu2 %v11389_v21  ;;  %v12266_v59 = vld [vmem:[%s17224_s5 + $0xa4] sm:$0xf]  ;;  %v7260_v56 = vpop.f32.mrf.mxu2  ;;  %v11289_v21 = vor.u32 %v12258_v20, %v11286_v57 }
 0x5e1   : > { %7497 = vmatmul.bf16.vlgmr.msra.gmra.mxu3 %v15020_v9  ;;  %7909 = vmatpush.bf16.msrb.mxu0 %v11261_v26  ;;  %v12249_v9 = vld [vmem:[%s17224_s5 + $0x14] sm:$0xf0]  ;;  %v11321_v47 = vor.u32 %v12266_v59, %v11318_v48  ;;  %v12288_v26 = vld [vmem:[%s17224_s5 + $0x154] sm:$0xf]  ;;  %v7233_v0 = vadd.f32 %v7232_v28, %v7219_v63  ;;  %v12278_v52 = vld [vmem:[%s17224_s5 + $0x104] sm:$0xf] }
 0x5e2   : > { %v11245_v35 = vor.u32 %v12249_v9, %v11244_v40  ;;  %v11409_v60 = vor.u32 %v12288_v26, %v11406_v31  ;;  %v11270_v40 = vld [vmem:[%s17224_s5 + $0x48] sm:$0xf0] }
 0x5e3   : > { %v7247_v27 = vadd.f32 %v7246_v42, %v7233_v0  ;;  %v11273_v2 = vor.u32 %v12254_v14, %v11270_v40  ;;  %v11382_v42 = vld [vmem:[%s17224_s5 + $0x128] sm:$0xf0] }
 0x5e4   : > { %7976 = vmatpush.bf16.msra.mxu1 %v11353_v24  ;;  %7938 = vmatpush.bf16.msrb.mxu2 %v11381_v58  ;;  %v11310_v24 = vld [vmem:[%s17224_s5 + $0x98] sm:$0xf0]  ;;  %v7248_v58 = vpop.f32.mrf.mxu1  ;;  %v11385_v59 = vor.u32 %v12282_v61, %v11382_v42  ;;  %v11428_v42 = vld [vmem:[%s17224_s5 + $0x180] sm:$0xf] }
 0x5e5   : > { %7910 = vmatpush.bf16.msrb.mxu0 %v11253_v23  ;;  %v11313_v15 = vor.u32 %v12264_v18, %v11310_v24  ;;  %v11281_v23 = vor.u32 %v12256_v12, %v11278_v50  ;;  %v7261_v33 = vadd.f32 %v7260_v56, %v7247_v27  ;;  %v11366_v18 = vld [vmem:[%s17224_s5 + $0x108] sm:$0xf0] }
 0x5e6   : > { %v7274_v9 = vpop.f32.mrf.mxu3  ;;  %v11369_v12 = vor.u32 %v12278_v52, %v11366_v18 }
 0x5e8   : > { %7977 = vmatpush.bf16.msra.mxu1 %v11345_v41  ;;  %7939 = vmatpush.bf16.msrb.mxu2 %v11373_v49  ;;  %v12262_v41 = vld [vmem:[%s17224_s5 + $0x84] sm:$0xf]  ;;  %v7262_v22 = vpop.f32.mrf.mxu2  ;;  %v11401_v49 = vor.u32 %v12286_v55, %v11398_v5  ;;  %v12307_v55 = vld [vmem:[%s17224_s5 + $0x1e4] sm:$0xf0]  ;;  %v11468_v5 = vld [vmem:[%s17224_s5 + $0x1d0] sm:$0xf] }
 0x5e9   : > { %7911 = vmatpush.bf16.msrb.mxu0 %v11245_v35  ;;  %v11305_v7 = vor.u32 %v12262_v41, %v11302_v29  ;;  %v11390_v35 = vld [vmem:[%s17224_s5 + $0x138] sm:$0xf0] }
 0x5ea   : > { %v11393_v34 = vor.u32 %v12284_v53, %v11390_v35 }
 0x5ec   : > { %7978 = vmatpush.bf16.msra.mxu1 %v11337_v6  ;;  %7940 = vmatpush.bf16.msrb.mxu2 %v11365_v43  ;;  %v7221_v6 = vadd.f32 %v7220_v8, %v7207_v4  ;;  %v7302_v36 = vpop.f32.mrf.mxu1  ;;  %v12250_v43 = vld [vmem:[%s17224_s5 + $0x24] sm:$0xf]  ;;  %v12305_v4 = vld [vmem:[%s17224_s5 + $0x1d4] sm:$0xf0] }
 0x5ed   : > { %7912 = vmatpush.bf16.msrb.mxu0 %v11237_v62  ;;  %v11469_v14 = vor.u32 %v12305_v4, %v11468_v5 }
 0x5ee   : > { %v7235_v54 = vadd.f32 %v7234_v13, %v7221_v6  ;;  %v7276_v48 = vpop.f32.mrf.mxu3 }
 0x5ef   : > { %v7288_v16 = vpop.f32.mrf.mxu0 }
 0x5f0   : > { %7979 = vmatpush.bf16.msra.mxu1 %v11329_v3  ;;  %7989 = vmatpush.bf16.msra.mxu2 %v11425_v46  ;;  %v7249_v28 = vadd.f32 %v7248_v58, %v7235_v54  ;;  %v7275_v3 = vadd.f32 %v7274_v9, %v7261_v33  ;;  %v11257_v46 = vor.u32 %v12250_v43, %v11254_v19  ;;  %v12309_v58 = vld [vmem:[%s17224_s5 + $0x1f4] sm:$0xf0]  ;;  %v11460_v9 = vld [vmem:[%s17224_s5 + $0x1c0] sm:$0xf]  ;;  %v12308_v43 = vld [vmem:[%s17224_s5 + $0x1f4] sm:$0xf] }
 0x5f1   : > { %7961 = vmatpush.bf16.msra.mxu0 %v11297_v1  ;;  %v12280_v1 = vld [vmem:[%s17224_s5 + $0x114] sm:$0xf]  ;;  %v11444_v54 = vld [vmem:[%s17224_s5 + $0x1a0] sm:$0xf]  ;;  %v11486_v19 = vld [vmem:[%s17224_s5 + $0x1f8] sm:$0xf0] }
 0x5f2   : > { %7913 = vmatmul.bf16.vlgmr.msrb.gmra.mxu0 %v16018_v32  ;;  %v7289_v38 = vadd.f32 %v7288_v16, %v7275_v3  ;;  %v7316_v62 = vpop.f32.mrf.mxu2  ;;  %v7263_v10 = vadd.f32 %v7262_v22, %v7249_v28  ;;  %v11452_v22 = vld [vmem:[%s17224_s5 + $0x1b0] sm:$0xf]  ;;  %v11445_v37 = vor.u32 %v12299_v25, %v11444_v54  ;;  %v12297_v16 = vld [vmem:[%s17224_s5 + $0x194] sm:$0xf0]  ;;  %v12295_v28 = vld [vmem:[%s17224_s5 + $0x184] sm:$0xf0] }
 0x5f3   : > { %v11429_v3 = vor.u32 %v12295_v28, %v11428_v42 }
 0x5f4   : > { %7980 = vmatpush.bf16.msra.mxu1 %v11321_v47  ;;  %7990 = vmatpush.bf16.msra.mxu2 %v11417_v39  ;;  %v7277_v56 = vadd.f32 %v7276_v48, %v7263_v10  ;;  %v7303_v20 = vadd.f32 %v7302_v36, %v7289_v38  ;;  %v11249_v47 = vor.u32 %v12248_v45, %v11246_v51  ;;  %v12246_v39 = vld [vmem:[%s17224_s5 + $0x4] sm:$0xf]  ;;  %v7304_v26 = vpop.f32.mrf.mxu1  ;;  %v11436_v36 = vld [vmem:[%s17224_s5 + $0x190] sm:$0xf] }
 0x5f5   : > { %7962 = vmatpush.bf16.msra.mxu0 %v11289_v21  ;;  %v11238_v21 = vld [vmem:[%s17224_s5 + $0x8] sm:$0xf0] }
 0x5f6   : > { %v7317_v31 = vadd.f32 %v7316_v62, %v7303_v20  ;;  %v11241_v50 = vor.u32 %v12246_v39, %v11238_v21  ;;  %v11489_v62 = vor.u32 %v12308_v43, %v11486_v19  ;;  %v11470_v20 = vld [vmem:[%s17224_s5 + $0x1d8] sm:$0xf0]  ;;  %v12302_v39 = vld [vmem:[%s17224_s5 + $0x1c4] sm:$0xf]  ;;  %v11462_v21 = vld [vmem:[%s17224_s5 + $0x1c8] sm:$0xf0] }
 0x5f7   : > { %v7290_v8 = vpop.f32.mrf.mxu0 }
 0x5f8   : > { %7981 = vmatpush.bf16.msra.mxu1 %v11313_v15  ;;  %7991 = vmatpush.bf16.msra.mxu2 %v11409_v60  ;;  %v7291_v24 = vadd.f32 %v7290_v8, %v7277_v56  ;;  %v7505_v0 = vmax.f32 %v7317_v31, 0.0  ;;  %v11484_v60 = vld [vmem:[%s17224_s5 + $0x1f0] sm:$0xf]  ;;  %v11465_v31 = vor.u32 %v12302_v39, %v11462_v21  ;;  %v8029_v39 = vld [vmem:[%s17226_s7 + $0x40] sm:$0xff]  ;;  %v8028_v21 = vld [vmem:[%s17226_s7 + $0x38] sm:$0xff] }
 0x5f9   : > { %7963 = vmatpush.bf16.msra.mxu0 %v11281_v23  ;;  %v11485_v13 = vor.u32 %v12309_v58, %v11484_v60  ;;  %v11476_v23 = vld [vmem:[%s17224_s5 + $0x1e0] sm:$0xf] }
 0x5fa   : > { %v7305_v44 = vadd.f32 %v7304_v26, %v7291_v24  ;;  %v7318_v63 = vpop.f32.mrf.mxu2 }
 0x5fb   : > { %7947 = vmatpush.bf16.msrb.mxu3 %v11485_v13 }
 0x5fc   : > { %7982 = vmatpush.bf16.msra.mxu1 %v11305_v7  ;;  %7992 = vmatpush.bf16.msra.mxu2 %v11401_v49  ;;  %v7319_v15 = vadd.f32 %v7318_v63, %v7305_v44  ;;  %v12303_v7 = vld [vmem:[%s17224_s5 + $0x1c4] sm:$0xf0]  ;;  %v12301_v49 = vld [vmem:[%s17224_s5 + $0x1b4] sm:$0xf0]  ;;  %v7358_v53 = vpop.f32.mrf.mxu1 }
 0x5fd   : > { %7964 = vmatpush.bf16.msra.mxu0 %v11273_v2  ;;  %v11461_v6 = vor.u32 %v12303_v7, %v11460_v9  ;;  %v11453_v2 = vor.u32 %v12301_v49, %v11452_v22  ;;  %v11438_v9 = vld [vmem:[%s17224_s5 + $0x198] sm:$0xf0] }
 0x5fe   : > { %v7509_v41 = vmax.f32 %v7319_v15, 0.0 }
 0x5ff   : > { %7983 = vmatmul.bf16.vlgmr.msra.gmra.mxu1 %v16811_v30  ;;  %v11374_v30 = vld [vmem:[%s17224_s5 + $0x118] sm:$0xf0] }
 0x600   : > { %7993 = vmatpush.bf16.msra.mxu2 %v11393_v34  ;;  %v11377_v57 = vor.u32 %v12280_v1, %v11374_v30  ;;  %v7513_v29 = vpack.c.bf16 %v7509_v41, %v7505_v0  ;;  %v12306_v1 = vld [vmem:[%s17224_s5 + $0x1e4] sm:$0xf]  ;;  %v11478_v30 = vld [vmem:[%s17224_s5 + $0x1e8] sm:$0xf0] }
 0x601   : > { %7965 = vmatpush.bf16.msra.mxu0 %v11265_v11  ;;  %v11437_v11 = vor.u32 %v12297_v16, %v11436_v36  ;;  %v11481_v10 = vor.u32 %v12306_v1, %v11478_v30 }
 0x602   : > { %7941 = vmatmul.bf16.vlgmr.msrb.gmra.mxu2 %v7513_v29 }
 0x604   : > { %7994 = vmatpush.bf16.msra.mxu2 %v11385_v59  ;;  %v7330_v40 = vpop.f32.mrf.mxu3  ;;  %v7360_v38 = vpop.f32.mrf.mxu1  ;;  %v4690_v59 = vperm.slane %v16445_v17, 3  ;;  %v12304_v17 = vld [vmem:[%s17224_s5 + $0x1d4] sm:$0xf] }
 0x605   : > { %7966 = vmatpush.bf16.msra.mxu0 %v11257_v46 }
 0x606   : > { %v7331_v45 = vadd.f32 %v7330_v40, %v4690_v59  ;;  %v12296_v40 = vld [vmem:[%s17224_s5 + $0x194] sm:$0xf] }
 0x608   : > { %7995 = vmatpush.bf16.msra.mxu2 %v11377_v57 }
 0x609   : > { %7967 = vmatpush.bf16.msra.mxu0 %v11249_v47  ;;  %v11473_v47 = vor.u32 %v12304_v17, %v11470_v20  ;;  %v8051_v17 = vld [vmem:[%s17226_s7 + $0xf0] sm:$0xff]  ;;  %v8033_v20 = vld [vmem:[%s17226_s7 + $0x60] sm:$0xff] }
 0x60c   : > { %7996 = vmatpush.bf16.msra.mxu2 %v11369_v12  ;;  %v7332_v35 = vpop.f32.mrf.mxu3  ;;  %v12300_v12 = vld [vmem:[%s17224_s5 + $0x1b4] sm:$0xf] }
 0x60d   : > { %7968 = vmatpush.bf16.msra.mxu0 %v11241_v50  ;;  %v7333_v51 = vadd.f32 %v7332_v35, %v4690_v59  ;;  %v11454_v50 = vld [vmem:[%s17224_s5 + $0x1b8] sm:$0xf0]  ;;  %v11430_v35 = vld [vmem:[%s17224_s5 + $0x188] sm:$0xf0] }
 0x60e   : > { %v11457_v0 = vor.u32 %v12300_v12, %v11454_v50  ;;  %v8023_v12 = vld [vmem:[%s17226_s7 + $0x10] sm:$0xff] }
 0x60f   : > { %v7344_v27 = vpop.f32.mrf.mxu0  ;;  %v8047_v50 = vld [vmem:[%s17226_s7 + $0xd0] sm:$0xff] }
 0x610   : > { %7969 = vmatmul.bf16.vlgmr.msra.gmra.mxu0 %v16018_v32  ;;  %v11477_v32 = vor.u32 %v12307_v55, %v11476_v23  ;;  %v7345_v56 = vadd.f32 %v7344_v27, %v7331_v45  ;;  %v12298_v23 = vld [vmem:[%s17224_s5 + $0x1a4] sm:$0xf]  ;;  %v11446_v55 = vld [vmem:[%s17224_s5 + $0x1a8] sm:$0xf0]  ;;  %v8035_v45 = vld [vmem:[%s17226_s7 + $0x70] sm:$0xff] }
 0x611   : > { %v11449_v4 = vor.u32 %v12298_v23, %v11446_v55  ;;  %v8041_v23 = vld [vmem:[%s17226_s7 + $0xa0] sm:$0xff]  ;;  %v8040_v55 = vld [vmem:[%s17226_s7 + $0x98] sm:$0xff] }
 0x612   : > { %7997 = vmatmul.bf16.vlgmr.msra.gmra.mxu2 %v7513_v29  ;;  %7948 = vmatpush.bf16.msrb.mxu3 %v11477_v32  ;;  %v7372_v33 = vpop.f32.mrf.mxu2  ;;  %v7359_v24 = vadd.f32 %v7358_v53, %v7345_v56  ;;  %v12294_v53 = vld [vmem:[%s17224_s5 + $0x184] sm:$0xf]  ;;  %v8052_v56 = vld [vmem:[%s17226_s7 + $0xf8] sm:$0xff] }
 0x613   : > { %v11433_v25 = vor.u32 %v12294_v53, %v11430_v35  ;;  %8080 = vmatpush.msrb.mxu1 %v8052_v56 }
 0x614   : > { %v7373_v63 = vadd.f32 %v7372_v33, %v7359_v24  ;;  %v8030_v24 = vld [vmem:[%s17226_s7 + $0x48] sm:$0xff] }
 0x615   : > { %8081 = vmatpush.msrb.mxu1 %v8051_v17 }
 0x616   : > { %7949 = vmatpush.bf16.msrb.mxu3 %v11469_v14 }
 0x617   : > { %v7346_v34 = vpop.f32.mrf.mxu0 }
 0x618   : > { %v7347_v52 = vadd.f32 %v7346_v34, %v7333_v51  ;;  %v8034_v51 = vld [vmem:[%s17226_s7 + $0x68] sm:$0xff] }
 0x61a   : > { %7950 = vmatpush.bf16.msrb.mxu3 %v11461_v6  ;;  %v7374_v48 = vpop.f32.mrf.mxu2  ;;  %v7361_v44 = vadd.f32 %v7360_v38, %v7347_v52  ;;  %v11441_v6 = vor.u32 %v12296_v40, %v11438_v9  ;;  %v8031_v52 = vld [vmem:[%s17226_s7 + $0x50] sm:$0xff]  ;;  %v8037_v40 = vld [vmem:[%s17226_s7 + $0x80] sm:$0xff] }
 0x61c   : > { %v7414_v57 = vpop.f32.mrf.mxu1  ;;  %v7375_v41 = vadd.f32 %v7374_v48, %v7361_v44  ;;  %v8025_v44 = vld [vmem:[%s17226_s7 + $0x20] sm:$0xff] }
 0x61e   : > { %7951 = vmatpush.bf16.msrb.mxu3 %v11453_v2 }
 0x622   : > { %7952 = vmatpush.bf16.msrb.mxu3 %v11445_v37 }
 0x624   : > { %v7386_v61 = vpop.f32.mrf.mxu3  ;;  %v7416_v60 = vpop.f32.mrf.mxu1 }
 0x625   : > { %v7387_v29 = vadd.f32 %v7386_v61, %v7373_v63  ;;  %v8024_v63 = vld [vmem:[%s17226_s7 + $0x18] sm:$0xff] }
 0x626   : > { %7953 = vmatpush.bf16.msrb.mxu3 %v11437_v11 }
 0x62a   : > { %7954 = vmatpush.bf16.msrb.mxu3 %v11429_v3 }
 0x62c   : > { %v7388_v8 = vpop.f32.mrf.mxu3 }
 0x62d   : > { %v7389_v58 = vadd.f32 %v7388_v8, %v7375_v41  ;;  %v8032_v8 = vld [vmem:[%s17226_s7 + $0x58] sm:$0xff]  ;;  %v8021_v41 = vld [vmem:[%s17226_s7] sm:$0xff] }
 0x62e   : > { %8003 = vmatpush.bf16.msra.mxu3 %v11489_v62 }
 0x62f   : > { %v7400_v46 = vpop.f32.mrf.mxu0 }
 0x630   : > { %v7401_v13 = vadd.f32 %v7400_v46, %v7387_v29  ;;  %v8045_v29 = vld [vmem:[%s17226_s7 + $0xc0] sm:$0xff] }
 0x632   : > { %8004 = vmatpush.bf16.msra.mxu3 %v11481_v10  ;;  %v7428_v18 = vpop.f32.mrf.mxu2  ;;  %v7415_v7 = vadd.f32 %v7414_v57, %v7401_v13  ;;  %v8036_v10 = vld [vmem:[%s17226_s7 + $0x78] sm:$0xff]  ;;  %v8050_v57 = vld [vmem:[%s17226_s7 + $0xe8] sm:$0xff] }
 0x633   : > { %8057 = vmatpush.msrb.mxu0 %v8036_v10  ;;  %12310 = vmatpush.msrb.mxu2 %v8036_v10  ;;  %v8042_v13 = vld [vmem:[%s17226_s7 + $0xa8] sm:$0xff] }
 0x634   : > { %v7429_v2 = vadd.f32 %v7428_v18, %v7415_v7  ;;  %8082 = vmatpush.msrb.mxu1 %v8050_v57  ;;  %v8048_v18 = vld [vmem:[%s17226_s7 + $0xd8] sm:$0xff] }
 0x635   : > { %8058 = vmatpush.msrb.mxu0 %v8035_v45  ;;  %12311 = vmatpush.msrb.mxu2 %v8035_v45 }
 0x636   : > { %8005 = vmatpush.bf16.msra.mxu3 %v11473_v47  ;;  %v8049_v47 = vld [vmem:[%s17226_s7 + $0xe0] sm:$0xff] }
 0x637   : > { %v7402_v26 = vpop.f32.mrf.mxu0  ;;  %8059 = vmatpush.msrb.mxu0 %v8034_v51  ;;  %12312 = vmatpush.msrb.mxu2 %v8034_v51 }
 0x638   : > { %v7403_v14 = vadd.f32 %v7402_v26, %v7389_v58  ;;  %8083 = vmatpush.msrb.mxu1 %v8049_v47  ;;  %v8027_v26 = vld [vmem:[%s17226_s7 + $0x30] sm:$0xff] }
 0x639   : > { %8060 = vmatpush.msrb.mxu0 %v8033_v20  ;;  %12313 = vmatpush.msrb.mxu2 %v8033_v20  ;;  %v8043_v58 = vld [vmem:[%s17226_s7 + $0xb0] sm:$0xff] }
 0x63a   : > { %8006 = vmatpush.bf16.msra.mxu3 %v11465_v31  ;;  %v7430_v32 = vpop.f32.mrf.mxu2  ;;  %v7417_v27 = vadd.f32 %v7416_v60, %v7403_v14  ;;  %8084 = vmatpush.msrb.mxu1 %v8048_v18  ;;  %v8026_v31 = vld [vmem:[%s17226_s7 + $0x28] sm:$0xff]  ;;  %v8044_v60 = vld [vmem:[%s17226_s7 + $0xb8] sm:$0xff] }
 0x63b   : > { %8061 = vmatpush.msrb.mxu0 %v8032_v8  ;;  %12314 = vmatpush.msrb.mxu2 %v8032_v8  ;;  %v12369_v8 = vld [vmem:[%s17227_s8] ss:$0 sm:$0xff] }
 0x63c   : > { %v7470_v22 = vpop.f32.mrf.mxu1  ;;  %v7431_v37 = vadd.f32 %v7430_v32, %v7417_v27  ;;  %8085 = vmatpush.msrb.mxu1 %v8047_v50  ;;  %v8039_v32 = vld [vmem:[%s17226_s7 + $0x90] sm:$0xff] }
 0x63d   : > { %8062 = vmatpush.msrb.mxu0 %v8031_v52  ;;  %12315 = vmatpush.msrb.mxu2 %v8031_v52 }
 0x63e   : > { %8007 = vmatpush.bf16.msra.mxu3 %v11457_v0  ;;  %v8046_v0 = vld [vmem:[%s17226_s7 + $0xc8] sm:$0xff] }
 0x63f   : > { %8063 = vmatpush.msrb.mxu0 %v8030_v24  ;;  %12316 = vmatpush.msrb.mxu2 %v8030_v24 }
 0x640   : > { %8086 = vmatpush.msrb.mxu1 %v8046_v0 }
 0x641   : > { %8064 = vmatpush.msrb.mxu0 %v8029_v39  ;;  %12317 = vmatpush.msrb.mxu2 %v8029_v39 }
 0x642   : > { %8008 = vmatpush.bf16.msra.mxu3 %v11449_v4  ;;  %8087 = vmatpush.msrb.mxu1 %v8045_v29  ;;  %v7579_v4 = vld [vmem:[%s17225_s6] sm:$0x3] }
 0x643   : > { %8065 = vmatpush.msrb.mxu0 %v8028_v21  ;;  %12318 = vmatpush.msrb.mxu2 %v8028_v21  ;;  %v7581_v9 = vperm.slane %v7579_v4, 0 }
 0x644   : > { %v7442_v15 = vpop.f32.mrf.mxu3  ;;  %v7472_v28 = vpop.f32.mrf.mxu1  ;;  %8088 = vmatpush.msrb.mxu1 %v8044_v60 }
 0x645   : > { %v7443_v33 = vadd.f32 %v7442_v15, %v7429_v2  ;;  %8066 = vmatpush.msrb.mxu0 %v8027_v26  ;;  %12319 = vmatpush.msrb.mxu2 %v8027_v26  ;;  %v8022_v15 = vld [vmem:[%s17226_s7 + $0x8] sm:$0xff] }
 0x646   : > { %8009 = vmatpush.bf16.msra.mxu3 %v11441_v6  ;;  %8089 = vmatpush.msrb.mxu1 %v8043_v58 }
 0x647   : > { %8067 = vmatpush.msrb.mxu0 %v8026_v31  ;;  %12320 = vmatpush.msrb.mxu2 %v8026_v31 }
 0x648   : > { %8090 = vmatpush.msrb.mxu1 %v8042_v13 }
 0x649   : > { %8068 = vmatpush.msrb.mxu0 %v8025_v44  ;;  %12321 = vmatpush.msrb.mxu2 %v8025_v44 }
 0x64a   : > { %8010 = vmatpush.bf16.msra.mxu3 %v11433_v25  ;;  %8091 = vmatpush.msrb.mxu1 %v8041_v23 }
 0x64b   : > { %8069 = vmatpush.msrb.mxu0 %v8024_v63  ;;  %12322 = vmatpush.msrb.mxu2 %v8024_v63 }
 0x64c   : > { %v7444_v49 = vpop.f32.mrf.mxu3  ;;  %8092 = vmatpush.msrb.mxu1 %v8040_v55 }
 0x64d   : > { %v7445_v36 = vadd.f32 %v7444_v49, %v7431_v37  ;;  %8070 = vmatpush.msrb.mxu0 %v8023_v12  ;;  %12323 = vmatpush.msrb.mxu2 %v8023_v12 }
 0x64e   : > { %8093 = vmatpush.msrb.mxu1 %v8039_v32 }
 0x64f   : > { %v7456_v5 = vpop.f32.mrf.mxu0  ;;  %8071 = vmatpush.msrb.mxu0 %v8022_v15  ;;  %12324 = vmatpush.msrb.mxu2 %v8022_v15 }
 0x650   : > { %v7457_v16 = vadd.f32 %v7456_v5, %v7443_v33  ;;  %v8038_v5 = vld [vmem:[%s17226_s7 + $0x88] sm:$0xff] }
 0x651   : > { %8072 = vmatpush.msrb.mxu0 %v8021_v41  ;;  %12325 = vmatpush.msrb.mxu2 %v8021_v41 }
 0x652   : > { %v7484_v54 = vpop.f32.mrf.mxu2  ;;  %v7471_v42 = vadd.f32 %v7470_v22, %v7457_v16  ;;  %8094 = vmatpush.msrb.mxu1 %v8038_v5 }
 0x654   : > { %v7485_v19 = vadd.f32 %v7484_v54, %v7471_v42  ;;  %8095 = vmatpush.msrb.mxu1 %v8037_v40 }
 0x657   : > { %v7458_v34 = vpop.f32.mrf.mxu0 }
 0x658   : > { %v7459_v11 = vadd.f32 %v7458_v34, %v7445_v36  ;;  %v7582_v36 = vperm.slane %v7579_v4, 1 }
 0x65a   : > { %v7473_v3 = vadd.f32 %v7472_v28, %v7459_v11  ;;  %v7486_v43 = vpop.f32.mrf.mxu2 }
 0x65c   : > { %v7487_v38 = vadd.f32 %v7486_v43, %v7473_v3  ;;  %v7928_v6 = vpop.f32.mrf.mxu1 }
 0x664   : > { %v7498_v61 = vpop.f32.mrf.mxu3  ;;  %v7930_v37 = vpop.f32.mrf.mxu1 }
 0x665   : > { %v7499_v62 = vadd.f32 %v7498_v61, %v7485_v19 }
 0x667   : > { %v7506_v46 = vmax.f32 %v7499_v62, 0.0 }
 0x66c   : > { %v7500_v59 = vpop.f32.mrf.mxu3 }
 0x66d   : > { %v7501_v48 = vadd.f32 %v7500_v59, %v7487_v38 }
 0x66f   : > { %v7510_v1 = vmax.f32 %v7501_v48, 0.0  ;;  %v7914_v14 = vpop.f32.mrf.mxu0 }
 0x670   : > { %v7915_v27 = vadd.f32 %v7914_v14, %v7581_v9 }
 0x671   : > { %v7514_v30 = vpack.c.bf16 %v7510_v1, %v7506_v46 }
 0x672   : > { %v7929_v49 = vadd.f32 %v7928_v6, %v7915_v27 }
 0x673   : > { %7955 = vmatmul.bf16.vlgmr.msrb.gmra.mxu3 %v7514_v30 }
 0x674   : > { %12326 = vmatpush.msrb.mxu3 %v8052_v56 }
 0x676   : > { %12327 = vmatpush.msrb.mxu3 %v8051_v17 }
 0x677   : > { %v7916_v22 = vpop.f32.mrf.mxu0 }
 0x678   : > { %12328 = vmatpush.msrb.mxu3 %v8050_v57  ;;  %v7917_v54 = vadd.f32 %v7916_v22, %v7581_v9 }
 0x67a   : > { %12329 = vmatpush.msrb.mxu3 %v8049_v47  ;;  %v7931_v16 = vadd.f32 %v7930_v37, %v7917_v54 }
 0x67c   : > { %12330 = vmatpush.msrb.mxu3 %v8048_v18  ;;  %v7984_v3 = vpop.f32.mrf.mxu1 }
 0x67e   : > { %12331 = vmatpush.msrb.mxu3 %v8047_v50 }
 0x680   : > { %12332 = vmatpush.msrb.mxu3 %v8046_v0 }
 0x682   : > { %12333 = vmatpush.msrb.mxu3 %v8045_v29 }
 0x683   : > { %8011 = vmatmul.bf16.vlgmr.msra.gmra.mxu3 %v7514_v30 }
 0x684   : > { %12334 = vmatpush.msrb.mxu3 %v8044_v60  ;;  %v7986_v10 = vpop.f32.mrf.mxu1 }
 0x685   : > { %v7942_v7 = vpop.f32.mrf.mxu2 }
 0x686   : > { %12335 = vmatpush.msrb.mxu3 %v8043_v58  ;;  %v7943_v2 = vadd.f32 %v7942_v7, %v7929_v49 }
 0x688   : > { %12336 = vmatpush.msrb.mxu3 %v8042_v13 }
 0x68a   : > { %12337 = vmatpush.msrb.mxu3 %v8041_v23 }
 0x68c   : > { %12338 = vmatpush.msrb.mxu3 %v8040_v55 }
 0x68d   : > { %v7944_v53 = vpop.f32.mrf.mxu2  ;;  %v7970_v34 = vpop.f32.mrf.mxu0 }
 0x68e   : > { %12339 = vmatpush.msrb.mxu3 %v8039_v32  ;;  %v7945_v11 = vadd.f32 %v7944_v53, %v7931_v16  ;;  %v7971_v42 = vadd.f32 %v7970_v34, %v7582_v36 }
 0x690   : > { %12340 = vmatpush.msrb.mxu3 %v8038_v5  ;;  %v7985_v38 = vadd.f32 %v7984_v3, %v7971_v42 }
 0x692   : > { %12341 = vmatpush.msrb.mxu3 %v8037_v40 }
 0x695   : > { %v7998_v43 = vpop.f32.mrf.mxu2  ;;  %v7972_v62 = vpop.f32.mrf.mxu0 }
 0x696   : > { %v7999_v59 = vadd.f32 %v7998_v43, %v7985_v38  ;;  %v7973_v46 = vadd.f32 %v7972_v62, %v7582_v36 }
 0x698   : > { %v7987_v51 = vadd.f32 %v7986_v10, %v7973_v46 }
 0x69d   : > { %v8000_v45 = vpop.f32.mrf.mxu2 }
 0x69e   : > { %v8001_v56 = vadd.f32 %v8000_v45, %v7987_v51 }
 0x6f6   : > { %v7956_v35 = vpop.f32.mrf.mxu3 }
 0x6f7   : > { %v7957_v25 = vadd.f32 %v7956_v35, %v7943_v2 }
 0x6f9   : > { %v8017_v33 = vmax.f32 %v7957_v25, 0.0 }
 0x6fb   : > { %8073 = vmatmul.f32.vlgmr.msrb.gmra.mxu0 %v8017_v33 }
 0x6fe   : > { %v7958_v61 = vpop.f32.mrf.mxu3 }
 0x6ff   : > { %v7959_v28 = vadd.f32 %v7958_v61, %v7945_v11 }
 0x701   : > { %v8019_v19 = vmax.f32 %v7959_v28, 0.0 }
 0x703   : > { %8076 = vmatmul.f32.vlgmr.msrb.gmra.mxu2 %v8019_v19 }
 0x706   : > { %v8012_v48 = vpop.f32.mrf.mxu3 }
 0x707   : > { %v8013_v1 = vadd.f32 %v8012_v48, %v7999_v59 }
 0x709   : > { %v8018_v30 = vmax.f32 %v8013_v1, 0.0 }
 0x70b   : > { %8096 = vmatmul.f32.vlgmr.msrb.gmra.mxu1 %v8018_v30 }
 0x70e   : > { %v8014_v17 = vpop.f32.mrf.mxu3 }
 0x70f   : > { %v8015_v20 = vadd.f32 %v8014_v17, %v8001_v56 }
 0x711   : > { %v8020_v57 = vmax.f32 %v8015_v20, 0.0 }
 0x713   : > { %8099 = vmatmul.f32.vlgmr.msrb.gmra.mxu3 %v8020_v57 }
 0x778   : > { %v8074_v47 = vpop.f32.mrf.mxu0 }
 0x779   : > { %v8075_v52 = vadd.f32 %v12369_v8, %v8074_v47 }
 0x786   : > { %v8077_v21 = vpop.f32.mrf.mxu2 }
 0x787   : > { %v8078_v26 = vadd.f32 %v12369_v8, %v8077_v21 }
 0x788   : > { %v8097_v18 = vpop.f32.mrf.mxu1 }
 0x789   : > { %v8098_v24 = vadd.f32 %v8097_v18, %v8075_v52 }
 0x78b   : > { %v8104_v39 = vsel %vm8103_vm0, %v8098_v24, -inf }
 0x78c   : > { %8105 = vmax.xlane.f32.xlu0 %v8104_v39 }
 0x796   : > { %v8100_v31 = vpop.f32.mrf.mxu3 }
 0x797   : > { %v8101_v44 = vadd.f32 %v8100_v31, %v8078_v26 }
 0x799   : > { %v8107_v63 = vsel %vm8103_vm0, %v8101_v44, -inf }
 0x79a   : > { %8108 = vmax.xlane.f32.xlu0 %v8107_v63 }
 0x7ff   : > { %v8106_v12 = vpop.xlane.xlu0 %8105 }
 0x800   : > { %v8110_v50 = vsub.f32 %v8098_v24, %v8106_v12 }
 0x802   : > { %v8112_v15 = vmul.f32 1.442695, %v8110_v50 }
 0x804   : > { %12370 = vpow2.f32 %v8112_v15 }
 0x80a   : > { %v12371_v0 = vpop.eup %12370 }
 0x80b   : > { %v8116_v41 = vsel %vm8103_vm0, %v12371_v0, 0.0 }
 0x80c   : > { %8117 = vadd.xlane.f32.xlu1 %v8116_v41 }
 0x80d   : > { %v8109_v29 = vpop.xlane.xlu0 %8108 }
 0x80e   : > { %v8111_v60 = vsub.f32 %v8101_v44, %v8109_v29 }
 0x810   : > { %v8114_v58 = vmul.f32 1.442695, %v8111_v60 }
 0x812   : > { %12372 = vpow2.f32 %v8114_v58 }
 0x818   : > { %v12373_v13 = vpop.eup %12372 }
 0x819   : > { %v8119_v23 = vsel %vm8103_vm0, %v12373_v13, 0.0 }
 0x81a   : > { %8120 = vadd.xlane.f32.xlu1 %v8119_v23 }
 0x87f   : > { %v8118_v55 = vpop.xlane.xlu1 %8117 }
 0x880   : > { %12374 = vrcp.f32 %v8118_v55  ;;  %v8133_v14 = vand.u32 2147483648, %v8118_v55  ;;  %v8131_v9 = vand.u32 2147483647, %v8118_v55  ;;  %vm8127_vm2 = vweird.f32 %v8118_v55 }
 0x882   : > { %v8134_v27 = vor.u32 1.1754944e-38, %v8133_v14  ;;  %vm8132_vm4 = vcmp.eq.f32.partialorder %v8131_v9, 8.507059e+37 }
 0x886   : > { %v12375_v32 = vpop.eup %12374 }
 0x887   : > { %v8123_v5 = vmul.f32 %v12375_v32, %v8118_v55  ;;  %vm8128_vm1 = vweird.f32 %v12375_v32 }
 0x888   : > { %vm8129_vm3 = vmor %vm8127_vm2, %vm8128_vm1 }
 0x889   : > { %v8124_v4 = vsub.f32 1.0, %v8123_v5 }
 0x88b   : > { %v8125_v40 = vmul.f32 %v12375_v32, %v8124_v4 }
 0x88d   : > { %v8126_v7 = vadd.f32 %v12375_v32, %v8125_v40  ;;  %v8121_v6 = vpop.xlane.xlu1 %8120 }
 0x88e   : > { %12376 = vrcp.f32 %v8121_v6  ;;  %v8148_v25 = vand.u32 2147483648, %v8121_v6  ;;  %v8146_v33 = vand.u32 2147483647, %v8121_v6  ;;  %vm8142_vm6 = vweird.f32 %v8121_v6 }
 0x88f   : > { %v8130_v22 = vsel %vm8129_vm3, %v12375_v32, %v8126_v7 }
 0x890   : > { %v8135_v49 = vsel %vm8132_vm4, %v8134_v27, %v8130_v22  ;;  %v8149_v36 = vor.u32 1.1754944e-38, %v8148_v25  ;;  %vm8147_vm8 = vcmp.eq.f32.partialorder %v8146_v33, 8.507059e+37 }
 0x891   : > { %v8136_v2 = vmul.f32 %v12371_v0, %v8135_v49 }
 0x893   : > { %8152 = vst.msk [vmem:[%s768_s19] sm:$0xff] %vm8103_vm0, %v8136_v2 }
 0x894   : > { %v12377_v53 = vpop.eup %12376 }
 0x895   : > { %v8138_v35 = vmul.f32 %v12377_v53, %v8121_v6  ;;  %vm8143_vm5 = vweird.f32 %v12377_v53 }
 0x896   : > { %vm8144_vm7 = vmor %vm8142_vm6, %vm8143_vm5 }
 0x897   : > { %v8139_v54 = vsub.f32 1.0, %v8138_v35 }
 0x899   : > { %v8140_v37 = vmul.f32 %v12377_v53, %v8139_v54 }
 0x89b   : > { %v8141_v34 = vadd.f32 %v12377_v53, %v8140_v37 }
 0x89d   : > { %v8145_v16 = vsel %vm8144_vm7, %v12377_v53, %v8141_v34 }
 0x89e   : > { %v8150_v11 = vsel %vm8147_vm8, %v8149_v36, %v8145_v16 }
 0x89f   : > { %v8151_v61 = vmul.f32 %v12373_v13, %v8150_v11 }
 0x8a1   : > { %8153 = vst.msk [vmem:[%s768_s19 + $0x8] sm:$0xff] %vm8103_vm0, %v8151_v61 }
 0x8a2 PF: > { %p16_p9 = scmp.ge.s32.totalorder %s12470_s13, 4   ;;  %s17229_s30 = smov %s12397_s10 }
 0x8a3   : > { %s17230_s10 = smov %s12479_s16  ;;  %s17231_s11 = smov %s12470_s13 }
 0x8a4   :  { %18 = sbr.rel (!%p16_p9) target bundleno = 2 (0x2), region = 114 }

</bundles_post_ra>
